<compile_context>
chip_gen: v7x
topology: tpu7x:2x2x1
jax: 0.10.0
libtpu: 0.0.40
codegen_flags: <defaults>
</compile_context>

<pallas_src>
import functools

import jax
import jax.numpy as jnp
from jax import lax
from jax.experimental import pallas as pl
from jax.experimental.pallas import tpu as pltpu

MATMUL_DTYPE = jnp.bfloat16   # MXU inputs & inter-stage activations; f32 accumulation.
IN_EPS = 1e-5                 # PyTorch InstanceNorm2d default eps.


def _round_up(x, m):
    return (x + m - 1) // m * m


def _vmem_limit_bytes():
    """Per-generation VMEM budget: ~48 MiB on v7x (64 MiB/TC), ~96 MiB on v5e/v6e."""
    try:
        cap = int(pltpu.get_tpu_info().vmem_capacity_bytes)
    except Exception:
        cap = 64 * 1024 * 1024
    return int(min(int(cap * 0.75), 100 * 1024 * 1024))


# ----------------------------- Pallas kernels ------------------------------

def _up_conv_in_relu_kernel(x_ref, w_ref, g_ref, b_ref, m_ref, o_ref,
                            *, H, W, Wp, eps):
    """Fused [Upsample(x2 nearest) -> Conv3x3(pad=1) -> InstanceNorm(affine) -> ReLU].

    The upsample+conv is computed as 4 parity sub-convolutions over the
    original resolution; each of the 4 taps of each parity is one shifted-
    window matmul over the flattened zero-padded input slab (no im2col).

    x_ref: (1, C_in, Lpad)    zero-padded (pad=1) input, row-major flat, bf16
    w_ref: (16, C_out, C_in)  effective 2x2 weights, index = 4*(2*py+px)+2*a+b, bf16
    g_ref, b_ref: (C_out, 1)  InstanceNorm affine params, f32
    m_ref: (1, L)             valid-column mask (col % Wp < W), f32
    o_ref: (1, 4, C_out, L)   per-parity output planes (row stride Wp), bf16
    """
    L = H * Wp
    c_out = w_ref.shape[1]
    mask = m_ref[...]                      # (1, L)
    n_valid = 4.0 * H * W                  # pixels of the (2H, 2W) upsampled map

    # TODO(synk): once the spatial axis is tiled, concatenate pairs of taps
    # along the contraction (depth 2*C_in = 256 at nf=128) for better MXU depth
    # fill on v6e/v7x, and try pl.Buffered(3) on the input spec if DMA is exposed.
    accs = []
    for py in range(2):
        for px in range(2):
            acc = jnp.zeros((c_out, L), jnp.float32)
            for a in range(2):
                for b in range(2):
                    start = (py + a) * Wp + (px + b)
                    slab = x_ref[0, :, start:start + L]              # (C_in, L)
                    acc = acc + jnp.dot(w_ref[4 * (2 * py + px) + 2 * a + b],
                                        slab,
                                        preferred_element_type=jnp.float32)
            accs.append(acc)

    # Two-pass InstanceNorm over the whole (2H, 2W) map (all 4 parity planes).
    mean = sum(jnp.sum(a * mask, axis=1, keepdims=True) for a in accs) / n_valid
    cent = [(a - mean) * mask for a in accs]
    var = sum(jnp.sum(c * c, axis=1, keepdims=True) for c in cent) / n_valid
    scale = lax.rsqrt(var + eps) * g_ref[...]
    shift = b_ref[...]
    for p, c in enumerate(cent):
        o_ref[0, p] = jnp.maximum(c * scale + shift, 0.0).astype(o_ref.dtype)


def _reflect_conv_bias_kernel(x_ref, w_ref, bias_ref, o_ref, *, K, Wp, L):
    """Final conv: K*K shifted-window matmuls over the reflection-padded slab + bias.

    x_ref: (1, C_in, Lpad)     reflection-padded input, row-major flat, bf16
    w_ref: (K*K, C_out, C_in)  per-tap weights (C_out padded to 8), bf16
    bias_ref: (C_out, 1)       f32
    o_ref: (1, C_out, L)       f32, row stride Wp (garbage cols sliced wrapper-side)
    """
    c_out = w_ref.shape[1]
    acc = jnp.zeros((c_out, L), jnp.float32)
    for kh in range(K):
        for kw in range(K):
            start = kh * Wp + kw
            slab = x_ref[0, :, start:start + L]                      # (C_in, L)
            acc = acc + jnp.dot(w_ref[kh * K + kw], slab,
                                preferred_element_type=jnp.float32)
    o_ref[0] = (acc + bias_ref[...]).astype(o_ref.dtype)


# ----------------------- wrapper-side layout plumbing -----------------------

def _flatten_padded(hp):
    """(B, C, Hp, Wp) -> (B, C, Lpad): row-major flatten plus >=Wp zero columns of
    slack so every tap slab `start + H*Wp` stays in bounds; Lpad lane-rounded."""
    B, C, Hp, Wp = hp.shape
    flat = hp.reshape(B, C, Hp * Wp)
    lpad = _round_up(Hp * Wp + Wp, 128)
    return jnp.pad(flat, ((0, 0), (0, 0), (0, lpad - Hp * Wp)))


def _parity_weights(w):
    """(C_out, C_in, 3, 3) OIHW -> (16, C_out, C_in) effective 2x2 weights for the
    4 output parities of [nearest-x2 upsample -> conv3x3(pad=1)].

    For output row y = 2Y+py the 3 conv taps hit original rows {Y-1, Y} (py=0,
    weights [w0, w1+w2]) or {Y, Y+1} (py=1, weights [w0+w1, w2]); same for
    columns.  Index order matches the kernel: 4*(2*py+px) + 2*a + b.
    """
    v = [(w[:, :, 0, :], w[:, :, 1, :] + w[:, :, 2, :]),          # py = 0: a = 0, 1
         (w[:, :, 0, :] + w[:, :, 1, :], w[:, :, 2, :])]          # py = 1
    planes = []
    for py in range(2):
        for px in range(2):
            taps = []
            for a in range(2):
                vv = v[py][a]                                     # (C_out, C_in, 3)
                if px == 0:
                    hh = (vv[:, :, 0], vv[:, :, 1] + vv[:, :, 2])
                else:
                    hh = (vv[:, :, 0] + vv[:, :, 1], vv[:, :, 2])
                taps.extend(hh)                                   # order b = 0, 1
            planes.append(jnp.stack(taps, axis=0))                # (4, C_out, C_in)
    return jnp.stack(planes, axis=0).reshape(16, w.shape[0], w.shape[1])


def _up_conv_in_relu(h, w, gamma, beta, *, eps):
    """One fused [Upsample x2 -> Conv3x3 -> InstanceNorm -> ReLU] stage."""
    B, C_in, H, W = h.shape
    C_out = w.shape[0]
    Wp = W + 2
    L = H * Wp

    # TODO(synk): at production sizes (nf=128, large H*W) tile the flattened
    # spatial axis as an extra "arbitrary" grid dimension with a streaming
    # two-pass InstanceNorm (per-channel sum / sum-sq VMEM scratch, pl.when
    # init/finalize) and halo'd slab loads; size N-tiles to ~48 MiB VMEM on v7x
    # and ~2x larger on v5e/v6e.  Full three-stage fusion (no inter-stage HBM
    # round trip) is the follow-on step.
    hp = jnp.pad(h.astype(MATMUL_DTYPE), ((0, 0), (0, 0), (1, 1), (1, 1)))
    x_flat = _flatten_padded(hp)
    Lpad = x_flat.shape[-1]

    w_eff = _parity_weights(w).astype(MATMUL_DTYPE)
    g2 = gamma.astype(jnp.float32).reshape(C_out, 1)
    b2 = beta.astype(jnp.float32).reshape(C_out, 1)
    mask = ((jnp.arange(L, dtype=jnp.int32) % Wp) < W).astype(jnp.float32)[None, :]

    kern = functools.partial(_up_conv_in_relu_kernel, H=H, W=W, Wp=Wp, eps=eps)
    grid_spec = pltpu.PrefetchScalarGridSpec(
        num_scalar_prefetch=0,
        grid=(B,),
        in_specs=[
            pl.BlockSpec((1, C_in, Lpad), lambda b: (b, 0, 0)),      # padded image
            pl.BlockSpec((16, C_out, C_in), lambda b: (0, 0, 0)),    # parity weights
            pl.BlockSpec((C_out, 1), lambda b: (0, 0)),              # gamma
            pl.BlockSpec((C_out, 1), lambda b: (0, 0)),              # beta
            pl.BlockSpec((1, L), lambda b: (0, 0)),                  # valid-col mask
        ],
        out_specs=pl.BlockSpec((1, 4, C_out, L), lambda b: (b, 0, 0, 0)),
    )
    flops = 2 * B * 16 * C_out * C_in * L
    bytes_accessed = ((x_flat.size + w_eff.size + B * 4 * C_out * L) * 2
                      + (mask.size + 2 * C_out) * 4)
    out = pl.pallas_call(
        kern,
        out_shape=jax.ShapeDtypeStruct((B, 4, C_out, L), MATMUL_DTYPE),
        grid_spec=grid_spec,
        compiler_params=pltpu.CompilerParams(
            dimension_semantics=("parallel",),
            vmem_limit_bytes=_vmem_limit_bytes(),
        ),
        cost_estimate=pl.CostEstimate(flops=flops, transcendentals=0,
                                      bytes_accessed=bytes_accessed),
    )(x_flat, w_eff, g2, b2, mask)

    # Interleave parity planes back to (B, C_out, 2H, 2W) (layout plumbing only).
    out = out.reshape(B, 2, 2, C_out, H, Wp)[:, :, :, :, :, :W]
    out = out.transpose(0, 3, 4, 1, 5, 2).reshape(B, C_out, 2 * H, 2 * W)
    return out


def _reflect_conv_bias(h, w, bias, *, c_out_pad=8):
    """ReflectionPad2d(3) -> Conv2d(C_in, nOut, 7, bias=True) stage."""
    B, C_in, H, W = h.shape
    nOut = w.shape[0]
    K, pad = 7, 3
    Wp = W + 2 * pad
    L = H * Wp

    hp = jnp.pad(h.astype(MATMUL_DTYPE), ((0, 0), (0, 0), (pad, pad), (pad, pad)),
                 mode="reflect")
    x_flat = _flatten_padded(hp)
    Lpad = x_flat.shape[-1]

    co = max(c_out_pad, nOut)                       # pad nOut -> full sublane tile
    w_p = jnp.pad(w, ((0, co - nOut), (0, 0), (0, 0), (0, 0)))
    w_taps = w_p.transpose(2, 3, 0, 1).reshape(K * K, co, C_in).astype(MATMUL_DTYPE)
    bias_p = jnp.pad(bias, (0, co - nOut)).astype(jnp.float32).reshape(co, 1)

    kern = functools.partial(_reflect_conv_bias_kernel, K=K, Wp=Wp, L=L)
    grid_spec = pltpu.PrefetchScalarGridSpec(
        num_scalar_prefetch=0,
        grid=(B,),
        in_specs=[
            pl.BlockSpec((1, C_in, Lpad), lambda b: (b, 0, 0)),
            pl.BlockSpec((K * K, co, C_in), lambda b: (0, 0, 0)),
            pl.BlockSpec((co, 1), lambda b: (0, 0)),
        ],
        out_specs=pl.BlockSpec((1, co, L), lambda b: (b, 0, 0)),
    )
    flops = 2 * B * K * K * co * C_in * L
    bytes_accessed = (x_flat.size + w_taps.size) * 2 + (B * co * L + co) * 4
    out = pl.pallas_call(
        kern,
        out_shape=jax.ShapeDtypeStruct((B, co, L), jnp.float32),
        grid_spec=grid_spec,
        compiler_params=pltpu.CompilerParams(
            dimension_semantics=("parallel",),
            vmem_limit_bytes=_vmem_limit_bytes(),
        ),
        cost_estimate=pl.CostEstimate(flops=flops, transcendentals=0,
                                      bytes_accessed=bytes_accessed),
    )(x_flat, w_taps, bias_p)

    return out.reshape(B, co, H, Wp)[:, :nOut, :, :W]


def upconv_forward(x, w1, g1, b1, w2, g2, b2, w3, bias3, *, eps=IN_EPS):
    """Forward pass of _upConv (spectralNorm=False).

    x: (B, nf, H, W) f32.  w1: (nf/2, nf, 3, 3), w2: (nf/4, nf/2, 3, 3),
    w3: (nOut, nf/4, 7, 7) in PyTorch OIHW layout.  g*/b*: InstanceNorm affine
    params.  bias3: (nOut,) final conv bias.  Returns (B, nOut, 4H, 4W) f32.
    """
    h = _up_conv_in_relu(x, w1, g1, b1, eps=eps)
    h = _up_conv_in_relu(h, w2, g2, b2, eps=eps)
    return _reflect_conv_bias(h, w3, bias3)


# ------------------------------ pure-JAX reference --------------------------

def _nearest_upsample2(x):
    B, C, H, W = x.shape
    x = jnp.broadcast_to(x[:, :, :, None, :, None], (B, C, H, 2, W, 2))
    return x.reshape(B, C, 2 * H, 2 * W)


def reference_upconv(x, w1, g1, b1, w2, g2, b2, w3, bias3, *, eps=IN_EPS):
    def conv(h, w, padding):
        return lax.conv_general_dilated(
            h, w, window_strides=(1, 1), padding=padding,
            dimension_numbers=("NCHW", "OIHW", "NCHW"))

    def inorm(h, g, b):
        mean = h.mean(axis=(2, 3), keepdims=True)
        var = h.var(axis=(2, 3), keepdims=True)
        hn = (h - mean) * lax.rsqrt(var + eps)
        return hn * g[None, :, None, None] + b[None, :, None, None]

    h = _nearest_upsample2(x)
    h = jax.nn.relu(inorm(conv(h, w1, [(1, 1), (1, 1)]), g1, b1))
    h = _nearest_upsample2(h)
    h = jax.nn.relu(inorm(conv(h, w2, [(1, 1), (1, 1)]), g2, b2))
    h = jnp.pad(h, ((0, 0), (0, 0), (3, 3), (3, 3)), mode="reflect")
    return conv(h, w3, "VALID") + bias3[None, :, None, None]


# ----------------------------------- main -----------------------------------

if __name__ == "__main__":
    B, nf, H, W = 2, 16, 8, 8          # small shapes; module default nf=128
    nOut = 3

    key = jax.random.PRNGKey(0)
    keys = jax.random.split(key, 9)
    x = jax.random.normal(keys[0], (B, nf, H, W), dtype=jnp.float32)

    def conv_w(k, co, ci, K):
        fan_in = ci * K * K
        return jax.random.normal(k, (co, ci, K, K), jnp.float32) * jnp.sqrt(2.0 / fan_in)

    w1 = conv_w(keys[1], nf // 2, nf, 3)
    w2 = conv_w(keys[2], nf // 4, nf // 2, 3)
    w3 = conv_w(keys[3], nOut, nf // 4, 7)
    g1 = 1.0 + 0.1 * jax.random.normal(keys[4], (nf // 2,), jnp.float32)
    b1 = 0.1 * jax.random.normal(keys[5], (nf // 2,), jnp.float32)
    g2 = 1.0 + 0.1 * jax.random.normal(keys[6], (nf // 4,), jnp.float32)
    b2 = 0.1 * jax.random.normal(keys[7], (nf // 4,), jnp.float32)
    bias3 = 0.1 * jax.random.normal(keys[8], (nOut,), jnp.float32)

    fwd = jax.jit(upconv_forward)
    out = jax.block_until_ready(fwd(x, w1, g1, b1, w2, g2, b2, w3, bias3))
    assert out.shape == (B, nOut, 4 * H, 4 * W), out.shape

    ref = reference_upconv(x, w1, g1, b1, w2, g2, b2, w3, bias3)
    max_err = float(jnp.max(jnp.abs(out - ref)))
    # bf16 MXU inputs + bf16 inter-stage activations (f32 accumulation / norm
    # math) vs a pure-f32 reference.
    assert jnp.allclose(out, ref, atol=1e-1, rtol=1e-1), f"max |err| = {max_err}"

    print("KERNEL_OK")
</pallas_src>

<mosaic_0001>
module attributes {stable_mosaic.version = 11 : i64} {
  func.func @_up_conv_in_relu_kernel(%arg0: i32, %arg1: memref<1x16x128xbf16, #tpu.memory_space<vmem>>, %arg2: memref<16x8x16xbf16, #tpu.memory_space<vmem>>, %arg3: memref<8x1xf32, #tpu.memory_space<vmem>>, %arg4: memref<8x1xf32, #tpu.memory_space<vmem>>, %arg5: memref<1x80xf32, #tpu.memory_space<vmem>>, %arg6: memref<1x4x8x80xbf16, #tpu.memory_space<vmem>>) attributes {dimension_semantics = [#tpu.dimension_semantics<parallel>], iteration_bounds = array<i64: 2>, scalar_prefetch = 0 : i64, scratch_operands = 0 : i64, tpu.core_type = #tpu.core_type<tc>, window_params = [{transform_indices = @transform_0, window_bounds = array<i64: 1, 16, 128>}, {pipeline_mode = #tpu.pipeline_mode<synchronous>, transform_indices = @transform_1, window_bounds = array<i64: 16, 8, 16>}, {pipeline_mode = #tpu.pipeline_mode<synchronous>, transform_indices = @transform_2, window_bounds = array<i64: 8, 1>}, {pipeline_mode = #tpu.pipeline_mode<synchronous>, transform_indices = @transform_3, window_bounds = array<i64: 8, 1>}, {pipeline_mode = #tpu.pipeline_mode<synchronous>, transform_indices = @transform_4, window_bounds = array<i64: 1, 80>}, {transform_indices = @transform_5, window_bounds = array<i64: 1, 4, 8, 80>}]} {
    %c0 = arith.constant 0 : index
    %c0_0 = arith.constant 0 : index
    %0 = vector.load %arg5[%c0, %c0_0] : memref<1x80xf32, #tpu.memory_space<vmem>>, vector<1x80xf32>
    %cst = arith.constant 0.000000e+00 : f32
    %1 = vector.broadcast %cst : f32 to vector<8x80xf32>
    %c0_1 = arith.constant 0 : index
    %c0_2 = arith.constant 0 : index
    %c0_3 = arith.constant 0 : index
    %2 = vector.load %arg1[%c0_1, %c0_2, %c0_3] : memref<1x16x128xbf16, #tpu.memory_space<vmem>>, vector<1x16x80xbf16>
    %3 = vector.shape_cast %2 : vector<1x16x80xbf16> to vector<16x80xbf16>
    %c0_4 = arith.constant 0 : index
    %c0_5 = arith.constant 0 : index
    %c0_6 = arith.constant 0 : index
    %4 = vector.load %arg2[%c0_4, %c0_5, %c0_6] : memref<16x8x16xbf16, #tpu.memory_space<vmem>>, vector<1x8x16xbf16>
    %5 = vector.shape_cast %4 : vector<1x8x16xbf16> to vector<8x16xbf16>
    %cst_7 = arith.constant dense<0.000000e+00> : vector<8x80xf32>
    %6 = tpu.matmul %5, %3, %cst_7 {dimension_numbers = #tpu.dot_dimension_numbers<[1], [0], [0], [1], [0, 0, 1, 1], [], []>} : vector<8x16xbf16>, vector<16x80xbf16>, vector<8x80xf32> -> vector<8x80xf32>
    %7 = arith.addf %1, %6 : vector<8x80xf32>
    %c0_8 = arith.constant 0 : index
    %c0_9 = arith.constant 0 : index
    %c1 = arith.constant 1 : index
    %8 = vector.load %arg1[%c0_8, %c0_9, %c1] : memref<1x16x128xbf16, #tpu.memory_space<vmem>>, vector<1x16x80xbf16>
    %9 = vector.shape_cast %8 : vector<1x16x80xbf16> to vector<16x80xbf16>
    %c1_10 = arith.constant 1 : index
    %c0_11 = arith.constant 0 : index
    %c0_12 = arith.constant 0 : index
    %10 = vector.load %arg2[%c1_10, %c0_11, %c0_12] : memref<16x8x16xbf16, #tpu.memory_space<vmem>>, vector<1x8x16xbf16>
    %11 = vector.shape_cast %10 : vector<1x8x16xbf16> to vector<8x16xbf16>
    %cst_13 = arith.constant dense<0.000000e+00> : vector<8x80xf32>
    %12 = tpu.matmul %11, %9, %cst_13 {dimension_numbers = #tpu.dot_dimension_numbers<[1], [0], [0], [1], [0, 0, 1, 1], [], []>} : vector<8x16xbf16>, vector<16x80xbf16>, vector<8x80xf32> -> vector<8x80xf32>
    %13 = arith.addf %7, %12 : vector<8x80xf32>
    %c0_14 = arith.constant 0 : index
    %c0_15 = arith.constant 0 : index
    %c10 = arith.constant 10 : index
    %14 = vector.load %arg1[%c0_14, %c0_15, %c10] : memref<1x16x128xbf16, #tpu.memory_space<vmem>>, vector<1x16x80xbf16>
    %15 = vector.shape_cast %14 : vector<1x16x80xbf16> to vector<16x80xbf16>
    %c2 = arith.constant 2 : index
    %c0_16 = arith.constant 0 : index
    %c0_17 = arith.constant 0 : index
    %16 = vector.load %arg2[%c2, %c0_16, %c0_17] : memref<16x8x16xbf16, #tpu.memory_space<vmem>>, vector<1x8x16xbf16>
    %17 = vector.shape_cast %16 : vector<1x8x16xbf16> to vector<8x16xbf16>
    %cst_18 = arith.constant dense<0.000000e+00> : vector<8x80xf32>
    %18 = tpu.matmul %17, %15, %cst_18 {dimension_numbers = #tpu.dot_dimension_numbers<[1], [0], [0], [1], [0, 0, 1, 1], [], []>} : vector<8x16xbf16>, vector<16x80xbf16>, vector<8x80xf32> -> vector<8x80xf32>
    %19 = arith.addf %13, %18 : vector<8x80xf32>
    %c0_19 = arith.constant 0 : index
    %c0_20 = arith.constant 0 : index
    %c11 = arith.constant 11 : index
    %20 = vector.load %arg1[%c0_19, %c0_20, %c11] : memref<1x16x128xbf16, #tpu.memory_space<vmem>>, vector<1x16x80xbf16>
    %21 = vector.shape_cast %20 : vector<1x16x80xbf16> to vector<16x80xbf16>
    %c3 = arith.constant 3 : index
    %c0_21 = arith.constant 0 : index
    %c0_22 = arith.constant 0 : index
    %22 = vector.load %arg2[%c3, %c0_21, %c0_22] : memref<16x8x16xbf16, #tpu.memory_space<vmem>>, vector<1x8x16xbf16>
    %23 = vector.shape_cast %22 : vector<1x8x16xbf16> to vector<8x16xbf16>
    %cst_23 = arith.constant dense<0.000000e+00> : vector<8x80xf32>
    %24 = tpu.matmul %23, %21, %cst_23 {dimension_numbers = #tpu.dot_dimension_numbers<[1], [0], [0], [1], [0, 0, 1, 1], [], []>} : vector<8x16xbf16>, vector<16x80xbf16>, vector<8x80xf32> -> vector<8x80xf32>
    %25 = arith.addf %19, %24 : vector<8x80xf32>
    %cst_24 = arith.constant 0.000000e+00 : f32
    %26 = vector.broadcast %cst_24 : f32 to vector<8x80xf32>
    %c0_25 = arith.constant 0 : index
    %c0_26 = arith.constant 0 : index
    %c1_27 = arith.constant 1 : index
    %27 = vector.load %arg1[%c0_25, %c0_26, %c1_27] : memref<1x16x128xbf16, #tpu.memory_space<vmem>>, vector<1x16x80xbf16>
    %28 = vector.shape_cast %27 : vector<1x16x80xbf16> to vector<16x80xbf16>
    %c4 = arith.constant 4 : index
    %c0_28 = arith.constant 0 : index
    %c0_29 = arith.constant 0 : index
    %29 = vector.load %arg2[%c4, %c0_28, %c0_29] : memref<16x8x16xbf16, #tpu.memory_space<vmem>>, vector<1x8x16xbf16>
    %30 = vector.shape_cast %29 : vector<1x8x16xbf16> to vector<8x16xbf16>
    %cst_30 = arith.constant dense<0.000000e+00> : vector<8x80xf32>
    %31 = tpu.matmul %30, %28, %cst_30 {dimension_numbers = #tpu.dot_dimension_numbers<[1], [0], [0], [1], [0, 0, 1, 1], [], []>} : vector<8x16xbf16>, vector<16x80xbf16>, vector<8x80xf32> -> vector<8x80xf32>
    %32 = arith.addf %26, %31 : vector<8x80xf32>
    %c0_31 = arith.constant 0 : index
    %c0_32 = arith.constant 0 : index
    %c2_33 = arith.constant 2 : index
    %33 = vector.load %arg1[%c0_31, %c0_32, %c2_33] : memref<1x16x128xbf16, #tpu.memory_space<vmem>>, vector<1x16x80xbf16>
    %34 = vector.shape_cast %33 : vector<1x16x80xbf16> to vector<16x80xbf16>
    %c5 = arith.constant 5 : index
    %c0_34 = arith.constant 0 : index
    %c0_35 = arith.constant 0 : index
    %35 = vector.load %arg2[%c5, %c0_34, %c0_35] : memref<16x8x16xbf16, #tpu.memory_space<vmem>>, vector<1x8x16xbf16>
    %36 = vector.shape_cast %35 : vector<1x8x16xbf16> to vector<8x16xbf16>
    %cst_36 = arith.constant dense<0.000000e+00> : vector<8x80xf32>
    %37 = tpu.matmul %36, %34, %cst_36 {dimension_numbers = #tpu.dot_dimension_numbers<[1], [0], [0], [1], [0, 0, 1, 1], [], []>} : vector<8x16xbf16>, vector<16x80xbf16>, vector<8x80xf32> -> vector<8x80xf32>
    %38 = arith.addf %32, %37 : vector<8x80xf32>
    %c0_37 = arith.constant 0 : index
    %c0_38 = arith.constant 0 : index
    %c11_39 = arith.constant 11 : index
    %39 = vector.load %arg1[%c0_37, %c0_38, %c11_39] : memref<1x16x128xbf16, #tpu.memory_space<vmem>>, vector<1x16x80xbf16>
    %40 = vector.shape_cast %39 : vector<1x16x80xbf16> to vector<16x80xbf16>
    %c6 = arith.constant 6 : index
    %c0_40 = arith.constant 0 : index
    %c0_41 = arith.constant 0 : index
    %41 = vector.load %arg2[%c6, %c0_40, %c0_41] : memref<16x8x16xbf16, #tpu.memory_space<vmem>>, vector<1x8x16xbf16>
    %42 = vector.shape_cast %41 : vector<1x8x16xbf16> to vector<8x16xbf16>
    %cst_42 = arith.constant dense<0.000000e+00> : vector<8x80xf32>
    %43 = tpu.matmul %42, %40, %cst_42 {dimension_numbers = #tpu.dot_dimension_numbers<[1], [0], [0], [1], [0, 0, 1, 1], [], []>} : vector<8x16xbf16>, vector<16x80xbf16>, vector<8x80xf32> -> vector<8x80xf32>
    %44 = arith.addf %38, %43 : vector<8x80xf32>
    %c0_43 = arith.constant 0 : index
    %c0_44 = arith.constant 0 : index
    %c12 = arith.constant 12 : index
    %45 = vector.load %arg1[%c0_43, %c0_44, %c12] : memref<1x16x128xbf16, #tpu.memory_space<vmem>>, vector<1x16x80xbf16>
    %46 = vector.shape_cast %45 : vector<1x16x80xbf16> to vector<16x80xbf16>
    %c7 = arith.constant 7 : index
    %c0_45 = arith.constant 0 : index
    %c0_46 = arith.constant 0 : index
    %47 = vector.load %arg2[%c7, %c0_45, %c0_46] : memref<16x8x16xbf16, #tpu.memory_space<vmem>>, vector<1x8x16xbf16>
    %48 = vector.shape_cast %47 : vector<1x8x16xbf16> to vector<8x16xbf16>
    %cst_47 = arith.constant dense<0.000000e+00> : vector<8x80xf32>
    %49 = tpu.matmul %48, %46, %cst_47 {dimension_numbers = #tpu.dot_dimension_numbers<[1], [0], [0], [1], [0, 0, 1, 1], [], []>} : vector<8x16xbf16>, vector<16x80xbf16>, vector<8x80xf32> -> vector<8x80xf32>
    %50 = arith.addf %44, %49 : vector<8x80xf32>
    %cst_48 = arith.constant 0.000000e+00 : f32
    %51 = vector.broadcast %cst_48 : f32 to vector<8x80xf32>
    %c0_49 = arith.constant 0 : index
    %c0_50 = arith.constant 0 : index
    %c10_51 = arith.constant 10 : index
    %52 = vector.load %arg1[%c0_49, %c0_50, %c10_51] : memref<1x16x128xbf16, #tpu.memory_space<vmem>>, vector<1x16x80xbf16>
    %53 = vector.shape_cast %52 : vector<1x16x80xbf16> to vector<16x80xbf16>
    %c8 = arith.constant 8 : index
    %c0_52 = arith.constant 0 : index
    %c0_53 = arith.constant 0 : index
    %54 = vector.load %arg2[%c8, %c0_52, %c0_53] : memref<16x8x16xbf16, #tpu.memory_space<vmem>>, vector<1x8x16xbf16>
    %55 = vector.shape_cast %54 : vector<1x8x16xbf16> to vector<8x16xbf16>
    %cst_54 = arith.constant dense<0.000000e+00> : vector<8x80xf32>
    %56 = tpu.matmul %55, %53, %cst_54 {dimension_numbers = #tpu.dot_dimension_numbers<[1], [0], [0], [1], [0, 0, 1, 1], [], []>} : vector<8x16xbf16>, vector<16x80xbf16>, vector<8x80xf32> -> vector<8x80xf32>
    %57 = arith.addf %51, %56 : vector<8x80xf32>
    %c0_55 = arith.constant 0 : index
    %c0_56 = arith.constant 0 : index
    %c11_57 = arith.constant 11 : index
    %58 = vector.load %arg1[%c0_55, %c0_56, %c11_57] : memref<1x16x128xbf16, #tpu.memory_space<vmem>>, vector<1x16x80xbf16>
    %59 = vector.shape_cast %58 : vector<1x16x80xbf16> to vector<16x80xbf16>
    %c9 = arith.constant 9 : index
    %c0_58 = arith.constant 0 : index
    %c0_59 = arith.constant 0 : index
    %60 = vector.load %arg2[%c9, %c0_58, %c0_59] : memref<16x8x16xbf16, #tpu.memory_space<vmem>>, vector<1x8x16xbf16>
    %61 = vector.shape_cast %60 : vector<1x8x16xbf16> to vector<8x16xbf16>
    %cst_60 = arith.constant dense<0.000000e+00> : vector<8x80xf32>
    %62 = tpu.matmul %61, %59, %cst_60 {dimension_numbers = #tpu.dot_dimension_numbers<[1], [0], [0], [1], [0, 0, 1, 1], [], []>} : vector<8x16xbf16>, vector<16x80xbf16>, vector<8x80xf32> -> vector<8x80xf32>
    %63 = arith.addf %57, %62 : vector<8x80xf32>
    %c0_61 = arith.constant 0 : index
    %c0_62 = arith.constant 0 : index
    %c20 = arith.constant 20 : index
    %64 = vector.load %arg1[%c0_61, %c0_62, %c20] : memref<1x16x128xbf16, #tpu.memory_space<vmem>>, vector<1x16x80xbf16>
    %65 = vector.shape_cast %64 : vector<1x16x80xbf16> to vector<16x80xbf16>
    %c10_63 = arith.constant 10 : index
    %c0_64 = arith.constant 0 : index
    %c0_65 = arith.constant 0 : index
    %66 = vector.load %arg2[%c10_63, %c0_64, %c0_65] : memref<16x8x16xbf16, #tpu.memory_space<vmem>>, vector<1x8x16xbf16>
    %67 = vector.shape_cast %66 : vector<1x8x16xbf16> to vector<8x16xbf16>
    %cst_66 = arith.constant dense<0.000000e+00> : vector<8x80xf32>
    %68 = tpu.matmul %67, %65, %cst_66 {dimension_numbers = #tpu.dot_dimension_numbers<[1], [0], [0], [1], [0, 0, 1, 1], [], []>} : vector<8x16xbf16>, vector<16x80xbf16>, vector<8x80xf32> -> vector<8x80xf32>
    %69 = arith.addf %63, %68 : vector<8x80xf32>
    %c0_67 = arith.constant 0 : index
    %c0_68 = arith.constant 0 : index
    %c21 = arith.constant 21 : index
    %70 = vector.load %arg1[%c0_67, %c0_68, %c21] : memref<1x16x128xbf16, #tpu.memory_space<vmem>>, vector<1x16x80xbf16>
    %71 = vector.shape_cast %70 : vector<1x16x80xbf16> to vector<16x80xbf16>
    %c11_69 = arith.constant 11 : index
    %c0_70 = arith.constant 0 : index
    %c0_71 = arith.constant 0 : index
    %72 = vector.load %arg2[%c11_69, %c0_70, %c0_71] : memref<16x8x16xbf16, #tpu.memory_space<vmem>>, vector<1x8x16xbf16>
    %73 = vector.shape_cast %72 : vector<1x8x16xbf16> to vector<8x16xbf16>
    %cst_72 = arith.constant dense<0.000000e+00> : vector<8x80xf32>
    %74 = tpu.matmul %73, %71, %cst_72 {dimension_numbers = #tpu.dot_dimension_numbers<[1], [0], [0], [1], [0, 0, 1, 1], [], []>} : vector<8x16xbf16>, vector<16x80xbf16>, vector<8x80xf32> -> vector<8x80xf32>
    %75 = arith.addf %69, %74 : vector<8x80xf32>
    %cst_73 = arith.constant 0.000000e+00 : f32
    %76 = vector.broadcast %cst_73 : f32 to vector<8x80xf32>
    %c0_74 = arith.constant 0 : index
    %c0_75 = arith.constant 0 : index
    %c11_76 = arith.constant 11 : index
    %77 = vector.load %arg1[%c0_74, %c0_75, %c11_76] : memref<1x16x128xbf16, #tpu.memory_space<vmem>>, vector<1x16x80xbf16>
    %78 = vector.shape_cast %77 : vector<1x16x80xbf16> to vector<16x80xbf16>
    %c12_77 = arith.constant 12 : index
    %c0_78 = arith.constant 0 : index
    %c0_79 = arith.constant 0 : index
    %79 = vector.load %arg2[%c12_77, %c0_78, %c0_79] : memref<16x8x16xbf16, #tpu.memory_space<vmem>>, vector<1x8x16xbf16>
    %80 = vector.shape_cast %79 : vector<1x8x16xbf16> to vector<8x16xbf16>
    %cst_80 = arith.constant dense<0.000000e+00> : vector<8x80xf32>
    %81 = tpu.matmul %80, %78, %cst_80 {dimension_numbers = #tpu.dot_dimension_numbers<[1], [0], [0], [1], [0, 0, 1, 1], [], []>} : vector<8x16xbf16>, vector<16x80xbf16>, vector<8x80xf32> -> vector<8x80xf32>
    %82 = arith.addf %76, %81 : vector<8x80xf32>
    %c0_81 = arith.constant 0 : index
    %c0_82 = arith.constant 0 : index
    %c12_83 = arith.constant 12 : index
    %83 = vector.load %arg1[%c0_81, %c0_82, %c12_83] : memref<1x16x128xbf16, #tpu.memory_space<vmem>>, vector<1x16x80xbf16>
    %84 = vector.shape_cast %83 : vector<1x16x80xbf16> to vector<16x80xbf16>
    %c13 = arith.constant 13 : index
    %c0_84 = arith.constant 0 : index
    %c0_85 = arith.constant 0 : index
    %85 = vector.load %arg2[%c13, %c0_84, %c0_85] : memref<16x8x16xbf16, #tpu.memory_space<vmem>>, vector<1x8x16xbf16>
    %86 = vector.shape_cast %85 : vector<1x8x16xbf16> to vector<8x16xbf16>
    %cst_86 = arith.constant dense<0.000000e+00> : vector<8x80xf32>
    %87 = tpu.matmul %86, %84, %cst_86 {dimension_numbers = #tpu.dot_dimension_numbers<[1], [0], [0], [1], [0, 0, 1, 1], [], []>} : vector<8x16xbf16>, vector<16x80xbf16>, vector<8x80xf32> -> vector<8x80xf32>
    %88 = arith.addf %82, %87 : vector<8x80xf32>
    %c0_87 = arith.constant 0 : index
    %c0_88 = arith.constant 0 : index
    %c21_89 = arith.constant 21 : index
    %89 = vector.load %arg1[%c0_87, %c0_88, %c21_89] : memref<1x16x128xbf16, #tpu.memory_space<vmem>>, vector<1x16x80xbf16>
    %90 = vector.shape_cast %89 : vector<1x16x80xbf16> to vector<16x80xbf16>
    %c14 = arith.constant 14 : index
    %c0_90 = arith.constant 0 : index
    %c0_91 = arith.constant 0 : index
    %91 = vector.load %arg2[%c14, %c0_90, %c0_91] : memref<16x8x16xbf16, #tpu.memory_space<vmem>>, vector<1x8x16xbf16>
    %92 = vector.shape_cast %91 : vector<1x8x16xbf16> to vector<8x16xbf16>
    %cst_92 = arith.constant dense<0.000000e+00> : vector<8x80xf32>
    %93 = tpu.matmul %92, %90, %cst_92 {dimension_numbers = #tpu.dot_dimension_numbers<[1], [0], [0], [1], [0, 0, 1, 1], [], []>} : vector<8x16xbf16>, vector<16x80xbf16>, vector<8x80xf32> -> vector<8x80xf32>
    %94 = arith.addf %88, %93 : vector<8x80xf32>
    %c0_93 = arith.constant 0 : index
    %c0_94 = arith.constant 0 : index
    %c22 = arith.constant 22 : index
    %95 = vector.load %arg1[%c0_93, %c0_94, %c22] : memref<1x16x128xbf16, #tpu.memory_space<vmem>>, vector<1x16x80xbf16>
    %96 = vector.shape_cast %95 : vector<1x16x80xbf16> to vector<16x80xbf16>
    %c15 = arith.constant 15 : index
    %c0_95 = arith.constant 0 : index
    %c0_96 = arith.constant 0 : index
    %97 = vector.load %arg2[%c15, %c0_95, %c0_96] : memref<16x8x16xbf16, #tpu.memory_space<vmem>>, vector<1x8x16xbf16>
    %98 = vector.shape_cast %97 : vector<1x8x16xbf16> to vector<8x16xbf16>
    %cst_97 = arith.constant dense<0.000000e+00> : vector<8x80xf32>
    %99 = tpu.matmul %98, %96, %cst_97 {dimension_numbers = #tpu.dot_dimension_numbers<[1], [0], [0], [1], [0, 0, 1, 1], [], []>} : vector<8x16xbf16>, vector<16x80xbf16>, vector<8x80xf32> -> vector<8x80xf32>
    %100 = arith.addf %94, %99 : vector<8x80xf32>
    %101 = vector.broadcast %0 : vector<1x80xf32> to vector<8x80xf32>
    %102 = arith.mulf %25, %101 : vector<8x80xf32>
    %cst_98 = arith.constant dense<0.000000e+00> : vector<8xf32>
    %103 = vector.multi_reduction <add>, %102, %cst_98 [1] : vector<8x80xf32> to vector<8xf32>
    %104 = vector.shape_cast %103 : vector<8xf32> to vector<8x1xf32>
    %cst_99 = arith.constant 0.000000e+00 : f32
    %105 = vector.broadcast %cst_99 : f32 to vector<8x1xf32>
    %106 = arith.addf %105, %104 : vector<8x1xf32>
    %107 = vector.broadcast %0 : vector<1x80xf32> to vector<8x80xf32>
    %108 = arith.mulf %50, %107 : vector<8x80xf32>
    %cst_100 = arith.constant dense<0.000000e+00> : vector<8xf32>
    %109 = vector.multi_reduction <add>, %108, %cst_100 [1] : vector<8x80xf32> to vector<8xf32>
    %110 = vector.shape_cast %109 : vector<8xf32> to vector<8x1xf32>
    %111 = arith.addf %106, %110 : vector<8x1xf32>
    %112 = vector.broadcast %0 : vector<1x80xf32> to vector<8x80xf32>
    %113 = arith.mulf %75, %112 : vector<8x80xf32>
    %cst_101 = arith.constant dense<0.000000e+00> : vector<8xf32>
    %114 = vector.multi_reduction <add>, %113, %cst_101 [1] : vector<8x80xf32> to vector<8xf32>
    %115 = vector.shape_cast %114 : vector<8xf32> to vector<8x1xf32>
    %116 = arith.addf %111, %115 : vector<8x1xf32>
    %117 = vector.broadcast %0 : vector<1x80xf32> to vector<8x80xf32>
    %118 = arith.mulf %100, %117 : vector<8x80xf32>
    %cst_102 = arith.constant dense<0.000000e+00> : vector<8xf32>
    %119 = vector.multi_reduction <add>, %118, %cst_102 [1] : vector<8x80xf32> to vector<8xf32>
    %120 = vector.shape_cast %119 : vector<8xf32> to vector<8x1xf32>
    %121 = arith.addf %116, %120 : vector<8x1xf32>
    %cst_103 = arith.constant 2.560000e+02 : f32
    %122 = vector.broadcast %cst_103 : f32 to vector<8x1xf32>
    %123 = arith.divf %121, %122 : vector<8x1xf32>
    %124 = vector.broadcast %123 : vector<8x1xf32> to vector<8x80xf32>
    %125 = arith.subf %25, %124 : vector<8x80xf32>
    %126 = vector.broadcast %0 : vector<1x80xf32> to vector<8x80xf32>
    %127 = arith.mulf %125, %126 : vector<8x80xf32>
    %128 = vector.broadcast %123 : vector<8x1xf32> to vector<8x80xf32>
    %129 = arith.subf %50, %128 : vector<8x80xf32>
    %130 = vector.broadcast %0 : vector<1x80xf32> to vector<8x80xf32>
    %131 = arith.mulf %129, %130 : vector<8x80xf32>
    %132 = vector.broadcast %123 : vector<8x1xf32> to vector<8x80xf32>
    %133 = arith.subf %75, %132 : vector<8x80xf32>
    %134 = vector.broadcast %0 : vector<1x80xf32> to vector<8x80xf32>
    %135 = arith.mulf %133, %134 : vector<8x80xf32>
    %136 = vector.broadcast %123 : vector<8x1xf32> to vector<8x80xf32>
    %137 = arith.subf %100, %136 : vector<8x80xf32>
    %138 = vector.broadcast %0 : vector<1x80xf32> to vector<8x80xf32>
    %139 = arith.mulf %137, %138 : vector<8x80xf32>
    %140 = arith.mulf %127, %127 : vector<8x80xf32>
    %cst_104 = arith.constant dense<0.000000e+00> : vector<8xf32>
    %141 = vector.multi_reduction <add>, %140, %cst_104 [1] : vector<8x80xf32> to vector<8xf32>
    %142 = vector.shape_cast %141 : vector<8xf32> to vector<8x1xf32>
    %cst_105 = arith.constant 0.000000e+00 : f32
    %143 = vector.broadcast %cst_105 : f32 to vector<8x1xf32>
    %144 = arith.addf %143, %142 : vector<8x1xf32>
    %145 = arith.mulf %131, %131 : vector<8x80xf32>
    %cst_106 = arith.constant dense<0.000000e+00> : vector<8xf32>
    %146 = vector.multi_reduction <add>, %145, %cst_106 [1] : vector<8x80xf32> to vector<8xf32>
    %147 = vector.shape_cast %146 : vector<8xf32> to vector<8x1xf32>
    %148 = arith.addf %144, %147 : vector<8x1xf32>
    %149 = arith.mulf %135, %135 : vector<8x80xf32>
    %cst_107 = arith.constant dense<0.000000e+00> : vector<8xf32>
    %150 = vector.multi_reduction <add>, %149, %cst_107 [1] : vector<8x80xf32> to vector<8xf32>
    %151 = vector.shape_cast %150 : vector<8xf32> to vector<8x1xf32>
    %152 = arith.addf %148, %151 : vector<8x1xf32>
    %153 = arith.mulf %139, %139 : vector<8x80xf32>
    %cst_108 = arith.constant dense<0.000000e+00> : vector<8xf32>
    %154 = vector.multi_reduction <add>, %153, %cst_108 [1] : vector<8x80xf32> to vector<8xf32>
    %155 = vector.shape_cast %154 : vector<8xf32> to vector<8x1xf32>
    %156 = arith.addf %152, %155 : vector<8x1xf32>
    %cst_109 = arith.constant 2.560000e+02 : f32
    %157 = vector.broadcast %cst_109 : f32 to vector<8x1xf32>
    %158 = arith.divf %156, %157 : vector<8x1xf32>
    %cst_110 = arith.constant 9.99999974E-6 : f32
    %159 = vector.broadcast %cst_110 : f32 to vector<8x1xf32>
    %160 = arith.addf %158, %159 : vector<8x1xf32>
    %161 = math.rsqrt %160 : vector<8x1xf32>
    %c0_111 = arith.constant 0 : index
    %c0_112 = arith.constant 0 : index
    %162 = vector.load %arg3[%c0_111, %c0_112] : memref<8x1xf32, #tpu.memory_space<vmem>>, vector<8x1xf32>
    %163 = arith.mulf %161, %162 : vector<8x1xf32>
    %c0_113 = arith.constant 0 : index
    %c0_114 = arith.constant 0 : index
    %164 = vector.load %arg4[%c0_113, %c0_114] : memref<8x1xf32, #tpu.memory_space<vmem>>, vector<8x1xf32>
    %165 = vector.broadcast %163 : vector<8x1xf32> to vector<8x80xf32>
    %166 = arith.mulf %127, %165 : vector<8x80xf32>
    %167 = vector.broadcast %164 : vector<8x1xf32> to vector<8x80xf32>
    %168 = arith.addf %166, %167 : vector<8x80xf32>
    %cst_115 = arith.constant 0.000000e+00 : f32
    %169 = vector.broadcast %cst_115 : f32 to vector<8x80xf32>
    %170 = arith.maximumf %168, %169 : vector<8x80xf32>
    %171 = arith.truncf %170 : vector<8x80xf32> to vector<8x80xbf16>
    %c0_116 = arith.constant 0 : index
    %c0_117 = arith.constant 0 : index
    %c0_118 = arith.constant 0 : index
    %c0_119 = arith.constant 0 : index
    %172 = vector.load %arg6[%c0_116, %c0_117, %c0_118, %c0_119] : memref<1x4x8x80xbf16, #tpu.memory_space<vmem>>, vector<1x1x8x80xbf16>
    %173 = vector.shape_cast %172 : vector<1x1x8x80xbf16> to vector<8x80xbf16>
    %174 = vector.shape_cast %171 : vector<8x80xbf16> to vector<1x1x8x80xbf16>
    tpu.vector_store %arg6[%c0_116, %c0_117, %c0_118, %c0_119], %174 {strides = array<i32>} : memref<1x4x8x80xbf16, #tpu.memory_space<vmem>>, vector<1x1x8x80xbf16>,
    %175 = vector.broadcast %163 : vector<8x1xf32> to vector<8x80xf32>
    %176 = arith.mulf %131, %175 : vector<8x80xf32>
    %177 = vector.broadcast %164 : vector<8x1xf32> to vector<8x80xf32>
    %178 = arith.addf %176, %177 : vector<8x80xf32>
    %cst_120 = arith.constant 0.000000e+00 : f32
    %179 = vector.broadcast %cst_120 : f32 to vector<8x80xf32>
    %180 = arith.maximumf %178, %179 : vector<8x80xf32>
    %181 = arith.truncf %180 : vector<8x80xf32> to vector<8x80xbf16>
    %c0_121 = arith.constant 0 : index
    %c1_122 = arith.constant 1 : index
    %c0_123 = arith.constant 0 : index
    %c0_124 = arith.constant 0 : index
    %182 = vector.load %arg6[%c0_121, %c1_122, %c0_123, %c0_124] : memref<1x4x8x80xbf16, #tpu.memory_space<vmem>>, vector<1x1x8x80xbf16>
    %183 = vector.shape_cast %182 : vector<1x1x8x80xbf16> to vector<8x80xbf16>
    %184 = vector.shape_cast %181 : vector<8x80xbf16> to vector<1x1x8x80xbf16>
    tpu.vector_store %arg6[%c0_121, %c1_122, %c0_123, %c0_124], %184 {strides = array<i32>} : memref<1x4x8x80xbf16, #tpu.memory_space<vmem>>, vector<1x1x8x80xbf16>,
    %185 = vector.broadcast %163 : vector<8x1xf32> to vector<8x80xf32>
    %186 = arith.mulf %135, %185 : vector<8x80xf32>
    %187 = vector.broadcast %164 : vector<8x1xf32> to vector<8x80xf32>
    %188 = arith.addf %186, %187 : vector<8x80xf32>
    %cst_125 = arith.constant 0.000000e+00 : f32
    %189 = vector.broadcast %cst_125 : f32 to vector<8x80xf32>
    %190 = arith.maximumf %188, %189 : vector<8x80xf32>
    %191 = arith.truncf %190 : vector<8x80xf32> to vector<8x80xbf16>
    %c0_126 = arith.constant 0 : index
    %c2_127 = arith.constant 2 : index
    %c0_128 = arith.constant 0 : index
    %c0_129 = arith.constant 0 : index
    %192 = vector.load %arg6[%c0_126, %c2_127, %c0_128, %c0_129] : memref<1x4x8x80xbf16, #tpu.memory_space<vmem>>, vector<1x1x8x80xbf16>
    %193 = vector.shape_cast %192 : vector<1x1x8x80xbf16> to vector<8x80xbf16>
    %194 = vector.shape_cast %191 : vector<8x80xbf16> to vector<1x1x8x80xbf16>
    tpu.vector_store %arg6[%c0_126, %c2_127, %c0_128, %c0_129], %194 {strides = array<i32>} : memref<1x4x8x80xbf16, #tpu.memory_space<vmem>>, vector<1x1x8x80xbf16>,
    %195 = vector.broadcast %163 : vector<8x1xf32> to vector<8x80xf32>
    %196 = arith.mulf %139, %195 : vector<8x80xf32>
    %197 = vector.broadcast %164 : vector<8x1xf32> to vector<8x80xf32>
    %198 = arith.addf %196, %197 : vector<8x80xf32>
    %cst_130 = arith.constant 0.000000e+00 : f32
    %199 = vector.broadcast %cst_130 : f32 to vector<8x80xf32>
    %200 = arith.maximumf %198, %199 : vector<8x80xf32>
    %201 = arith.truncf %200 : vector<8x80xf32> to vector<8x80xbf16>
    %c0_131 = arith.constant 0 : index
    %c3_132 = arith.constant 3 : index
    %c0_133 = arith.constant 0 : index
    %c0_134 = arith.constant 0 : index
    %202 = vector.load %arg6[%c0_131, %c3_132, %c0_133, %c0_134] : memref<1x4x8x80xbf16, #tpu.memory_space<vmem>>, vector<1x1x8x80xbf16>
    %203 = vector.shape_cast %202 : vector<1x1x8x80xbf16> to vector<8x80xbf16>
    %204 = vector.shape_cast %201 : vector<8x80xbf16> to vector<1x1x8x80xbf16>
    tpu.vector_store %arg6[%c0_131, %c3_132, %c0_133, %c0_134], %204 {strides = array<i32>} : memref<1x4x8x80xbf16, #tpu.memory_space<vmem>>, vector<1x1x8x80xbf16>,
    return
  }
  func.func @transform_0(%arg0: i32) -> (i32, i32, i32) {
    %c0_i32 = arith.constant 0 : i32
    %c0_i32_0 = arith.constant 0 : i32
    %c0_i32_1 = arith.constant 0 : i32
    return %arg0, %c0_i32, %c0_i32_0 : i32, i32, i32
  }
  func.func @transform_1(%arg0: i32) -> (i32, i32, i32) {
    %c0_i32 = arith.constant 0 : i32
    %c0_i32_0 = arith.constant 0 : i32
    %c0_i32_1 = arith.constant 0 : i32
    %c0_i32_2 = arith.constant 0 : i32
    return %c0_i32, %c0_i32_0, %c0_i32_1 : i32, i32, i32
  }
  func.func @transform_2(%arg0: i32) -> (i32, i32) {
    %c0_i32 = arith.constant 0 : i32
    %c0_i32_0 = arith.constant 0 : i32
    %c0_i32_1 = arith.constant 0 : i32
    return %c0_i32, %c0_i32_0 : i32, i32
  }
  func.func @transform_3(%arg0: i32) -> (i32, i32) {
    %c0_i32 = arith.constant 0 : i32
    %c0_i32_0 = arith.constant 0 : i32
    %c0_i32_1 = arith.constant 0 : i32
    return %c0_i32, %c0_i32_0 : i32, i32
  }
  func.func @transform_4(%arg0: i32) -> (i32, i32) {
    %c0_i32 = arith.constant 0 : i32
    %c0_i32_0 = arith.constant 0 : i32
    %c0_i32_1 = arith.constant 0 : i32
    return %c0_i32, %c0_i32_0 : i32, i32
  }
  func.func @transform_5(%arg0: i32) -> (i32, i32, i32, i32) {
    %c0_i32 = arith.constant 0 : i32
    %c0_i32_0 = arith.constant 0 : i32
    %c0_i32_1 = arith.constant 0 : i32
    %c0_i32_2 = arith.constant 0 : i32
    return %arg0, %c0_i32, %c0_i32_0, %c0_i32_1 : i32, i32, i32, i32
  }
}

module attributes {stable_mosaic.version = 11 : i64} {
  func.func @_up_conv_in_relu_kernel(%arg0: i32, %arg1: memref<1x8x384xbf16, #tpu.memory_space<vmem>>, %arg2: memref<16x4x8xbf16, #tpu.memory_space<vmem>>, %arg3: memref<4x1xf32, #tpu.memory_space<vmem>>, %arg4: memref<4x1xf32, #tpu.memory_space<vmem>>, %arg5: memref<1x288xf32, #tpu.memory_space<vmem>>, %arg6: memref<1x4x4x288xbf16, #tpu.memory_space<vmem>>) attributes {dimension_semantics = [#tpu.dimension_semantics<parallel>], iteration_bounds = array<i64: 2>, scalar_prefetch = 0 : i64, scratch_operands = 0 : i64, tpu.core_type = #tpu.core_type<tc>, window_params = [{transform_indices = @transform_0, window_bounds = array<i64: 1, 8, 384>}, {pipeline_mode = #tpu.pipeline_mode<synchronous>, transform_indices = @transform_1, window_bounds = array<i64: 16, 4, 8>}, {pipeline_mode = #tpu.pipeline_mode<synchronous>, transform_indices = @transform_2, window_bounds = array<i64: 4, 1>}, {pipeline_mode = #tpu.pipeline_mode<synchronous>, transform_indices = @transform_3, window_bounds = array<i64: 4, 1>}, {pipeline_mode = #tpu.pipeline_mode<synchronous>, transform_indices = @transform_4, window_bounds = array<i64: 1, 288>}, {transform_indices = @transform_5, window_bounds = array<i64: 1, 4, 4, 288>}]} {
    %c0 = arith.constant 0 : index
    %c0_0 = arith.constant 0 : index
    %0 = vector.load %arg5[%c0, %c0_0] : memref<1x288xf32, #tpu.memory_space<vmem>>, vector<1x288xf32>
    %cst = arith.constant 0.000000e+00 : f32
    %1 = vector.broadcast %cst : f32 to vector<4x288xf32>
    %c0_1 = arith.constant 0 : index
    %c0_2 = arith.constant 0 : index
    %c0_3 = arith.constant 0 : index
    %2 = vector.load %arg1[%c0_1, %c0_2, %c0_3] : memref<1x8x384xbf16, #tpu.memory_space<vmem>>, vector<1x8x288xbf16>
    %3 = vector.shape_cast %2 : vector<1x8x288xbf16> to vector<8x288xbf16>
    %c0_4 = arith.constant 0 : index
    %c0_5 = arith.constant 0 : index
    %c0_6 = arith.constant 0 : index
    %4 = vector.load %arg2[%c0_4, %c0_5, %c0_6] : memref<16x4x8xbf16, #tpu.memory_space<vmem>>, vector<1x4x8xbf16>
    %5 = vector.shape_cast %4 : vector<1x4x8xbf16> to vector<4x8xbf16>
    %cst_7 = arith.constant dense<0.000000e+00> : vector<4x288xf32>
    %6 = tpu.matmul %5, %3, %cst_7 {dimension_numbers = #tpu.dot_dimension_numbers<[1], [0], [0], [1], [0, 0, 1, 1], [], []>} : vector<4x8xbf16>, vector<8x288xbf16>, vector<4x288xf32> -> vector<4x288xf32>
    %7 = arith.addf %1, %6 : vector<4x288xf32>
    %c0_8 = arith.constant 0 : index
    %c0_9 = arith.constant 0 : index
    %c1 = arith.constant 1 : index
    %8 = vector.load %arg1[%c0_8, %c0_9, %c1] : memref<1x8x384xbf16, #tpu.memory_space<vmem>>, vector<1x8x288xbf16>
    %9 = vector.shape_cast %8 : vector<1x8x288xbf16> to vector<8x288xbf16>
    %c1_10 = arith.constant 1 : index
    %c0_11 = arith.constant 0 : index
    %c0_12 = arith.constant 0 : index
    %10 = vector.load %arg2[%c1_10, %c0_11, %c0_12] : memref<16x4x8xbf16, #tpu.memory_space<vmem>>, vector<1x4x8xbf16>
    %11 = vector.shape_cast %10 : vector<1x4x8xbf16> to vector<4x8xbf16>
    %cst_13 = arith.constant dense<0.000000e+00> : vector<4x288xf32>
    %12 = tpu.matmul %11, %9, %cst_13 {dimension_numbers = #tpu.dot_dimension_numbers<[1], [0], [0], [1], [0, 0, 1, 1], [], []>} : vector<4x8xbf16>, vector<8x288xbf16>, vector<4x288xf32> -> vector<4x288xf32>
    %13 = arith.addf %7, %12 : vector<4x288xf32>
    %c0_14 = arith.constant 0 : index
    %c0_15 = arith.constant 0 : index
    %c18 = arith.constant 18 : index
    %14 = vector.load %arg1[%c0_14, %c0_15, %c18] : memref<1x8x384xbf16, #tpu.memory_space<vmem>>, vector<1x8x288xbf16>
    %15 = vector.shape_cast %14 : vector<1x8x288xbf16> to vector<8x288xbf16>
    %c2 = arith.constant 2 : index
    %c0_16 = arith.constant 0 : index
    %c0_17 = arith.constant 0 : index
    %16 = vector.load %arg2[%c2, %c0_16, %c0_17] : memref<16x4x8xbf16, #tpu.memory_space<vmem>>, vector<1x4x8xbf16>
    %17 = vector.shape_cast %16 : vector<1x4x8xbf16> to vector<4x8xbf16>
    %cst_18 = arith.constant dense<0.000000e+00> : vector<4x288xf32>
    %18 = tpu.matmul %17, %15, %cst_18 {dimension_numbers = #tpu.dot_dimension_numbers<[1], [0], [0], [1], [0, 0, 1, 1], [], []>} : vector<4x8xbf16>, vector<8x288xbf16>, vector<4x288xf32> -> vector<4x288xf32>
    %19 = arith.addf %13, %18 : vector<4x288xf32>
    %c0_19 = arith.constant 0 : index
    %c0_20 = arith.constant 0 : index
    %c19 = arith.constant 19 : index
    %20 = vector.load %arg1[%c0_19, %c0_20, %c19] : memref<1x8x384xbf16, #tpu.memory_space<vmem>>, vector<1x8x288xbf16>
    %21 = vector.shape_cast %20 : vector<1x8x288xbf16> to vector<8x288xbf16>
    %c3 = arith.constant 3 : index
    %c0_21 = arith.constant 0 : index
    %c0_22 = arith.constant 0 : index
    %22 = vector.load %arg2[%c3, %c0_21, %c0_22] : memref<16x4x8xbf16, #tpu.memory_space<vmem>>, vector<1x4x8xbf16>
    %23 = vector.shape_cast %22 : vector<1x4x8xbf16> to vector<4x8xbf16>
    %cst_23 = arith.constant dense<0.000000e+00> : vector<4x288xf32>
    %24 = tpu.matmul %23, %21, %cst_23 {dimension_numbers = #tpu.dot_dimension_numbers<[1], [0], [0], [1], [0, 0, 1, 1], [], []>} : vector<4x8xbf16>, vector<8x288xbf16>, vector<4x288xf32> -> vector<4x288xf32>
    %25 = arith.addf %19, %24 : vector<4x288xf32>
    %cst_24 = arith.constant 0.000000e+00 : f32
    %26 = vector.broadcast %cst_24 : f32 to vector<4x288xf32>
    %c0_25 = arith.constant 0 : index
    %c0_26 = arith.constant 0 : index
    %c1_27 = arith.constant 1 : index
    %27 = vector.load %arg1[%c0_25, %c0_26, %c1_27] : memref<1x8x384xbf16, #tpu.memory_space<vmem>>, vector<1x8x288xbf16>
    %28 = vector.shape_cast %27 : vector<1x8x288xbf16> to vector<8x288xbf16>
    %c4 = arith.constant 4 : index
    %c0_28 = arith.constant 0 : index
    %c0_29 = arith.constant 0 : index
    %29 = vector.load %arg2[%c4, %c0_28, %c0_29] : memref<16x4x8xbf16, #tpu.memory_space<vmem>>, vector<1x4x8xbf16>
    %30 = vector.shape_cast %29 : vector<1x4x8xbf16> to vector<4x8xbf16>
    %cst_30 = arith.constant dense<0.000000e+00> : vector<4x288xf32>
    %31 = tpu.matmul %30, %28, %cst_30 {dimension_numbers = #tpu.dot_dimension_numbers<[1], [0], [0], [1], [0, 0, 1, 1], [], []>} : vector<4x8xbf16>, vector<8x288xbf16>, vector<4x288xf32> -> vector<4x288xf32>
    %32 = arith.addf %26, %31 : vector<4x288xf32>
    %c0_31 = arith.constant 0 : index
    %c0_32 = arith.constant 0 : index
    %c2_33 = arith.constant 2 : index
    %33 = vector.load %arg1[%c0_31, %c0_32, %c2_33] : memref<1x8x384xbf16, #tpu.memory_space<vmem>>, vector<1x8x288xbf16>
    %34 = vector.shape_cast %33 : vector<1x8x288xbf16> to vector<8x288xbf16>
    %c5 = arith.constant 5 : index
    %c0_34 = arith.constant 0 : index
    %c0_35 = arith.constant 0 : index
    %35 = vector.load %arg2[%c5, %c0_34, %c0_35] : memref<16x4x8xbf16, #tpu.memory_space<vmem>>, vector<1x4x8xbf16>
    %36 = vector.shape_cast %35 : vector<1x4x8xbf16> to vector<4x8xbf16>
    %cst_36 = arith.constant dense<0.000000e+00> : vector<4x288xf32>
    %37 = tpu.matmul %36, %34, %cst_36 {dimension_numbers = #tpu.dot_dimension_numbers<[1], [0], [0], [1], [0, 0, 1, 1], [], []>} : vector<4x8xbf16>, vector<8x288xbf16>, vector<4x288xf32> -> vector<4x288xf32>
    %38 = arith.addf %32, %37 : vector<4x288xf32>
    %c0_37 = arith.constant 0 : index
    %c0_38 = arith.constant 0 : index
    %c19_39 = arith.constant 19 : index
    %39 = vector.load %arg1[%c0_37, %c0_38, %c19_39] : memref<1x8x384xbf16, #tpu.memory_space<vmem>>, vector<1x8x288xbf16>
    %40 = vector.shape_cast %39 : vector<1x8x288xbf16> to vector<8x288xbf16>
    %c6 = arith.constant 6 : index
    %c0_40 = arith.constant 0 : index
    %c0_41 = arith.constant 0 : index
    %41 = vector.load %arg2[%c6, %c0_40, %c0_41] : memref<16x4x8xbf16, #tpu.memory_space<vmem>>, vector<1x4x8xbf16>
    %42 = vector.shape_cast %41 : vector<1x4x8xbf16> to vector<4x8xbf16>
    %cst_42 = arith.constant dense<0.000000e+00> : vector<4x288xf32>
    %43 = tpu.matmul %42, %40, %cst_42 {dimension_numbers = #tpu.dot_dimension_numbers<[1], [0], [0], [1], [0, 0, 1, 1], [], []>} : vector<4x8xbf16>, vector<8x288xbf16>, vector<4x288xf32> -> vector<4x288xf32>
    %44 = arith.addf %38, %43 : vector<4x288xf32>
    %c0_43 = arith.constant 0 : index
    %c0_44 = arith.constant 0 : index
    %c20 = arith.constant 20 : index
    %45 = vector.load %arg1[%c0_43, %c0_44, %c20] : memref<1x8x384xbf16, #tpu.memory_space<vmem>>, vector<1x8x288xbf16>
    %46 = vector.shape_cast %45 : vector<1x8x288xbf16> to vector<8x288xbf16>
    %c7 = arith.constant 7 : index
    %c0_45 = arith.constant 0 : index
    %c0_46 = arith.constant 0 : index
    %47 = vector.load %arg2[%c7, %c0_45, %c0_46] : memref<16x4x8xbf16, #tpu.memory_space<vmem>>, vector<1x4x8xbf16>
    %48 = vector.shape_cast %47 : vector<1x4x8xbf16> to vector<4x8xbf16>
    %cst_47 = arith.constant dense<0.000000e+00> : vector<4x288xf32>
    %49 = tpu.matmul %48, %46, %cst_47 {dimension_numbers = #tpu.dot_dimension_numbers<[1], [0], [0], [1], [0, 0, 1, 1], [], []>} : vector<4x8xbf16>, vector<8x288xbf16>, vector<4x288xf32> -> vector<4x288xf32>
    %50 = arith.addf %44, %49 : vector<4x288xf32>
    %cst_48 = arith.constant 0.000000e+00 : f32
    %51 = vector.broadcast %cst_48 : f32 to vector<4x288xf32>
    %c0_49 = arith.constant 0 : index
    %c0_50 = arith.constant 0 : index
    %c18_51 = arith.constant 18 : index
    %52 = vector.load %arg1[%c0_49, %c0_50, %c18_51] : memref<1x8x384xbf16, #tpu.memory_space<vmem>>, vector<1x8x288xbf16>
    %53 = vector.shape_cast %52 : vector<1x8x288xbf16> to vector<8x288xbf16>
    %c8 = arith.constant 8 : index
    %c0_52 = arith.constant 0 : index
    %c0_53 = arith.constant 0 : index
    %54 = vector.load %arg2[%c8, %c0_52, %c0_53] : memref<16x4x8xbf16, #tpu.memory_space<vmem>>, vector<1x4x8xbf16>
    %55 = vector.shape_cast %54 : vector<1x4x8xbf16> to vector<4x8xbf16>
    %cst_54 = arith.constant dense<0.000000e+00> : vector<4x288xf32>
    %56 = tpu.matmul %55, %53, %cst_54 {dimension_numbers = #tpu.dot_dimension_numbers<[1], [0], [0], [1], [0, 0, 1, 1], [], []>} : vector<4x8xbf16>, vector<8x288xbf16>, vector<4x288xf32> -> vector<4x288xf32>
    %57 = arith.addf %51, %56 : vector<4x288xf32>
    %c0_55 = arith.constant 0 : index
    %c0_56 = arith.constant 0 : index
    %c19_57 = arith.constant 19 : index
    %58 = vector.load %arg1[%c0_55, %c0_56, %c19_57] : memref<1x8x384xbf16, #tpu.memory_space<vmem>>, vector<1x8x288xbf16>
    %59 = vector.shape_cast %58 : vector<1x8x288xbf16> to vector<8x288xbf16>
    %c9 = arith.constant 9 : index
    %c0_58 = arith.constant 0 : index
    %c0_59 = arith.constant 0 : index
    %60 = vector.load %arg2[%c9, %c0_58, %c0_59] : memref<16x4x8xbf16, #tpu.memory_space<vmem>>, vector<1x4x8xbf16>
    %61 = vector.shape_cast %60 : vector<1x4x8xbf16> to vector<4x8xbf16>
    %cst_60 = arith.constant dense<0.000000e+00> : vector<4x288xf32>
    %62 = tpu.matmul %61, %59, %cst_60 {dimension_numbers = #tpu.dot_dimension_numbers<[1], [0], [0], [1], [0, 0, 1, 1], [], []>} : vector<4x8xbf16>, vector<8x288xbf16>, vector<4x288xf32> -> vector<4x288xf32>
    %63 = arith.addf %57, %62 : vector<4x288xf32>
    %c0_61 = arith.constant 0 : index
    %c0_62 = arith.constant 0 : index
    %c36 = arith.constant 36 : index
    %64 = vector.load %arg1[%c0_61, %c0_62, %c36] : memref<1x8x384xbf16, #tpu.memory_space<vmem>>, vector<1x8x288xbf16>
    %65 = vector.shape_cast %64 : vector<1x8x288xbf16> to vector<8x288xbf16>
    %c10 = arith.constant 10 : index
    %c0_63 = arith.constant 0 : index
    %c0_64 = arith.constant 0 : index
    %66 = vector.load %arg2[%c10, %c0_63, %c0_64] : memref<16x4x8xbf16, #tpu.memory_space<vmem>>, vector<1x4x8xbf16>
    %67 = vector.shape_cast %66 : vector<1x4x8xbf16> to vector<4x8xbf16>
    %cst_65 = arith.constant dense<0.000000e+00> : vector<4x288xf32>
    %68 = tpu.matmul %67, %65, %cst_65 {dimension_numbers = #tpu.dot_dimension_numbers<[1], [0], [0], [1], [0, 0, 1, 1], [], []>} : vector<4x8xbf16>, vector<8x288xbf16>, vector<4x288xf32> -> vector<4x288xf32>
    %69 = arith.addf %63, %68 : vector<4x288xf32>
    %c0_66 = arith.constant 0 : index
    %c0_67 = arith.constant 0 : index
    %c37 = arith.constant 37 : index
    %70 = vector.load %arg1[%c0_66, %c0_67, %c37] : memref<1x8x384xbf16, #tpu.memory_space<vmem>>, vector<1x8x288xbf16>
    %71 = vector.shape_cast %70 : vector<1x8x288xbf16> to vector<8x288xbf16>
    %c11 = arith.constant 11 : index
    %c0_68 = arith.constant 0 : index
    %c0_69 = arith.constant 0 : index
    %72 = vector.load %arg2[%c11, %c0_68, %c0_69] : memref<16x4x8xbf16, #tpu.memory_space<vmem>>, vector<1x4x8xbf16>
    %73 = vector.shape_cast %72 : vector<1x4x8xbf16> to vector<4x8xbf16>
    %cst_70 = arith.constant dense<0.000000e+00> : vector<4x288xf32>
    %74 = tpu.matmul %73, %71, %cst_70 {dimension_numbers = #tpu.dot_dimension_numbers<[1], [0], [0], [1], [0, 0, 1, 1], [], []>} : vector<4x8xbf16>, vector<8x288xbf16>, vector<4x288xf32> -> vector<4x288xf32>
    %75 = arith.addf %69, %74 : vector<4x288xf32>
    %cst_71 = arith.constant 0.000000e+00 : f32
    %76 = vector.broadcast %cst_71 : f32 to vector<4x288xf32>
    %c0_72 = arith.constant 0 : index
    %c0_73 = arith.constant 0 : index
    %c19_74 = arith.constant 19 : index
    %77 = vector.load %arg1[%c0_72, %c0_73, %c19_74] : memref<1x8x384xbf16, #tpu.memory_space<vmem>>, vector<1x8x288xbf16>
    %78 = vector.shape_cast %77 : vector<1x8x288xbf16> to vector<8x288xbf16>
    %c12 = arith.constant 12 : index
    %c0_75 = arith.constant 0 : index
    %c0_76 = arith.constant 0 : index
    %79 = vector.load %arg2[%c12, %c0_75, %c0_76] : memref<16x4x8xbf16, #tpu.memory_space<vmem>>, vector<1x4x8xbf16>
    %80 = vector.shape_cast %79 : vector<1x4x8xbf16> to vector<4x8xbf16>
    %cst_77 = arith.constant dense<0.000000e+00> : vector<4x288xf32>
    %81 = tpu.matmul %80, %78, %cst_77 {dimension_numbers = #tpu.dot_dimension_numbers<[1], [0], [0], [1], [0, 0, 1, 1], [], []>} : vector<4x8xbf16>, vector<8x288xbf16>, vector<4x288xf32> -> vector<4x288xf32>
    %82 = arith.addf %76, %81 : vector<4x288xf32>
    %c0_78 = arith.constant 0 : index
    %c0_79 = arith.constant 0 : index
    %c20_80 = arith.constant 20 : index
    %83 = vector.load %arg1[%c0_78, %c0_79, %c20_80] : memref<1x8x384xbf16, #tpu.memory_space<vmem>>, vector<1x8x288xbf16>
    %84 = vector.shape_cast %83 : vector<1x8x288xbf16> to vector<8x288xbf16>
    %c13 = arith.constant 13 : index
    %c0_81 = arith.constant 0 : index
    %c0_82 = arith.constant 0 : index
    %85 = vector.load %arg2[%c13, %c0_81, %c0_82] : memref<16x4x8xbf16, #tpu.memory_space<vmem>>, vector<1x4x8xbf16>
    %86 = vector.shape_cast %85 : vector<1x4x8xbf16> to vector<4x8xbf16>
    %cst_83 = arith.constant dense<0.000000e+00> : vector<4x288xf32>
    %87 = tpu.matmul %86, %84, %cst_83 {dimension_numbers = #tpu.dot_dimension_numbers<[1], [0], [0], [1], [0, 0, 1, 1], [], []>} : vector<4x8xbf16>, vector<8x288xbf16>, vector<4x288xf32> -> vector<4x288xf32>
    %88 = arith.addf %82, %87 : vector<4x288xf32>
    %c0_84 = arith.constant 0 : index
    %c0_85 = arith.constant 0 : index
    %c37_86 = arith.constant 37 : index
    %89 = vector.load %arg1[%c0_84, %c0_85, %c37_86] : memref<1x8x384xbf16, #tpu.memory_space<vmem>>, vector<1x8x288xbf16>
    %90 = vector.shape_cast %89 : vector<1x8x288xbf16> to vector<8x288xbf16>
    %c14 = arith.constant 14 : index
    %c0_87 = arith.constant 0 : index
    %c0_88 = arith.constant 0 : index
    %91 = vector.load %arg2[%c14, %c0_87, %c0_88] : memref<16x4x8xbf16, #tpu.memory_space<vmem>>, vector<1x4x8xbf16>
    %92 = vector.shape_cast %91 : vector<1x4x8xbf16> to vector<4x8xbf16>
    %cst_89 = arith.constant dense<0.000000e+00> : vector<4x288xf32>
    %93 = tpu.matmul %92, %90, %cst_89 {dimension_numbers = #tpu.dot_dimension_numbers<[1], [0], [0], [1], [0, 0, 1, 1], [], []>} : vector<4x8xbf16>, vector<8x288xbf16>, vector<4x288xf32> -> vector<4x288xf32>
    %94 = arith.addf %88, %93 : vector<4x288xf32>
    %c0_90 = arith.constant 0 : index
    %c0_91 = arith.constant 0 : index
    %c38 = arith.constant 38 : index
    %95 = vector.load %arg1[%c0_90, %c0_91, %c38] : memref<1x8x384xbf16, #tpu.memory_space<vmem>>, vector<1x8x288xbf16>
    %96 = vector.shape_cast %95 : vector<1x8x288xbf16> to vector<8x288xbf16>
    %c15 = arith.constant 15 : index
    %c0_92 = arith.constant 0 : index
    %c0_93 = arith.constant 0 : index
    %97 = vector.load %arg2[%c15, %c0_92, %c0_93] : memref<16x4x8xbf16, #tpu.memory_space<vmem>>, vector<1x4x8xbf16>
    %98 = vector.shape_cast %97 : vector<1x4x8xbf16> to vector<4x8xbf16>
    %cst_94 = arith.constant dense<0.000000e+00> : vector<4x288xf32>
    %99 = tpu.matmul %98, %96, %cst_94 {dimension_numbers = #tpu.dot_dimension_numbers<[1], [0], [0], [1], [0, 0, 1, 1], [], []>} : vector<4x8xbf16>, vector<8x288xbf16>, vector<4x288xf32> -> vector<4x288xf32>
    %100 = arith.addf %94, %99 : vector<4x288xf32>
    %101 = vector.broadcast %0 : vector<1x288xf32> to vector<4x288xf32>
    %102 = arith.mulf %25, %101 : vector<4x288xf32>
    %cst_95 = arith.constant dense<0.000000e+00> : vector<4xf32>
    %103 = vector.multi_reduction <add>, %102, %cst_95 [1] : vector<4x288xf32> to vector<4xf32>
    %104 = vector.shape_cast %103 : vector<4xf32> to vector<4x1xf32>
    %cst_96 = arith.constant 0.000000e+00 : f32
    %105 = vector.broadcast %cst_96 : f32 to vector<4x1xf32>
    %106 = arith.addf %105, %104 : vector<4x1xf32>
    %107 = vector.broadcast %0 : vector<1x288xf32> to vector<4x288xf32>
    %108 = arith.mulf %50, %107 : vector<4x288xf32>
    %cst_97 = arith.constant dense<0.000000e+00> : vector<4xf32>
    %109 = vector.multi_reduction <add>, %108, %cst_97 [1] : vector<4x288xf32> to vector<4xf32>
    %110 = vector.shape_cast %109 : vector<4xf32> to vector<4x1xf32>
    %111 = arith.addf %106, %110 : vector<4x1xf32>
    %112 = vector.broadcast %0 : vector<1x288xf32> to vector<4x288xf32>
    %113 = arith.mulf %75, %112 : vector<4x288xf32>
    %cst_98 = arith.constant dense<0.000000e+00> : vector<4xf32>
    %114 = vector.multi_reduction <add>, %113, %cst_98 [1] : vector<4x288xf32> to vector<4xf32>
    %115 = vector.shape_cast %114 : vector<4xf32> to vector<4x1xf32>
    %116 = arith.addf %111, %115 : vector<4x1xf32>
    %117 = vector.broadcast %0 : vector<1x288xf32> to vector<4x288xf32>
    %118 = arith.mulf %100, %117 : vector<4x288xf32>
    %cst_99 = arith.constant dense<0.000000e+00> : vector<4xf32>
    %119 = vector.multi_reduction <add>, %118, %cst_99 [1] : vector<4x288xf32> to vector<4xf32>
    %120 = vector.shape_cast %119 : vector<4xf32> to vector<4x1xf32>
    %121 = arith.addf %116, %120 : vector<4x1xf32>
    %cst_100 = arith.constant 1.024000e+03 : f32
    %122 = vector.broadcast %cst_100 : f32 to vector<4x1xf32>
    %123 = arith.divf %121, %122 : vector<4x1xf32>
    %124 = vector.broadcast %123 : vector<4x1xf32> to vector<4x288xf32>
    %125 = arith.subf %25, %124 : vector<4x288xf32>
    %126 = vector.broadcast %0 : vector<1x288xf32> to vector<4x288xf32>
    %127 = arith.mulf %125, %126 : vector<4x288xf32>
    %128 = vector.broadcast %123 : vector<4x1xf32> to vector<4x288xf32>
    %129 = arith.subf %50, %128 : vector<4x288xf32>
    %130 = vector.broadcast %0 : vector<1x288xf32> to vector<4x288xf32>
    %131 = arith.mulf %129, %130 : vector<4x288xf32>
    %132 = vector.broadcast %123 : vector<4x1xf32> to vector<4x288xf32>
    %133 = arith.subf %75, %132 : vector<4x288xf32>
    %134 = vector.broadcast %0 : vector<1x288xf32> to vector<4x288xf32>
    %135 = arith.mulf %133, %134 : vector<4x288xf32>
    %136 = vector.broadcast %123 : vector<4x1xf32> to vector<4x288xf32>
    %137 = arith.subf %100, %136 : vector<4x288xf32>
    %138 = vector.broadcast %0 : vector<1x288xf32> to vector<4x288xf32>
    %139 = arith.mulf %137, %138 : vector<4x288xf32>
    %140 = arith.mulf %127, %127 : vector<4x288xf32>
    %cst_101 = arith.constant dense<0.000000e+00> : vector<4xf32>
    %141 = vector.multi_reduction <add>, %140, %cst_101 [1] : vector<4x288xf32> to vector<4xf32>
    %142 = vector.shape_cast %141 : vector<4xf32> to vector<4x1xf32>
    %cst_102 = arith.constant 0.000000e+00 : f32
    %143 = vector.broadcast %cst_102 : f32 to vector<4x1xf32>
    %144 = arith.addf %143, %142 : vector<4x1xf32>
    %145 = arith.mulf %131, %131 : vector<4x288xf32>
    %cst_103 = arith.constant dense<0.000000e+00> : vector<4xf32>
    %146 = vector.multi_reduction <add>, %145, %cst_103 [1] : vector<4x288xf32> to vector<4xf32>
    %147 = vector.shape_cast %146 : vector<4xf32> to vector<4x1xf32>
    %148 = arith.addf %144, %147 : vector<4x1xf32>
    %149 = arith.mulf %135, %135 : vector<4x288xf32>
    %cst_104 = arith.constant dense<0.000000e+00> : vector<4xf32>
    %150 = vector.multi_reduction <add>, %149, %cst_104 [1] : vector<4x288xf32> to vector<4xf32>
    %151 = vector.shape_cast %150 : vector<4xf32> to vector<4x1xf32>
    %152 = arith.addf %148, %151 : vector<4x1xf32>
    %153 = arith.mulf %139, %139 : vector<4x288xf32>
    %cst_105 = arith.constant dense<0.000000e+00> : vector<4xf32>
    %154 = vector.multi_reduction <add>, %153, %cst_105 [1] : vector<4x288xf32> to vector<4xf32>
    %155 = vector.shape_cast %154 : vector<4xf32> to vector<4x1xf32>
    %156 = arith.addf %152, %155 : vector<4x1xf32>
    %cst_106 = arith.constant 1.024000e+03 : f32
    %157 = vector.broadcast %cst_106 : f32 to vector<4x1xf32>
    %158 = arith.divf %156, %157 : vector<4x1xf32>
    %cst_107 = arith.constant 9.99999974E-6 : f32
    %159 = vector.broadcast %cst_107 : f32 to vector<4x1xf32>
    %160 = arith.addf %158, %159 : vector<4x1xf32>
    %161 = math.rsqrt %160 : vector<4x1xf32>
    %c0_108 = arith.constant 0 : index
    %c0_109 = arith.constant 0 : index
    %162 = vector.load %arg3[%c0_108, %c0_109] : memref<4x1xf32, #tpu.memory_space<vmem>>, vector<4x1xf32>
    %163 = arith.mulf %161, %162 : vector<4x1xf32>
    %c0_110 = arith.constant 0 : index
    %c0_111 = arith.constant 0 : index
    %164 = vector.load %arg4[%c0_110, %c0_111] : memref<4x1xf32, #tpu.memory_space<vmem>>, vector<4x1xf32>
    %165 = vector.broadcast %163 : vector<4x1xf32> to vector<4x288xf32>
    %166 = arith.mulf %127, %165 : vector<4x288xf32>
    %167 = vector.broadcast %164 : vector<4x1xf32> to vector<4x288xf32>
    %168 = arith.addf %166, %167 : vector<4x288xf32>
    %cst_112 = arith.constant 0.000000e+00 : f32
    %169 = vector.broadcast %cst_112 : f32 to vector<4x288xf32>
    %170 = arith.maximumf %168, %169 : vector<4x288xf32>
    %171 = arith.truncf %170 : vector<4x288xf32> to vector<4x288xbf16>
    %c0_113 = arith.constant 0 : index
    %c0_114 = arith.constant 0 : index
    %c0_115 = arith.constant 0 : index
    %c0_116 = arith.constant 0 : index
    %172 = vector.load %arg6[%c0_113, %c0_114, %c0_115, %c0_116] : memref<1x4x4x288xbf16, #tpu.memory_space<vmem>>, vector<1x1x4x288xbf16>
    %173 = vector.shape_cast %172 : vector<1x1x4x288xbf16> to vector<4x288xbf16>
    %174 = vector.shape_cast %171 : vector<4x288xbf16> to vector<1x1x4x288xbf16>
    tpu.vector_store %arg6[%c0_113, %c0_114, %c0_115, %c0_116], %174 {strides = array<i32>} : memref<1x4x4x288xbf16, #tpu.memory_space<vmem>>, vector<1x1x4x288xbf16>,
    %175 = vector.broadcast %163 : vector<4x1xf32> to vector<4x288xf32>
    %176 = arith.mulf %131, %175 : vector<4x288xf32>
    %177 = vector.broadcast %164 : vector<4x1xf32> to vector<4x288xf32>
    %178 = arith.addf %176, %177 : vector<4x288xf32>
    %cst_117 = arith.constant 0.000000e+00 : f32
    %179 = vector.broadcast %cst_117 : f32 to vector<4x288xf32>
    %180 = arith.maximumf %178, %179 : vector<4x288xf32>
    %181 = arith.truncf %180 : vector<4x288xf32> to vector<4x288xbf16>
    %c0_118 = arith.constant 0 : index
    %c1_119 = arith.constant 1 : index
    %c0_120 = arith.constant 0 : index
    %c0_121 = arith.constant 0 : index
    %182 = vector.load %arg6[%c0_118, %c1_119, %c0_120, %c0_121] : memref<1x4x4x288xbf16, #tpu.memory_space<vmem>>, vector<1x1x4x288xbf16>
    %183 = vector.shape_cast %182 : vector<1x1x4x288xbf16> to vector<4x288xbf16>
    %184 = vector.shape_cast %181 : vector<4x288xbf16> to vector<1x1x4x288xbf16>
    tpu.vector_store %arg6[%c0_118, %c1_119, %c0_120, %c0_121], %184 {strides = array<i32>} : memref<1x4x4x288xbf16, #tpu.memory_space<vmem>>, vector<1x1x4x288xbf16>,
    %185 = vector.broadcast %163 : vector<4x1xf32> to vector<4x288xf32>
    %186 = arith.mulf %135, %185 : vector<4x288xf32>
    %187 = vector.broadcast %164 : vector<4x1xf32> to vector<4x288xf32>
    %188 = arith.addf %186, %187 : vector<4x288xf32>
    %cst_122 = arith.constant 0.000000e+00 : f32
    %189 = vector.broadcast %cst_122 : f32 to vector<4x288xf32>
    %190 = arith.maximumf %188, %189 : vector<4x288xf32>
    %191 = arith.truncf %190 : vector<4x288xf32> to vector<4x288xbf16>
    %c0_123 = arith.constant 0 : index
    %c2_124 = arith.constant 2 : index
    %c0_125 = arith.constant 0 : index
    %c0_126 = arith.constant 0 : index
    %192 = vector.load %arg6[%c0_123, %c2_124, %c0_125, %c0_126] : memref<1x4x4x288xbf16, #tpu.memory_space<vmem>>, vector<1x1x4x288xbf16>
    %193 = vector.shape_cast %192 : vector<1x1x4x288xbf16> to vector<4x288xbf16>
    %194 = vector.shape_cast %191 : vector<4x288xbf16> to vector<1x1x4x288xbf16>
    tpu.vector_store %arg6[%c0_123, %c2_124, %c0_125, %c0_126], %194 {strides = array<i32>} : memref<1x4x4x288xbf16, #tpu.memory_space<vmem>>, vector<1x1x4x288xbf16>,
    %195 = vector.broadcast %163 : vector<4x1xf32> to vector<4x288xf32>
    %196 = arith.mulf %139, %195 : vector<4x288xf32>
    %197 = vector.broadcast %164 : vector<4x1xf32> to vector<4x288xf32>
    %198 = arith.addf %196, %197 : vector<4x288xf32>
    %cst_127 = arith.constant 0.000000e+00 : f32
    %199 = vector.broadcast %cst_127 : f32 to vector<4x288xf32>
    %200 = arith.maximumf %198, %199 : vector<4x288xf32>
    %201 = arith.truncf %200 : vector<4x288xf32> to vector<4x288xbf16>
    %c0_128 = arith.constant 0 : index
    %c3_129 = arith.constant 3 : index
    %c0_130 = arith.constant 0 : index
    %c0_131 = arith.constant 0 : index
    %202 = vector.load %arg6[%c0_128, %c3_129, %c0_130, %c0_131] : memref<1x4x4x288xbf16, #tpu.memory_space<vmem>>, vector<1x1x4x288xbf16>
    %203 = vector.shape_cast %202 : vector<1x1x4x288xbf16> to vector<4x288xbf16>
    %204 = vector.shape_cast %201 : vector<4x288xbf16> to vector<1x1x4x288xbf16>
    tpu.vector_store %arg6[%c0_128, %c3_129, %c0_130, %c0_131], %204 {strides = array<i32>} : memref<1x4x4x288xbf16, #tpu.memory_space<vmem>>, vector<1x1x4x288xbf16>,
    return
  }
  func.func @transform_0(%arg0: i32) -> (i32, i32, i32) {
    %c0_i32 = arith.constant 0 : i32
    %c0_i32_0 = arith.constant 0 : i32
    %c0_i32_1 = arith.constant 0 : i32
    return %arg0, %c0_i32, %c0_i32_0 : i32, i32, i32
  }
  func.func @transform_1(%arg0: i32) -> (i32, i32, i32) {
    %c0_i32 = arith.constant 0 : i32
    %c0_i32_0 = arith.constant 0 : i32
    %c0_i32_1 = arith.constant 0 : i32
    %c0_i32_2 = arith.constant 0 : i32
    return %c0_i32, %c0_i32_0, %c0_i32_1 : i32, i32, i32
  }
  func.func @transform_2(%arg0: i32) -> (i32, i32) {
    %c0_i32 = arith.constant 0 : i32
    %c0_i32_0 = arith.constant 0 : i32
    %c0_i32_1 = arith.constant 0 : i32
    return %c0_i32, %c0_i32_0 : i32, i32
  }
  func.func @transform_3(%arg0: i32) -> (i32, i32) {
    %c0_i32 = arith.constant 0 : i32
    %c0_i32_0 = arith.constant 0 : i32
    %c0_i32_1 = arith.constant 0 : i32
    return %c0_i32, %c0_i32_0 : i32, i32
  }
  func.func @transform_4(%arg0: i32) -> (i32, i32) {
    %c0_i32 = arith.constant 0 : i32
    %c0_i32_0 = arith.constant 0 : i32
    %c0_i32_1 = arith.constant 0 : i32
    return %c0_i32, %c0_i32_0 : i32, i32
  }
  func.func @transform_5(%arg0: i32) -> (i32, i32, i32, i32) {
    %c0_i32 = arith.constant 0 : i32
    %c0_i32_0 = arith.constant 0 : i32
    %c0_i32_1 = arith.constant 0 : i32
    %c0_i32_2 = arith.constant 0 : i32
    return %arg0, %c0_i32, %c0_i32_0, %c0_i32_1 : i32, i32, i32, i32
  }
}

module attributes {stable_mosaic.version = 11 : i64} {
  func.func @_reflect_conv_bias_kernel(%arg0: i32, %arg1: memref<1x4x1536xbf16, #tpu.memory_space<vmem>>, %arg2: memref<49x8x4xbf16, #tpu.memory_space<vmem>>, %arg3: memref<8x1xf32, #tpu.memory_space<vmem>>, %arg4: memref<1x8x1216xf32, #tpu.memory_space<vmem>>) attributes {dimension_semantics = [#tpu.dimension_semantics<parallel>], iteration_bounds = array<i64: 2>, scalar_prefetch = 0 : i64, scratch_operands = 0 : i64, tpu.core_type = #tpu.core_type<tc>, window_params = [{transform_indices = @transform_0, window_bounds = array<i64: 1, 4, 1536>}, {pipeline_mode = #tpu.pipeline_mode<synchronous>, transform_indices = @transform_1, window_bounds = array<i64: 49, 8, 4>}, {pipeline_mode = #tpu.pipeline_mode<synchronous>, transform_indices = @transform_2, window_bounds = array<i64: 8, 1>}, {transform_indices = @transform_3, window_bounds = array<i64: 1, 8, 1216>}]} {
    %cst = arith.constant 0.000000e+00 : f32
    %0 = vector.broadcast %cst : f32 to vector<8x1216xf32>
    %c0 = arith.constant 0 : index
    %c0_0 = arith.constant 0 : index
    %c0_1 = arith.constant 0 : index
    %1 = vector.load %arg1[%c0, %c0_0, %c0_1] : memref<1x4x1536xbf16, #tpu.memory_space<vmem>>, vector<1x4x1216xbf16>
    %2 = vector.shape_cast %1 : vector<1x4x1216xbf16> to vector<4x1216xbf16>
    %c0_2 = arith.constant 0 : index
    %c0_3 = arith.constant 0 : index
    %c0_4 = arith.constant 0 : index
    %3 = vector.load %arg2[%c0_2, %c0_3, %c0_4] : memref<49x8x4xbf16, #tpu.memory_space<vmem>>, vector<1x8x4xbf16>
    %4 = vector.shape_cast %3 : vector<1x8x4xbf16> to vector<8x4xbf16>
    %cst_5 = arith.constant dense<0.000000e+00> : vector<8x1216xf32>
    %5 = tpu.matmul %4, %2, %cst_5 {dimension_numbers = #tpu.dot_dimension_numbers<[1], [0], [0], [1], [0, 0, 1, 1], [], []>} : vector<8x4xbf16>, vector<4x1216xbf16>, vector<8x1216xf32> -> vector<8x1216xf32>
    %6 = arith.addf %0, %5 : vector<8x1216xf32>
    %c0_6 = arith.constant 0 : index
    %c0_7 = arith.constant 0 : index
    %c1 = arith.constant 1 : index
    %7 = vector.load %arg1[%c0_6, %c0_7, %c1] : memref<1x4x1536xbf16, #tpu.memory_space<vmem>>, vector<1x4x1216xbf16>
    %8 = vector.shape_cast %7 : vector<1x4x1216xbf16> to vector<4x1216xbf16>
    %c1_8 = arith.constant 1 : index
    %c0_9 = arith.constant 0 : index
    %c0_10 = arith.constant 0 : index
    %9 = vector.load %arg2[%c1_8, %c0_9, %c0_10] : memref<49x8x4xbf16, #tpu.memory_space<vmem>>, vector<1x8x4xbf16>
    %10 = vector.shape_cast %9 : vector<1x8x4xbf16> to vector<8x4xbf16>
    %cst_11 = arith.constant dense<0.000000e+00> : vector<8x1216xf32>
    %11 = tpu.matmul %10, %8, %cst_11 {dimension_numbers = #tpu.dot_dimension_numbers<[1], [0], [0], [1], [0, 0, 1, 1], [], []>} : vector<8x4xbf16>, vector<4x1216xbf16>, vector<8x1216xf32> -> vector<8x1216xf32>
    %12 = arith.addf %6, %11 : vector<8x1216xf32>
    %c0_12 = arith.constant 0 : index
    %c0_13 = arith.constant 0 : index
    %c2 = arith.constant 2 : index
    %13 = vector.load %arg1[%c0_12, %c0_13, %c2] : memref<1x4x1536xbf16, #tpu.memory_space<vmem>>, vector<1x4x1216xbf16>
    %14 = vector.shape_cast %13 : vector<1x4x1216xbf16> to vector<4x1216xbf16>
    %c2_14 = arith.constant 2 : index
    %c0_15 = arith.constant 0 : index
    %c0_16 = arith.constant 0 : index
    %15 = vector.load %arg2[%c2_14, %c0_15, %c0_16] : memref<49x8x4xbf16, #tpu.memory_space<vmem>>, vector<1x8x4xbf16>
    %16 = vector.shape_cast %15 : vector<1x8x4xbf16> to vector<8x4xbf16>
    %cst_17 = arith.constant dense<0.000000e+00> : vector<8x1216xf32>
    %17 = tpu.matmul %16, %14, %cst_17 {dimension_numbers = #tpu.dot_dimension_numbers<[1], [0], [0], [1], [0, 0, 1, 1], [], []>} : vector<8x4xbf16>, vector<4x1216xbf16>, vector<8x1216xf32> -> vector<8x1216xf32>
    %18 = arith.addf %12, %17 : vector<8x1216xf32>
    %c0_18 = arith.constant 0 : index
    %c0_19 = arith.constant 0 : index
    %c3 = arith.constant 3 : index
    %19 = vector.load %arg1[%c0_18, %c0_19, %c3] : memref<1x4x1536xbf16, #tpu.memory_space<vmem>>, vector<1x4x1216xbf16>
    %20 = vector.shape_cast %19 : vector<1x4x1216xbf16> to vector<4x1216xbf16>
    %c3_20 = arith.constant 3 : index
    %c0_21 = arith.constant 0 : index
    %c0_22 = arith.constant 0 : index
    %21 = vector.load %arg2[%c3_20, %c0_21, %c0_22] : memref<49x8x4xbf16, #tpu.memory_space<vmem>>, vector<1x8x4xbf16>
    %22 = vector.shape_cast %21 : vector<1x8x4xbf16> to vector<8x4xbf16>
    %cst_23 = arith.constant dense<0.000000e+00> : vector<8x1216xf32>
    %23 = tpu.matmul %22, %20, %cst_23 {dimension_numbers = #tpu.dot_dimension_numbers<[1], [0], [0], [1], [0, 0, 1, 1], [], []>} : vector<8x4xbf16>, vector<4x1216xbf16>, vector<8x1216xf32> -> vector<8x1216xf32>
    %24 = arith.addf %18, %23 : vector<8x1216xf32>
    %c0_24 = arith.constant 0 : index
    %c0_25 = arith.constant 0 : index
    %c4 = arith.constant 4 : index
    %25 = vector.load %arg1[%c0_24, %c0_25, %c4] : memref<1x4x1536xbf16, #tpu.memory_space<vmem>>, vector<1x4x1216xbf16>
    %26 = vector.shape_cast %25 : vector<1x4x1216xbf16> to vector<4x1216xbf16>
    %c4_26 = arith.constant 4 : index
    %c0_27 = arith.constant 0 : index
    %c0_28 = arith.constant 0 : index
    %27 = vector.load %arg2[%c4_26, %c0_27, %c0_28] : memref<49x8x4xbf16, #tpu.memory_space<vmem>>, vector<1x8x4xbf16>
    %28 = vector.shape_cast %27 : vector<1x8x4xbf16> to vector<8x4xbf16>
    %cst_29 = arith.constant dense<0.000000e+00> : vector<8x1216xf32>
    %29 = tpu.matmul %28, %26, %cst_29 {dimension_numbers = #tpu.dot_dimension_numbers<[1], [0], [0], [1], [0, 0, 1, 1], [], []>} : vector<8x4xbf16>, vector<4x1216xbf16>, vector<8x1216xf32> -> vector<8x1216xf32>
    %30 = arith.addf %24, %29 : vector<8x1216xf32>
    %c0_30 = arith.constant 0 : index
    %c0_31 = arith.constant 0 : index
    %c5 = arith.constant 5 : index
    %31 = vector.load %arg1[%c0_30, %c0_31, %c5] : memref<1x4x1536xbf16, #tpu.memory_space<vmem>>, vector<1x4x1216xbf16>
    %32 = vector.shape_cast %31 : vector<1x4x1216xbf16> to vector<4x1216xbf16>
    %c5_32 = arith.constant 5 : index
    %c0_33 = arith.constant 0 : index
    %c0_34 = arith.constant 0 : index
    %33 = vector.load %arg2[%c5_32, %c0_33, %c0_34] : memref<49x8x4xbf16, #tpu.memory_space<vmem>>, vector<1x8x4xbf16>
    %34 = vector.shape_cast %33 : vector<1x8x4xbf16> to vector<8x4xbf16>
    %cst_35 = arith.constant dense<0.000000e+00> : vector<8x1216xf32>
    %35 = tpu.matmul %34, %32, %cst_35 {dimension_numbers = #tpu.dot_dimension_numbers<[1], [0], [0], [1], [0, 0, 1, 1], [], []>} : vector<8x4xbf16>, vector<4x1216xbf16>, vector<8x1216xf32> -> vector<8x1216xf32>
    %36 = arith.addf %30, %35 : vector<8x1216xf32>
    %c0_36 = arith.constant 0 : index
    %c0_37 = arith.constant 0 : index
    %c6 = arith.constant 6 : index
    %37 = vector.load %arg1[%c0_36, %c0_37, %c6] : memref<1x4x1536xbf16, #tpu.memory_space<vmem>>, vector<1x4x1216xbf16>
    %38 = vector.shape_cast %37 : vector<1x4x1216xbf16> to vector<4x1216xbf16>
    %c6_38 = arith.constant 6 : index
    %c0_39 = arith.constant 0 : index
    %c0_40 = arith.constant 0 : index
    %39 = vector.load %arg2[%c6_38, %c0_39, %c0_40] : memref<49x8x4xbf16, #tpu.memory_space<vmem>>, vector<1x8x4xbf16>
    %40 = vector.shape_cast %39 : vector<1x8x4xbf16> to vector<8x4xbf16>
    %cst_41 = arith.constant dense<0.000000e+00> : vector<8x1216xf32>
    %41 = tpu.matmul %40, %38, %cst_41 {dimension_numbers = #tpu.dot_dimension_numbers<[1], [0], [0], [1], [0, 0, 1, 1], [], []>} : vector<8x4xbf16>, vector<4x1216xbf16>, vector<8x1216xf32> -> vector<8x1216xf32>
    %42 = arith.addf %36, %41 : vector<8x1216xf32>
    %c0_42 = arith.constant 0 : index
    %c0_43 = arith.constant 0 : index
    %c38 = arith.constant 38 : index
    %43 = vector.load %arg1[%c0_42, %c0_43, %c38] : memref<1x4x1536xbf16, #tpu.memory_space<vmem>>, vector<1x4x1216xbf16>
    %44 = vector.shape_cast %43 : vector<1x4x1216xbf16> to vector<4x1216xbf16>
    %c7 = arith.constant 7 : index
    %c0_44 = arith.constant 0 : index
    %c0_45 = arith.constant 0 : index
    %45 = vector.load %arg2[%c7, %c0_44, %c0_45] : memref<49x8x4xbf16, #tpu.memory_space<vmem>>, vector<1x8x4xbf16>
    %46 = vector.shape_cast %45 : vector<1x8x4xbf16> to vector<8x4xbf16>
    %cst_46 = arith.constant dense<0.000000e+00> : vector<8x1216xf32>
    %47 = tpu.matmul %46, %44, %cst_46 {dimension_numbers = #tpu.dot_dimension_numbers<[1], [0], [0], [1], [0, 0, 1, 1], [], []>} : vector<8x4xbf16>, vector<4x1216xbf16>, vector<8x1216xf32> -> vector<8x1216xf32>
    %48 = arith.addf %42, %47 : vector<8x1216xf32>
    %c0_47 = arith.constant 0 : index
    %c0_48 = arith.constant 0 : index
    %c39 = arith.constant 39 : index
    %49 = vector.load %arg1[%c0_47, %c0_48, %c39] : memref<1x4x1536xbf16, #tpu.memory_space<vmem>>, vector<1x4x1216xbf16>
    %50 = vector.shape_cast %49 : vector<1x4x1216xbf16> to vector<4x1216xbf16>
    %c8 = arith.constant 8 : index
    %c0_49 = arith.constant 0 : index
    %c0_50 = arith.constant 0 : index
    %51 = vector.load %arg2[%c8, %c0_49, %c0_50] : memref<49x8x4xbf16, #tpu.memory_space<vmem>>, vector<1x8x4xbf16>
    %52 = vector.shape_cast %51 : vector<1x8x4xbf16> to vector<8x4xbf16>
    %cst_51 = arith.constant dense<0.000000e+00> : vector<8x1216xf32>
    %53 = tpu.matmul %52, %50, %cst_51 {dimension_numbers = #tpu.dot_dimension_numbers<[1], [0], [0], [1], [0, 0, 1, 1], [], []>} : vector<8x4xbf16>, vector<4x1216xbf16>, vector<8x1216xf32> -> vector<8x1216xf32>
    %54 = arith.addf %48, %53 : vector<8x1216xf32>
    %c0_52 = arith.constant 0 : index
    %c0_53 = arith.constant 0 : index
    %c40 = arith.constant 40 : index
    %55 = vector.load %arg1[%c0_52, %c0_53, %c40] : memref<1x4x1536xbf16, #tpu.memory_space<vmem>>, vector<1x4x1216xbf16>
    %56 = vector.shape_cast %55 : vector<1x4x1216xbf16> to vector<4x1216xbf16>
    %c9 = arith.constant 9 : index
    %c0_54 = arith.constant 0 : index
    %c0_55 = arith.constant 0 : index
    %57 = vector.load %arg2[%c9, %c0_54, %c0_55] : memref<49x8x4xbf16, #tpu.memory_space<vmem>>, vector<1x8x4xbf16>
    %58 = vector.shape_cast %57 : vector<1x8x4xbf16> to vector<8x4xbf16>
    %cst_56 = arith.constant dense<0.000000e+00> : vector<8x1216xf32>
    %59 = tpu.matmul %58, %56, %cst_56 {dimension_numbers = #tpu.dot_dimension_numbers<[1], [0], [0], [1], [0, 0, 1, 1], [], []>} : vector<8x4xbf16>, vector<4x1216xbf16>, vector<8x1216xf32> -> vector<8x1216xf32>
    %60 = arith.addf %54, %59 : vector<8x1216xf32>
    %c0_57 = arith.constant 0 : index
    %c0_58 = arith.constant 0 : index
    %c41 = arith.constant 41 : index
    %61 = vector.load %arg1[%c0_57, %c0_58, %c41] : memref<1x4x1536xbf16, #tpu.memory_space<vmem>>, vector<1x4x1216xbf16>
    %62 = vector.shape_cast %61 : vector<1x4x1216xbf16> to vector<4x1216xbf16>
    %c10 = arith.constant 10 : index
    %c0_59 = arith.constant 0 : index
    %c0_60 = arith.constant 0 : index
    %63 = vector.load %arg2[%c10, %c0_59, %c0_60] : memref<49x8x4xbf16, #tpu.memory_space<vmem>>, vector<1x8x4xbf16>
    %64 = vector.shape_cast %63 : vector<1x8x4xbf16> to vector<8x4xbf16>
    %cst_61 = arith.constant dense<0.000000e+00> : vector<8x1216xf32>
    %65 = tpu.matmul %64, %62, %cst_61 {dimension_numbers = #tpu.dot_dimension_numbers<[1], [0], [0], [1], [0, 0, 1, 1], [], []>} : vector<8x4xbf16>, vector<4x1216xbf16>, vector<8x1216xf32> -> vector<8x1216xf32>
    %66 = arith.addf %60, %65 : vector<8x1216xf32>
    %c0_62 = arith.constant 0 : index
    %c0_63 = arith.constant 0 : index
    %c42 = arith.constant 42 : index
    %67 = vector.load %arg1[%c0_62, %c0_63, %c42] : memref<1x4x1536xbf16, #tpu.memory_space<vmem>>, vector<1x4x1216xbf16>
    %68 = vector.shape_cast %67 : vector<1x4x1216xbf16> to vector<4x1216xbf16>
    %c11 = arith.constant 11 : index
    %c0_64 = arith.constant 0 : index
    %c0_65 = arith.constant 0 : index
    %69 = vector.load %arg2[%c11, %c0_64, %c0_65] : memref<49x8x4xbf16, #tpu.memory_space<vmem>>, vector<1x8x4xbf16>
    %70 = vector.shape_cast %69 : vector<1x8x4xbf16> to vector<8x4xbf16>
    %cst_66 = arith.constant dense<0.000000e+00> : vector<8x1216xf32>
    %71 = tpu.matmul %70, %68, %cst_66 {dimension_numbers = #tpu.dot_dimension_numbers<[1], [0], [0], [1], [0, 0, 1, 1], [], []>} : vector<8x4xbf16>, vector<4x1216xbf16>, vector<8x1216xf32> -> vector<8x1216xf32>
    %72 = arith.addf %66, %71 : vector<8x1216xf32>
    %c0_67 = arith.constant 0 : index
    %c0_68 = arith.constant 0 : index
    %c43 = arith.constant 43 : index
    %73 = vector.load %arg1[%c0_67, %c0_68, %c43] : memref<1x4x1536xbf16, #tpu.memory_space<vmem>>, vector<1x4x1216xbf16>
    %74 = vector.shape_cast %73 : vector<1x4x1216xbf16> to vector<4x1216xbf16>
    %c12 = arith.constant 12 : index
    %c0_69 = arith.constant 0 : index
    %c0_70 = arith.constant 0 : index
    %75 = vector.load %arg2[%c12, %c0_69, %c0_70] : memref<49x8x4xbf16, #tpu.memory_space<vmem>>, vector<1x8x4xbf16>
    %76 = vector.shape_cast %75 : vector<1x8x4xbf16> to vector<8x4xbf16>
    %cst_71 = arith.constant dense<0.000000e+00> : vector<8x1216xf32>
    %77 = tpu.matmul %76, %74, %cst_71 {dimension_numbers = #tpu.dot_dimension_numbers<[1], [0], [0], [1], [0, 0, 1, 1], [], []>} : vector<8x4xbf16>, vector<4x1216xbf16>, vector<8x1216xf32> -> vector<8x1216xf32>
    %78 = arith.addf %72, %77 : vector<8x1216xf32>
    %c0_72 = arith.constant 0 : index
    %c0_73 = arith.constant 0 : index
    %c44 = arith.constant 44 : index
    %79 = vector.load %arg1[%c0_72, %c0_73, %c44] : memref<1x4x1536xbf16, #tpu.memory_space<vmem>>, vector<1x4x1216xbf16>
    %80 = vector.shape_cast %79 : vector<1x4x1216xbf16> to vector<4x1216xbf16>
    %c13 = arith.constant 13 : index
    %c0_74 = arith.constant 0 : index
    %c0_75 = arith.constant 0 : index
    %81 = vector.load %arg2[%c13, %c0_74, %c0_75] : memref<49x8x4xbf16, #tpu.memory_space<vmem>>, vector<1x8x4xbf16>
    %82 = vector.shape_cast %81 : vector<1x8x4xbf16> to vector<8x4xbf16>
    %cst_76 = arith.constant dense<0.000000e+00> : vector<8x1216xf32>
    %83 = tpu.matmul %82, %80, %cst_76 {dimension_numbers = #tpu.dot_dimension_numbers<[1], [0], [0], [1], [0, 0, 1, 1], [], []>} : vector<8x4xbf16>, vector<4x1216xbf16>, vector<8x1216xf32> -> vector<8x1216xf32>
    %84 = arith.addf %78, %83 : vector<8x1216xf32>
    %c0_77 = arith.constant 0 : index
    %c0_78 = arith.constant 0 : index
    %c76 = arith.constant 76 : index
    %85 = vector.load %arg1[%c0_77, %c0_78, %c76] : memref<1x4x1536xbf16, #tpu.memory_space<vmem>>, vector<1x4x1216xbf16>
    %86 = vector.shape_cast %85 : vector<1x4x1216xbf16> to vector<4x1216xbf16>
    %c14 = arith.constant 14 : index
    %c0_79 = arith.constant 0 : index
    %c0_80 = arith.constant 0 : index
    %87 = vector.load %arg2[%c14, %c0_79, %c0_80] : memref<49x8x4xbf16, #tpu.memory_space<vmem>>, vector<1x8x4xbf16>
    %88 = vector.shape_cast %87 : vector<1x8x4xbf16> to vector<8x4xbf16>
    %cst_81 = arith.constant dense<0.000000e+00> : vector<8x1216xf32>
    %89 = tpu.matmul %88, %86, %cst_81 {dimension_numbers = #tpu.dot_dimension_numbers<[1], [0], [0], [1], [0, 0, 1, 1], [], []>} : vector<8x4xbf16>, vector<4x1216xbf16>, vector<8x1216xf32> -> vector<8x1216xf32>
    %90 = arith.addf %84, %89 : vector<8x1216xf32>
    %c0_82 = arith.constant 0 : index
    %c0_83 = arith.constant 0 : index
    %c77 = arith.constant 77 : index
    %91 = vector.load %arg1[%c0_82, %c0_83, %c77] : memref<1x4x1536xbf16, #tpu.memory_space<vmem>>, vector<1x4x1216xbf16>
    %92 = vector.shape_cast %91 : vector<1x4x1216xbf16> to vector<4x1216xbf16>
    %c15 = arith.constant 15 : index
    %c0_84 = arith.constant 0 : index
    %c0_85 = arith.constant 0 : index
    %93 = vector.load %arg2[%c15, %c0_84, %c0_85] : memref<49x8x4xbf16, #tpu.memory_space<vmem>>, vector<1x8x4xbf16>
    %94 = vector.shape_cast %93 : vector<1x8x4xbf16> to vector<8x4xbf16>
    %cst_86 = arith.constant dense<0.000000e+00> : vector<8x1216xf32>
    %95 = tpu.matmul %94, %92, %cst_86 {dimension_numbers = #tpu.dot_dimension_numbers<[1], [0], [0], [1], [0, 0, 1, 1], [], []>} : vector<8x4xbf16>, vector<4x1216xbf16>, vector<8x1216xf32> -> vector<8x1216xf32>
    %96 = arith.addf %90, %95 : vector<8x1216xf32>
    %c0_87 = arith.constant 0 : index
    %c0_88 = arith.constant 0 : index
    %c78 = arith.constant 78 : index
    %97 = vector.load %arg1[%c0_87, %c0_88, %c78] : memref<1x4x1536xbf16, #tpu.memory_space<vmem>>, vector<1x4x1216xbf16>
    %98 = vector.shape_cast %97 : vector<1x4x1216xbf16> to vector<4x1216xbf16>
    %c16 = arith.constant 16 : index
    %c0_89 = arith.constant 0 : index
    %c0_90 = arith.constant 0 : index
    %99 = vector.load %arg2[%c16, %c0_89, %c0_90] : memref<49x8x4xbf16, #tpu.memory_space<vmem>>, vector<1x8x4xbf16>
    %100 = vector.shape_cast %99 : vector<1x8x4xbf16> to vector<8x4xbf16>
    %cst_91 = arith.constant dense<0.000000e+00> : vector<8x1216xf32>
    %101 = tpu.matmul %100, %98, %cst_91 {dimension_numbers = #tpu.dot_dimension_numbers<[1], [0], [0], [1], [0, 0, 1, 1], [], []>} : vector<8x4xbf16>, vector<4x1216xbf16>, vector<8x1216xf32> -> vector<8x1216xf32>
    %102 = arith.addf %96, %101 : vector<8x1216xf32>
    %c0_92 = arith.constant 0 : index
    %c0_93 = arith.constant 0 : index
    %c79 = arith.constant 79 : index
    %103 = vector.load %arg1[%c0_92, %c0_93, %c79] : memref<1x4x1536xbf16, #tpu.memory_space<vmem>>, vector<1x4x1216xbf16>
    %104 = vector.shape_cast %103 : vector<1x4x1216xbf16> to vector<4x1216xbf16>
    %c17 = arith.constant 17 : index
    %c0_94 = arith.constant 0 : index
    %c0_95 = arith.constant 0 : index
    %105 = vector.load %arg2[%c17, %c0_94, %c0_95] : memref<49x8x4xbf16, #tpu.memory_space<vmem>>, vector<1x8x4xbf16>
    %106 = vector.shape_cast %105 : vector<1x8x4xbf16> to vector<8x4xbf16>
    %cst_96 = arith.constant dense<0.000000e+00> : vector<8x1216xf32>
    %107 = tpu.matmul %106, %104, %cst_96 {dimension_numbers = #tpu.dot_dimension_numbers<[1], [0], [0], [1], [0, 0, 1, 1], [], []>} : vector<8x4xbf16>, vector<4x1216xbf16>, vector<8x1216xf32> -> vector<8x1216xf32>
    %108 = arith.addf %102, %107 : vector<8x1216xf32>
    %c0_97 = arith.constant 0 : index
    %c0_98 = arith.constant 0 : index
    %c80 = arith.constant 80 : index
    %109 = vector.load %arg1[%c0_97, %c0_98, %c80] : memref<1x4x1536xbf16, #tpu.memory_space<vmem>>, vector<1x4x1216xbf16>
    %110 = vector.shape_cast %109 : vector<1x4x1216xbf16> to vector<4x1216xbf16>
    %c18 = arith.constant 18 : index
    %c0_99 = arith.constant 0 : index
    %c0_100 = arith.constant 0 : index
    %111 = vector.load %arg2[%c18, %c0_99, %c0_100] : memref<49x8x4xbf16, #tpu.memory_space<vmem>>, vector<1x8x4xbf16>
    %112 = vector.shape_cast %111 : vector<1x8x4xbf16> to vector<8x4xbf16>
    %cst_101 = arith.constant dense<0.000000e+00> : vector<8x1216xf32>
    %113 = tpu.matmul %112, %110, %cst_101 {dimension_numbers = #tpu.dot_dimension_numbers<[1], [0], [0], [1], [0, 0, 1, 1], [], []>} : vector<8x4xbf16>, vector<4x1216xbf16>, vector<8x1216xf32> -> vector<8x1216xf32>
    %114 = arith.addf %108, %113 : vector<8x1216xf32>
    %c0_102 = arith.constant 0 : index
    %c0_103 = arith.constant 0 : index
    %c81 = arith.constant 81 : index
    %115 = vector.load %arg1[%c0_102, %c0_103, %c81] : memref<1x4x1536xbf16, #tpu.memory_space<vmem>>, vector<1x4x1216xbf16>
    %116 = vector.shape_cast %115 : vector<1x4x1216xbf16> to vector<4x1216xbf16>
    %c19 = arith.constant 19 : index
    %c0_104 = arith.constant 0 : index
    %c0_105 = arith.constant 0 : index
    %117 = vector.load %arg2[%c19, %c0_104, %c0_105] : memref<49x8x4xbf16, #tpu.memory_space<vmem>>, vector<1x8x4xbf16>
    %118 = vector.shape_cast %117 : vector<1x8x4xbf16> to vector<8x4xbf16>
    %cst_106 = arith.constant dense<0.000000e+00> : vector<8x1216xf32>
    %119 = tpu.matmul %118, %116, %cst_106 {dimension_numbers = #tpu.dot_dimension_numbers<[1], [0], [0], [1], [0, 0, 1, 1], [], []>} : vector<8x4xbf16>, vector<4x1216xbf16>, vector<8x1216xf32> -> vector<8x1216xf32>
    %120 = arith.addf %114, %119 : vector<8x1216xf32>
    %c0_107 = arith.constant 0 : index
    %c0_108 = arith.constant 0 : index
    %c82 = arith.constant 82 : index
    %121 = vector.load %arg1[%c0_107, %c0_108, %c82] : memref<1x4x1536xbf16, #tpu.memory_space<vmem>>, vector<1x4x1216xbf16>
    %122 = vector.shape_cast %121 : vector<1x4x1216xbf16> to vector<4x1216xbf16>
    %c20 = arith.constant 20 : index
    %c0_109 = arith.constant 0 : index
    %c0_110 = arith.constant 0 : index
    %123 = vector.load %arg2[%c20, %c0_109, %c0_110] : memref<49x8x4xbf16, #tpu.memory_space<vmem>>, vector<1x8x4xbf16>
    %124 = vector.shape_cast %123 : vector<1x8x4xbf16> to vector<8x4xbf16>
    %cst_111 = arith.constant dense<0.000000e+00> : vector<8x1216xf32>
    %125 = tpu.matmul %124, %122, %cst_111 {dimension_numbers = #tpu.dot_dimension_numbers<[1], [0], [0], [1], [0, 0, 1, 1], [], []>} : vector<8x4xbf16>, vector<4x1216xbf16>, vector<8x1216xf32> -> vector<8x1216xf32>
    %126 = arith.addf %120, %125 : vector<8x1216xf32>
    %c0_112 = arith.constant 0 : index
    %c0_113 = arith.constant 0 : index
    %c114 = arith.constant 114 : index
    %127 = vector.load %arg1[%c0_112, %c0_113, %c114] : memref<1x4x1536xbf16, #tpu.memory_space<vmem>>, vector<1x4x1216xbf16>
    %128 = vector.shape_cast %127 : vector<1x4x1216xbf16> to vector<4x1216xbf16>
    %c21 = arith.constant 21 : index
    %c0_114 = arith.constant 0 : index
    %c0_115 = arith.constant 0 : index
    %129 = vector.load %arg2[%c21, %c0_114, %c0_115] : memref<49x8x4xbf16, #tpu.memory_space<vmem>>, vector<1x8x4xbf16>
    %130 = vector.shape_cast %129 : vector<1x8x4xbf16> to vector<8x4xbf16>
    %cst_116 = arith.constant dense<0.000000e+00> : vector<8x1216xf32>
    %131 = tpu.matmul %130, %128, %cst_116 {dimension_numbers = #tpu.dot_dimension_numbers<[1], [0], [0], [1], [0, 0, 1, 1], [], []>} : vector<8x4xbf16>, vector<4x1216xbf16>, vector<8x1216xf32> -> vector<8x1216xf32>
    %132 = arith.addf %126, %131 : vector<8x1216xf32>
    %c0_117 = arith.constant 0 : index
    %c0_118 = arith.constant 0 : index
    %c115 = arith.constant 115 : index
    %133 = vector.load %arg1[%c0_117, %c0_118, %c115] : memref<1x4x1536xbf16, #tpu.memory_space<vmem>>, vector<1x4x1216xbf16>
    %134 = vector.shape_cast %133 : vector<1x4x1216xbf16> to vector<4x1216xbf16>
    %c22 = arith.constant 22 : index
    %c0_119 = arith.constant 0 : index
    %c0_120 = arith.constant 0 : index
    %135 = vector.load %arg2[%c22, %c0_119, %c0_120] : memref<49x8x4xbf16, #tpu.memory_space<vmem>>, vector<1x8x4xbf16>
    %136 = vector.shape_cast %135 : vector<1x8x4xbf16> to vector<8x4xbf16>
    %cst_121 = arith.constant dense<0.000000e+00> : vector<8x1216xf32>
    %137 = tpu.matmul %136, %134, %cst_121 {dimension_numbers = #tpu.dot_dimension_numbers<[1], [0], [0], [1], [0, 0, 1, 1], [], []>} : vector<8x4xbf16>, vector<4x1216xbf16>, vector<8x1216xf32> -> vector<8x1216xf32>
    %138 = arith.addf %132, %137 : vector<8x1216xf32>
    %c0_122 = arith.constant 0 : index
    %c0_123 = arith.constant 0 : index
    %c116 = arith.constant 116 : index
    %139 = vector.load %arg1[%c0_122, %c0_123, %c116] : memref<1x4x1536xbf16, #tpu.memory_space<vmem>>, vector<1x4x1216xbf16>
    %140 = vector.shape_cast %139 : vector<1x4x1216xbf16> to vector<4x1216xbf16>
    %c23 = arith.constant 23 : index
    %c0_124 = arith.constant 0 : index
    %c0_125 = arith.constant 0 : index
    %141 = vector.load %arg2[%c23, %c0_124, %c0_125] : memref<49x8x4xbf16, #tpu.memory_space<vmem>>, vector<1x8x4xbf16>
    %142 = vector.shape_cast %141 : vector<1x8x4xbf16> to vector<8x4xbf16>
    %cst_126 = arith.constant dense<0.000000e+00> : vector<8x1216xf32>
    %143 = tpu.matmul %142, %140, %cst_126 {dimension_numbers = #tpu.dot_dimension_numbers<[1], [0], [0], [1], [0, 0, 1, 1], [], []>} : vector<8x4xbf16>, vector<4x1216xbf16>, vector<8x1216xf32> -> vector<8x1216xf32>
    %144 = arith.addf %138, %143 : vector<8x1216xf32>
    %c0_127 = arith.constant 0 : index
    %c0_128 = arith.constant 0 : index
    %c117 = arith.constant 117 : index
    %145 = vector.load %arg1[%c0_127, %c0_128, %c117] : memref<1x4x1536xbf16, #tpu.memory_space<vmem>>, vector<1x4x1216xbf16>
    %146 = vector.shape_cast %145 : vector<1x4x1216xbf16> to vector<4x1216xbf16>
    %c24 = arith.constant 24 : index
    %c0_129 = arith.constant 0 : index
    %c0_130 = arith.constant 0 : index
    %147 = vector.load %arg2[%c24, %c0_129, %c0_130] : memref<49x8x4xbf16, #tpu.memory_space<vmem>>, vector<1x8x4xbf16>
    %148 = vector.shape_cast %147 : vector<1x8x4xbf16> to vector<8x4xbf16>
    %cst_131 = arith.constant dense<0.000000e+00> : vector<8x1216xf32>
    %149 = tpu.matmul %148, %146, %cst_131 {dimension_numbers = #tpu.dot_dimension_numbers<[1], [0], [0], [1], [0, 0, 1, 1], [], []>} : vector<8x4xbf16>, vector<4x1216xbf16>, vector<8x1216xf32> -> vector<8x1216xf32>
    %150 = arith.addf %144, %149 : vector<8x1216xf32>
    %c0_132 = arith.constant 0 : index
    %c0_133 = arith.constant 0 : index
    %c118 = arith.constant 118 : index
    %151 = vector.load %arg1[%c0_132, %c0_133, %c118] : memref<1x4x1536xbf16, #tpu.memory_space<vmem>>, vector<1x4x1216xbf16>
    %152 = vector.shape_cast %151 : vector<1x4x1216xbf16> to vector<4x1216xbf16>
    %c25 = arith.constant 25 : index
    %c0_134 = arith.constant 0 : index
    %c0_135 = arith.constant 0 : index
    %153 = vector.load %arg2[%c25, %c0_134, %c0_135] : memref<49x8x4xbf16, #tpu.memory_space<vmem>>, vector<1x8x4xbf16>
    %154 = vector.shape_cast %153 : vector<1x8x4xbf16> to vector<8x4xbf16>
    %cst_136 = arith.constant dense<0.000000e+00> : vector<8x1216xf32>
    %155 = tpu.matmul %154, %152, %cst_136 {dimension_numbers = #tpu.dot_dimension_numbers<[1], [0], [0], [1], [0, 0, 1, 1], [], []>} : vector<8x4xbf16>, vector<4x1216xbf16>, vector<8x1216xf32> -> vector<8x1216xf32>
    %156 = arith.addf %150, %155 : vector<8x1216xf32>
    %c0_137 = arith.constant 0 : index
    %c0_138 = arith.constant 0 : index
    %c119 = arith.constant 119 : index
    %157 = vector.load %arg1[%c0_137, %c0_138, %c119] : memref<1x4x1536xbf16, #tpu.memory_space<vmem>>, vector<1x4x1216xbf16>
    %158 = vector.shape_cast %157 : vector<1x4x1216xbf16> to vector<4x1216xbf16>
    %c26 = arith.constant 26 : index
    %c0_139 = arith.constant 0 : index
    %c0_140 = arith.constant 0 : index
    %159 = vector.load %arg2[%c26, %c0_139, %c0_140] : memref<49x8x4xbf16, #tpu.memory_space<vmem>>, vector<1x8x4xbf16>
    %160 = vector.shape_cast %159 : vector<1x8x4xbf16> to vector<8x4xbf16>
    %cst_141 = arith.constant dense<0.000000e+00> : vector<8x1216xf32>
    %161 = tpu.matmul %160, %158, %cst_141 {dimension_numbers = #tpu.dot_dimension_numbers<[1], [0], [0], [1], [0, 0, 1, 1], [], []>} : vector<8x4xbf16>, vector<4x1216xbf16>, vector<8x1216xf32> -> vector<8x1216xf32>
    %162 = arith.addf %156, %161 : vector<8x1216xf32>
    %c0_142 = arith.constant 0 : index
    %c0_143 = arith.constant 0 : index
    %c120 = arith.constant 120 : index
    %163 = vector.load %arg1[%c0_142, %c0_143, %c120] : memref<1x4x1536xbf16, #tpu.memory_space<vmem>>, vector<1x4x1216xbf16>
    %164 = vector.shape_cast %163 : vector<1x4x1216xbf16> to vector<4x1216xbf16>
    %c27 = arith.constant 27 : index
    %c0_144 = arith.constant 0 : index
    %c0_145 = arith.constant 0 : index
    %165 = vector.load %arg2[%c27, %c0_144, %c0_145] : memref<49x8x4xbf16, #tpu.memory_space<vmem>>, vector<1x8x4xbf16>
    %166 = vector.shape_cast %165 : vector<1x8x4xbf16> to vector<8x4xbf16>
    %cst_146 = arith.constant dense<0.000000e+00> : vector<8x1216xf32>
    %167 = tpu.matmul %166, %164, %cst_146 {dimension_numbers = #tpu.dot_dimension_numbers<[1], [0], [0], [1], [0, 0, 1, 1], [], []>} : vector<8x4xbf16>, vector<4x1216xbf16>, vector<8x1216xf32> -> vector<8x1216xf32>
    %168 = arith.addf %162, %167 : vector<8x1216xf32>
    %c0_147 = arith.constant 0 : index
    %c0_148 = arith.constant 0 : index
    %c152 = arith.constant 152 : index
    %169 = vector.load %arg1[%c0_147, %c0_148, %c152] : memref<1x4x1536xbf16, #tpu.memory_space<vmem>>, vector<1x4x1216xbf16>
    %170 = vector.shape_cast %169 : vector<1x4x1216xbf16> to vector<4x1216xbf16>
    %c28 = arith.constant 28 : index
    %c0_149 = arith.constant 0 : index
    %c0_150 = arith.constant 0 : index
    %171 = vector.load %arg2[%c28, %c0_149, %c0_150] : memref<49x8x4xbf16, #tpu.memory_space<vmem>>, vector<1x8x4xbf16>
    %172 = vector.shape_cast %171 : vector<1x8x4xbf16> to vector<8x4xbf16>
    %cst_151 = arith.constant dense<0.000000e+00> : vector<8x1216xf32>
    %173 = tpu.matmul %172, %170, %cst_151 {dimension_numbers = #tpu.dot_dimension_numbers<[1], [0], [0], [1], [0, 0, 1, 1], [], []>} : vector<8x4xbf16>, vector<4x1216xbf16>, vector<8x1216xf32> -> vector<8x1216xf32>
    %174 = arith.addf %168, %173 : vector<8x1216xf32>
    %c0_152 = arith.constant 0 : index
    %c0_153 = arith.constant 0 : index
    %c153 = arith.constant 153 : index
    %175 = vector.load %arg1[%c0_152, %c0_153, %c153] : memref<1x4x1536xbf16, #tpu.memory_space<vmem>>, vector<1x4x1216xbf16>
    %176 = vector.shape_cast %175 : vector<1x4x1216xbf16> to vector<4x1216xbf16>
    %c29 = arith.constant 29 : index
    %c0_154 = arith.constant 0 : index
    %c0_155 = arith.constant 0 : index
    %177 = vector.load %arg2[%c29, %c0_154, %c0_155] : memref<49x8x4xbf16, #tpu.memory_space<vmem>>, vector<1x8x4xbf16>
    %178 = vector.shape_cast %177 : vector<1x8x4xbf16> to vector<8x4xbf16>
    %cst_156 = arith.constant dense<0.000000e+00> : vector<8x1216xf32>
    %179 = tpu.matmul %178, %176, %cst_156 {dimension_numbers = #tpu.dot_dimension_numbers<[1], [0], [0], [1], [0, 0, 1, 1], [], []>} : vector<8x4xbf16>, vector<4x1216xbf16>, vector<8x1216xf32> -> vector<8x1216xf32>
    %180 = arith.addf %174, %179 : vector<8x1216xf32>
    %c0_157 = arith.constant 0 : index
    %c0_158 = arith.constant 0 : index
    %c154 = arith.constant 154 : index
    %181 = vector.load %arg1[%c0_157, %c0_158, %c154] : memref<1x4x1536xbf16, #tpu.memory_space<vmem>>, vector<1x4x1216xbf16>
    %182 = vector.shape_cast %181 : vector<1x4x1216xbf16> to vector<4x1216xbf16>
    %c30 = arith.constant 30 : index
    %c0_159 = arith.constant 0 : index
    %c0_160 = arith.constant 0 : index
    %183 = vector.load %arg2[%c30, %c0_159, %c0_160] : memref<49x8x4xbf16, #tpu.memory_space<vmem>>, vector<1x8x4xbf16>
    %184 = vector.shape_cast %183 : vector<1x8x4xbf16> to vector<8x4xbf16>
    %cst_161 = arith.constant dense<0.000000e+00> : vector<8x1216xf32>
    %185 = tpu.matmul %184, %182, %cst_161 {dimension_numbers = #tpu.dot_dimension_numbers<[1], [0], [0], [1], [0, 0, 1, 1], [], []>} : vector<8x4xbf16>, vector<4x1216xbf16>, vector<8x1216xf32> -> vector<8x1216xf32>
    %186 = arith.addf %180, %185 : vector<8x1216xf32>
    %c0_162 = arith.constant 0 : index
    %c0_163 = arith.constant 0 : index
    %c155 = arith.constant 155 : index
    %187 = vector.load %arg1[%c0_162, %c0_163, %c155] : memref<1x4x1536xbf16, #tpu.memory_space<vmem>>, vector<1x4x1216xbf16>
    %188 = vector.shape_cast %187 : vector<1x4x1216xbf16> to vector<4x1216xbf16>
    %c31 = arith.constant 31 : index
    %c0_164 = arith.constant 0 : index
    %c0_165 = arith.constant 0 : index
    %189 = vector.load %arg2[%c31, %c0_164, %c0_165] : memref<49x8x4xbf16, #tpu.memory_space<vmem>>, vector<1x8x4xbf16>
    %190 = vector.shape_cast %189 : vector<1x8x4xbf16> to vector<8x4xbf16>
    %cst_166 = arith.constant dense<0.000000e+00> : vector<8x1216xf32>
    %191 = tpu.matmul %190, %188, %cst_166 {dimension_numbers = #tpu.dot_dimension_numbers<[1], [0], [0], [1], [0, 0, 1, 1], [], []>} : vector<8x4xbf16>, vector<4x1216xbf16>, vector<8x1216xf32> -> vector<8x1216xf32>
    %192 = arith.addf %186, %191 : vector<8x1216xf32>
    %c0_167 = arith.constant 0 : index
    %c0_168 = arith.constant 0 : index
    %c156 = arith.constant 156 : index
    %193 = vector.load %arg1[%c0_167, %c0_168, %c156] : memref<1x4x1536xbf16, #tpu.memory_space<vmem>>, vector<1x4x1216xbf16>
    %194 = vector.shape_cast %193 : vector<1x4x1216xbf16> to vector<4x1216xbf16>
    %c32 = arith.constant 32 : index
    %c0_169 = arith.constant 0 : index
    %c0_170 = arith.constant 0 : index
    %195 = vector.load %arg2[%c32, %c0_169, %c0_170] : memref<49x8x4xbf16, #tpu.memory_space<vmem>>, vector<1x8x4xbf16>
    %196 = vector.shape_cast %195 : vector<1x8x4xbf16> to vector<8x4xbf16>
    %cst_171 = arith.constant dense<0.000000e+00> : vector<8x1216xf32>
    %197 = tpu.matmul %196, %194, %cst_171 {dimension_numbers = #tpu.dot_dimension_numbers<[1], [0], [0], [1], [0, 0, 1, 1], [], []>} : vector<8x4xbf16>, vector<4x1216xbf16>, vector<8x1216xf32> -> vector<8x1216xf32>
    %198 = arith.addf %192, %197 : vector<8x1216xf32>
    %c0_172 = arith.constant 0 : index
    %c0_173 = arith.constant 0 : index
    %c157 = arith.constant 157 : index
    %199 = vector.load %arg1[%c0_172, %c0_173, %c157] : memref<1x4x1536xbf16, #tpu.memory_space<vmem>>, vector<1x4x1216xbf16>
    %200 = vector.shape_cast %199 : vector<1x4x1216xbf16> to vector<4x1216xbf16>
    %c33 = arith.constant 33 : index
    %c0_174 = arith.constant 0 : index
    %c0_175 = arith.constant 0 : index
    %201 = vector.load %arg2[%c33, %c0_174, %c0_175] : memref<49x8x4xbf16, #tpu.memory_space<vmem>>, vector<1x8x4xbf16>
    %202 = vector.shape_cast %201 : vector<1x8x4xbf16> to vector<8x4xbf16>
    %cst_176 = arith.constant dense<0.000000e+00> : vector<8x1216xf32>
    %203 = tpu.matmul %202, %200, %cst_176 {dimension_numbers = #tpu.dot_dimension_numbers<[1], [0], [0], [1], [0, 0, 1, 1], [], []>} : vector<8x4xbf16>, vector<4x1216xbf16>, vector<8x1216xf32> -> vector<8x1216xf32>
    %204 = arith.addf %198, %203 : vector<8x1216xf32>
    %c0_177 = arith.constant 0 : index
    %c0_178 = arith.constant 0 : index
    %c158 = arith.constant 158 : index
    %205 = vector.load %arg1[%c0_177, %c0_178, %c158] : memref<1x4x1536xbf16, #tpu.memory_space<vmem>>, vector<1x4x1216xbf16>
    %206 = vector.shape_cast %205 : vector<1x4x1216xbf16> to vector<4x1216xbf16>
    %c34 = arith.constant 34 : index
    %c0_179 = arith.constant 0 : index
    %c0_180 = arith.constant 0 : index
    %207 = vector.load %arg2[%c34, %c0_179, %c0_180] : memref<49x8x4xbf16, #tpu.memory_space<vmem>>, vector<1x8x4xbf16>
    %208 = vector.shape_cast %207 : vector<1x8x4xbf16> to vector<8x4xbf16>
    %cst_181 = arith.constant dense<0.000000e+00> : vector<8x1216xf32>
    %209 = tpu.matmul %208, %206, %cst_181 {dimension_numbers = #tpu.dot_dimension_numbers<[1], [0], [0], [1], [0, 0, 1, 1], [], []>} : vector<8x4xbf16>, vector<4x1216xbf16>, vector<8x1216xf32> -> vector<8x1216xf32>
    %210 = arith.addf %204, %209 : vector<8x1216xf32>
    %c0_182 = arith.constant 0 : index
    %c0_183 = arith.constant 0 : index
    %c190 = arith.constant 190 : index
    %211 = vector.load %arg1[%c0_182, %c0_183, %c190] : memref<1x4x1536xbf16, #tpu.memory_space<vmem>>, vector<1x4x1216xbf16>
    %212 = vector.shape_cast %211 : vector<1x4x1216xbf16> to vector<4x1216xbf16>
    %c35 = arith.constant 35 : index
    %c0_184 = arith.constant 0 : index
    %c0_185 = arith.constant 0 : index
    %213 = vector.load %arg2[%c35, %c0_184, %c0_185] : memref<49x8x4xbf16, #tpu.memory_space<vmem>>, vector<1x8x4xbf16>
    %214 = vector.shape_cast %213 : vector<1x8x4xbf16> to vector<8x4xbf16>
    %cst_186 = arith.constant dense<0.000000e+00> : vector<8x1216xf32>
    %215 = tpu.matmul %214, %212, %cst_186 {dimension_numbers = #tpu.dot_dimension_numbers<[1], [0], [0], [1], [0, 0, 1, 1], [], []>} : vector<8x4xbf16>, vector<4x1216xbf16>, vector<8x1216xf32> -> vector<8x1216xf32>
    %216 = arith.addf %210, %215 : vector<8x1216xf32>
    %c0_187 = arith.constant 0 : index
    %c0_188 = arith.constant 0 : index
    %c191 = arith.constant 191 : index
    %217 = vector.load %arg1[%c0_187, %c0_188, %c191] : memref<1x4x1536xbf16, #tpu.memory_space<vmem>>, vector<1x4x1216xbf16>
    %218 = vector.shape_cast %217 : vector<1x4x1216xbf16> to vector<4x1216xbf16>
    %c36 = arith.constant 36 : index
    %c0_189 = arith.constant 0 : index
    %c0_190 = arith.constant 0 : index
    %219 = vector.load %arg2[%c36, %c0_189, %c0_190] : memref<49x8x4xbf16, #tpu.memory_space<vmem>>, vector<1x8x4xbf16>
    %220 = vector.shape_cast %219 : vector<1x8x4xbf16> to vector<8x4xbf16>
    %cst_191 = arith.constant dense<0.000000e+00> : vector<8x1216xf32>
    %221 = tpu.matmul %220, %218, %cst_191 {dimension_numbers = #tpu.dot_dimension_numbers<[1], [0], [0], [1], [0, 0, 1, 1], [], []>} : vector<8x4xbf16>, vector<4x1216xbf16>, vector<8x1216xf32> -> vector<8x1216xf32>
    %222 = arith.addf %216, %221 : vector<8x1216xf32>
    %c0_192 = arith.constant 0 : index
    %c0_193 = arith.constant 0 : index
    %c192 = arith.constant 192 : index
    %223 = vector.load %arg1[%c0_192, %c0_193, %c192] : memref<1x4x1536xbf16, #tpu.memory_space<vmem>>, vector<1x4x1216xbf16>
    %224 = vector.shape_cast %223 : vector<1x4x1216xbf16> to vector<4x1216xbf16>
    %c37 = arith.constant 37 : index
    %c0_194 = arith.constant 0 : index
    %c0_195 = arith.constant 0 : index
    %225 = vector.load %arg2[%c37, %c0_194, %c0_195] : memref<49x8x4xbf16, #tpu.memory_space<vmem>>, vector<1x8x4xbf16>
    %226 = vector.shape_cast %225 : vector<1x8x4xbf16> to vector<8x4xbf16>
    %cst_196 = arith.constant dense<0.000000e+00> : vector<8x1216xf32>
    %227 = tpu.matmul %226, %224, %cst_196 {dimension_numbers = #tpu.dot_dimension_numbers<[1], [0], [0], [1], [0, 0, 1, 1], [], []>} : vector<8x4xbf16>, vector<4x1216xbf16>, vector<8x1216xf32> -> vector<8x1216xf32>
    %228 = arith.addf %222, %227 : vector<8x1216xf32>
    %c0_197 = arith.constant 0 : index
    %c0_198 = arith.constant 0 : index
    %c193 = arith.constant 193 : index
    %229 = vector.load %arg1[%c0_197, %c0_198, %c193] : memref<1x4x1536xbf16, #tpu.memory_space<vmem>>, vector<1x4x1216xbf16>
    %230 = vector.shape_cast %229 : vector<1x4x1216xbf16> to vector<4x1216xbf16>
    %c38_199 = arith.constant 38 : index
    %c0_200 = arith.constant 0 : index
    %c0_201 = arith.constant 0 : index
    %231 = vector.load %arg2[%c38_199, %c0_200, %c0_201] : memref<49x8x4xbf16, #tpu.memory_space<vmem>>, vector<1x8x4xbf16>
    %232 = vector.shape_cast %231 : vector<1x8x4xbf16> to vector<8x4xbf16>
    %cst_202 = arith.constant dense<0.000000e+00> : vector<8x1216xf32>
    %233 = tpu.matmul %232, %230, %cst_202 {dimension_numbers = #tpu.dot_dimension_numbers<[1], [0], [0], [1], [0, 0, 1, 1], [], []>} : vector<8x4xbf16>, vector<4x1216xbf16>, vector<8x1216xf32> -> vector<8x1216xf32>
    %234 = arith.addf %228, %233 : vector<8x1216xf32>
    %c0_203 = arith.constant 0 : index
    %c0_204 = arith.constant 0 : index
    %c194 = arith.constant 194 : index
    %235 = vector.load %arg1[%c0_203, %c0_204, %c194] : memref<1x4x1536xbf16, #tpu.memory_space<vmem>>, vector<1x4x1216xbf16>
    %236 = vector.shape_cast %235 : vector<1x4x1216xbf16> to vector<4x1216xbf16>
    %c39_205 = arith.constant 39 : index
    %c0_206 = arith.constant 0 : index
    %c0_207 = arith.constant 0 : index
    %237 = vector.load %arg2[%c39_205, %c0_206, %c0_207] : memref<49x8x4xbf16, #tpu.memory_space<vmem>>, vector<1x8x4xbf16>
    %238 = vector.shape_cast %237 : vector<1x8x4xbf16> to vector<8x4xbf16>
    %cst_208 = arith.constant dense<0.000000e+00> : vector<8x1216xf32>
    %239 = tpu.matmul %238, %236, %cst_208 {dimension_numbers = #tpu.dot_dimension_numbers<[1], [0], [0], [1], [0, 0, 1, 1], [], []>} : vector<8x4xbf16>, vector<4x1216xbf16>, vector<8x1216xf32> -> vector<8x1216xf32>
    %240 = arith.addf %234, %239 : vector<8x1216xf32>
    %c0_209 = arith.constant 0 : index
    %c0_210 = arith.constant 0 : index
    %c195 = arith.constant 195 : index
    %241 = vector.load %arg1[%c0_209, %c0_210, %c195] : memref<1x4x1536xbf16, #tpu.memory_space<vmem>>, vector<1x4x1216xbf16>
    %242 = vector.shape_cast %241 : vector<1x4x1216xbf16> to vector<4x1216xbf16>
    %c40_211 = arith.constant 40 : index
    %c0_212 = arith.constant 0 : index
    %c0_213 = arith.constant 0 : index
    %243 = vector.load %arg2[%c40_211, %c0_212, %c0_213] : memref<49x8x4xbf16, #tpu.memory_space<vmem>>, vector<1x8x4xbf16>
    %244 = vector.shape_cast %243 : vector<1x8x4xbf16> to vector<8x4xbf16>
    %cst_214 = arith.constant dense<0.000000e+00> : vector<8x1216xf32>
    %245 = tpu.matmul %244, %242, %cst_214 {dimension_numbers = #tpu.dot_dimension_numbers<[1], [0], [0], [1], [0, 0, 1, 1], [], []>} : vector<8x4xbf16>, vector<4x1216xbf16>, vector<8x1216xf32> -> vector<8x1216xf32>
    %246 = arith.addf %240, %245 : vector<8x1216xf32>
    %c0_215 = arith.constant 0 : index
    %c0_216 = arith.constant 0 : index
    %c196 = arith.constant 196 : index
    %247 = vector.load %arg1[%c0_215, %c0_216, %c196] : memref<1x4x1536xbf16, #tpu.memory_space<vmem>>, vector<1x4x1216xbf16>
    %248 = vector.shape_cast %247 : vector<1x4x1216xbf16> to vector<4x1216xbf16>
    %c41_217 = arith.constant 41 : index
    %c0_218 = arith.constant 0 : index
    %c0_219 = arith.constant 0 : index
    %249 = vector.load %arg2[%c41_217, %c0_218, %c0_219] : memref<49x8x4xbf16, #tpu.memory_space<vmem>>, vector<1x8x4xbf16>
    %250 = vector.shape_cast %249 : vector<1x8x4xbf16> to vector<8x4xbf16>
    %cst_220 = arith.constant dense<0.000000e+00> : vector<8x1216xf32>
    %251 = tpu.matmul %250, %248, %cst_220 {dimension_numbers = #tpu.dot_dimension_numbers<[1], [0], [0], [1], [0, 0, 1, 1], [], []>} : vector<8x4xbf16>, vector<4x1216xbf16>, vector<8x1216xf32> -> vector<8x1216xf32>
    %252 = arith.addf %246, %251 : vector<8x1216xf32>
    %c0_221 = arith.constant 0 : index
    %c0_222 = arith.constant 0 : index
    %c228 = arith.constant 228 : index
    %253 = vector.load %arg1[%c0_221, %c0_222, %c228] : memref<1x4x1536xbf16, #tpu.memory_space<vmem>>, vector<1x4x1216xbf16>
    %254 = vector.shape_cast %253 : vector<1x4x1216xbf16> to vector<4x1216xbf16>
    %c42_223 = arith.constant 42 : index
    %c0_224 = arith.constant 0 : index
    %c0_225 = arith.constant 0 : index
    %255 = vector.load %arg2[%c42_223, %c0_224, %c0_225] : memref<49x8x4xbf16, #tpu.memory_space<vmem>>, vector<1x8x4xbf16>
    %256 = vector.shape_cast %255 : vector<1x8x4xbf16> to vector<8x4xbf16>
    %cst_226 = arith.constant dense<0.000000e+00> : vector<8x1216xf32>
    %257 = tpu.matmul %256, %254, %cst_226 {dimension_numbers = #tpu.dot_dimension_numbers<[1], [0], [0], [1], [0, 0, 1, 1], [], []>} : vector<8x4xbf16>, vector<4x1216xbf16>, vector<8x1216xf32> -> vector<8x1216xf32>
    %258 = arith.addf %252, %257 : vector<8x1216xf32>
    %c0_227 = arith.constant 0 : index
    %c0_228 = arith.constant 0 : index
    %c229 = arith.constant 229 : index
    %259 = vector.load %arg1[%c0_227, %c0_228, %c229] : memref<1x4x1536xbf16, #tpu.memory_space<vmem>>, vector<1x4x1216xbf16>
    %260 = vector.shape_cast %259 : vector<1x4x1216xbf16> to vector<4x1216xbf16>
    %c43_229 = arith.constant 43 : index
    %c0_230 = arith.constant 0 : index
    %c0_231 = arith.constant 0 : index
    %261 = vector.load %arg2[%c43_229, %c0_230, %c0_231] : memref<49x8x4xbf16, #tpu.memory_space<vmem>>, vector<1x8x4xbf16>
    %262 = vector.shape_cast %261 : vector<1x8x4xbf16> to vector<8x4xbf16>
    %cst_232 = arith.constant dense<0.000000e+00> : vector<8x1216xf32>
    %263 = tpu.matmul %262, %260, %cst_232 {dimension_numbers = #tpu.dot_dimension_numbers<[1], [0], [0], [1], [0, 0, 1, 1], [], []>} : vector<8x4xbf16>, vector<4x1216xbf16>, vector<8x1216xf32> -> vector<8x1216xf32>
    %264 = arith.addf %258, %263 : vector<8x1216xf32>
    %c0_233 = arith.constant 0 : index
    %c0_234 = arith.constant 0 : index
    %c230 = arith.constant 230 : index
    %265 = vector.load %arg1[%c0_233, %c0_234, %c230] : memref<1x4x1536xbf16, #tpu.memory_space<vmem>>, vector<1x4x1216xbf16>
    %266 = vector.shape_cast %265 : vector<1x4x1216xbf16> to vector<4x1216xbf16>
    %c44_235 = arith.constant 44 : index
    %c0_236 = arith.constant 0 : index
    %c0_237 = arith.constant 0 : index
    %267 = vector.load %arg2[%c44_235, %c0_236, %c0_237] : memref<49x8x4xbf16, #tpu.memory_space<vmem>>, vector<1x8x4xbf16>
    %268 = vector.shape_cast %267 : vector<1x8x4xbf16> to vector<8x4xbf16>
    %cst_238 = arith.constant dense<0.000000e+00> : vector<8x1216xf32>
    %269 = tpu.matmul %268, %266, %cst_238 {dimension_numbers = #tpu.dot_dimension_numbers<[1], [0], [0], [1], [0, 0, 1, 1], [], []>} : vector<8x4xbf16>, vector<4x1216xbf16>, vector<8x1216xf32> -> vector<8x1216xf32>
    %270 = arith.addf %264, %269 : vector<8x1216xf32>
    %c0_239 = arith.constant 0 : index
    %c0_240 = arith.constant 0 : index
    %c231 = arith.constant 231 : index
    %271 = vector.load %arg1[%c0_239, %c0_240, %c231] : memref<1x4x1536xbf16, #tpu.memory_space<vmem>>, vector<1x4x1216xbf16>
    %272 = vector.shape_cast %271 : vector<1x4x1216xbf16> to vector<4x1216xbf16>
    %c45 = arith.constant 45 : index
    %c0_241 = arith.constant 0 : index
    %c0_242 = arith.constant 0 : index
    %273 = vector.load %arg2[%c45, %c0_241, %c0_242] : memref<49x8x4xbf16, #tpu.memory_space<vmem>>, vector<1x8x4xbf16>
    %274 = vector.shape_cast %273 : vector<1x8x4xbf16> to vector<8x4xbf16>
    %cst_243 = arith.constant dense<0.000000e+00> : vector<8x1216xf32>
    %275 = tpu.matmul %274, %272, %cst_243 {dimension_numbers = #tpu.dot_dimension_numbers<[1], [0], [0], [1], [0, 0, 1, 1], [], []>} : vector<8x4xbf16>, vector<4x1216xbf16>, vector<8x1216xf32> -> vector<8x1216xf32>
    %276 = arith.addf %270, %275 : vector<8x1216xf32>
    %c0_244 = arith.constant 0 : index
    %c0_245 = arith.constant 0 : index
    %c232 = arith.constant 232 : index
    %277 = vector.load %arg1[%c0_244, %c0_245, %c232] : memref<1x4x1536xbf16, #tpu.memory_space<vmem>>, vector<1x4x1216xbf16>
    %278 = vector.shape_cast %277 : vector<1x4x1216xbf16> to vector<4x1216xbf16>
    %c46 = arith.constant 46 : index
    %c0_246 = arith.constant 0 : index
    %c0_247 = arith.constant 0 : index
    %279 = vector.load %arg2[%c46, %c0_246, %c0_247] : memref<49x8x4xbf16, #tpu.memory_space<vmem>>, vector<1x8x4xbf16>
    %280 = vector.shape_cast %279 : vector<1x8x4xbf16> to vector<8x4xbf16>
    %cst_248 = arith.constant dense<0.000000e+00> : vector<8x1216xf32>
    %281 = tpu.matmul %280, %278, %cst_248 {dimension_numbers = #tpu.dot_dimension_numbers<[1], [0], [0], [1], [0, 0, 1, 1], [], []>} : vector<8x4xbf16>, vector<4x1216xbf16>, vector<8x1216xf32> -> vector<8x1216xf32>
    %282 = arith.addf %276, %281 : vector<8x1216xf32>
    %c0_249 = arith.constant 0 : index
    %c0_250 = arith.constant 0 : index
    %c233 = arith.constant 233 : index
    %283 = vector.load %arg1[%c0_249, %c0_250, %c233] : memref<1x4x1536xbf16, #tpu.memory_space<vmem>>, vector<1x4x1216xbf16>
    %284 = vector.shape_cast %283 : vector<1x4x1216xbf16> to vector<4x1216xbf16>
    %c47 = arith.constant 47 : index
    %c0_251 = arith.constant 0 : index
    %c0_252 = arith.constant 0 : index
    %285 = vector.load %arg2[%c47, %c0_251, %c0_252] : memref<49x8x4xbf16, #tpu.memory_space<vmem>>, vector<1x8x4xbf16>
    %286 = vector.shape_cast %285 : vector<1x8x4xbf16> to vector<8x4xbf16>
    %cst_253 = arith.constant dense<0.000000e+00> : vector<8x1216xf32>
    %287 = tpu.matmul %286, %284, %cst_253 {dimension_numbers = #tpu.dot_dimension_numbers<[1], [0], [0], [1], [0, 0, 1, 1], [], []>} : vector<8x4xbf16>, vector<4x1216xbf16>, vector<8x1216xf32> -> vector<8x1216xf32>
    %288 = arith.addf %282, %287 : vector<8x1216xf32>
    %c0_254 = arith.constant 0 : index
    %c0_255 = arith.constant 0 : index
    %c234 = arith.constant 234 : index
    %289 = vector.load %arg1[%c0_254, %c0_255, %c234] : memref<1x4x1536xbf16, #tpu.memory_space<vmem>>, vector<1x4x1216xbf16>
    %290 = vector.shape_cast %289 : vector<1x4x1216xbf16> to vector<4x1216xbf16>
    %c48 = arith.constant 48 : index
    %c0_256 = arith.constant 0 : index
    %c0_257 = arith.constant 0 : index
    %291 = vector.load %arg2[%c48, %c0_256, %c0_257] : memref<49x8x4xbf16, #tpu.memory_space<vmem>>, vector<1x8x4xbf16>
    %292 = vector.shape_cast %291 : vector<1x8x4xbf16> to vector<8x4xbf16>
    %cst_258 = arith.constant dense<0.000000e+00> : vector<8x1216xf32>
    %293 = tpu.matmul %292, %290, %cst_258 {dimension_numbers = #tpu.dot_dimension_numbers<[1], [0], [0], [1], [0, 0, 1, 1], [], []>} : vector<8x4xbf16>, vector<4x1216xbf16>, vector<8x1216xf32> -> vector<8x1216xf32>
    %294 = arith.addf %288, %293 : vector<8x1216xf32>
    %c0_259 = arith.constant 0 : index
    %c0_260 = arith.constant 0 : index
    %295 = vector.load %arg3[%c0_259, %c0_260] : memref<8x1xf32, #tpu.memory_space<vmem>>, vector<8x1xf32>
    %296 = vector.broadcast %295 : vector<8x1xf32> to vector<8x1216xf32>
    %297 = arith.addf %294, %296 : vector<8x1216xf32>
    %c0_261 = arith.constant 0 : index
    %c0_262 = arith.constant 0 : index
    %c0_263 = arith.constant 0 : index
    %298 = vector.load %arg4[%c0_261, %c0_262, %c0_263] : memref<1x8x1216xf32, #tpu.memory_space<vmem>>, vector<1x8x1216xf32>
    %299 = vector.shape_cast %298 : vector<1x8x1216xf32> to vector<8x1216xf32>
    %300 = vector.shape_cast %297 : vector<8x1216xf32> to vector<1x8x1216xf32>
    tpu.vector_store %arg4[%c0_261, %c0_262, %c0_263], %300 {strides = array<i32>} : memref<1x8x1216xf32, #tpu.memory_space<vmem>>, vector<1x8x1216xf32>,
    return
  }
  func.func @transform_0(%arg0: i32) -> (i32, i32, i32) {
    %c0_i32 = arith.constant 0 : i32
    %c0_i32_0 = arith.constant 0 : i32
    %c0_i32_1 = arith.constant 0 : i32
    return %arg0, %c0_i32, %c0_i32_0 : i32, i32, i32
  }
  func.func @transform_1(%arg0: i32) -> (i32, i32, i32) {
    %c0_i32 = arith.constant 0 : i32
    %c0_i32_0 = arith.constant 0 : i32
    %c0_i32_1 = arith.constant 0 : i32
    %c0_i32_2 = arith.constant 0 : i32
    return %c0_i32, %c0_i32_0, %c0_i32_1 : i32, i32, i32
  }
  func.func @transform_2(%arg0: i32) -> (i32, i32) {
    %c0_i32 = arith.constant 0 : i32
    %c0_i32_0 = arith.constant 0 : i32
    %c0_i32_1 = arith.constant 0 : i32
    return %c0_i32, %c0_i32_0 : i32, i32
  }
  func.func @transform_3(%arg0: i32) -> (i32, i32, i32) {
    %c0_i32 = arith.constant 0 : i32
    %c0_i32_0 = arith.constant 0 : i32
    %c0_i32_1 = arith.constant 0 : i32
    return %arg0, %c0_i32, %c0_i32_0 : i32, i32, i32
  }
}

</mosaic_0001>

<bundles_post_ra>
// kernel: upconv_forward.3
= control target key start
LH: loop header
LB: loop body
LE: loop exit
PB: predicated region body
PF: predicated region fallthrough
CT: control target
= control target key end

     0   :  { %s1437_s18 = smov 0   ;;  %s1587_s0 = inlined_call_operand.vmem [shape: bf16[2,16,128], index: 0, kind: input, shape index: {}]   ;;  %s1588_s1 = inlined_call_operand.vmem [shape: bf16[16,8,16], index: 1, kind: input, shape index: {}]   ;;  %s1589_s2 = inlined_call_operand.vmem [shape: f32[8,1], index: 2, kind: input, shape index: {}]   ;;  %s1590_s3 = inlined_call_operand.vmem [shape: f32[8,1], index: 3, kind: input, shape index: {}]   ;;  %s1591_s4 = inlined_call_operand.vmem [shape: f32[1,80], index: 4, kind: input, shape index: {}]   ;;  %s1592_s5 = inlined_call_operand.vmem [shape: bf16[2,4,8,80], index: 5, kind: output, shape index: {}]  }
   0x1 LB: > { %s1139_s19 = sadd.s32 4294967295, %s1394_s18   ;;  %p1143_p0 = scmp.ge.s32.totalorder %s1394_s18, 1  ;;  %s1394_s18 = sphi %s1437_s18, %s15_s18  }
   0x2   : > { %p187_p1 = scmp.lt.s32.totalorder %s1394_s18, 3 }
   0x4   : > { %p188_p2 = pnand %p1143_p0, %p187_p1 }
   0x5   : > { %p215_p3 = scmp.lt.s32.totalorder (!%p188_p2), %s1139_s19, 1  ;;  %v1396_v0 = vmov (!%p188_p2), 0.0   ;;  %vm1397_vm0 = vmmov (!%p188_p2), 0   ;;  %s1398_s24 = smov (!%p188_p2), 127   ;;  %v1148_v3 = vld [vmem:[%s1588_s1 + $0x4] sm:$0xf] (!%p188_p2) }
   0x6   : > { %191 = sbr.rel (%p188_p2) target bundleno = 892 (0x37c), region = 40  ;;  %1220 = vmatprep.subr.bf16.mxu0 (!%p188_p2), %v1396_v0  ;;  %1222 = vmatprep.mubr.msk.bf16.mxu0 (!%p188_p2), %vm1397_vm0, %v1396_v0  ;;  %s1399_s25 = smov (!%p188_p2), 118   ;;  %vm240_vm1 = vcmask (!%p188_p2), 130048   ;;  %v1157_v5 = vld [vmem:[%s1588_s1 + $0x14] sm:$0xf] (!%p188_p2)  ;;  %vm994_vm2 = vcmask (!%p188_p2), 654336  }
   0x7   : > { %1244 = vmatprep.subr.bf16.mxu1 (!%p188_p2), %v1396_v0  ;;  %1246 = vmatprep.mubr.msk.bf16.mxu1 (!%p188_p2), %vm1397_vm0, %v1396_v0  ;;  %s1400_s26 = smov (!%p188_p2), 126   ;;  %s1401_s27 = smov (!%p188_p2), 117   ;;  %v229_v7 = vld [vmem:[%s1588_s1] sm:$0xf] (!%p188_p2)  ;;  %v1156_v8 = vld [vmem:[%s1588_s1 + $0x10] sm:$0xf] (!%p188_p2) }
   0x8   : > { %s1402_s28 = smov (!%p188_p2), 116   ;;  %s1403_s29 = smov (!%p188_p2), 108   ;;  %v1152_v10 = vld [vmem:[%s1588_s1 + $0x8] sm:$0xf] (!%p188_p2)  ;;  %v1160_v11 = vld [vmem:[%s1588_s1 + $0x18] sm:$0xf] (!%p188_p2) }
   0x9   : > { %s1404_s30 = smov (!%p188_p2), 107   ;;  %s1405_s6 = smov (!%p188_p2), 106   ;;  %v1154_v13 = vld [vmem:[%s1588_s1 + $0xc] sm:$0xf] (!%p188_p2)  ;;  %v1162_v14 = vld [vmem:[%s1588_s1 + $0x1c] sm:$0xf] (!%p188_p2) }
   0xa   : > { %v1165_v15 = vld [vmem:[%s1588_s1 + $0x24] sm:$0xf] (!%p188_p2)  ;;  %v1173_v16 = vld [vmem:[%s1588_s1 + $0x34] sm:$0xf] (!%p188_p2)  ;;  %v1164_v17 = vld [vmem:[%s1588_s1 + $0x20] sm:$0xf] (!%p188_p2) }
   0xb   : > { %v1172_v19 = vld [vmem:[%s1588_s1 + $0x30] sm:$0xf] (!%p188_p2)  ;;  %v1168_v21 = vld [vmem:[%s1588_s1 + $0x28] sm:$0xf] (!%p188_p2)  ;;  %v1176_v22 = vld [vmem:[%s1588_s1 + $0x38] sm:$0xf] (!%p188_p2) }
   0xc   : > { %v1170_v24 = vld [vmem:[%s1588_s1 + $0x2c] sm:$0xf] (!%p188_p2)  ;;  %v1178_v25 = vld [vmem:[%s1588_s1 + $0x3c] sm:$0xf] (!%p188_p2)  ;;  %v1180_v26 = vld [vmem:[%s1591_s4] ss:$0 sm:$0xff] (!%p188_p2) }
   0xd   : > { %s1594_s19 = smov (!%p215_p3, %s1139_s19), 1  ;;  %vm1064_vm3 = vcmask 650240  }
   0xe   : > { %s1186_s20 = sshll.u32 %s1594_s19, 3 }
   0xf   : > { %s219_s23 = scalar_lea.vmem %s1587_s0, %s1186_s20 }
  0x10   : > { %v1385_v1 = vld [vmem:[%s219_s23] sm:$0xff]  }
  0x11   : > { %237 = vrot.lane.b32.xlu0 %v1385_v1, %s1398_s24  ;;  %330 = vrot.lane.b32.xlu1 %v1385_v1, %s1399_s25  ;;  %s1187_s24 = sshll.u32 %s1594_s19, 4 }
  0x15   : > { %430 = vrot.lane.b32.xlu0 %v1385_v1, %s1400_s26  ;;  %379 = vrot.lane.b32.xlu1 %v1385_v1, %s1401_s27  ;;  %s224_s27 = scalar_lea.vmem %s1592_s5, %s1187_s24 }
  0x19   : > { %567 = vrot.lane.b32.xlu0 %v1385_v1, %s1402_s28  ;;  %706 = vrot.lane.b32.xlu1 %v1385_v1, %s1403_s29 }
  0x1d   : > { %755 = vrot.lane.b32.xlu0 %v1385_v1, %s1404_s30  ;;  %940 = vrot.lane.b32.xlu1 %v1385_v1, %s1405_s6 }
  0x83   : > { %v238_v2 = vpop.permute.xlu0 %237  ;;  %v331_v6 = vpop.permute.xlu1 %330 }
  0x84   : > { %1221 = vmatpush3.bf16.msra.mxu0 %v238_v2 }
  0x85   : > { %1226 = vmatprep.subr.bf16.mxu0 %v1396_v0 }
  0x87   : > { %1223 = vmatmul.mubr.msk.bf16.vlgmr.msra.gmra.mrb[0].mxu0 %vm240_vm1, %v1148_v3  ;;  %v431_v4 = vpop.permute.xlu0 %430  ;;  %v380_v9 = vpop.permute.xlu1 %379 }
  0x88   : > { %1227 = vmatpush3.bf16.msra.mxu0 %v1385_v1  ;;  %1245 = vmatpush3.bf16.msra.mxu1 %v431_v4 }
  0x89   : > { %1250 = vmatprep.subr.bf16.mxu1 %v1396_v0  ;;  %1228 = vmatprep.mubr.msk.bf16.mxu0 %vm1397_vm0, %v1396_v0 }
  0x8a   : > { %1232 = vmatprep.subr.bf16.mxu0 %v1396_v0 }
  0x8b   : > { %1247 = vmatmul.mubr.msk.bf16.vlgmr.msra.gmra.mrb[0].mxu1 %vm240_vm1, %v1157_v5  ;;  %v568_v12 = vpop.permute.xlu0 %567  ;;  %v707_v18 = vpop.permute.xlu1 %706 }
  0x8c   : > { %1251 = vmatpush3.bf16.msra.mxu1 %v238_v2  ;;  %1252 = vmatprep.mubr.msk.bf16.mxu1 %vm1397_vm0, %v1396_v0 }
  0x8d   : > { %1256 = vmatprep.subr.bf16.mxu1 %v1396_v0 }
  0x8f   : > { %v756_v20 = vpop.permute.xlu0 %755  ;;  %v941_v23 = vpop.permute.xlu1 %940 }
  0x93   : > { %1229 = vmatmul.mubr.msk.bf16.vlgmr.msra.gmra.mrb[0].mxu0 %vm240_vm1, %v229_v7 }
  0x94   : > { %1233 = vmatpush3.bf16.msra.mxu0 %v331_v6  ;;  %1234 = vmatprep.mubr.msk.bf16.mxu0 %vm1397_vm0, %v1396_v0 }
  0x95   : > { %1238 = vmatprep.subr.bf16.mxu0 %v1396_v0 }
  0x97   : > { %1253 = vmatmul.mubr.msk.bf16.vlgmr.msra.gmra.mrb[0].mxu1 %vm240_vm1, %v1156_v8 }
  0x98   : > { %1257 = vmatpush3.bf16.msra.mxu1 %v380_v9  ;;  %1258 = vmatprep.mubr.msk.bf16.mxu1 %vm1397_vm0, %v1396_v0 }
  0x99   : > { %1262 = vmatprep.subr.bf16.mxu1 %v1396_v0 }
  0x9f   : > { %1235 = vmatmul.mubr.msk.bf16.vlgmr.msra.gmra.mrb[0].mxu0 %vm240_vm1, %v1152_v10 }
  0xa0   : > { %1239 = vmatpush3.bf16.msra.mxu0 %v380_v9  ;;  %1240 = vmatprep.mubr.msk.bf16.mxu0 %vm1397_vm0, %v1396_v0 }
  0xa1   : > { %1268 = vmatprep.subr.bf16.mxu0 %v1396_v0 }
  0xa3   : > { %1259 = vmatmul.mubr.msk.bf16.vlgmr.msra.gmra.mrb[0].mxu1 %vm240_vm1, %v1160_v11  ;;  %v1406_v11 = vmov 0  }
  0xa4   : > { %1263 = vmatpush3.bf16.msra.mxu1 %v568_v12  ;;  %1264 = vmatprep.mubr.msk.bf16.mxu1 %vm1397_vm0, %v1396_v0 }
  0xa5   : > { %1292 = vmatprep.subr.bf16.mxu1 %v1396_v0  ;;  %1383 = vset.pattern.permute.xlu1 %v1406_v11 }
  0xa6   : > { %1384 = vset.pattern.permute.xlu0 %v1406_v11 }
  0xab   : > { %1241 = vmatmul.mubr.msk.bf16.vlgmr.msra.gmra.mrb[0].mxu0 %vm240_vm1, %v1154_v13 }
  0xac   : > { %1269 = vmatpush3.bf16.msra.mxu0 %v380_v9  ;;  %1270 = vmatprep.mubr.msk.bf16.mxu0 %vm1397_vm0, %v1396_v0 }
  0xad   : > { %1274 = vmatprep.subr.bf16.mxu0 %v1396_v0 }
  0xaf   : > { %1265 = vmatmul.mubr.msk.bf16.vlgmr.msra.gmra.mrb[0].mxu1 %vm240_vm1, %v1162_v14 }
  0xb0   : > { %1293 = vmatpush3.bf16.msra.mxu1 %v568_v12  ;;  %1294 = vmatprep.mubr.msk.bf16.mxu1 %vm1397_vm0, %v1396_v0  ;;  %v1049_v12 = vld [vmem:[%s1590_s3] sm:$0xff] }
  0xb1   : > { %1298 = vmatprep.subr.bf16.mxu1 %v1396_v0 }
  0xb3   : > { %1271 = vmatmul.mubr.msk.bf16.vlgmr.msra.gmra.mrb[4].mxu0 %vm240_vm1, %v1165_v15 }
  0xb4   : > { %1275 = vmatpush3.bf16.msra.mxu0 %v331_v6  ;;  %1276 = vmatprep.mubr.msk.bf16.mxu0 %vm1397_vm0, %v1396_v0 }
  0xb5   : > { %1280 = vmatprep.subr.bf16.mxu0 %v1396_v0 }
  0xb7   : > { %1295 = vmatmul.mubr.msk.bf16.vlgmr.msra.gmra.mrb[4].mxu1 %vm240_vm1, %v1173_v16 }
  0xb8   : > { %1299 = vmatpush3.bf16.msra.mxu1 %v380_v9  ;;  %1300 = vmatprep.mubr.msk.bf16.mxu1 %vm1397_vm0, %v1396_v0 }
  0xb9   : > { %1304 = vmatprep.subr.bf16.mxu1 %v1396_v0 }
  0xbf   : > { %1277 = vmatmul.mubr.msk.bf16.vlgmr.msra.gmra.mrb[4].mxu0 %vm240_vm1, %v1164_v17 }
  0xc0   : > { %1281 = vmatpush3.bf16.msra.mxu0 %v707_v18  ;;  %1282 = vmatprep.mubr.msk.bf16.mxu0 %vm1397_vm0, %v1396_v0 }
  0xc1   : > { %1286 = vmatprep.subr.bf16.mxu0 %v1396_v0 }
  0xc3   : > { %1301 = vmatmul.mubr.msk.bf16.vlgmr.msra.gmra.mrb[4].mxu1 %vm240_vm1, %v1172_v19 }
  0xc4   : > { %1305 = vmatpush3.bf16.msra.mxu1 %v756_v20  ;;  %1306 = vmatprep.mubr.msk.bf16.mxu1 %vm1397_vm0, %v1396_v0 }
  0xc5   : > { %1310 = vmatprep.subr.bf16.mxu1 %v1396_v0 }
  0xcb   : > { %1283 = vmatmul.mubr.msk.bf16.vlgmr.msra.gmra.mrb[4].mxu0 %vm240_vm1, %v1168_v21 }
  0xcc   : > { %1287 = vmatpush3.bf16.msra.mxu0 %v756_v20  ;;  %1288 = vmatprep.mubr.msk.bf16.mxu0 %vm1397_vm0, %v1396_v0 }
  0xcf   : > { %1307 = vmatmul.mubr.msk.bf16.vlgmr.msra.gmra.mrb[4].mxu1 %vm240_vm1, %v1176_v22  ;;  %v1047_v22 = vld [vmem:[%s1589_s2] sm:$0xff] }
  0xd0   : > { %1311 = vmatpush3.bf16.msra.mxu1 %v941_v23  ;;  %1312 = vmatprep.mubr.msk.bf16.mxu1 %vm1397_vm0, %v1396_v0 }
  0xd7   : > { %1289 = vmatmul.mubr.msk.bf16.vlgmr.msra.gmra.mrb[4].mxu0 %vm240_vm1, %v1170_v24 }
  0xdb   : > { %1313 = vmatmul.mubr.msk.bf16.vlgmr.msra.gmra.mrb[4].mxu1 %vm240_vm1, %v1178_v25 }
 0x17e   : > { %v419_v27 = vpop.f32.mrb[0].mxu0 }
 0x17f   : > { %v993_v28 = vmul.f32 %v1180_v26, %v419_v27  ;;  %v1242_v29 = vpop.f32.mrb[1].mxu0 }
 0x180   : > { %v422_v30 = vpop.f32.mrb[2].mxu0 }
 0x181   : > { %v1243_v31 = vpop.f32.mrb[3].mxu0  ;;  %v995_v32 = vsel %vm994_vm2, %v993_v28, 0.0 }
 0x182   : > { %996 = vadd.xlane.f32.xlu0 %v995_v32  ;;  %v607_v33 = vpop.f32.mrb[0].mxu1 }
 0x183   : > { %v999_v34 = vmul.f32 %v1180_v26, %v607_v33  ;;  %v1266_v35 = vpop.f32.mrb[1].mxu1 }
 0x184   : > { %v610_v36 = vpop.f32.mrb[2].mxu1 }
 0x185   : > { %v1267_v37 = vpop.f32.mrb[3].mxu1  ;;  %v1000_v38 = vsel %vm994_vm2, %v999_v34, 0.0 }
 0x186   : > { %1001 = vadd.xlane.f32.xlu1 %v1000_v38 }
 0x1aa   : > { %v795_v39 = vpop.f32.mrb[4].mxu0 }
 0x1ab   : > { %v1004_v40 = vmul.f32 %v1180_v26, %v795_v39  ;;  %v1290_v41 = vpop.f32.mrb[5].mxu0 }
 0x1ac   : > { %v798_v42 = vpop.f32.mrb[6].mxu0 }
 0x1ad   : > { %v1291_v43 = vpop.f32.mrb[7].mxu0  ;;  %v1005_v44 = vsel %vm994_vm2, %v1004_v40, 0.0 }
 0x1ae   : > { %v980_v45 = vpop.f32.mrb[4].mxu1  ;;  %1006 = vadd.xlane.f32.xlu0 %v1005_v44 }
 0x1af   : > { %v1009_v46 = vmul.f32 %v1180_v26, %v980_v45  ;;  %v1314_v47 = vpop.f32.mrb[5].mxu1 }
 0x1b0   : > { %v983_v48 = vpop.f32.mrb[6].mxu1 }
 0x1b1   : > { %v1315_v49 = vpop.f32.mrb[7].mxu1  ;;  %v1010_v50 = vsel %vm994_vm2, %v1009_v46, 0.0 }
 0x1b2   : > { %1011 = vadd.xlane.f32.xlu0 %v1010_v50 }
 0x20f   : > { %v997_v51 = vpop.xlane.xlu0 %996 }
 0x213   : > { %v1002_v52 = vpop.xlane.xlu1 %1001 }
 0x214   : > { %v1003_v54 = vadd.f32 %v1002_v52, %v997_v51 }
 0x23b   : > { %v1007_v53 = vpop.xlane.xlu0 %1006 }
 0x23c   : > { %v1008_v55 = vadd.f32 %v1007_v53, %v1003_v54 }
 0x23f   : > { %v1012_v56 = vpop.xlane.xlu0 %1011 }
 0x240   : > { %v1013_v57 = vadd.f32 %v1012_v56, %v1008_v55 }
 0x242   : > { %v1015_v58 = vmul.f32 0.00390625, %v1013_v57 }
 0x244   : > { %v1018_v59 = vsub.f32 %v607_v33, %v1015_v58  ;;  %v1016_v60 = vsub.f32 %v419_v27, %v1015_v58  ;;  %v1022_v61 = vsub.f32 %v980_v45, %v1015_v58  ;;  %v1020_v62 = vsub.f32 %v795_v39, %v1015_v58 }
 0x246   : > { %v1019_v63 = vmul.f32 %v1180_v26, %v1018_v59  ;;  %v1017_v0 = vmul.f32 %v1180_v26, %v1016_v60  ;;  %v1023_v1 = vmul.f32 %v1180_v26, %v1022_v61  ;;  %v1021_v2 = vmul.f32 %v1180_v26, %v1020_v62 }
 0x248   : > { %v1029_v3 = vmul.f32 %v1019_v63, %v1019_v63  ;;  %v1024_v4 = vmul.f32 %v1017_v0, %v1017_v0  ;;  %v1039_v7 = vmul.f32 %v1023_v1, %v1023_v1  ;;  %v1034_v8 = vmul.f32 %v1021_v2, %v1021_v2 }
 0x24a   : > { %v1030_v5 = vsel %vm994_vm2, %v1029_v3, 0.0  ;;  %v1025_v6 = vsel %vm994_vm2, %v1024_v4, 0.0  ;;  %v1040_v9 = vsel %vm994_vm2, %v1039_v7, 0.0  ;;  %v1035_v10 = vsel %vm994_vm2, %v1034_v8, 0.0 }
 0x24b   : > { %1031 = vadd.xlane.f32.xlu0 %v1030_v5  ;;  %1026 = vadd.xlane.f32.xlu1 %v1025_v6 }
 0x24f   : > { %1041 = vadd.xlane.f32.xlu0 %v1040_v9  ;;  %1036 = vadd.xlane.f32.xlu1 %v1035_v10 }
 0x265   : > { %1058 = vperm.xlu0 %1384, %v1049_v12  }
 0x2d8   : > { %v1032_v13 = vpop.xlane.xlu0 %1031  ;;  %v1027_v14 = vpop.xlane.xlu1 %1026 }
 0x2d9   : > { %v1033_v15 = vadd.f32 %v1032_v13, %v1027_v14 }
 0x2dc   : > { %v1037_v16 = vpop.xlane.xlu1 %1036  ;;  %v1042_v18 = vpop.xlane.xlu0 %1041 }
 0x2dd   : > { %v1038_v17 = vadd.f32 %v1037_v16, %v1033_v15 }
 0x2df   : > { %v1043_v19 = vadd.f32 %v1042_v18, %v1038_v17 }
 0x2e1   : > { %v1044_v20 = vmul.f32 0.00390625, %v1043_v19 }
 0x2e3   : > { %v1045_v21 = vadd.f32 1e-05, %v1044_v20 }
 0x2e4   : > { %v1059_v26 = vpop.permute.xlu0 %1058 }
 0x2e5   : > { %1386 = vrsqrt.f32 %v1045_v21 }
 0x2ef   : > { %v1387_v23 = vpop.eup %1386 }
 0x2f0   : > { %v1048_v24 = vmul.f32 %v1387_v23, %v1047_v22 }
 0x2f2   : > { %1052 = vperm.xlu1 %1383, %v1048_v24  }
 0x371   : > { %v1053_v25 = vpop.permute.xlu1 %1052 }
 0x372   : > { %v1055_v27 = vmul.f32 %v1053_v25, %v1017_v0  ;;  %v1066_v28 = vmul.f32 %v1053_v25, %v1019_v63  ;;  %v1072_v29 = vmul.f32 %v1053_v25, %v1021_v2  ;;  %v1078_v30 = vmul.f32 %v1053_v25, %v1023_v1 }
 0x374   : > { %v1061_v31 = vadd.f32 %v1059_v26, %v1055_v27  ;;  %v1067_v32 = vadd.f32 %v1066_v28, %v1059_v26  ;;  %v1073_v33 = vadd.f32 %v1072_v29, %v1059_v26  ;;  %v1079_v34 = vadd.f32 %v1078_v30, %v1059_v26 }
 0x376   : > { %v1062_v35 = vmax.f32 %v1061_v31, 0.0  ;;  %v1068_v36 = vmax.f32 %v1067_v32, 0.0  ;;  %v1074_v37 = vmax.f32 %v1073_v33, 0.0  ;;  %v1080_v38 = vmax.f32 %v1079_v34, 0.0 }
 0x378   : > { %v1063_v39 = vpack.c.bf16 %v1062_v35, %v1062_v35  ;;  %v1069_v40 = vpack.c.bf16 %v1068_v36, %v1068_v36  ;;  %v1075_v41 = vpack.c.bf16 %v1074_v37, %v1074_v37  ;;  %v1081_v42 = vpack.c.bf16 %v1080_v38, %v1080_v38 }
 0x37a   : > { %1065 = vst.msk [vmem:[%s224_s27] sm:$0xf] %vm1064_vm3, %v1063_v39  ;;  %1181 = vst.msk [vmem:[%s224_s27 + $0x4] sm:$0xf] %vm1064_vm3, %v1069_v40 }
 0x37b   : > { %1182 = vst.msk [vmem:[%s224_s27 + $0x8] sm:$0xf] %vm1064_vm3, %v1075_v41  ;;  %1183 = vst.msk [vmem:[%s224_s27 + $0xc] sm:$0xf] %vm1064_vm3, %v1081_v42 }
 0x37c PF: > { %s15_s18 = sadd.s32 1, %s1394_s18  }
 0x37d   : > { %p12_p4 = scmp.ge.s32.totalorder %s15_s18, 4  }
 0x37f   :  { %14 = sbr.rel (!%p12_p4) target bundleno = 1 (0x1), region = 88 }

// kernel: upconv_forward.4
= control target key start
LH: loop header
LB: loop body
LE: loop exit
PB: predicated region body
PF: predicated region fallthrough
CT: control target
= control target key end

     0   :  { %s2518_s18 = smov 0   ;;  %s2950_s0 = inlined_call_operand.vmem [shape: bf16[2,8,384], index: 0, kind: input, shape index: {}]   ;;  %s2951_s1 = inlined_call_operand.vmem [shape: bf16[16,4,8], index: 1, kind: input, shape index: {}]   ;;  %s2952_s2 = inlined_call_operand.vmem [shape: f32[4,1], index: 2, kind: input, shape index: {}]   ;;  %s2953_s3 = inlined_call_operand.vmem [shape: f32[4,1], index: 3, kind: input, shape index: {}]   ;;  %s2954_s4 = inlined_call_operand.vmem [shape: f32[1,288], index: 4, kind: input, shape index: {}]   ;;  %s2955_s5 = inlined_call_operand.vmem [shape: bf16[2,4,4,288], index: 5, kind: output, shape index: {}]  }
   0x1 LB: > { %s2133_s19 = sadd.s32 4294967295, %s2474_s18   ;;  %p2137_p0 = scmp.ge.s32.totalorder %s2474_s18, 1  ;;  %s2474_s18 = sphi %s2518_s18, %s15_s18  }
   0x2   : > { %p187_p1 = scmp.lt.s32.totalorder %s2474_s18, 3 }
   0x4   : > { %p188_p2 = pnand %p2137_p0, %p187_p1 }
   0x5   : > { %p215_p3 = scmp.lt.s32.totalorder (!%p188_p2), %s2133_s19, 1  ;;  %v2476_v0 = vmov (!%p188_p2), 0.0   ;;  %vm2477_vm0 = vmmov (!%p188_p2), 0   ;;  %v2478_v1 = vmov (!%p188_p2), 0   ;;  %s2479_s24 = smov (!%p188_p2), 127   ;;  %vm253_vm1 = vcmask (!%p188_p2), 1043456  }
   0x6   : > { %191 = sbr.rel (%p188_p2) target bundleno = 1009 (0x3f1), region = 40  ;;  %2247 = vmatprep.subr.bf16.mxu1 (!%p188_p2), %v2476_v0  ;;  %2249 = vmatprep.mubr.msk.bf16.mxu1 (!%p188_p2), %vm2477_vm0, %v2476_v0  ;;  %s2480_s25 = smov (!%p188_p2), 110   ;;  %v2140_v9 = vld [vmem:[%s2951_s1 + $0x2] sm:$0x3] (!%p188_p2)  ;;  %vm249_vm2 = vcmask (!%p188_p2), 64512   ;;  %vm246_vm3 = vcmask (!%p188_p2), 1039360  }
   0x7   : > { %295 = vmatprep.mubr.bf16.mxu0 (!%p188_p2), %v2478_v1  ;;  %2461 = vset.pattern.permute.xlu1 (!%p188_p2), %v2478_v1  ;;  %s2481_s26 = smov (!%p188_p2), 109   ;;  %s2482_s27 = smov (!%p188_p2), 126   ;;  %vm445_vm4 = vcmask (!%p188_p2), 900096   ;;  %v229_v21 = vld [vmem:[%s2951_s1] sm:$0x3] (!%p188_p2)  ;;  %vm552_vm5 = vcmask (!%p188_p2), 891904  }
   0x8   : > { %2462 = vset.pattern.permute.xlu0 (!%p188_p2), %v2478_v1  ;;  %s2483_s28 = smov (!%p188_p2), 108   ;;  %s2484_s29 = smov (!%p188_p2), 92   ;;  %v2150_v29 = vld [vmem:[%s2951_s1 + $0x4] sm:$0x3] (!%p188_p2)  ;;  %vm661_vm6 = vcmask (!%p188_p2), 1031168   ;;  %vm938_vm7 = vcmask (!%p188_p2), 883712  }
   0x9   : > { %s2485_s30 = smov (!%p188_p2), 91   ;;  %s2486_s6 = smov (!%p188_p2), 90   ;;  %v2154_v36 = vld [vmem:[%s2951_s1 + $0x6] sm:$0x3] (!%p188_p2)  ;;  %v2159_v40 = vld [vmem:[%s2951_s1 + $0xa] sm:$0x3] (!%p188_p2) }
   0xa   : > { %v2158_v42 = vld [vmem:[%s2951_s1 + $0x8] sm:$0x3] (!%p188_p2)  ;;  %v2166_v46 = vld [vmem:[%s2951_s1 + $0xc] sm:$0x3] (!%p188_p2)  ;;  %v2170_v50 = vld [vmem:[%s2951_s1 + $0xe] sm:$0x3] (!%p188_p2) }
   0xb   : > { %v2175_v52 = vld [vmem:[%s2951_s1 + $0x12] sm:$0x3] (!%p188_p2)  ;;  %vm1217_vm8 = vcmask (!%p188_p2), 752640   ;;  %v2174_v57 = vld [vmem:[%s2951_s1 + $0x10] sm:$0x3] (!%p188_p2)  ;;  %vm1324_vm9 = vcmask (!%p188_p2), 744448  }
   0xc   : > { %vm1692_vm10 = vcmask (!%p188_p2), 736256   ;;  %vm1813_vm11 = vcmask (!%p188_p2), 257024   ;;  %vm1970_vm12 = vcmask (!%p188_p2), 1041408   ;;  %vm1971_vm13 = vcmask (!%p188_p2), 1043458  }
   0xd   : > { %s2959_s19 = smov (!%p215_p3, %s2133_s19), 1  ;;  %vm1973_vm14 = vcmask 259076   ;;  %vm1972_vm15 = vmor %vm1971_vm13, %vm1970_vm12 }
   0xe   : > { %s2439_s20 = smul.u32 12, %s2959_s19 }
  0x10   : > { %s219_s23 = scalar_lea.vmem %s2950_s0, %s2439_s20 }
  0x11   : > { %v2463_v2 = vld [vmem:[%s219_s23 + $0x8] ss:$0 sps:$4 sm:$0xff]   ;;  %v227_v3 = vld [vmem:[%s219_s23] sm:$0xff] }
  0x12   : > { %v2141_v4 = vcombine.low %v227_v3, %v227_v3  ;;  %244 = vrot.lane.b32.xlu1 %v2463_v2, %s2479_s24  ;;  %v2142_v5 = vcombine.high %v227_v3, %v227_v3  ;;  %v354_v10 = vsel %vm253_vm1, %v2463_v2, 0 }
  0x14   : > { %240 = vrot.lane.b32.xlu0 %v2141_v4, %s2479_s24  ;;  %v348_v17 = vsel %vm253_vm1, %v2141_v4, 0 }
  0x16   : > { %439 = vrot.lane.b32.xlu1 %v2141_v4, %s2480_s25 }
  0x18   : > { %242 = vrot.lane.b32.xlu0 %v2142_v5, %s2479_s24  ;;  %s2440_s24 = smul.u32 24, %s2959_s19 }
  0x1a   : > { %443 = vrot.lane.b32.xlu1 %v2463_v2, %s2480_s25 }
  0x1c   : > { %441 = vrot.lane.b32.xlu0 %v2142_v5, %s2480_s25 }
  0x1e   : > { %548 = vrot.lane.b32.xlu1 %v2142_v5, %s2481_s26 }
  0x20   : > { %546 = vrot.lane.b32.xlu0 %v2141_v4, %s2481_s26 }
  0x22   : > { %655 = vrot.lane.b32.xlu1 %v2141_v4, %s2482_s27 }
  0x24   : > { %550 = vrot.lane.b32.xlu0 %v2463_v2, %s2481_s26  ;;  %s224_s26 = scalar_lea.vmem %s2955_s5, %s2440_s24 }
  0x26   : > { %659 = vrot.lane.b32.xlu1 %v2463_v2, %s2482_s27 }
  0x28   : > { %657 = vrot.lane.b32.xlu0 %v2142_v5, %s2482_s27 }
  0x2a   : > { %934 = vrot.lane.b32.xlu1 %v2142_v5, %s2483_s28 }
  0x2c   : > { %932 = vrot.lane.b32.xlu0 %v2141_v4, %s2483_s28 }
  0x2e   : > { %1211 = vrot.lane.b32.xlu1 %v2141_v4, %s2484_s29 }
  0x30   : > { %936 = vrot.lane.b32.xlu0 %v2463_v2, %s2483_s28 }
  0x32   : > { %1215 = vrot.lane.b32.xlu1 %v2463_v2, %s2484_s29 }
  0x34   : > { %1213 = vrot.lane.b32.xlu0 %v2142_v5, %s2484_s29 }
  0x36   : > { %1320 = vrot.lane.b32.xlu1 %v2142_v5, %s2485_s30 }
  0x38   : > { %1318 = vrot.lane.b32.xlu0 %v2141_v4, %s2485_s30 }
  0x3a   : > { %1686 = vrot.lane.b32.xlu1 %v2141_v4, %s2486_s6 }
  0x3c   : > { %1322 = vrot.lane.b32.xlu0 %v2463_v2, %s2485_s30 }
  0x3e   : > { %1690 = vrot.lane.b32.xlu1 %v2463_v2, %s2486_s6  ;;  %v2182_v2 = vld [vmem:[%s2951_s1 + $0x14] sm:$0x3] }
  0x40   : > { %1688 = vrot.lane.b32.xlu0 %v2142_v5, %s2486_s6 }
  0x84   : > { %v245_v6 = vpop.permute.xlu1 %244 }
  0x85   : > { %v2539_v8 = vsel %vm253_vm1, %v245_v6, 0 }
  0x86   : > { %v241_v7 = vpop.permute.xlu0 %240  ;;  %2248 = vmatpush3.bf16.msra.mxu1 %v2539_v8 }
  0x87   : > { %2253 = vmatprep.subr.bf16.mxu1 %v2476_v0 }
  0x88   : > { %v440_v11 = vpop.permute.xlu1 %439 }
  0x89   : > { %2250 = vmatmul.mubr.msk.bf16.vlgmr.msra.gmra.mrb[0].mxu1 %vm249_vm2, %v2140_v9 }
  0x8a   : > { %v243_v12 = vpop.permute.xlu0 %242  ;;  %2254 = vmatpush3.bf16.msra.mxu1 %v354_v10  ;;  %2255 = vmatprep.mubr.msk.bf16.mxu1 %vm2477_vm0, %v2476_v0 }
  0x8b   : > { %v2548_v13 = vsel %vm246_vm3, %v243_v12, %v245_v6  ;;  %v247_v14 = vsel %vm246_vm3, %v241_v7, %v243_v12  ;;  %2259 = vmatprep.subr.bf16.mxu1 %v2476_v0  ;;  %v2186_v6 = vld [vmem:[%s2951_s1 + $0x16] sm:$0x3]  ;;  %v2191_v7 = vld [vmem:[%s2951_s1 + $0x1a] sm:$0x3] }
  0x8c   : > { %2144 = vmatprep.subr.msk.bf16.mxu0 %vm253_vm1, %v2548_v13  ;;  %v2555_v15 = vsel %vm253_vm1, %v247_v14, 0  ;;  %v444_v16 = vpop.permute.xlu1 %443 }
  0x8d   : > { %264 = vmatpush1.bf16.msra.mxu0 %v2555_v15  ;;  %v2572_v22 = vsel %vm253_vm1, %v444_v16, 0 }
  0x8e   : > { %2147 = vmatprep.subr.msk.bf16.mxu0 %vm253_vm1, %v2142_v5  ;;  %v442_v18 = vpop.permute.xlu0 %441 }
  0x8f   : > { %v2562_v19 = vsel %vm445_vm4, %v442_v18, %v444_v16  ;;  %v446_v23 = vsel %vm445_vm4, %v440_v11, %v442_v18  ;;  %v1792_v18 = vlaneseq }
  0x90   : > { %2145 = vmatmul.mubr.msk.bf16.vlgmr.msra.gmra.mrb[0].mxu0 %vm249_vm2, %v2140_v9  ;;  %v549_v24 = vpop.permute.xlu1 %548  ;;  %v2581_v26 = vsel %vm253_vm1, %v446_v23, 0  ;;  %v2190_v9 = vld [vmem:[%s2951_s1 + $0x18] sm:$0x3] }
  0x91   : > { %357 = vmatpush1.bf16.msra.mxu0 %v348_v17  ;;  %388 = vmatprep.mubr.bf16.mxu0 %v2478_v1  ;;  %v2202_v17 = vld [vmem:[%s2951_s1 + $0x1e] sm:$0x3] }
  0x92   : > { %2151 = vmatprep.subr.msk.bf16.mxu0 %vm253_vm1, %v2562_v19  ;;  %v547_v20 = vpop.permute.xlu0 %546 }
  0x93   : > { %v553_v31 = vsel %vm552_vm5, %v547_v20, %v549_v24 }
  0x94   : > { %v656_v28 = vpop.permute.xlu1 %655  ;;  %v2602_v34 = vsel %vm253_vm1, %v553_v31, 0 }
  0x95   : > { %2256 = vmatmul.mubr.msk.bf16.vlgmr.msra.gmra.mrb[0].mxu1 %vm249_vm2, %v229_v21 }
  0x96   : > { %2260 = vmatpush3.bf16.msra.mxu1 %v2572_v22  ;;  %2261 = vmatprep.mubr.msk.bf16.mxu1 %vm2477_vm0, %v2476_v0  ;;  %v551_v25 = vpop.permute.xlu0 %550 }
  0x97   : > { %2265 = vmatprep.subr.bf16.mxu1 %v2476_v0  ;;  %v2583_v27 = vsel %vm552_vm5, %v549_v24, %v551_v25  ;;  %v2594_v30 = vsel %vm253_vm1, %v551_v25, 0 }
  0x98   : > { %v660_v33 = vpop.permute.xlu1 %659 }
  0x99   : > { %v674_v37 = vsel %vm253_vm1, %v660_v33, 0 }
  0x9a   : > { %v658_v32 = vpop.permute.xlu0 %657 }
  0x9b   : > { %v663_v35 = vsel %vm661_vm6, %v658_v32, %v660_v33  ;;  %v662_v38 = vsel %vm661_vm6, %v656_v28, %v658_v32 }
  0x9c   : > { %2148 = vmatmul.mubr.msk.bf16.vlgmr.msra.gmra.mrb[0].mxu0 %vm249_vm2, %v229_v21  ;;  %v668_v39 = vsel %vm253_vm1, %v662_v38, 0  ;;  %v935_v43 = vpop.permute.xlu1 %934 }
  0x9d   : > { %461 = vmatpush1.bf16.msra.mxu0 %v2581_v26  ;;  %492 = vmatprep.mubr.bf16.mxu0 %v2478_v1 }
  0x9e   : > { %2155 = vmatprep.subr.msk.bf16.mxu0 %vm253_vm1, %v2583_v27  ;;  %v933_v41 = vpop.permute.xlu0 %932 }
  0x9f   : > { %v939_v48 = vsel %vm938_vm7, %v933_v41, %v935_v43 }
  0xa0   : > { %v2661_v49 = vsel %vm253_vm1, %v939_v48, 0  ;;  %v1212_v51 = vpop.permute.xlu1 %1211 }
  0xa1   : > { %2262 = vmatmul.mubr.msk.bf16.vlgmr.msra.gmra.mrb[0].mxu1 %vm249_vm2, %v2150_v29 }
  0xa2   : > { %2266 = vmatpush3.bf16.msra.mxu1 %v2594_v30  ;;  %2267 = vmatprep.mubr.msk.bf16.mxu1 %vm2477_vm0, %v2476_v0  ;;  %v937_v44 = vpop.permute.xlu0 %936 }
  0xa3   : > { %2271 = vmatprep.subr.bf16.mxu1 %v2476_v0  ;;  %v2642_v45 = vsel %vm938_vm7, %v935_v43, %v937_v44  ;;  %v2653_v47 = vsel %vm253_vm1, %v937_v44, 0 }
  0xa4   : > { %v1216_v54 = vpop.permute.xlu1 %1215 }
  0xa5   : > { %v1230_v58 = vsel %vm253_vm1, %v1216_v54, 0 }
  0xa6   : > { %v1214_v53 = vpop.permute.xlu0 %1213 }
  0xa7   : > { %v1219_v55 = vsel %vm1217_vm8, %v1214_v53, %v1216_v54  ;;  %v1218_v59 = vsel %vm1217_vm8, %v1212_v51, %v1214_v53 }
  0xa8   : > { %2152 = vmatmul.mubr.msk.bf16.vlgmr.msra.gmra.mrb[0].mxu0 %vm249_vm2, %v2150_v29  ;;  %v1321_v60 = vpop.permute.xlu1 %1320  ;;  %v1224_v62 = vsel %vm253_vm1, %v1218_v59, 0 }
  0xa9   : > { %568 = vmatpush1.bf16.msra.mxu0 %v2602_v34  ;;  %599 = vmatprep.mubr.bf16.mxu0 %v2478_v1 }
  0xaa   : > { %2160 = vmatprep.subr.msk.bf16.mxu0 %vm253_vm1, %v663_v35  ;;  %v1319_v56 = vpop.permute.xlu0 %1318 }
  0xab   : > { %v1325_v4 = vsel %vm1324_vm9, %v1319_v56, %v1321_v60 }
  0xac   : > { %v1331_v5 = vsel %vm253_vm1, %v1325_v4, 0 }
  0xad   : > { %2268 = vmatmul.mubr.msk.bf16.vlgmr.msra.gmra.mrb[0].mxu1 %vm249_vm2, %v2154_v36 }
  0xae   : > { %2272 = vmatpush3.bf16.msra.mxu1 %v674_v37  ;;  %2273 = vmatprep.mubr.msk.bf16.mxu1 %vm2477_vm0, %v2476_v0  ;;  %v1323_v61 = vpop.permute.xlu0 %1322 }
  0xaf   : > { %2277 = vmatprep.subr.bf16.mxu1 %v2476_v0  ;;  %v1326_v63 = vsel %vm1324_vm9, %v1321_v60, %v1323_v61  ;;  %v1337_v3 = vsel %vm253_vm1, %v1323_v61, 0 }
  0xb2   : > { %v1689_v10 = vpop.permute.xlu0 %1688 }
  0xb4   : > { %2156 = vmatmul.mubr.msk.bf16.vlgmr.msra.gmra.mrb[0].mxu0 %vm249_vm2, %v2154_v36 }
  0xb5   : > { %677 = vmatpush1.bf16.msra.mxu0 %v668_v39  ;;  %708 = vmatprep.mubr.bf16.mxu0 %v2478_v1 }
  0xb6   : > { %2163 = vmatprep.subr.msk.bf16.mxu0 %vm253_vm1, %v2548_v13  ;;  %2274 = vmatmul.mubr.msk.bf16.vlgmr.msra.gmra.mrb[4].mxu1 %vm249_vm2, %v2159_v40  ;;  %v2198_v13 = vld [vmem:[%s2951_s1 + $0x1c] sm:$0x3] }
  0xb7   : > { %2278 = vmatpush3.bf16.msra.mxu1 %v2539_v8  ;;  %2279 = vmatprep.mubr.msk.bf16.mxu1 %vm2477_vm0, %v2476_v0  ;;  %v1687_v8 = vpop.permute.xlu1 %1686 }
  0xb8   : > { %2283 = vmatprep.subr.bf16.mxu1 %v2476_v0 }
  0xbb   : > { %v1691_v11 = vpop.permute.xlu1 %1690 }
  0xbc   : > { %2161 = vmatmul.mubr.msk.bf16.vlgmr.msra.gmra.mrb[4].mxu0 %vm249_vm2, %v2159_v40  ;;  %v1694_v12 = vsel %vm1692_vm10, %v1689_v10, %v1691_v11  ;;  %v1705_v14 = vsel %vm253_vm1, %v1691_v11, 0 }
  0xbd   : > { %761 = vmatpush1.bf16.msra.mxu0 %v2555_v15  ;;  %792 = vmatprep.mubr.bf16.mxu0 %v2478_v1  ;;  %v1693_v15 = vsel %vm1692_vm10, %v1687_v8, %v1689_v10 }
  0xbe   : > { %2167 = vmatprep.subr.msk.bf16.mxu0 %vm253_vm1, %v2583_v27  ;;  %v1699_v16 = vsel %vm253_vm1, %v1693_v15, 0 }
  0xc2   : > { %2280 = vmatmul.mubr.msk.bf16.vlgmr.msra.gmra.mrb[4].mxu1 %vm249_vm2, %v2158_v42 }
  0xc3   : > { %2284 = vmatpush3.bf16.msra.mxu1 %v2594_v30  ;;  %2285 = vmatprep.mubr.msk.bf16.mxu1 %vm2477_vm0, %v2476_v0 }
  0xc4   : > { %2289 = vmatprep.subr.bf16.mxu1 %v2476_v0 }
  0xc8   : > { %2164 = vmatmul.mubr.msk.bf16.vlgmr.msra.gmra.mrb[4].mxu0 %vm249_vm2, %v2158_v42 }
  0xc9   : > { %847 = vmatpush1.bf16.msra.mxu0 %v2602_v34  ;;  %878 = vmatprep.mubr.bf16.mxu0 %v2478_v1 }
  0xca   : > { %2171 = vmatprep.subr.msk.bf16.mxu0 %vm253_vm1, %v2642_v45 }
  0xce   : > { %2286 = vmatmul.mubr.msk.bf16.vlgmr.msra.gmra.mrb[4].mxu1 %vm249_vm2, %v2166_v46 }
  0xcf   : > { %2290 = vmatpush3.bf16.msra.mxu1 %v2653_v47  ;;  %2291 = vmatprep.mubr.msk.bf16.mxu1 %vm2477_vm0, %v2476_v0 }
  0xd0   : > { %2295 = vmatprep.subr.bf16.mxu1 %v2476_v0 }
  0xd4   : > { %2168 = vmatmul.mubr.msk.bf16.vlgmr.msra.gmra.mrb[4].mxu0 %vm249_vm2, %v2166_v46 }
  0xd5   : > { %954 = vmatpush1.bf16.msra.mxu0 %v2661_v49  ;;  %985 = vmatprep.mubr.bf16.mxu0 %v2478_v1 }
  0xd6   : > { %2176 = vmatprep.subr.msk.bf16.mxu0 %vm253_vm1, %v2583_v27 }
  0xda   : > { %2292 = vmatmul.mubr.msk.bf16.vlgmr.msra.gmra.mrb[4].mxu1 %vm249_vm2, %v2170_v50 }
  0xdb   : > { %2296 = vmatpush3.bf16.msra.mxu1 %v2594_v30  ;;  %2297 = vmatprep.mubr.msk.bf16.mxu1 %vm2477_vm0, %v2476_v0 }
  0xdc   : > { %2301 = vmatprep.subr.bf16.mxu1 %v2476_v0 }
  0xe0   : > { %2172 = vmatmul.mubr.msk.bf16.vlgmr.msra.gmra.mrb[4].mxu0 %vm249_vm2, %v2170_v50 }
  0xe1   : > { %1045 = vmatpush1.bf16.msra.mxu0 %v2602_v34  ;;  %1076 = vmatprep.mubr.bf16.mxu0 %v2478_v1 }
  0xe2   : > { %2179 = vmatprep.subr.msk.bf16.mxu0 %vm253_vm1, %v2562_v19  ;;  %2298 = vmatmul.mubr.msk.bf16.vlgmr.msra.gmra.mrb[8].mxu1 %vm249_vm2, %v2175_v52  ;;  %v2768_v19 = vshrl.u32 %v1792_v18, 7 }
  0xe3   : > { %2302 = vmatpush3.bf16.msra.mxu1 %v2572_v22  ;;  %2303 = vmatprep.mubr.msk.bf16.mxu1 %vm2477_vm0, %v2476_v0 }
  0xe4   : > { %2307 = vmatprep.subr.bf16.mxu1 %v2476_v0  ;;  %v1802_v21 = vsub.s32 2, %v2768_v19  ;;  %v1798_v22 = vsub.s32 1, %v2768_v19 }
  0xe8   : > { %2177 = vmatmul.mubr.msk.bf16.vlgmr.msra.gmra.mrb[8].mxu0 %vm249_vm2, %v2175_v52 }
  0xe9   : > { %1129 = vmatpush1.bf16.msra.mxu0 %v2581_v26  ;;  %1160 = vmatprep.mubr.bf16.mxu0 %v2478_v1 }
  0xea   : > { %2183 = vmatprep.subr.msk.bf16.mxu0 %vm253_vm1, %v1219_v55 }
  0xee   : > { %2304 = vmatmul.mubr.msk.bf16.vlgmr.msra.gmra.mrb[8].mxu1 %vm249_vm2, %v2174_v57 }
  0xef   : > { %2308 = vmatpush3.bf16.msra.mxu1 %v1230_v58  ;;  %2309 = vmatprep.mubr.msk.bf16.mxu1 %vm2477_vm0, %v2476_v0 }
  0xf0   : > { %2313 = vmatprep.subr.bf16.mxu1 %v2476_v0 }
  0xf4   : > { %2180 = vmatmul.mubr.msk.bf16.vlgmr.msra.gmra.mrb[8].mxu0 %vm249_vm2, %v2174_v57 }
  0xf5   : > { %1233 = vmatpush1.bf16.msra.mxu0 %v1224_v62  ;;  %1264 = vmatprep.mubr.bf16.mxu0 %v2478_v1 }
  0xf6   : > { %2187 = vmatprep.subr.msk.bf16.mxu0 %vm253_vm1, %v1326_v63 }
  0xfa   : > { %2310 = vmatmul.mubr.msk.bf16.vlgmr.msra.gmra.mrb[8].mxu1 %vm249_vm2, %v2182_v2 }
  0xfb   : > { %2314 = vmatpush3.bf16.msra.mxu1 %v1337_v3  ;;  %2315 = vmatprep.mubr.msk.bf16.mxu1 %vm2477_vm0, %v2476_v0 }
  0xfc   : > { %2319 = vmatprep.subr.bf16.mxu1 %v2476_v0 }
 0x100   : > { %2184 = vmatmul.mubr.msk.bf16.vlgmr.msra.gmra.mrb[8].mxu0 %vm249_vm2, %v2182_v2 }
 0x101   : > { %1340 = vmatpush1.bf16.msra.mxu0 %v1331_v5  ;;  %1371 = vmatprep.mubr.bf16.mxu0 %v2478_v1 }
 0x102   : > { %2192 = vmatprep.subr.msk.bf16.mxu0 %vm253_vm1, %v2642_v45 }
 0x106   : > { %2316 = vmatmul.mubr.msk.bf16.vlgmr.msra.gmra.mrb[8].mxu1 %vm249_vm2, %v2186_v6 }
 0x107   : > { %2320 = vmatpush3.bf16.msra.mxu1 %v2653_v47  ;;  %2321 = vmatprep.mubr.msk.bf16.mxu1 %vm2477_vm0, %v2476_v0 }
 0x108   : > { %2325 = vmatprep.subr.bf16.mxu1 %v2476_v0 }
 0x10c   : > { %2188 = vmatmul.mubr.msk.bf16.vlgmr.msra.gmra.mrb[8].mxu0 %vm249_vm2, %v2186_v6 }
 0x10d   : > { %1431 = vmatpush1.bf16.msra.mxu0 %v2661_v49  ;;  %1462 = vmatprep.mubr.bf16.mxu0 %v2478_v1 }
 0x10e   : > { %2195 = vmatprep.subr.msk.bf16.mxu0 %vm253_vm1, %v2583_v27  ;;  %2322 = vmatmul.mubr.msk.bf16.vlgmr.msra.gmra.mrb[12].mxu1 %vm249_vm2, %v2191_v7 }
 0x10f   : > { %2326 = vmatpush3.bf16.msra.mxu1 %v2594_v30  ;;  %2327 = vmatprep.mubr.msk.bf16.mxu1 %vm2477_vm0, %v2476_v0 }
 0x110   : > { %2331 = vmatprep.subr.bf16.mxu1 %v2476_v0 }
 0x114   : > { %2193 = vmatmul.mubr.msk.bf16.vlgmr.msra.gmra.mrb[12].mxu0 %vm249_vm2, %v2191_v7 }
 0x115   : > { %1515 = vmatpush1.bf16.msra.mxu0 %v2602_v34  ;;  %1546 = vmatprep.mubr.bf16.mxu0 %v2478_v1 }
 0x116   : > { %2199 = vmatprep.subr.msk.bf16.mxu0 %vm253_vm1, %v1326_v63 }
 0x11a   : > { %2328 = vmatmul.mubr.msk.bf16.vlgmr.msra.gmra.mrb[12].mxu1 %vm249_vm2, %v2190_v9 }
 0x11b   : > { %2332 = vmatpush3.bf16.msra.mxu1 %v1337_v3  ;;  %2333 = vmatprep.mubr.msk.bf16.mxu1 %vm2477_vm0, %v2476_v0 }
 0x11c   : > { %2337 = vmatprep.subr.bf16.mxu1 %v2476_v0 }
 0x120   : > { %2196 = vmatmul.mubr.msk.bf16.vlgmr.msra.gmra.mrb[12].mxu0 %vm249_vm2, %v2190_v9 }
 0x121   : > { %1601 = vmatpush1.bf16.msra.mxu0 %v1331_v5  ;;  %1632 = vmatprep.mubr.bf16.mxu0 %v2478_v1 }
 0x122   : > { %2203 = vmatprep.subr.msk.bf16.mxu0 %vm253_vm1, %v1694_v12 }
 0x126   : > { %2334 = vmatmul.mubr.msk.bf16.vlgmr.msra.gmra.mrb[12].mxu1 %vm249_vm2, %v2198_v13 }
 0x127   : > { %2338 = vmatpush3.bf16.msra.mxu1 %v1705_v14  ;;  %2339 = vmatprep.mubr.msk.bf16.mxu1 %vm2477_vm0, %v2476_v0  ;;  %v1794_v0 = vsub.s32 0, %v2768_v19  ;;  %vm2929_vm0 = vmor %vm1973_vm14, %vm1972_vm15 }
 0x12c   : > { %2200 = vmatmul.mubr.msk.bf16.vlgmr.msra.gmra.mrb[12].mxu0 %vm249_vm2, %v2198_v13 }
 0x12d   : > { %1708 = vmatpush1.bf16.msra.mxu0 %v1699_v16  ;;  %1739 = vmatprep.mubr.bf16.mxu0 %v2478_v1  ;;  %v226_v1 = vld [vmem:[%s2954_s4] sm:$0x7] }
 0x12e   : > { %v2778_v26 = vrot.slane %v226_v1, %v1794_v0  ;;  %v2780_v27 = vrot.slane %v226_v1, %v1802_v21  ;;  %v2782_v28 = vrot.slane %v226_v1, %v1798_v22 }
 0x132   : > { %2340 = vmatmul.mubr.msk.bf16.vlgmr.msra.gmra.mrb[12].mxu1 %vm249_vm2, %v2202_v17 }
 0x138   : > { %2204 = vmatmul.mubr.msk.bf16.vlgmr.msra.gmra.mrb[12].mxu0 %vm249_vm2, %v2202_v17 }
 0x180   : > { %v2771_v20 = vpop.f32.mrb[0].mxu1 }
 0x181   : > { %v2269_v23 = vpop.f32.mrb[1].mxu1  ;;  %v1809_v32 = vmul.f32 %v2780_v27, %v2771_v20 }
 0x182   : > { %v645_v24 = vpop.f32.mrb[2].mxu1 }
 0x183   : > { %v2270_v25 = vpop.f32.mrb[3].mxu1  ;;  %v1814_v39 = vsel %vm1813_vm11, %v1809_v32, 0.0 }
 0x187   : > { %v2784_v29 = vpop.f32.mrb[0].mxu0 }
 0x188   : > { %v1807_v30 = vmul.f32 %v2778_v26, %v2784_v29  ;;  %v2788_v31 = vpop.f32.mrb[1].mxu0 }
 0x189   : > { %v1808_v33 = vmul.f32 %v2782_v28, %v2788_v31  ;;  %v605_v34 = vpop.f32.mrb[2].mxu0 }
 0x18a   : > { %v1810_v35 = vsel %vm253_vm1, %v1807_v30, 0.0  ;;  %v606_v36 = vpop.f32.mrb[3].mxu0 }
 0x18b   : > { %v1811_v37 = vsel %vm253_vm1, %v1808_v33, 0.0 }
 0x18c   : > { %v1812_v38 = vadd.f32 %v1811_v37, %v1810_v35 }
 0x18e   : > { %v1815_v40 = vadd.f32 %v1814_v39, %v1812_v38 }
 0x190   : > { %1816 = vadd.xlane.f32.xlu0 %v1815_v40 }
 0x1ad   : > { %v2797_v41 = vpop.f32.mrb[4].mxu1 }
 0x1ae   : > { %v2293_v42 = vpop.f32.mrb[5].mxu1  ;;  %v1821_v48 = vmul.f32 %v2780_v27, %v2797_v41 }
 0x1af   : > { %v1031_v43 = vpop.f32.mrb[6].mxu1 }
 0x1b0   : > { %v2294_v44 = vpop.f32.mrb[7].mxu1  ;;  %v1825_v55 = vsel %vm1813_vm11, %v1821_v48, 0.0 }
 0x1b3   : > { %v2799_v45 = vpop.f32.mrb[4].mxu0 }
 0x1b4   : > { %v1819_v46 = vmul.f32 %v2778_v26, %v2799_v45  ;;  %v2803_v47 = vpop.f32.mrb[5].mxu0 }
 0x1b5   : > { %v1820_v49 = vmul.f32 %v2782_v28, %v2803_v47  ;;  %v991_v50 = vpop.f32.mrb[6].mxu0 }
 0x1b6   : > { %v1822_v51 = vsel %vm253_vm1, %v1819_v46, 0.0  ;;  %v992_v52 = vpop.f32.mrb[7].mxu0 }
 0x1b7   : > { %v1823_v53 = vsel %vm253_vm1, %v1820_v49, 0.0 }
 0x1b8   : > { %v1824_v54 = vadd.f32 %v1823_v53, %v1822_v51 }
 0x1ba   : > { %v1826_v56 = vadd.f32 %v1825_v55, %v1824_v54 }
 0x1bc   : > { %1827 = vadd.xlane.f32.xlu1 %v1826_v56 }
 0x1d9   : > { %v2812_v57 = vpop.f32.mrb[8].mxu1 }
 0x1da   : > { %v2317_v58 = vpop.f32.mrb[9].mxu1  ;;  %v1832_v2 = vmul.f32 %v2780_v27, %v2812_v57 }
 0x1db   : > { %v1417_v59 = vpop.f32.mrb[10].mxu1 }
 0x1dc   : > { %v2318_v60 = vpop.f32.mrb[11].mxu1  ;;  %v1836_v9 = vsel %vm1813_vm11, %v1832_v2, 0.0 }
 0x1df   : > { %v2814_v61 = vpop.f32.mrb[8].mxu0 }
 0x1e0   : > { %v1830_v62 = vmul.f32 %v2778_v26, %v2814_v61  ;;  %v2818_v63 = vpop.f32.mrb[9].mxu0 }
 0x1e1   : > { %v1831_v3 = vmul.f32 %v2782_v28, %v2818_v63  ;;  %v1377_v4 = vpop.f32.mrb[10].mxu0 }
 0x1e2   : > { %v1833_v5 = vsel %vm253_vm1, %v1830_v62, 0.0  ;;  %v1378_v6 = vpop.f32.mrb[11].mxu0 }
 0x1e3   : > { %v1834_v7 = vsel %vm253_vm1, %v1831_v3, 0.0 }
 0x1e4   : > { %v1835_v8 = vadd.f32 %v1834_v7, %v1833_v5 }
 0x1e6   : > { %v1837_v10 = vadd.f32 %v1836_v9, %v1835_v8 }
 0x1e8   : > { %1838 = vadd.xlane.f32.xlu0 %v1837_v10 }
 0x205   : > { %v1782_v11 = vpop.f32.mrb[12].mxu1 }
 0x206   : > { %v2341_v12 = vpop.f32.mrb[13].mxu1  ;;  %v1843_v18 = vmul.f32 %v2780_v27, %v1782_v11 }
 0x207   : > { %v1785_v13 = vpop.f32.mrb[14].mxu1 }
 0x208   : > { %v2342_v14 = vpop.f32.mrb[15].mxu1  ;;  %v1847_v25 = vsel %vm1813_vm11, %v1843_v18, 0.0 }
 0x20b   : > { %v1741_v15 = vpop.f32.mrb[12].mxu0 }
 0x20c   : > { %v1841_v16 = vmul.f32 %v2778_v26, %v1741_v15  ;;  %v1743_v17 = vpop.f32.mrb[13].mxu0 }
 0x20d   : > { %v1842_v0 = vmul.f32 %v2782_v28, %v1743_v17  ;;  %v1745_v21 = vpop.f32.mrb[14].mxu0 }
 0x20e   : > { %v1844_v22 = vsel %vm253_vm1, %v1841_v16, 0.0  ;;  %v1746_v1 = vpop.f32.mrb[15].mxu0 }
 0x20f   : > { %v1845_v23 = vsel %vm253_vm1, %v1842_v0, 0.0 }
 0x210   : > { %v1846_v24 = vadd.f32 %v1845_v23, %v1844_v22 }
 0x212   : > { %v1848_v30 = vadd.f32 %v1847_v25, %v1846_v24 }
 0x214   : > { %1849 = vadd.xlane.f32.xlu0 %v1848_v30 }
 0x21d   : > { %v1817_v32 = vpop.xlane.xlu0 %1816 }
 0x249   : > { %v1828_v33 = vpop.xlane.xlu1 %1827 }
 0x24a   : > { %v1829_v35 = vadd.f32 %v1828_v33, %v1817_v32 }
 0x275   : > { %v1839_v34 = vpop.xlane.xlu0 %1838 }
 0x276   : > { %v1840_v36 = vadd.f32 %v1839_v34, %v1829_v35 }
 0x2a1   : > { %v1850_v37 = vpop.xlane.xlu0 %1849 }
 0x2a2   : > { %v1851_v38 = vadd.f32 %v1850_v37, %v1840_v36 }
 0x2a4   : > { %v1853_v39 = vmul.f32 0.0009765625, %v1851_v38 }
 0x2a6   : > { %v1860_v40 = vsub.f32 %v2799_v45, %v1853_v39  ;;  %v1861_v42 = vsub.f32 %v2803_v47, %v1853_v39  ;;  %v1862_v43 = vsub.f32 %v2797_v41, %v1853_v39  ;;  %v1854_v44 = vsub.f32 %v2784_v29, %v1853_v39 }
 0x2a7   : > { %v1855_v46 = vsub.f32 %v2788_v31, %v1853_v39  ;;  %v1856_v48 = vsub.f32 %v2771_v20, %v1853_v39  ;;  %v1872_v49 = vsub.f32 %v1741_v15, %v1853_v39  ;;  %v1873_v50 = vsub.f32 %v1743_v17, %v1853_v39 }
 0x2a8   : > { %v2840_v51 = vmul.f32 %v1860_v40, %v2778_v26  ;;  %v2843_v52 = vmul.f32 %v1861_v42, %v2782_v28  ;;  %v2846_v45 = vmul.f32 %v1862_v43, %v2780_v27  ;;  %v2849_v47 = vmul.f32 %v1854_v44, %v2778_v26  ;;  %v1925_v44 = vld [vmem:[%s2952_s2] sm:$0xf] }
 0x2a9   : > { %v2852_v29 = vmul.f32 %v1855_v46, %v2782_v28  ;;  %v2855_v31 = vmul.f32 %v1856_v48, %v2780_v27  ;;  %v1874_v20 = vsub.f32 %v1782_v11, %v1853_v39  ;;  %v2858_v41 = vmul.f32 %v1872_v49, %v2778_v26 }
 0x2aa   : > { %v1889_v53 = vmul.f32 %v2840_v51, %v2840_v51  ;;  %v1890_v54 = vmul.f32 %v2843_v52, %v2843_v52  ;;  %v1891_v55 = vmul.f32 %v2846_v45, %v2846_v45  ;;  %v1878_v56 = vmul.f32 %v2849_v47, %v2849_v47 }
 0x2ab   : > { %v1879_v58 = vmul.f32 %v2852_v29, %v2852_v29  ;;  %v1880_v59 = vmul.f32 %v2855_v31, %v2855_v31  ;;  %v2873_v60 = vmul.f32 %v1873_v50, %v2782_v28  ;;  %v2876_v62 = vmul.f32 %v1874_v20, %v2780_v27 }
 0x2ac   : > { %v1892_v2 = vsel %vm253_vm1, %v1889_v53, 0.0  ;;  %v1893_v3 = vsel %vm253_vm1, %v1890_v54, 0.0  ;;  %v1895_v4 = vsel %vm1813_vm11, %v1891_v55, 0.0  ;;  %v1881_v5 = vsel %vm253_vm1, %v1878_v56, 0.0 }
 0x2ad   : > { %v1894_v6 = vadd.f32 %v1893_v3, %v1892_v2  ;;  %v1882_v7 = vsel %vm253_vm1, %v1879_v58, 0.0  ;;  %v1884_v8 = vsel %vm1813_vm11, %v1880_v59, 0.0  ;;  %v1911_v9 = vmul.f32 %v2858_v41, %v2858_v41 }
 0x2ae   : > { %v1883_v10 = vadd.f32 %v1882_v7, %v1881_v5  ;;  %v1912_v11 = vmul.f32 %v2873_v60, %v2873_v60  ;;  %v1913_v12 = vmul.f32 %v2876_v62, %v2876_v62  ;;  %v1866_v13 = vsub.f32 %v2814_v61, %v1853_v39 }
 0x2af   : > { %v1896_v14 = vadd.f32 %v1895_v4, %v1894_v6  ;;  %v1914_v15 = vsel %vm253_vm1, %v1911_v9, 0.0  ;;  %v1867_v16 = vsub.f32 %v2818_v63, %v1853_v39  ;;  %v1868_v17 = vsub.f32 %v2812_v57, %v1853_v39 }
 0x2b0   : > { %v1885_v18 = vadd.f32 %v1884_v8, %v1883_v10  ;;  %v1915_v0 = vsel %vm253_vm1, %v1912_v11, 0.0  ;;  %v1869_v21 = vmul.f32 %v1866_v13, %v2778_v26  ;;  %v1917_v61 = vsel %vm1813_vm11, %v1913_v12, 0.0 }
 0x2b1   : > { %1897 = vadd.xlane.f32.xlu0 %v1896_v14  ;;  %v1916_v22 = vadd.f32 %v1915_v0, %v1914_v15  ;;  %v1870_v1 = vmul.f32 %v1867_v16, %v2782_v28  ;;  %v1871_v23 = vmul.f32 %v1868_v17, %v2780_v27  ;;  %v1927_v27 = vld [vmem:[%s2953_s3] sm:$0xf]  ;;  %v2487_v49 = vmov 1983009808  }
 0x2b2   : > { %1886 = vadd.xlane.f32.xlu1 %v1885_v18  ;;  %v1900_v24 = vmul.f32 %v1869_v21, %v1869_v21  ;;  %v1955_v50 = vunpack.c.l.s4 %v2487_v49 }
 0x2b3   : > { %v1918_v25 = vadd.f32 %v1917_v61, %v1916_v22  ;;  %v1901_v30 = vmul.f32 %v1870_v1, %v1870_v1  ;;  %v1902_v63 = vmul.f32 %v1871_v23, %v1871_v23 }
 0x2b4   : > { %v1903_v57 = vsel %vm253_vm1, %v1900_v24, 0.0  ;;  %v1956_v20 = vunpack.c.0.s8 %v1955_v50 }
 0x2b5   : > { %1919 = vadd.xlane.f32.xlu0 %v1918_v25  ;;  %v1904_v32 = vsel %vm253_vm1, %v1901_v30, 0.0  ;;  %v1906_v26 = vsel %vm1813_vm11, %v1902_v63, 0.0 }
 0x2b6   : > { %v1905_v33 = vadd.f32 %v1904_v32, %v1903_v57  ;;  %v2909_v53 = vsub.s32 %v1956_v20, %v2768_v19 }
 0x2b8   : > { %v1907_v34 = vadd.f32 %v1906_v26, %v1905_v33 }
 0x2ba   : > { %1908 = vadd.xlane.f32.xlu1 %v1907_v34 }
 0x2cb   : > { %1938 = vperm.xlu0 %2462, %v1927_v27  }
 0x33e   : > { %v1898_v35 = vpop.xlane.xlu0 %1897 }
 0x33f   : > { %v1887_v28 = vpop.xlane.xlu1 %1886 }
 0x340   : > { %v1899_v36 = vadd.f32 %v1898_v35, %v1887_v28 }
 0x342   : > { %v1920_v39 = vpop.xlane.xlu0 %1919 }
 0x347   : > { %v1909_v37 = vpop.xlane.xlu1 %1908 }
 0x348   : > { %v1910_v38 = vadd.f32 %v1909_v37, %v1899_v36 }
 0x34a   : > { %v1921_v40 = vadd.f32 %v1920_v39, %v1910_v38  ;;  %v1939_v2 = vpop.permute.xlu0 %1938 }
 0x34c   : > { %v1922_v42 = vmul.f32 0.0009765625, %v1921_v40 }
 0x34e   : > { %v1923_v43 = vadd.f32 1e-05, %v1922_v42 }
 0x350   : > { %2466 = vrsqrt.f32 %v1923_v43 }
 0x35a   : > { %v2467_v46 = vpop.eup %2466 }
 0x35b   : > { %v1926_v48 = vmul.f32 %v2467_v46, %v1925_v44 }
 0x35d   : > { %1930 = vperm.xlu1 %2461, %v1926_v48  }
 0x3dc   : > { %v1931_v54 = vpop.permute.xlu1 %1930 }
 0x3dd   : > { %v1933_v55 = vmul.f32 %v1931_v54, %v2849_v47  ;;  %v1934_v56 = vmul.f32 %v1931_v54, %v2852_v29  ;;  %v1935_v58 = vmul.f32 %v1931_v54, %v2855_v31  ;;  %v1976_v59 = vmul.f32 %v1931_v54, %v2840_v51 }
 0x3de   : > { %v1977_v3 = vmul.f32 %v1931_v54, %v2843_v52  ;;  %v1978_v4 = vmul.f32 %v1931_v54, %v2846_v45  ;;  %v2010_v5 = vmul.f32 %v1931_v54, %v1869_v21  ;;  %v2011_v19 = vmul.f32 %v1931_v54, %v1870_v1 }
 0x3df   : > { %v2012_v6 = vmul.f32 %v1931_v54, %v1871_v23  ;;  %v2044_v7 = vmul.f32 %v1931_v54, %v2858_v41  ;;  %v2045_v8 = vmul.f32 %v1931_v54, %v2873_v60  ;;  %v2046_v47 = vmul.f32 %v1931_v54, %v2876_v62 }
 0x3e0   : > { %v1941_v29 = vadd.f32 %v1939_v2, %v1933_v55  ;;  %v1942_v9 = vadd.f32 %v1939_v2, %v1934_v56  ;;  %v1943_v31 = vadd.f32 %v1939_v2, %v1935_v58  ;;  %v1979_v10 = vadd.f32 %v1976_v59, %v1939_v2 }
 0x3e1   : > { %v1980_v51 = vadd.f32 %v1977_v3, %v1939_v2  ;;  %v1981_v11 = vadd.f32 %v1978_v4, %v1939_v2  ;;  %v2013_v12 = vadd.f32 %v2010_v5, %v1939_v2  ;;  %v2014_v52 = vadd.f32 %v2011_v19, %v1939_v2 }
 0x3e2   : > { %v1944_v13 = vmax.f32 %v1941_v29, 0.0  ;;  %v1945_v45 = vmax.f32 %v1942_v9, 0.0  ;;  %v1946_v14 = vmax.f32 %v1943_v31, 0.0  ;;  %v1982_v15 = vmax.f32 %v1979_v10, 0.0 }
 0x3e3   : > { %v1983_v16 = vmax.f32 %v1980_v51, 0.0  ;;  %v1984_v17 = vmax.f32 %v1981_v11, 0.0  ;;  %v2015_v41 = vadd.f32 %v2012_v6, %v1939_v2  ;;  %v2016_v18 = vmax.f32 %v2013_v12, 0.0 }
 0x3e4   : > { %v1949_v60 = vpack.c.bf16 %v1946_v14, %v1946_v14  ;;  %v2206_v62 = vpack.c.bf16 %v1945_v45, %v1944_v13  ;;  %v2017_v0 = vmax.f32 %v2014_v52, 0.0  ;;  %v2047_v21 = vadd.f32 %v2044_v7, %v1939_v2 }
 0x3e5   : > { %v1987_v22 = vpack.c.bf16 %v1984_v17, %v1984_v17  ;;  %v2207_v1 = vpack.c.bf16 %v1983_v16, %v1982_v15  ;;  %v2018_v23 = vmax.f32 %v2015_v41, 0.0  ;;  %v2048_v61 = vadd.f32 %v2045_v8, %v1939_v2 }
 0x3e6   : > { %v1960_v24 = vrot.slane %v2206_v62, %v2909_v53  ;;  %v1967_v25 = vrot.slane %v1949_v60, %v2909_v53  ;;  %v2209_v30 = vpack.c.bf16 %v2017_v0, %v2016_v18  ;;  %v2049_v63 = vadd.f32 %v2046_v47, %v1939_v2 }
 0x3e7   : > { %v1998_v32 = vrot.slane %v2207_v1, %v2909_v53  ;;  %v2005_v33 = vrot.slane %v1987_v22, %v2909_v53  ;;  %v2021_v26 = vpack.c.bf16 %v2018_v23, %v2018_v23  ;;  %v2050_v34 = vmax.f32 %v2047_v21, 0.0 }
 0x3e8   : > { %v1968_v27 = vcombine.low %v1960_v24, %v1967_v25  ;;  %v2032_v28 = vrot.slane %v2209_v30, %v2909_v53  ;;  %v2051_v35 = vmax.f32 %v2048_v61, 0.0  ;;  %v2052_v36 = vmax.f32 %v2049_v63, 0.0 }
 0x3e9   : > { %v2006_v37 = vcombine.low %v1998_v32, %v2005_v33  ;;  %v2039_v38 = vrot.slane %v2021_v26, %v2909_v53 }
 0x3ea   : > { %1975 = vst.msk [vmem:[%s224_s26] sm:$0x3f] %vm2929_vm0, %v1968_v27  ;;  %v2055_v39 = vpack.c.bf16 %v2052_v36, %v2052_v36  ;;  %v2211_v40 = vpack.c.bf16 %v2051_v35, %v2050_v34 }
 0x3eb   : > { %2208 = vst.msk [vmem:[%s224_s26 + $0x6] sm:$0x3f] %vm2929_vm0, %v2006_v37  ;;  %v2040_v42 = vcombine.low %v2032_v28, %v2039_v38 }
 0x3ec   : > { %v2066_v43 = vrot.slane %v2211_v40, %v2909_v53  ;;  %v2073_v44 = vrot.slane %v2055_v39, %v2909_v53 }
 0x3ed   : > { %2210 = vst.msk [vmem:[%s224_s26 + $0xc] sm:$0x3f] %vm2929_vm0, %v2040_v42 }
 0x3ee   : > { %v2074_v46 = vcombine.low %v2066_v43, %v2073_v44 }
 0x3f0   : > { %2212 = vst.msk [vmem:[%s224_s26 + $0x12] sm:$0x3f] %vm2929_vm0, %v2074_v46 }
 0x3f1 PF: > { %s15_s18 = sadd.s32 1, %s2474_s18  }
 0x3f2   : > { %p12_p4 = scmp.ge.s32.totalorder %s15_s18, 4  }
 0x3f4   :  { %14 = sbr.rel (!%p12_p4) target bundleno = 1 (0x1), region = 88 }

// kernel: upconv_forward.5
= control target key start
LH: loop header
LB: loop body
LE: loop exit
PB: predicated region body
PF: predicated region fallthrough
CT: control target
= control target key end

     0   :  { %s17255_s12 = smov 0   ;;  %s21998_s0 = inlined_call_operand.vmem [shape: bf16[2,4,1536], index: 0, kind: input, shape index: {}]   ;;  %s21999_s1 = inlined_call_operand.vmem [shape: bf16[49,8,4], index: 1, kind: input, shape index: {}]   ;;  %s22000_s2 = inlined_call_operand.vmem [shape: f32[8,1], index: 2, kind: input, shape index: {}]   ;;  %s22001_s3 = inlined_call_operand.vmem [shape: f32[2,8,1216], index: 3, kind: output, shape index: {}]  }
   0x1 LB: > { %s16504_s13 = sadd.s32 4294967295, %s17183_s12   ;;  %p16508_p0 = scmp.ge.s32.totalorder %s17183_s12, 1  ;;  %s17183_s12 = sphi %s17255_s12, %s13_s12  }
   0x2   : > { %p137_p1 = scmp.lt.s32.totalorder %s17183_s12, 3 }
   0x4   : > { %p138_p2 = pnand %p16508_p0, %p137_p1 }
   0x5   : > { %p161_p3 = scmp.lt.s32.totalorder (!%p138_p2), %s16504_s13, 1  ;;  %v185_v0 = vlaneseq (!%p138_p2)  ;;  %v17185_v1 = vmov (!%p138_p2), 1983009808   ;;  %s17186_s18 = smov (!%p138_p2), 127   ;;  %v17187_v12 = vmov (!%p138_p2), 0   ;;  %vm243_vm0 = vcmask (!%p138_p2), 1039360  }
   0x6   : > { %141 = sbr.rel (%p138_p2) target bundleno = 1366 (0x556), region = 32  ;;  %v183_v2 = vunpack.c.l.s4 (!%p138_p2), %v17185_v1  ;;  %320 = vmatprep.mubr.bf16.mxu0 (!%p138_p2), %v17187_v12  ;;  %361 = vmatprep.mubr.bf16.mxu1 (!%p138_p2), %v17187_v12  ;;  %s17188_s19 = smov (!%p138_p2), 126   ;;  %vm257_vm1 = vcmask (!%p138_p2), 1041408   ;;  %v16511_v32 = vld [vmem:[%s21999_s1 + $0x4] sm:$0xf] (!%p138_p2)  ;;  %vm253_vm2 = vcmask (!%p138_p2), 31744  }
   0x7   : > { %v186_v3 = vshrl.u32 (!%p138_p2), %v185_v0, 7  ;;  %17135 = vset.pattern.permute.xlu0 (!%p138_p2), %v17187_v12  ;;  %17134 = vset.pattern.permute.xlu1 (!%p138_p2), %v17187_v12  ;;  %s17189_s20 = smov (!%p138_p2), 125   ;;  %s17190_s21 = smov (!%p138_p2), 124   ;;  %v175_v54 = vld [vmem:[%s21999_s1] sm:$0xf] (!%p138_p2)  ;;  %vm801_vm3 = vcmask (!%p138_p2), 1031168  }
   0x8   : > { %v184_v4 = vunpack.c.0.s8 (!%p138_p2), %v183_v2  ;;  %s17191_s22 = smov (!%p138_p2), 123   ;;  %s17192_s23 = smov (!%p138_p2), 122   ;;  %vm1129_vm4 = vcmask (!%p138_p2), 1022976   ;;  %vm1457_vm5 = vcmask (!%p138_p2), 1014784   ;;  %vm1785_vm6 = vcmask (!%p138_p2), 1006592  }
   0x9   : > { %s17193_s24 = smov (!%p138_p2), 90   ;;  %s17194_s27 = smov (!%p138_p2), 89   ;;  %vm2113_vm7 = vcmask (!%p138_p2), 998400   ;;  %vm2441_vm8 = vcmask (!%p138_p2), 736256   ;;  %vm2769_vm9 = vcmask (!%p138_p2), 728064   ;;  %vm3097_vm10 = vcmask (!%p138_p2), 719872  }
   0xa   : > { %v17266_v5 = vsub.s32 (!%p138_p2), %v184_v4, %v186_v3  ;;  %s17195_s30 = smov (!%p138_p2), 88   ;;  %s17196_s6 = smov (!%p138_p2), 87   ;;  %vm3425_vm11 = vcmask (!%p138_p2), 711680   ;;  %vm3753_vm12 = vcmask (!%p138_p2), 703488   ;;  %vm4081_vm13 = vcmask (!%p138_p2), 695296  }
   0xb   : > { %s17197_s9 = smov (!%p138_p2), 86   ;;  %s17203_s5 = smov (!%p138_p2), 49   ;;  %vm4409_vm14 = vcmask (!%p138_p2), 687104   ;;  %vm4747_vm15 = vcmask (!%p138_p2), 424960  }
   0xc   : > { %s17204_s8 = smov (!%p138_p2), 48   ;;  %s17205_s11 = smov (!%p138_p2), 47  }
   0xd   : > { %s22003_s13 = smov (!%p161_p3, %s16504_s13), 1  ;;  %s17206_s16 = smov 46  }
   0xe   : > { %s17074_s14 = smul.u32 24, %s22003_s13  ;;  %s17209_s26 = smov 12  }
   0xf   : > { %s17210_s29 = smov 11   ;;  %s17213_s15 = smov 8  }
  0x10   : > { %s17271_s17 = scalar_lea.vmem %s21998_s0, %s17074_s14  ;;  %s17198_s14 = smov 85  }
  0x11   : > { %v172_v6 = vld [vmem:[%s17271_s17] sm:$0xff]  ;;  %v173_v7 = vld [vmem:[%s17271_s17 + $0x8] sm:$0xff]  ;;  %v17314_v19 = vld.sshfl [vmem:[%s17271_s17 + $0x10] sm:$0x33 pattern:$0x76325410] }
  0x12   : > { %v17276_v8 = vrot.slane %v172_v6, %v17266_v5  ;;  %v181_v9 = vcombine.high %v172_v6, %v172_v6  ;;  %v17279_v10 = vrot.slane %v173_v7, %v17266_v5  ;;  %v198_v14 = vcombine.high %v173_v7, %v173_v7  ;;  %s17216_s25 = smov 102   ;;  %s17217_s28 = smov 101  }
  0x13   : > { %v17320_v20 = vcombine.high %v17314_v19, %v17314_v19  ;;  %v521_v62 = vsel %vm257_vm1, %v17314_v19, 0  ;;  %s17218_s4 = smov 100   ;;  %s17219_s7 = smov 99  }
  0x14   : > { %223 = vrot.lane.b32.xlu0 %v17276_v8, %s17186_s18  ;;  %v17283_v11 = vrot.slane %v181_v9, %v17266_v5  ;;  %v17290_v13 = vcombine.high %v17279_v10, %v17279_v10  ;;  %v17297_v15 = vcombine.high %v17276_v8, %v17276_v8  ;;  %v17305_v17 = vrot.slane %v198_v14, %v17266_v5  ;;  %s17228_s10 = smov 28  }
  0x15   : > { %v497_v48 = vsel %vm257_vm1, %v17276_v8, 0  ;;  %v509_v55 = vsel %vm257_vm1, %v17279_v10, 0 }
  0x16   : > { %227 = vrot.lane.b32.xlu1 %v17283_v11, %s17186_s18  ;;  %v17302_v16 = vcombine.high %v17283_v11, %v17283_v11  ;;  %v17311_v18 = vcombine.high %v17305_v17, %v17305_v17  ;;  %v503_v52 = vsel %vm257_vm1, %v17283_v11, 0  ;;  %v515_v59 = vsel %vm257_vm1, %v17305_v17, 0 }
  0x18   : > { %231 = vrot.lane.b32.xlu0 %v17279_v10, %s17186_s18 }
  0x1a   : > { %233 = vrot.lane.b32.xlu1 %v17290_v13, %s17186_s18 }
  0x1c   : > { %225 = vrot.lane.b32.xlu0 %v17297_v15, %s17186_s18 }
  0x1e   : > { %229 = vrot.lane.b32.xlu1 %v17302_v16, %s17186_s18 }
  0x20   : > { %235 = vrot.lane.b32.xlu0 %v17305_v17, %s17186_s18 }
  0x22   : > { %237 = vrot.lane.b32.xlu1 %v17311_v18, %s17186_s18 }
  0x24   : > { %239 = vrot.lane.b32.xlu0 %v17314_v19, %s17186_s18 }
  0x26   : > { %241 = vrot.lane.b32.xlu1 %v17320_v20, %s17186_s18  ;;  %s17199_s18 = smov 84  }
  0x28   : > { %781 = vrot.lane.b32.xlu0 %v17276_v8, %s17188_s19 }
  0x2a   : > { %783 = vrot.lane.b32.xlu1 %v17297_v15, %s17188_s19 }
  0x2c   : > { %785 = vrot.lane.b32.xlu0 %v17283_v11, %s17188_s19 }
  0x2e   : > { %787 = vrot.lane.b32.xlu1 %v17302_v16, %s17188_s19 }
  0x30   : > { %789 = vrot.lane.b32.xlu0 %v17279_v10, %s17188_s19 }
  0x32   : > { %791 = vrot.lane.b32.xlu1 %v17290_v13, %s17188_s19 }
  0x34   : > { %793 = vrot.lane.b32.xlu0 %v17305_v17, %s17188_s19 }
  0x36   : > { %795 = vrot.lane.b32.xlu1 %v17311_v18, %s17188_s19 }
  0x38   : > { %797 = vrot.lane.b32.xlu0 %v17314_v19, %s17188_s19 }
  0x3a   : > { %799 = vrot.lane.b32.xlu1 %v17320_v20, %s17188_s19  ;;  %s17214_s19 = smov 104  }
  0x3c   : > { %1109 = vrot.lane.b32.xlu0 %v17276_v8, %s17189_s20 }
  0x3e   : > { %1111 = vrot.lane.b32.xlu1 %v17297_v15, %s17189_s20 }
  0x40   : > { %1113 = vrot.lane.b32.xlu0 %v17283_v11, %s17189_s20 }
  0x42   : > { %1115 = vrot.lane.b32.xlu1 %v17302_v16, %s17189_s20 }
  0x44   : > { %1117 = vrot.lane.b32.xlu0 %v17279_v10, %s17189_s20 }
  0x46   : > { %1119 = vrot.lane.b32.xlu1 %v17290_v13, %s17189_s20 }
  0x48   : > { %1121 = vrot.lane.b32.xlu0 %v17305_v17, %s17189_s20 }
  0x4a   : > { %1123 = vrot.lane.b32.xlu1 %v17311_v18, %s17189_s20 }
  0x4c   : > { %1125 = vrot.lane.b32.xlu0 %v17314_v19, %s17189_s20 }
  0x4e   : > { %1127 = vrot.lane.b32.xlu1 %v17320_v20, %s17189_s20  ;;  %s17207_s20 = smov 14  }
  0x50   : > { %1437 = vrot.lane.b32.xlu0 %v17276_v8, %s17190_s21 }
  0x52   : > { %1439 = vrot.lane.b32.xlu1 %v17297_v15, %s17190_s21 }
  0x54   : > { %1441 = vrot.lane.b32.xlu0 %v17283_v11, %s17190_s21 }
  0x56   : > { %1443 = vrot.lane.b32.xlu1 %v17302_v16, %s17190_s21 }
  0x58   : > { %1445 = vrot.lane.b32.xlu0 %v17279_v10, %s17190_s21 }
  0x5a   : > { %1447 = vrot.lane.b32.xlu1 %v17290_v13, %s17190_s21 }
  0x5c   : > { %1449 = vrot.lane.b32.xlu0 %v17305_v17, %s17190_s21 }
  0x5e   : > { %1451 = vrot.lane.b32.xlu1 %v17311_v18, %s17190_s21 }
  0x60   : > { %1453 = vrot.lane.b32.xlu0 %v17314_v19, %s17190_s21 }
  0x62   : > { %1455 = vrot.lane.b32.xlu1 %v17320_v20, %s17190_s21  ;;  %s17200_s21 = smov 52  }
  0x64   : > { %1765 = vrot.lane.b32.xlu0 %v17276_v8, %s17191_s22 }
  0x66   : > { %1767 = vrot.lane.b32.xlu1 %v17297_v15, %s17191_s22 }
  0x68   : > { %1769 = vrot.lane.b32.xlu0 %v17283_v11, %s17191_s22 }
  0x6a   : > { %1771 = vrot.lane.b32.xlu1 %v17302_v16, %s17191_s22 }
  0x6c   : > { %1773 = vrot.lane.b32.xlu0 %v17279_v10, %s17191_s22 }
  0x6e   : > { %1775 = vrot.lane.b32.xlu1 %v17290_v13, %s17191_s22 }
  0x70   : > { %1777 = vrot.lane.b32.xlu0 %v17305_v17, %s17191_s22 }
  0x72   : > { %1779 = vrot.lane.b32.xlu1 %v17311_v18, %s17191_s22 }
  0x74   : > { %1781 = vrot.lane.b32.xlu0 %v17314_v19, %s17191_s22 }
  0x76   : > { %1783 = vrot.lane.b32.xlu1 %v17320_v20, %s17191_s22  ;;  %s17215_s22 = smov 103  }
  0x78   : > { %2093 = vrot.lane.b32.xlu0 %v17276_v8, %s17192_s23 }
  0x7a   : > { %2095 = vrot.lane.b32.xlu1 %v17297_v15, %s17192_s23 }
  0x7c   : > { %2097 = vrot.lane.b32.xlu0 %v17283_v11, %s17192_s23 }
  0x7e   : > { %2099 = vrot.lane.b32.xlu1 %v17302_v16, %s17192_s23 }
  0x80   : > { %2101 = vrot.lane.b32.xlu0 %v17279_v10, %s17192_s23 }
  0x82   : > { %2103 = vrot.lane.b32.xlu1 %v17290_v13, %s17192_s23 }
  0x84   : > { %2105 = vrot.lane.b32.xlu0 %v17305_v17, %s17192_s23 }
  0x86   : > { %v224_v21 = vpop.permute.xlu0 %223  ;;  %2107 = vrot.lane.b32.xlu1 %v17311_v18, %s17192_s23 }
  0x88   : > { %2109 = vrot.lane.b32.xlu0 %v17314_v19, %s17192_s23  ;;  %v228_v22 = vpop.permute.xlu1 %227 }
  0x8a   : > { %v232_v23 = vpop.permute.xlu0 %231  ;;  %2111 = vrot.lane.b32.xlu1 %v17320_v20, %s17192_s23  ;;  %s17208_s23 = smov 13  }
  0x8c   : > { %2421 = vrot.lane.b32.xlu0 %v17276_v8, %s17193_s24  ;;  %v234_v24 = vpop.permute.xlu1 %233 }
  0x8d   : > { %v248_v33 = vsel %vm243_vm0, %v232_v23, %v234_v24 }
  0x8e   : > { %v226_v25 = vpop.permute.xlu0 %225  ;;  %2423 = vrot.lane.b32.xlu1 %v17297_v15, %s17193_s24  ;;  %v271_v39 = vsel %vm257_vm1, %v248_v33, 0 }
  0x8f   : > { %v245_v26 = vsel %vm243_vm0, %v226_v25, %v228_v22  ;;  %v244_v27 = vsel %vm243_vm0, %v224_v21, %v226_v25  ;;  %v16533_v25 = vld [vmem:[%s21999_s1 + $0x8] sm:$0xf] }
  0x90   : > { %2425 = vrot.lane.b32.xlu0 %v17283_v11, %s17193_s24  ;;  %16513 = vmatprep.subr.msk.bf16.mxu0 %vm257_vm1, %v245_v26  ;;  %v230_v28 = vpop.permute.xlu1 %229  ;;  %v259_v29 = vsel %vm257_vm1, %v244_v27, 0 }
  0x91   : > { %289 = vmatpush1.bf16.msra.mxu0 %v259_v29  ;;  %v247_v30 = vsel %vm243_vm0, %v230_v28, %v232_v23  ;;  %v246_v31 = vsel %vm243_vm0, %v228_v22, %v230_v28 }
  0x92   : > { %v236_v34 = vpop.permute.xlu0 %235  ;;  %2427 = vrot.lane.b32.xlu1 %v17302_v16, %s17193_s24  ;;  %16515 = vmatprep.subr.msk.bf16.mxu1 %vm257_vm1, %v247_v30  ;;  %v265_v35 = vsel %vm257_vm1, %v246_v31, 0 }
  0x93   : > { %330 = vmatpush1.bf16.msra.mxu1 %v265_v35  ;;  %v249_v36 = vsel %vm243_vm0, %v234_v24, %v236_v34 }
  0x94   : > { %2429 = vrot.lane.b32.xlu0 %v17279_v10, %s17193_s24  ;;  %16514 = vmatmul.mubr.msk.bf16.vlgmr.msra.gmra.mrb[0].mxu0 %vm253_vm2, %v16511_v32  ;;  %v238_v37 = vpop.permute.xlu1 %237 }
  0x95   : > { %16517 = vmatprep.subr.msk.bf16.mxu0 %vm257_vm1, %v249_v36  ;;  %v250_v38 = vsel %vm243_vm0, %v236_v34, %v238_v37  ;;  %402 = vmatprep.mubr.bf16.mxu0 %v17187_v12 }
  0x96   : > { %371 = vmatpush1.bf16.msra.mxu0 %v271_v39  ;;  %v240_v40 = vpop.permute.xlu0 %239  ;;  %2431 = vrot.lane.b32.xlu1 %v17290_v13, %s17193_s24  ;;  %v277_v43 = vsel %vm257_vm1, %v250_v38, 0 }
  0x97   : > { %16516 = vmatmul.mubr.msk.bf16.vlgmr.msra.gmra.mrb[0].mxu1 %vm253_vm2, %v16511_v32  ;;  %v251_v41 = vsel %vm243_vm0, %v238_v37, %v240_v40 }
  0x98   : > { %2433 = vrot.lane.b32.xlu0 %v17305_v17, %s17193_s24  ;;  %16519 = vmatprep.subr.msk.bf16.mxu1 %vm257_vm1, %v251_v41  ;;  %v242_v42 = vpop.permute.xlu1 %241 }
  0x99   : > { %v252_v44 = vsel %vm243_vm0, %v240_v40, %v242_v42  ;;  %412 = vmatpush1.bf16.msra.mxu1 %v277_v43  ;;  %16521 = vmatprep.subr.msk.bf16.mxu0 %vm257_vm1, %v242_v42  ;;  %vm5086_vm0 = vcmask 416768  }
  0x9a   : > { %v782_v45 = vpop.permute.xlu0 %781  ;;  %2435 = vrot.lane.b32.xlu1 %v17311_v18, %s17193_s24  ;;  %v283_v46 = vsel %vm257_vm1, %v252_v44, 0  ;;  %443 = vmatprep.mubr.bf16.mxu1 %v17187_v12 }
  0x9b   : > { %16523 = vmatprep.subr.msk.bf16.mxu1 %vm257_vm1, %v17297_v15 }
  0x9c   : > { %2437 = vrot.lane.b32.xlu0 %v17314_v19, %s17193_s24  ;;  %16518 = vmatmul.mubr.msk.bf16.vlgmr.msra.gmra.mrb[4].mxu0 %vm253_vm2, %v16511_v32  ;;  %v784_v47 = vpop.permute.xlu1 %783 }
  0x9d   : > { %453 = vmatpush1.bf16.msra.mxu0 %v283_v46  ;;  %484 = vmatprep.mubr.bf16.mxu0 %v17187_v12  ;;  %v802_v2 = vsel %vm801_vm3, %v782_v45, %v784_v47 }
  0x9e   : > { %v786_v49 = vpop.permute.xlu0 %785  ;;  %2439 = vrot.lane.b32.xlu1 %v17320_v20, %s17193_s24  ;;  %16525 = vmatprep.subr.msk.bf16.mxu0 %vm257_vm1, %v17302_v16  ;;  %v815_v6 = vsel %vm257_vm1, %v802_v2, 0  ;;  %s17201_s24 = smov 51  }
  0x9f   : > { %16520 = vmatmul.mubr.msk.bf16.vlgmr.msra.gmra.mrb[4].mxu1 %vm253_vm2, %v16511_v32  ;;  %v803_v61 = vsel %vm801_vm3, %v784_v47, %v786_v49 }
  0xa0   : > { %2749 = vrot.lane.b32.xlu0 %v17276_v8, %s17194_s27  ;;  %v788_v50 = vpop.permute.xlu1 %787  ;;  %527 = vmatpush1.bf16.msra.mxu1 %v497_v48 }
  0xa1   : > { %558 = vmatprep.mubr.bf16.mxu1 %v17187_v12  ;;  %16527 = vmatprep.subr.msk.bf16.mxu1 %vm257_vm1, %v17290_v13  ;;  %v804_v4 = vsel %vm801_vm3, %v786_v49, %v788_v50  ;;  %v16545_v49 = vld [vmem:[%s21999_s1 + $0xc] sm:$0xf] }
  0xa2   : > { %v790_v51 = vpop.permute.xlu0 %789  ;;  %2751 = vrot.lane.b32.xlu1 %v17297_v15, %s17194_s27  ;;  %v821_v21 = vsel %vm257_vm1, %v804_v4, 0 }
  0xa3   : > { %v805_v0 = vsel %vm801_vm3, %v788_v50, %v790_v51 }
  0xa4   : > { %2753 = vrot.lane.b32.xlu0 %v17283_v11, %s17194_s27  ;;  %16522 = vmatmul.mubr.msk.bf16.vlgmr.msra.gmra.mrb[8].mxu0 %vm253_vm2, %v16511_v32  ;;  %v792_v53 = vpop.permute.xlu1 %791 }
  0xa5   : > { %568 = vmatpush1.bf16.msra.mxu0 %v503_v52  ;;  %599 = vmatprep.mubr.bf16.mxu0 %v17187_v12  ;;  %v806_v24 = vsel %vm801_vm3, %v790_v51, %v792_v53 }
  0xa6   : > { %v794_v56 = vpop.permute.xlu0 %793  ;;  %2755 = vrot.lane.b32.xlu1 %v17302_v16, %s17194_s27  ;;  %16529 = vmatprep.subr.msk.bf16.mxu0 %vm257_vm1, %v17311_v18  ;;  %v827_v28 = vsel %vm257_vm1, %v806_v24, 0 }
  0xa7   : > { %16524 = vmatmul.mubr.msk.bf16.vlgmr.msra.gmra.mrb[8].mxu1 %vm253_vm2, %v175_v54  ;;  %v807_v9 = vsel %vm801_vm3, %v792_v53, %v794_v56 }
  0xa8   : > { %2757 = vrot.lane.b32.xlu0 %v17279_v10, %s17194_s27  ;;  %v796_v57 = vpop.permute.xlu1 %795  ;;  %609 = vmatpush1.bf16.msra.mxu1 %v509_v55 }
  0xa9   : > { %640 = vmatprep.mubr.bf16.mxu1 %v17187_v12  ;;  %16531 = vmatprep.subr.msk.bf16.mxu1 %vm257_vm1, %v17320_v20  ;;  %v808_v27 = vsel %vm801_vm3, %v794_v56, %v796_v57 }
  0xaa   : > { %v17457_v58 = vpop.permute.xlu0 %797  ;;  %2759 = vrot.lane.b32.xlu1 %v17290_v13, %s17194_s27  ;;  %v833_v31 = vsel %vm257_vm1, %v808_v27, 0 }
  0xab   : > { %v809_v22 = vsel %vm801_vm3, %v796_v57, %v17457_v58 }
  0xac   : > { %2761 = vrot.lane.b32.xlu0 %v17305_v17, %s17194_s27  ;;  %16526 = vmatmul.mubr.msk.bf16.vlgmr.msra.gmra.mrb[12].mxu0 %vm253_vm2, %v175_v54  ;;  %v800_v60 = vpop.permute.xlu1 %799 }
  0xad   : > { %650 = vmatpush1.bf16.msra.mxu0 %v515_v59  ;;  %681 = vmatprep.mubr.bf16.mxu0 %v17187_v12  ;;  %v810_v34 = vsel %vm801_vm3, %v17457_v58, %v800_v60  ;;  %vm5425_vm3 = vcmask 408576  }
  0xae   : > { %16535 = vmatprep.subr.msk.bf16.mxu0 %vm257_vm1, %v803_v61  ;;  %v1110_v63 = vpop.permute.xlu0 %1109  ;;  %2763 = vrot.lane.b32.xlu1 %v17311_v18, %s17194_s27  ;;  %v839_v37 = vsel %vm257_vm1, %v810_v34, 0 }
  0xaf   : > { %16528 = vmatmul.mubr.msk.bf16.vlgmr.msra.gmra.mrb[12].mxu1 %vm253_vm2, %v175_v54 }
  0xb0   : > { %691 = vmatpush1.bf16.msra.mxu1 %v521_v62  ;;  %2765 = vrot.lane.b32.xlu0 %v17314_v19, %s17194_s27  ;;  %v1112_v1 = vpop.permute.xlu1 %1111 }
  0xb1   : > { %16537 = vmatprep.subr.msk.bf16.mxu1 %vm257_vm1, %v805_v0  ;;  %722 = vmatprep.mubr.bf16.mxu1 %v17187_v12  ;;  %v1130_v36 = vsel %vm1129_vm4, %v1110_v63, %v1112_v1 }
  0xb2   : > { %v17480_v3 = vpop.permute.xlu0 %1113  ;;  %2767 = vrot.lane.b32.xlu1 %v17320_v20, %s17194_s27  ;;  %v1143_v41 = vsel %vm257_vm1, %v1130_v36, 0  ;;  %v4012_v36 = vld [vmem:[%s17271_s17 + $0x8] sm:$0xff]  ;;  %s17202_s27 = smov 50  }
  0xb3   : > { %v1131_v32 = vsel %vm1129_vm4, %v1112_v1, %v17480_v3 }
  0xb4   : > { %3077 = vrot.lane.b32.xlu0 %v17276_v8, %s17195_s30  ;;  %16530 = vmatmul.mubr.msk.bf16.vlgmr.msra.gmra.mrb[16].mxu0 %vm253_vm2, %v175_v54  ;;  %v1116_v7 = vpop.permute.xlu1 %1115 }
  0xb5   : > { %845 = vmatpush1.bf16.msra.mxu0 %v815_v6  ;;  %876 = vmatprep.mubr.bf16.mxu0 %v17187_v12  ;;  %v1132_v44 = vsel %vm1129_vm4, %v17480_v3, %v1116_v7 }
  0xb6   : > { %16539 = vmatprep.subr.msk.bf16.mxu0 %vm257_vm1, %v807_v9  ;;  %v1118_v14 = vpop.permute.xlu0 %1117  ;;  %3079 = vrot.lane.b32.xlu1 %v17297_v15, %s17195_s30  ;;  %v1149_v47 = vsel %vm257_vm1, %v1132_v44, 0 }
  0xb7   : > { %16532 = vmatmul.mubr.msk.bf16.vlgmr.msra.gmra.mrb[16].mxu1 %vm253_vm2, %v175_v54  ;;  %v1133_v39 = vsel %vm1129_vm4, %v1116_v7, %v1118_v14 }
  0xb8   : > { %886 = vmatpush1.bf16.msra.mxu1 %v821_v21  ;;  %3081 = vrot.lane.b32.xlu0 %v17283_v11, %s17195_s30  ;;  %v1120_v23 = vpop.permute.xlu1 %1119 }
  0xb9   : > { %16541 = vmatprep.subr.msk.bf16.mxu1 %vm257_vm1, %v809_v22  ;;  %917 = vmatprep.mubr.bf16.mxu1 %v17187_v12  ;;  %v1134_v46 = vsel %vm1129_vm4, %v1118_v14, %v1120_v23 }
  0xba   : > { %v17506_v26 = vpop.permute.xlu0 %1121  ;;  %3083 = vrot.lane.b32.xlu1 %v17302_v16, %s17195_s30  ;;  %v1155_v52 = vsel %vm257_vm1, %v1134_v46, 0  ;;  %v16569_v46 = vld [vmem:[%s21999_s1 + $0x14] sm:$0xf] }
  0xbb   : > { %v1135_v42 = vsel %vm1129_vm4, %v1120_v23, %v17506_v26 }
  0xbc   : > { %3085 = vrot.lane.b32.xlu0 %v17279_v10, %s17195_s30  ;;  %16536 = vmatmul.mubr.msk.bf16.vlgmr.msra.gmra.mrb[20].mxu0 %vm253_vm2, %v16533_v25  ;;  %v1124_v29 = vpop.permute.xlu1 %1123 }
  0xbd   : > { %927 = vmatpush1.bf16.msra.mxu0 %v827_v28  ;;  %958 = vmatprep.mubr.bf16.mxu0 %v17187_v12  ;;  %v1136_v54 = vsel %vm1129_vm4, %v17506_v26, %v1124_v29 }
  0xbe   : > { %16543 = vmatprep.subr.msk.bf16.mxu0 %vm257_vm1, %v800_v60  ;;  %v1126_v30 = vpop.permute.xlu0 %1125  ;;  %3087 = vrot.lane.b32.xlu1 %v17290_v13, %s17195_s30  ;;  %v1161_v57 = vsel %vm257_vm1, %v1136_v54, 0 }
  0xbf   : > { %16538 = vmatmul.mubr.msk.bf16.vlgmr.msra.gmra.mrb[20].mxu1 %vm253_vm2, %v16533_v25  ;;  %v1137_v50 = vsel %vm1129_vm4, %v1124_v29, %v1126_v30 }
  0xc0   : > { %968 = vmatpush1.bf16.msra.mxu1 %v833_v31  ;;  %3089 = vrot.lane.b32.xlu0 %v17305_v17, %s17195_s30  ;;  %v1128_v33 = vpop.permute.xlu1 %1127 }
  0xc1   : > { %16547 = vmatprep.subr.msk.bf16.mxu1 %vm257_vm1, %v1131_v32  ;;  %999 = vmatprep.mubr.bf16.mxu1 %v17187_v12  ;;  %v1138_v56 = vsel %vm1129_vm4, %v1126_v30, %v1128_v33  ;;  %vm5764_vm4 = vcmask 400384  }
  0xc2   : > { %v17529_v35 = vpop.permute.xlu0 %1437  ;;  %3091 = vrot.lane.b32.xlu1 %v17311_v18, %s17195_s30  ;;  %v1167_v61 = vsel %vm257_vm1, %v1138_v56, 0  ;;  %v17765_v56 = vld.sshfl [vmem:[%s17271_s17 + $0x10] sm:$0x33 pattern:$0x76325410] }
  0xc4   : > { %3093 = vrot.lane.b32.xlu0 %v17314_v19, %s17195_s30  ;;  %16540 = vmatmul.mubr.msk.bf16.vlgmr.msra.gmra.mrb[24].mxu0 %vm253_vm2, %v16533_v25  ;;  %v1440_v38 = vpop.permute.xlu1 %1439 }
  0xc5   : > { %1009 = vmatpush1.bf16.msra.mxu0 %v839_v37  ;;  %1040 = vmatprep.mubr.bf16.mxu0 %v17187_v12  ;;  %v1458_v0 = vsel %vm1457_vm5, %v17529_v35, %v1440_v38 }
  0xc6   : > { %16549 = vmatprep.subr.msk.bf16.mxu0 %vm257_vm1, %v1133_v39  ;;  %v1442_v40 = vpop.permute.xlu0 %1441  ;;  %3095 = vrot.lane.b32.xlu1 %v17320_v20, %s17195_s30  ;;  %v1471_v3 = vsel %vm257_vm1, %v1458_v0, 0 }
  0xc7   : > { %16542 = vmatmul.mubr.msk.bf16.vlgmr.msra.gmra.mrb[24].mxu1 %vm253_vm2, %v16533_v25  ;;  %v1459_v59 = vsel %vm1457_vm5, %v1440_v38, %v1442_v40 }
  0xc8   : > { %1173 = vmatpush1.bf16.msra.mxu1 %v1143_v41  ;;  %3405 = vrot.lane.b32.xlu0 %v17276_v8, %s17196_s6  ;;  %v1444_v43 = vpop.permute.xlu1 %1443  ;;  %v17717_v41 = vrot.slane %v4012_v36, %v17266_v5 }
  0xc9   : > { %16551 = vmatprep.subr.msk.bf16.mxu1 %vm257_vm1, %v1135_v42  ;;  %1204 = vmatprep.mubr.bf16.mxu1 %v17187_v12  ;;  %v1460_v2 = vsel %vm1457_vm5, %v1442_v40, %v1444_v43  ;;  %v4036_v42 = vcombine.high %v4012_v36, %v4012_v36 }
  0xca   : > { %v17553_v45 = vpop.permute.xlu0 %1445  ;;  %3407 = vrot.lane.b32.xlu1 %v17297_v15, %s17196_s6 }
  0xcb   : > { %v1461_v62 = vsel %vm1457_vm5, %v1444_v43, %v17553_v45 }
  0xcc   : > { %3409 = vrot.lane.b32.xlu0 %v17283_v11, %s17196_s6  ;;  %16544 = vmatmul.mubr.msk.bf16.vlgmr.msra.gmra.mrb[28].mxu0 %vm253_vm2, %v16533_v25  ;;  %v1448_v48 = vpop.permute.xlu1 %1447 }
  0xcd   : > { %1214 = vmatpush1.bf16.msra.mxu0 %v1149_v47  ;;  %1245 = vmatprep.mubr.bf16.mxu0 %v17187_v12  ;;  %v1462_v21 = vsel %vm1457_vm5, %v17553_v45, %v1448_v48 }
  0xce   : > { %16553 = vmatprep.subr.msk.bf16.mxu0 %vm257_vm1, %v1137_v50  ;;  %v1450_v51 = vpop.permute.xlu0 %1449  ;;  %3411 = vrot.lane.b32.xlu1 %v17302_v16, %s17196_s6  ;;  %v1483_v23 = vsel %vm257_vm1, %v1462_v21, 0  ;;  %v17744_v50 = vrot.slane %v4036_v42, %v17266_v5 }
  0xcf   : > { %16548 = vmatmul.mubr.msk.bf16.vlgmr.msra.gmra.mrb[28].mxu1 %vm253_vm2, %v16545_v49  ;;  %v1463_v6 = vsel %vm1457_vm5, %v1448_v48, %v1450_v51 }
  0xd0   : > { %1255 = vmatpush1.bf16.msra.mxu1 %v1155_v52  ;;  %3413 = vrot.lane.b32.xlu0 %v17279_v10, %s17196_s6  ;;  %v1452_v53 = vpop.permute.xlu1 %1451 }
  0xd1   : > { %16555 = vmatprep.subr.msk.bf16.mxu1 %vm257_vm1, %v1128_v33  ;;  %1286 = vmatprep.mubr.bf16.mxu1 %v17187_v12 }
  0xd2   : > { %v17578_v55 = vpop.permute.xlu0 %1453  ;;  %3415 = vrot.lane.b32.xlu1 %v17290_v13, %s17196_s6 }
  0xd3   : > { %v1465_v9 = vsel %vm1457_vm5, %v1452_v53, %v17578_v55 }
  0xd4   : > { %3417 = vrot.lane.b32.xlu0 %v17305_v17, %s17196_s6  ;;  %16550 = vmatmul.mubr.msk.bf16.vlgmr.msra.gmra.mrb[32].mxu0 %vm253_vm2, %v16545_v49  ;;  %v1456_v58 = vpop.permute.xlu1 %1455 }
  0xd5   : > { %1296 = vmatpush1.bf16.msra.mxu0 %v1161_v57  ;;  %1327 = vmatprep.mubr.bf16.mxu0 %v17187_v12  ;;  %v1466_v28 = vsel %vm1457_vm5, %v17578_v55, %v1456_v58  ;;  %v17762_v55 = vcombine.high %v17744_v50, %v17744_v50 }
  0xd6   : > { %16559 = vmatprep.subr.msk.bf16.mxu0 %vm257_vm1, %v1459_v59  ;;  %v17590_v60 = vpop.permute.xlu0 %1765  ;;  %3419 = vrot.lane.b32.xlu1 %v17311_v18, %s17196_s6  ;;  %v1495_v31 = vsel %vm257_vm1, %v1466_v28, 0 }
  0xd7   : > { %16552 = vmatmul.mubr.msk.bf16.vlgmr.msra.gmra.mrb[32].mxu1 %vm253_vm2, %v16545_v49 }
  0xd8   : > { %1337 = vmatpush1.bf16.msra.mxu1 %v1167_v61  ;;  %3421 = vrot.lane.b32.xlu0 %v17314_v19, %s17196_s6  ;;  %v1768_v63 = vpop.permute.xlu1 %1767 }
  0xd9   : > { %16561 = vmatprep.subr.msk.bf16.mxu1 %vm257_vm1, %v1461_v62  ;;  %1368 = vmatprep.mubr.bf16.mxu1 %v17187_v12  ;;  %v17783_v62 = vcombine.high %v17765_v56, %v17765_v56 }
  0xda   : > { %v17604_v1 = vpop.permute.xlu0 %1769  ;;  %3423 = vrot.lane.b32.xlu1 %v17320_v20, %s17196_s6 }
  0xdb   : > { %v1787_v26 = vsel %vm1785_vm6, %v1768_v63, %v17604_v1 }
  0xdc   : > { %3733 = vrot.lane.b32.xlu0 %v17276_v8, %s17197_s9  ;;  %16554 = vmatmul.mubr.msk.bf16.vlgmr.msra.gmra.mrb[36].mxu0 %vm253_vm2, %v16545_v49  ;;  %v17613_v4 = vpop.permute.xlu1 %1771  ;;  %v1477_v8 = vsel %vm257_vm1, %v1460_v2, 0 }
  0xdd   : > { %1501 = vmatpush1.bf16.msra.mxu0 %v1471_v3  ;;  %1532 = vmatprep.mubr.bf16.mxu0 %v17187_v12  ;;  %v1788_v38 = vsel %vm1785_vm6, %v17604_v1, %v17613_v4 }
  0xde   : > { %16563 = vmatprep.subr.msk.bf16.mxu0 %vm257_vm1, %v1463_v6  ;;  %v17618_v7 = vpop.permute.xlu0 %1773  ;;  %3735 = vrot.lane.b32.xlu1 %v17297_v15, %s17197_s9  ;;  %v16557_v15 = vld [vmem:[%s21999_s1 + $0x10] sm:$0xf]  ;;  %v1805_v44 = vsel %vm257_vm1, %v1788_v38, 0 }
  0xdf   : > { %16556 = vmatmul.mubr.msk.bf16.vlgmr.msra.gmra.mrb[36].mxu1 %vm253_vm2, %v16545_v49  ;;  %v17741_v49 = vcombine.high %v17717_v41, %v17717_v41 }
  0xe0   : > { %1542 = vmatpush1.bf16.msra.mxu1 %v1477_v8  ;;  %3737 = vrot.lane.b32.xlu0 %v17283_v11, %s17197_s9  ;;  %v1776_v14 = vpop.permute.xlu1 %1775  ;;  %v1464_v11 = vsel %vm1457_vm5, %v1450_v51, %v1452_v53  ;;  %vm6103_vm5 = vcmask 392192  }
  0xe1   : > { %16565 = vmatprep.subr.msk.bf16.mxu1 %vm257_vm1, %v1465_v9  ;;  %1573 = vmatprep.mubr.bf16.mxu1 %v17187_v12  ;;  %v1790_v43 = vsel %vm1785_vm6, %v17618_v7, %v1776_v14 }
  0xe2   : > { %v17635_v22 = vpop.permute.xlu0 %1777  ;;  %3739 = vrot.lane.b32.xlu1 %v17302_v16, %s17197_s9  ;;  %v4011_v16 = vld [vmem:[%s17271_s17] sm:$0xff]  ;;  %v1811_v51 = vsel %vm257_vm1, %v1790_v43, 0 }
  0xe3   : > { %v17670_v29 = vrot.slane %v4011_v16, %v17266_v5  ;;  %v4019_v30 = vcombine.high %v4011_v16, %v4011_v16  ;;  %v1791_v37 = vsel %vm1785_vm6, %v1776_v14, %v17635_v22 }
  0xe4   : > { %3741 = vrot.lane.b32.xlu0 %v17279_v10, %s17197_s9  ;;  %16560 = vmatmul.mubr.msk.bf16.vlgmr.msra.gmra.mrb[40].mxu0 %vm253_vm2, %v16557_v15  ;;  %v17644_v24 = vpop.permute.xlu1 %1779  ;;  %v1489_v10 = vsel %vm257_vm1, %v1464_v11, 0  ;;  %v16581_v11 = vld [vmem:[%s21999_s1 + $0x18] sm:$0xf] }
  0xe5   : > { %1583 = vmatpush1.bf16.msra.mxu0 %v1483_v23  ;;  %1614 = vmatprep.mubr.bf16.mxu0 %v17187_v12  ;;  %v17694_v34 = vrot.slane %v4019_v30, %v17266_v5  ;;  %v1792_v53 = vsel %vm1785_vm6, %v17635_v22, %v17644_v24 }
  0xe6   : > { %16567 = vmatprep.subr.msk.bf16.mxu0 %vm257_vm1, %v1456_v58  ;;  %v17648_v25 = vpop.permute.xlu0 %1781  ;;  %3743 = vrot.lane.b32.xlu1 %v17290_v13, %s17197_s9  ;;  %v1817_v58 = vsel %vm257_vm1, %v1792_v53, 0 }
  0xe7   : > { %16562 = vmatmul.mubr.msk.bf16.vlgmr.msra.gmra.mrb[40].mxu1 %vm253_vm2, %v16557_v15  ;;  %v17714_v40 = vcombine.high %v17694_v34, %v17694_v34  ;;  %v1793_v47 = vsel %vm1785_vm6, %v17644_v24, %v17648_v25 }
  0xe8   : > { %1624 = vmatpush1.bf16.msra.mxu1 %v1489_v10  ;;  %3745 = vrot.lane.b32.xlu0 %v17305_v17, %s17197_s9  ;;  %v17659_v27 = vpop.permute.xlu1 %1783  ;;  %v1786_v17 = vsel %vm1785_vm6, %v17590_v60, %v1768_v63 }
  0xe9   : > { %16571 = vmatprep.subr.msk.bf16.mxu1 %vm257_vm1, %v1787_v26  ;;  %1655 = vmatprep.mubr.bf16.mxu1 %v17187_v12  ;;  %v1799_v35 = vsel %vm257_vm1, %v1786_v17, 0  ;;  %v1794_v57 = vsel %vm1785_vm6, %v17648_v25, %v17659_v27 }
  0xea   : > { %v17665_v13 = vpop.permute.xlu0 %2093  ;;  %3747 = vrot.lane.b32.xlu1 %v17311_v18, %s17197_s9  ;;  %v1789_v18 = vsel %vm1785_vm6, %v17613_v4, %v17618_v7  ;;  %v1823_v63 = vsel %vm257_vm1, %v1794_v57, 0  ;;  %vm6442_vm6 = vcmask 384000  }
  0xec   : > { %3749 = vrot.lane.b32.xlu0 %v17314_v19, %s17197_s9  ;;  %16564 = vmatmul.mubr.msk.bf16.vlgmr.msra.gmra.mrb[44].mxu0 %vm253_vm2, %v16557_v15  ;;  %v17678_v32 = vpop.permute.xlu1 %2095  ;;  %v17691_v19 = vcombine.high %v17670_v29, %v17670_v29 }
  0xed   : > { %1665 = vmatpush1.bf16.msra.mxu0 %v1495_v31  ;;  %1696 = vmatprep.mubr.bf16.mxu0 %v17187_v12  ;;  %v2114_v2 = vsel %vm2113_vm7, %v17665_v13, %v17678_v32 }
  0xee   : > { %16573 = vmatprep.subr.msk.bf16.mxu0 %vm257_vm1, %v1789_v18  ;;  %v17685_v33 = vpop.permute.xlu0 %2097  ;;  %3751 = vrot.lane.b32.xlu1 %v17320_v20, %s17197_s9  ;;  %v2127_v6 = vsel %vm257_vm1, %v2114_v2, 0 }
  0xef   : > { %16566 = vmatmul.mubr.msk.bf16.vlgmr.msra.gmra.mrb[44].mxu1 %vm253_vm2, %v16557_v15  ;;  %v2115_v60 = vsel %vm2113_vm7, %v17678_v32, %v17685_v33 }
  0xf0   : > { %1829 = vmatpush1.bf16.msra.mxu1 %v1799_v35  ;;  %4061 = vrot.lane.b32.xlu0 %v17670_v29, %s17198_s14  ;;  %v2100_v20 = vpop.permute.xlu1 %2099 }
  0xf1   : > { %16575 = vmatprep.subr.msk.bf16.mxu1 %vm257_vm1, %v1791_v37  ;;  %1860 = vmatprep.mubr.bf16.mxu1 %v17187_v12  ;;  %v2116_v4 = vsel %vm2113_vm7, %v17685_v33, %v2100_v20 }
  0xf2   : > { %v17708_v39 = vpop.permute.xlu0 %2101  ;;  %4063 = vrot.lane.b32.xlu1 %v17691_v19, %s17198_s14  ;;  %v2133_v14 = vsel %vm257_vm1, %v2116_v4, 0 }
  0xf3   : > { %v2117_v0 = vsel %vm2113_vm7, %v2100_v20, %v17708_v39 }
  0xf4   : > { %4065 = vrot.lane.b32.xlu0 %v17694_v34, %s17198_s14  ;;  %16568 = vmatmul.mubr.msk.bf16.vlgmr.msra.gmra.mrb[48].mxu0 %vm253_vm2, %v16557_v15  ;;  %v17725_v45 = vpop.permute.xlu1 %2103 }
  0xf5   : > { %1870 = vmatpush1.bf16.msra.mxu0 %v1805_v44  ;;  %1901 = vmatprep.mubr.bf16.mxu0 %v17187_v12  ;;  %v2118_v22 = vsel %vm2113_vm7, %v17708_v39, %v17725_v45  ;;  %v16593_v44 = vld [vmem:[%s21999_s1 + $0x1c] sm:$0xf] }
  0xf6   : > { %16577 = vmatprep.subr.msk.bf16.mxu0 %vm257_vm1, %v1793_v47  ;;  %v17735_v48 = vpop.permute.xlu0 %2105  ;;  %4067 = vrot.lane.b32.xlu1 %v17714_v40, %s17198_s14  ;;  %v2139_v25 = vsel %vm257_vm1, %v2118_v22, 0 }
  0xf7   : > { %16572 = vmatmul.mubr.msk.bf16.vlgmr.msra.gmra.mrb[48].mxu1 %vm253_vm2, %v16569_v46  ;;  %v2119_v8 = vsel %vm2113_vm7, %v17725_v45, %v17735_v48 }
  0xf8   : > { %1911 = vmatpush1.bf16.msra.mxu1 %v1811_v51  ;;  %4069 = vrot.lane.b32.xlu0 %v17717_v41, %s17198_s14  ;;  %v2108_v52 = vpop.permute.xlu1 %2107 }
  0xf9   : > { %16579 = vmatprep.subr.msk.bf16.mxu1 %vm257_vm1, %v17659_v27  ;;  %1942 = vmatprep.mubr.bf16.mxu1 %v17187_v12  ;;  %v2120_v24 = vsel %vm2113_vm7, %v17735_v48, %v2108_v52  ;;  %v4669_v48 = vld [vmem:[%s17271_s17 + $0x10] sm:$0x3f] }
  0xfa   : > { %v17756_v54 = vpop.permute.xlu0 %2109  ;;  %4071 = vrot.lane.b32.xlu1 %v17741_v49, %s17198_s14  ;;  %v2145_v26 = vsel %vm257_vm1, %v2120_v24, 0 }
  0xfb   : > { %v2121_v21 = vsel %vm2113_vm7, %v2108_v52, %v17756_v54 }
  0xfc   : > { %4073 = vrot.lane.b32.xlu0 %v17744_v50, %s17198_s14  ;;  %16574 = vmatmul.mubr.msk.bf16.vlgmr.msra.gmra.mrb[52].mxu0 %vm253_vm2, %v16569_v46  ;;  %v2112_v59 = vpop.permute.xlu1 %2111 }
  0xfd   : > { %1952 = vmatpush1.bf16.msra.mxu0 %v1817_v58  ;;  %1983 = vmatprep.mubr.bf16.mxu0 %v17187_v12  ;;  %v2122_v13 = vsel %vm2113_vm7, %v17756_v54, %v2112_v59  ;;  %v4716_v54 = vrot.slane %v4669_v48, %v17266_v5  ;;  %vm6781_vm7 = vcmask 375808  }
  0xfe   : > { %16583 = vmatprep.subr.msk.bf16.mxu0 %vm257_vm1, %v2115_v60  ;;  %v2422_v61 = vpop.permute.xlu0 %2421  ;;  %4075 = vrot.lane.b32.xlu1 %v17762_v55, %s17198_s14  ;;  %v2151_v31 = vsel %vm257_vm1, %v2122_v13, 0 }
  0xff   : > { %16576 = vmatmul.mubr.msk.bf16.vlgmr.msra.gmra.mrb[52].mxu1 %vm253_vm2, %v16569_v46 }
 0x100   : > { %1993 = vmatpush1.bf16.msra.mxu1 %v1823_v63  ;;  %4077 = vrot.lane.b32.xlu0 %v17765_v56, %s17198_s14  ;;  %v2424_v1 = vpop.permute.xlu1 %2423 }
 0x101   : > { %16585 = vmatprep.subr.msk.bf16.mxu1 %vm257_vm1, %v2117_v0  ;;  %2024 = vmatprep.mubr.bf16.mxu1 %v17187_v12  ;;  %v2442_v17 = vsel %vm2441_vm8, %v2422_v61, %v2424_v1 }
 0x102   : > { %v17796_v3 = vpop.permute.xlu0 %2425  ;;  %4079 = vrot.lane.b32.xlu1 %v17783_v62, %s17198_s14  ;;  %v2455_v35 = vsel %vm257_vm1, %v2442_v17, 0 }
 0x103   : > { %v2443_v27 = vsel %vm2441_vm8, %v2424_v1, %v17796_v3 }
 0x104   : > { %4389 = vrot.lane.b32.xlu0 %v17670_v29, %s17199_s18  ;;  %16578 = vmatmul.mubr.msk.bf16.vlgmr.msra.gmra.mrb[56].mxu0 %vm253_vm2, %v16569_v46  ;;  %v2428_v7 = vpop.permute.xlu1 %2427 }
 0x105   : > { %2157 = vmatpush1.bf16.msra.mxu0 %v2127_v6  ;;  %2188 = vmatprep.mubr.bf16.mxu0 %v17187_v12  ;;  %v2444_v20 = vsel %vm2441_vm8, %v17796_v3, %v2428_v7 }
 0x106   : > { %16587 = vmatprep.subr.msk.bf16.mxu0 %vm257_vm1, %v2119_v8  ;;  %v2430_v9 = vpop.permute.xlu0 %2429  ;;  %4391 = vrot.lane.b32.xlu1 %v17691_v19, %s17199_s18  ;;  %v2461_v42 = vsel %vm257_vm1, %v2444_v20, 0 }
 0x107   : > { %16580 = vmatmul.mubr.msk.bf16.vlgmr.msra.gmra.mrb[56].mxu1 %vm253_vm2, %v16569_v46  ;;  %v2445_v18 = vsel %vm2441_vm8, %v2428_v7, %v2430_v9 }
 0x108   : > { %2198 = vmatpush1.bf16.msra.mxu1 %v2133_v14  ;;  %4393 = vrot.lane.b32.xlu0 %v17694_v34, %s17199_s18  ;;  %v2432_v15 = vpop.permute.xlu1 %2431 }
 0x109   : > { %16589 = vmatprep.subr.msk.bf16.mxu1 %vm257_vm1, %v2121_v21  ;;  %2229 = vmatprep.mubr.bf16.mxu1 %v17187_v12  ;;  %v2446_v39 = vsel %vm2441_vm8, %v2430_v9, %v2432_v15 }
 0x10a   : > { %v17827_v23 = vpop.permute.xlu0 %2433  ;;  %4395 = vrot.lane.b32.xlu1 %v17714_v40, %s17199_s18  ;;  %v2467_v47 = vsel %vm257_vm1, %v2446_v39, 0 }
 0x10b   : > { %v2447_v36 = vsel %vm2441_vm8, %v2432_v15, %v17827_v23 }
 0x10c   : > { %4397 = vrot.lane.b32.xlu0 %v17717_v41, %s17199_s18  ;;  %16584 = vmatmul.mubr.msk.bf16.vlgmr.msra.gmra.mrb[60].mxu0 %vm253_vm2, %v16581_v11  ;;  %v2436_v10 = vpop.permute.xlu1 %2435 }
 0x10d   : > { %2239 = vmatpush1.bf16.msra.mxu0 %v2139_v25  ;;  %2270 = vmatprep.mubr.bf16.mxu0 %v17187_v12  ;;  %v2448_v52 = vsel %vm2441_vm8, %v17827_v23, %v2436_v10  ;;  %v16605_v23 = vld [vmem:[%s21999_s1 + $0x20] sm:$0xf] }
 0x10e   : > { %16591 = vmatprep.subr.msk.bf16.mxu0 %vm257_vm1, %v2112_v59  ;;  %v2438_v16 = vpop.permute.xlu0 %2437  ;;  %4399 = vrot.lane.b32.xlu1 %v17741_v49, %s17199_s18  ;;  %v2473_v57 = vsel %vm257_vm1, %v2448_v52, 0  ;;  %v4709_v59 = vcombine.high %v4669_v48, %v4669_v48  ;;  %v16617_v52 = vld [vmem:[%s21999_s1 + $0x24] sm:$0xf] }
 0x10f   : > { %16586 = vmatmul.mubr.msk.bf16.vlgmr.msra.gmra.mrb[60].mxu1 %vm253_vm2, %v16581_v11  ;;  %v2449_v45 = vsel %vm2441_vm8, %v2436_v10, %v2438_v16 }
 0x110   : > { %2280 = vmatpush1.bf16.msra.mxu1 %v2145_v26  ;;  %4401 = vrot.lane.b32.xlu0 %v17744_v50, %s17199_s18  ;;  %v2440_v28 = vpop.permute.xlu1 %2439  ;;  %v4723_v2 = vrot.slane %v4709_v59, %v17266_v5  ;;  %v5008_v26 = vld [vmem:[%s17271_s17 + $0x10] sm:$0x3f] }
 0x111   : > { %16595 = vmatprep.subr.msk.bf16.mxu1 %vm257_vm1, %v2443_v27  ;;  %2311 = vmatprep.mubr.bf16.mxu1 %v17187_v12  ;;  %v5055_v17 = vrot.slane %v5008_v26, %v17266_v5 }
 0x112   : > { %v17851_v30 = vpop.permute.xlu0 %2749  ;;  %4403 = vrot.lane.b32.xlu1 %v17762_v55, %s17199_s18 }
 0x114   : > { %4405 = vrot.lane.b32.xlu0 %v17765_v56, %s17199_s18  ;;  %16588 = vmatmul.mubr.msk.bf16.vlgmr.msra.gmra.mrb[64].mxu0 %vm253_vm2, %v16581_v11  ;;  %v17860_v32 = vpop.permute.xlu1 %2751  ;;  %v2450_v56 = vsel %vm2441_vm8, %v2438_v16, %v2440_v28  ;;  %vm7120_vm8 = vcmask 113664  }
 0x115   : > { %2321 = vmatpush1.bf16.msra.mxu0 %v2151_v31  ;;  %2352 = vmatprep.mubr.bf16.mxu0 %v17187_v12  ;;  %v2479_v63 = vsel %vm257_vm1, %v2450_v56, 0  ;;  %v2770_v3 = vsel %vm2769_vm9, %v17851_v30, %v17860_v32 }
 0x116   : > { %16597 = vmatprep.subr.msk.bf16.mxu0 %vm257_vm1, %v2445_v18  ;;  %v17865_v33 = vpop.permute.xlu0 %2753  ;;  %4407 = vrot.lane.b32.xlu1 %v17783_v62, %s17199_s18  ;;  %v4724_v62 = vcombine.high %v4716_v54, %v4716_v54  ;;  %v2783_v7 = vsel %vm257_vm1, %v2770_v3, 0  ;;  %v5048_v18 = vcombine.high %v5008_v26, %v5008_v26 }
 0x117   : > { %16590 = vmatmul.mubr.msk.bf16.vlgmr.msra.gmra.mrb[64].mxu1 %vm253_vm2, %v16581_v11  ;;  %v2771_v60 = vsel %vm2769_vm9, %v17860_v32, %v17865_v33 }
 0x118   : > { %2485 = vmatpush1.bf16.msra.mxu1 %v2455_v35  ;;  %4725 = vrot.lane.b32.xlu0 %v17670_v29, %s17200_s21  ;;  %v2756_v37 = vpop.permute.xlu1 %2755  ;;  %v5062_v39 = vrot.slane %v5048_v18, %v17266_v5 }
 0x119   : > { %16599 = vmatprep.subr.msk.bf16.mxu1 %vm257_vm1, %v2447_v36  ;;  %2516 = vmatprep.mubr.bf16.mxu1 %v17187_v12  ;;  %v2772_v6 = vsel %vm2769_vm9, %v17865_v33, %v2756_v37 }
 0x11a   : > { %v17879_v38 = vpop.permute.xlu0 %2757  ;;  %4727 = vrot.lane.b32.xlu1 %v17691_v19, %s17200_s21  ;;  %v2789_v21 = vsel %vm257_vm1, %v2772_v6, 0 }
 0x11b   : > { %v2773_v0 = vsel %vm2769_vm9, %v2756_v37, %v17879_v38  ;;  %v5063_v37 = vcombine.high %v5055_v17, %v5055_v17 }
 0x11c   : > { %4729 = vrot.lane.b32.xlu0 %v17694_v34, %s17200_s21  ;;  %16592 = vmatmul.mubr.msk.bf16.vlgmr.msra.gmra.mrb[68].mxu0 %vm253_vm2, %v16581_v11  ;;  %v17888_v43 = vpop.permute.xlu1 %2759 }
 0x11d   : > { %2526 = vmatpush1.bf16.msra.mxu0 %v2461_v42  ;;  %2557 = vmatprep.mubr.bf16.mxu0 %v17187_v12  ;;  %v2774_v11 = vsel %vm2769_vm9, %v17879_v38, %v17888_v43 }
 0x11e   : > { %16601 = vmatprep.subr.msk.bf16.mxu0 %vm257_vm1, %v2449_v45  ;;  %v17896_v46 = vpop.permute.xlu0 %2761  ;;  %4731 = vrot.lane.b32.xlu1 %v17714_v40, %s17200_s21  ;;  %v2795_v10 = vsel %vm257_vm1, %v2774_v11, 0 }
 0x11f   : > { %16596 = vmatmul.mubr.msk.bf16.vlgmr.msra.gmra.mrb[68].mxu1 %vm253_vm2, %v16593_v44  ;;  %v2775_v9 = vsel %vm2769_vm9, %v17888_v43, %v17896_v46 }
 0x120   : > { %2567 = vmatpush1.bf16.msra.mxu1 %v2467_v47  ;;  %4733 = vrot.lane.b32.xlu0 %v17717_v41, %s17200_s21  ;;  %v2764_v51 = vpop.permute.xlu1 %2763 }
 0x121   : > { %16603 = vmatprep.subr.msk.bf16.mxu1 %vm257_vm1, %v2440_v28  ;;  %2598 = vmatprep.mubr.bf16.mxu1 %v17187_v12  ;;  %v2776_v25 = vsel %vm2769_vm9, %v17896_v46, %v2764_v51 }
 0x122   : > { %v17909_v53 = vpop.permute.xlu0 %2765  ;;  %4735 = vrot.lane.b32.xlu1 %v17741_v49, %s17200_s21  ;;  %v2801_v28 = vsel %vm257_vm1, %v2776_v25, 0 }
 0x123   : > { %v2777_v15 = vsel %vm2769_vm9, %v2764_v51, %v17909_v53 }
 0x124   : > { %4737 = vrot.lane.b32.xlu0 %v17744_v50, %s17200_s21  ;;  %16598 = vmatmul.mubr.msk.bf16.vlgmr.msra.gmra.mrb[72].mxu0 %vm253_vm2, %v16593_v44  ;;  %v17919_v58 = vpop.permute.xlu1 %2767 }
 0x125   : > { %2608 = vmatpush1.bf16.msra.mxu0 %v2473_v57  ;;  %2639 = vmatprep.mubr.bf16.mxu0 %v17187_v12  ;;  %v2778_v31 = vsel %vm2769_vm9, %v17909_v53, %v17919_v58  ;;  %vm7459_vm9 = vcmask 105472  }
 0x126   : > { %16607 = vmatprep.subr.msk.bf16.mxu0 %vm257_vm1, %v2771_v60  ;;  %v17926_v61 = vpop.permute.xlu0 %3077  ;;  %4739 = vrot.lane.b32.xlu1 %v17762_v55, %s17200_s21  ;;  %v2807_v35 = vsel %vm257_vm1, %v2778_v31, 0  ;;  %v5347_v60 = vld [vmem:[%s17271_s17 + $0x10] sm:$0x3f] }
 0x127   : > { %16600 = vmatmul.mubr.msk.bf16.vlgmr.msra.gmra.mrb[72].mxu1 %vm253_vm2, %v16593_v44 }
 0x128   : > { %2649 = vmatpush1.bf16.msra.mxu1 %v2479_v63  ;;  %4741 = vrot.lane.b32.xlu0 %v4716_v54, %s17200_s21  ;;  %v3080_v1 = vpop.permute.xlu1 %3079 }
 0x129   : > { %16609 = vmatprep.subr.msk.bf16.mxu1 %vm257_vm1, %v2773_v0  ;;  %2680 = vmatprep.mubr.bf16.mxu1 %v17187_v12  ;;  %v3098_v33 = vsel %vm3097_vm10, %v17926_v61, %v3080_v1 }
 0x12a   : > { %v17941_v4 = vpop.permute.xlu0 %3081  ;;  %4743 = vrot.lane.b32.xlu1 %v4724_v62, %s17200_s21  ;;  %v3111_v42 = vsel %vm257_vm1, %v3098_v33, 0 }
 0x12b   : > { %v3099_v13 = vsel %vm3097_vm10, %v3080_v1, %v17941_v4 }
 0x12c   : > { %4745 = vrot.lane.b32.xlu0 %v4723_v2, %s17200_s21  ;;  %16602 = vmatmul.mubr.msk.bf16.vlgmr.msra.gmra.mrb[76].mxu0 %vm253_vm2, %v16593_v44  ;;  %v17949_v8 = vpop.permute.xlu1 %3083  ;;  %v5394_v2 = vrot.slane %v5347_v60, %v17266_v5  ;;  %s17075_s21 = smul.u32 80, %s22003_s13 }
 0x12d   : > { %2813 = vmatpush1.bf16.msra.mxu0 %v2783_v7  ;;  %2844 = vmatprep.mubr.bf16.mxu0 %v17187_v12  ;;  %v3100_v45 = vsel %vm3097_vm10, %v17941_v4, %v17949_v8  ;;  %v5387_v7 = vcombine.high %v5347_v60, %v5347_v60 }
 0x12e   : > { %16611 = vmatprep.subr.msk.bf16.mxu0 %vm257_vm1, %v2775_v9  ;;  %v17956_v14 = vpop.permute.xlu0 %3085  ;;  %5064 = vrot.lane.b32.xlu1 %v17670_v29, %s17201_s24  ;;  %v3117_v48 = vsel %vm257_vm1, %v3100_v45, 0 }
 0x12f   : > { %16604 = vmatmul.mubr.msk.bf16.vlgmr.msra.gmra.mrb[76].mxu1 %vm253_vm2, %v16593_v44  ;;  %v3101_v20 = vsel %vm3097_vm10, %v17949_v8, %v17956_v14  ;;  %v5401_v11 = vrot.slane %v5387_v7, %v17266_v5 }
 0x130   : > { %2854 = vmatpush1.bf16.msra.mxu1 %v2789_v21  ;;  %5066 = vrot.lane.b32.xlu0 %v17691_v19, %s17201_s24  ;;  %v3088_v22 = vpop.permute.xlu1 %3087 }
 0x131   : > { %16613 = vmatprep.subr.msk.bf16.mxu1 %vm257_vm1, %v2777_v15  ;;  %2885 = vmatprep.mubr.bf16.mxu1 %v17187_v12  ;;  %v3102_v47 = vsel %vm3097_vm10, %v17956_v14, %v3088_v22  ;;  %v5402_v14 = vcombine.high %v5394_v2, %v5394_v2 }
 0x132   : > { %v17974_v24 = vpop.permute.xlu0 %3089  ;;  %5068 = vrot.lane.b32.xlu1 %v17694_v34, %s17201_s24  ;;  %v3123_v56 = vsel %vm257_vm1, %v3102_v47, 0 }
 0x133   : > { %v3103_v43 = vsel %vm3097_vm10, %v3088_v22, %v17974_v24 }
 0x134   : > { %5070 = vrot.lane.b32.xlu0 %v17714_v40, %s17201_s24  ;;  %16608 = vmatmul.mubr.msk.bf16.vlgmr.msra.gmra.mrb[80].mxu0 %vm253_vm2, %v16605_v23  ;;  %v17984_v16 = vpop.permute.xlu1 %3091 }
 0x135   : > { %2895 = vmatpush1.bf16.msra.mxu0 %v2795_v10  ;;  %2926 = vmatprep.mubr.bf16.mxu0 %v17187_v12 }
 0x136   : > { %16615 = vmatprep.subr.msk.bf16.mxu0 %vm257_vm1, %v17919_v58  ;;  %v17990_v27 = vpop.permute.xlu0 %3093  ;;  %5072 = vrot.lane.b32.xlu1 %v17717_v41, %s17201_s24  ;;  %v3104_v58 = vsel %vm3097_vm10, %v17974_v24, %v17984_v16 }
 0x137   : > { %16610 = vmatmul.mubr.msk.bf16.vlgmr.msra.gmra.mrb[80].mxu1 %vm253_vm2, %v16605_v23  ;;  %v3105_v53 = vsel %vm3097_vm10, %v17984_v16, %v17990_v27  ;;  %v3129_v62 = vsel %vm257_vm1, %v3104_v58, 0 }
 0x138   : > { %2936 = vmatpush1.bf16.msra.mxu1 %v2801_v28  ;;  %5074 = vrot.lane.b32.xlu0 %v17741_v49, %s17201_s24  ;;  %v3096_v30 = vpop.permute.xlu1 %3095 }
 0x139   : > { %16619 = vmatprep.subr.msk.bf16.mxu1 %vm257_vm1, %v3099_v13  ;;  %2967 = vmatprep.mubr.bf16.mxu1 %v17187_v12  ;;  %v3106_v61 = vsel %vm3097_vm10, %v17990_v27, %v3096_v30  ;;  %v16629_v27 = vld [vmem:[%s21999_s1 + $0x28] sm:$0xf]  ;;  %vm7798_vm10 = vcmask 97280  }
 0x13a   : > { %v18006_v32 = vpop.permute.xlu0 %3405  ;;  %5076 = vrot.lane.b32.xlu1 %v17744_v50, %s17201_s24  ;;  %v3135_v3 = vsel %vm257_vm1, %v3106_v61, 0 }
 0x13c   : > { %5078 = vrot.lane.b32.xlu0 %v17762_v55, %s17201_s24  ;;  %16612 = vmatmul.mubr.msk.bf16.vlgmr.msra.gmra.mrb[84].mxu0 %vm253_vm2, %v16605_v23  ;;  %v18016_v36 = vpop.permute.xlu1 %3407 }
 0x13d   : > { %2977 = vmatpush1.bf16.msra.mxu0 %v2807_v35  ;;  %3008 = vmatprep.mubr.bf16.mxu0 %v17187_v12  ;;  %v3426_v8 = vsel %vm3425_vm11, %v18006_v32, %v18016_v36 }
 0x13e   : > { %16621 = vmatprep.subr.msk.bf16.mxu0 %vm257_vm1, %v3101_v20  ;;  %v18023_v38 = vpop.permute.xlu0 %3409  ;;  %5080 = vrot.lane.b32.xlu1 %v5055_v17, %s17201_s24  ;;  %v3439_v15 = vsel %vm257_vm1, %v3426_v8, 0 }
 0x13f   : > { %16614 = vmatmul.mubr.msk.bf16.vlgmr.msra.gmra.mrb[84].mxu1 %vm253_vm2, %v16605_v23  ;;  %v3427_v0 = vsel %vm3425_vm11, %v18016_v36, %v18023_v38  ;;  %v5686_v36 = vld [vmem:[%s17271_s17 + $0x10] sm:$0x3f] }
 0x140   : > { %3141 = vmatpush1.bf16.msra.mxu1 %v3111_v42  ;;  %5082 = vrot.lane.b32.xlu0 %v5063_v37, %s17201_s24  ;;  %v3412_v44 = vpop.permute.xlu1 %3411  ;;  %v5733_v42 = vrot.slane %v5686_v36, %v17266_v5  ;;  %v5726_v45 = vcombine.high %v5686_v36, %v5686_v36 }
 0x141   : > { %16623 = vmatprep.subr.msk.bf16.mxu1 %vm257_vm1, %v3103_v43  ;;  %3172 = vmatprep.mubr.bf16.mxu1 %v17187_v12  ;;  %v3428_v21 = vsel %vm3425_vm11, %v18023_v38, %v3412_v44 }
 0x142   : > { %v18037_v46 = vpop.permute.xlu0 %3413  ;;  %5084 = vrot.lane.b32.xlu1 %v5062_v39, %s17201_s24  ;;  %v3445_v25 = vsel %vm257_vm1, %v3428_v21, 0  ;;  %v5740_v58 = vrot.slane %v5726_v45, %v17266_v5  ;;  %s21982_s24 = scalar_lea.vmem %s22001_s3, %s17075_s21 }
 0x143   : > { %v3429_v4 = vsel %vm3425_vm11, %v3412_v44, %v18037_v46 }
 0x144   : > { %5403 = vrot.lane.b32.xlu0 %v17670_v29, %s17202_s27  ;;  %16616 = vmatmul.mubr.msk.bf16.vlgmr.msra.gmra.mrb[88].mxu0 %vm253_vm2, %v16605_v23  ;;  %v18046_v51 = vpop.permute.xlu1 %3415 }
 0x145   : > { %3182 = vmatpush1.bf16.msra.mxu0 %v3117_v48  ;;  %3213 = vmatprep.mubr.bf16.mxu0 %v17187_v12  ;;  %v3430_v26 = vsel %vm3425_vm11, %v18037_v46, %v18046_v51 }
 0x146   : > { %16625 = vmatprep.subr.msk.bf16.mxu0 %vm257_vm1, %v3105_v53  ;;  %v18056_v54 = vpop.permute.xlu0 %3417  ;;  %5405 = vrot.lane.b32.xlu1 %v17691_v19, %s17202_s27 }
 0x147   : > { %16620 = vmatmul.mubr.msk.bf16.vlgmr.msra.gmra.mrb[88].mxu1 %vm253_vm2, %v16617_v52  ;;  %v3431_v23 = vsel %vm3425_vm11, %v18046_v51, %v18056_v54 }
 0x148   : > { %3223 = vmatpush1.bf16.msra.mxu1 %v3123_v56  ;;  %5407 = vrot.lane.b32.xlu0 %v17694_v34, %s17202_s27  ;;  %v3420_v57 = vpop.permute.xlu1 %3419 }
 0x149   : > { %16627 = vmatprep.subr.msk.bf16.mxu1 %vm257_vm1, %v3096_v30  ;;  %3254 = vmatprep.mubr.bf16.mxu1 %v17187_v12  ;;  %v3432_v13 = vsel %vm3425_vm11, %v18056_v54, %v3420_v57  ;;  %v3451_v30 = vsel %vm257_vm1, %v3430_v26, 0 }
 0x14a   : > { %v18069_v59 = vpop.permute.xlu0 %3421  ;;  %5409 = vrot.lane.b32.xlu1 %v17714_v40, %s17202_s27  ;;  %v3457_v32 = vsel %vm257_vm1, %v3432_v13, 0 }
 0x14b   : > { %v3433_v10 = vsel %vm3425_vm11, %v3420_v57, %v18069_v59 }
 0x14c   : > { %5411 = vrot.lane.b32.xlu0 %v17717_v41, %s17202_s27  ;;  %16622 = vmatmul.mubr.msk.bf16.vlgmr.msra.gmra.mrb[92].mxu0 %vm253_vm2, %v16617_v52  ;;  %v18080_v63 = vpop.permute.xlu1 %3423 }
 0x14d   : > { %3264 = vmatpush1.bf16.msra.mxu0 %v3129_v62  ;;  %3295 = vmatprep.mubr.bf16.mxu0 %v17187_v12  ;;  %v3434_v35 = vsel %vm3425_vm11, %v18069_v59, %v18080_v63  ;;  %vm8137_vm11 = vcmask 89088  }
 0x14e   : > { %16631 = vmatprep.subr.msk.bf16.mxu0 %vm257_vm1, %v3427_v0  ;;  %v18087_v1 = vpop.permute.xlu0 %3733  ;;  %5413 = vrot.lane.b32.xlu1 %v17741_v49, %s17202_s27  ;;  %v3463_v38 = vsel %vm257_vm1, %v3434_v35, 0 }
 0x14f   : > { %16624 = vmatmul.mubr.msk.bf16.vlgmr.msra.gmra.mrb[92].mxu1 %vm253_vm2, %v16617_v52 }
 0x150   : > { %3305 = vmatpush1.bf16.msra.mxu1 %v3135_v3  ;;  %5415 = vrot.lane.b32.xlu0 %v17744_v50, %s17202_s27  ;;  %v3736_v6 = vpop.permute.xlu1 %3735 }
 0x151   : > { %16633 = vmatprep.subr.msk.bf16.mxu1 %vm257_vm1, %v3429_v4  ;;  %3336 = vmatprep.mubr.bf16.mxu1 %v17187_v12  ;;  %v3754_v20 = vsel %vm3753_vm12, %v18087_v1, %v3736_v6  ;;  %v18230_v1 = vld [vmem:[%s21999_s1 + $0x2c] sm:$0xf] }
 0x152   : > { %v18103_v9 = vpop.permute.xlu0 %3737  ;;  %5417 = vrot.lane.b32.xlu1 %v17762_v55, %s17202_s27  ;;  %v3767_v46 = vsel %vm257_vm1, %v3754_v20, 0 }
 0x153   : > { %v3755_v18 = vsel %vm3753_vm12, %v3736_v6, %v18103_v9 }
 0x154   : > { %5419 = vrot.lane.b32.xlu0 %v5394_v2, %s17202_s27  ;;  %16626 = vmatmul.mubr.msk.bf16.vlgmr.msra.gmra.mrb[96].mxu0 %vm253_vm2, %v16617_v52  ;;  %v18112_v22 = vpop.permute.xlu1 %3739 }
 0x155   : > { %3469 = vmatpush1.bf16.msra.mxu0 %v3439_v15  ;;  %3500 = vmatprep.mubr.bf16.mxu0 %v17187_v12  ;;  %v3756_v54 = vsel %vm3753_vm12, %v18103_v9, %v18112_v22 }
 0x156   : > { %16635 = vmatprep.subr.msk.bf16.mxu0 %vm257_vm1, %v3431_v23  ;;  %v18120_v24 = vpop.permute.xlu0 %3741  ;;  %5421 = vrot.lane.b32.xlu1 %v5402_v14, %s17202_s27 }
 0x157   : > { %16628 = vmatmul.mubr.msk.bf16.vlgmr.msra.gmra.mrb[96].mxu1 %vm253_vm2, %v16617_v52  ;;  %v3757_v43 = vsel %vm3753_vm12, %v18112_v22, %v18120_v24  ;;  %v5741_v52 = vcombine.high %v5733_v42, %v5733_v42 }
 0x158   : > { %3510 = vmatpush1.bf16.msra.mxu1 %v3445_v25  ;;  %5423 = vrot.lane.b32.xlu0 %v5401_v11, %s17202_s27  ;;  %v18128_v16 = vpop.permute.xlu1 %3743 }
 0x159   : > { %16637 = vmatprep.subr.msk.bf16.mxu1 %vm257_vm1, %v3433_v10  ;;  %3541 = vmatprep.mubr.bf16.mxu1 %v17187_v12  ;;  %v3758_v62 = vsel %vm3753_vm12, %v18120_v24, %v18128_v16 }
 0x15a   : > { %v18138_v28 = vpop.permute.xlu0 %3745  ;;  %5742 = vrot.lane.b32.xlu1 %v17670_v29, %s17203_s5  ;;  %v3779_v7 = vsel %vm257_vm1, %v3758_v62, 0 }
 0x15b   : > { %v3759_v48 = vsel %vm3753_vm12, %v18128_v16, %v18138_v28 }
 0x15c   : > { %5744 = vrot.lane.b32.xlu0 %v17691_v19, %s17203_s5  ;;  %16632 = vmatmul.mubr.msk.bf16.vlgmr.msra.gmra.mrb[100].mxu0 %vm253_vm2, %v16629_v27  ;;  %v18148_v17 = vpop.permute.xlu1 %3747 }
 0x15d   : > { %3551 = vmatpush1.bf16.msra.mxu0 %v3451_v30  ;;  %3582 = vmatprep.mubr.bf16.mxu0 %v17187_v12  ;;  %v3760_v21 = vsel %vm3753_vm12, %v18138_v28, %v18148_v17  ;;  %v6025_v28 = vld [vmem:[%s17271_s17 + $0x10] sm:$0x3f] }
 0x15e   : > { %16639 = vmatprep.subr.msk.bf16.mxu0 %vm257_vm1, %v18080_v63  ;;  %v18153_v31 = vpop.permute.xlu0 %3749  ;;  %5746 = vrot.lane.b32.xlu1 %v17694_v34, %s17203_s5  ;;  %v3773_v63 = vsel %vm257_vm1, %v3756_v54, 0  ;;  %v3785_v25 = vsel %vm257_vm1, %v3760_v21, 0  ;;  %v6065_v36 = vcombine.high %v6025_v28, %v6025_v28 }
 0x15f   : > { %16634 = vmatmul.mubr.msk.bf16.vlgmr.msra.gmra.mrb[100].mxu1 %vm253_vm2, %v16629_v27  ;;  %v3761_v3 = vsel %vm3753_vm12, %v18148_v17, %v18153_v31 }
 0x160   : > { %3592 = vmatpush1.bf16.msra.mxu1 %v3457_v32  ;;  %5748 = vrot.lane.b32.xlu0 %v17714_v40, %s17203_s5  ;;  %v18163_v33 = vpop.permute.xlu1 %3751 }
 0x161   : > { %16643 = vmatprep.subr.msk.bf16.mxu1 %vm257_vm1, %v3755_v18  ;;  %3623 = vmatprep.mubr.bf16.mxu1 %v17187_v12  ;;  %v3762_v24 = vsel %vm3753_vm12, %v18153_v31, %v18163_v33  ;;  %vm8476_vm12 = vcmask 80896  }
 0x162   : > { %v18171_v37 = vpop.permute.xlu0 %4061  ;;  %5750 = vrot.lane.b32.xlu1 %v17717_v41, %s17203_s5 }
 0x164   : > { %5752 = vrot.lane.b32.xlu0 %v17741_v49, %s17203_s5  ;;  %16636 = vmatmul.mubr.msk.bf16.vlgmr.msra.gmra.mrb[104].mxu0 %vm253_vm2, %v16629_v27  ;;  %v18181_v39 = vpop.permute.xlu1 %4063 }
 0x165   : > { %3633 = vmatpush1.bf16.msra.mxu0 %v3463_v38  ;;  %3664 = vmatprep.mubr.bf16.mxu0 %v17187_v12 }
 0x166   : > { %16645 = vmatprep.subr.msk.bf16.mxu0 %vm257_vm1, %v3757_v43  ;;  %v18189_v44 = vpop.permute.xlu0 %4065  ;;  %5754 = vrot.lane.b32.xlu1 %v17744_v50, %s17203_s5 }
 0x167   : > { %16638 = vmatmul.mubr.msk.bf16.vlgmr.msra.gmra.mrb[104].mxu1 %vm253_vm2, %v16629_v27  ;;  %v18195_v47 = vpop.f32.mrb[0].mxu0  ;;  %v4083_v16 = vsel %vm4081_vm13, %v18181_v39, %v18189_v44 }
 0x168   : > { %3797 = vmatpush1.bf16.msra.mxu1 %v3767_v46  ;;  %5756 = vrot.lane.b32.xlu0 %v17762_v55, %s17203_s5  ;;  %v18202_v51 = vpop.permute.xlu1 %4067  ;;  %v18204_v53 = vpop.f32.mrb[1].mxu0 }
 0x169   : > { %16647 = vmatprep.subr.msk.bf16.mxu1 %vm257_vm1, %v3759_v48  ;;  %3828 = vmatprep.mubr.bf16.mxu1 %v17187_v12  ;;  %v326_v56 = vpop.f32.mrb[2].mxu0  ;;  %v4084_v38 = vsel %vm4081_vm13, %v18189_v44, %v18202_v51  ;;  %v6362_v44 = vld [vmem:[%s17271_s17] sm:$0xff] }
 0x16a   : > { %v18211_v57 = vpop.permute.xlu0 %4069  ;;  %5758 = vrot.lane.b32.xlu1 %v5733_v42, %s17203_s5  ;;  %v18215_v59 = vpop.f32.mrb[0].mxu1  ;;  %v4101_v48 = vsel %vm257_vm1, %v4084_v38, 0 }
 0x16b   : > { %v18217_v60 = vpop.f32.mrb[1].mxu1  ;;  %v327_v61 = vpop.f32.mrb[3].mxu0  ;;  %v4085_v30 = vsel %vm4081_vm13, %v18202_v51, %v18211_v57  ;;  %v6079_v51 = vrot.slane %v6065_v36, %v17266_v5 }
 0x16c   : > { %5760 = vrot.lane.b32.xlu0 %v5741_v52, %s17203_s5  ;;  %16640 = vmatmul.mubr.msk.bf16.vlgmr.msra.gmra.mrb[108].mxu0 %vm253_vm2, %v16629_v27  ;;  %v18225_v0 = vpop.permute.xlu1 %4071  ;;  %v367_v2 = vpop.f32.mrb[2].mxu1 }
 0x16d   : > { %3838 = vmatpush1.bf16.msra.mxu0 %v3773_v63  ;;  %3869 = vmatprep.mubr.bf16.mxu0 %v17187_v12  ;;  %v368_v4 = vpop.f32.mrb[3].mxu1  ;;  %v4086_v62 = vsel %vm4081_vm13, %v18211_v57, %v18225_v0  ;;  %v18358_v63 = vld [vmem:[%s21999_s1 + $0x30] sm:$0xf] }
 0x16e   : > { %16649 = vmatprep.subr.msk.bf16.mxu0 %vm257_vm1, %v3761_v3  ;;  %v18237_v6 = vpop.permute.xlu0 %4073  ;;  %5762 = vrot.lane.b32.xlu1 %v5740_v58, %s17203_s5  ;;  %v4107_v21 = vsel %vm257_vm1, %v4086_v62, 0  ;;  %s17211_s5 = smov 10  }
 0x16f   : > { %16644 = vmatmul.mubr.msk.bf16.vlgmr.msra.gmra.mrb[108].mxu1 %vm253_vm2, %v18230_v1  ;;  %v18243_v8 = vpop.f32.mrb[4].mxu0  ;;  %v4087_v45 = vsel %vm4081_vm13, %v18225_v0, %v18237_v6 }
 0x170   : > { %3879 = vmatpush1.bf16.msra.mxu1 %v3779_v7  ;;  %6081 = vrot.lane.b32.xlu0 %v17670_v29, %s17204_s8  ;;  %v18247_v9 = vpop.permute.xlu1 %4075  ;;  %v18249_v14 = vpop.f32.mrb[5].mxu0 }
 0x171   : > { %16651 = vmatprep.subr.msk.bf16.mxu1 %vm257_vm1, %v18163_v33  ;;  %3910 = vmatprep.mubr.bf16.mxu1 %v17187_v12  ;;  %v408_v15 = vpop.f32.mrb[6].mxu0 }
 0x172   : > { %v18257_v22 = vpop.permute.xlu0 %4077  ;;  %6083 = vrot.lane.b32.xlu1 %v17691_v19, %s17204_s8  ;;  %v18261_v29 = vpop.f32.mrb[4].mxu1 }
 0x173   : > { %v18263_v11 = vpop.f32.mrb[5].mxu1  ;;  %v409_v23 = vpop.f32.mrb[7].mxu0  ;;  %v4089_v54 = vsel %vm4081_vm13, %v18247_v9, %v18257_v22 }
 0x174   : > { %6085 = vrot.lane.b32.xlu0 %v17694_v34, %s17204_s8  ;;  %16646 = vmatmul.mubr.msk.bf16.vlgmr.msra.gmra.mrb[112].mxu0 %vm253_vm2, %v18230_v1  ;;  %v18273_v19 = vpop.permute.xlu1 %4079  ;;  %v449_v10 = vpop.f32.mrb[6].mxu1  ;;  %v3791_v34 = vsel %vm257_vm1, %v3762_v24, 0 }
 0x175   : > { %3920 = vmatpush1.bf16.msra.mxu0 %v3785_v25  ;;  %3951 = vmatprep.mubr.bf16.mxu0 %v17187_v12  ;;  %v450_v26 = vpop.f32.mrb[7].mxu1 }
 0x176   : > { %16655 = vmatprep.subr.msk.bf16.mxu0 %vm257_vm1, %v4083_v16  ;;  %v18280_v27 = vpop.permute.xlu0 %4389  ;;  %6087 = vrot.lane.b32.xlu1 %v17714_v40, %s17204_s8  ;;  %v4082_v40 = vsel %vm4081_vm13, %v18171_v37, %v18181_v39 }
 0x177   : > { %16648 = vmatmul.mubr.msk.bf16.vlgmr.msra.gmra.mrb[112].mxu1 %vm253_vm2, %v18230_v1  ;;  %v18288_v13 = vpop.f32.mrb[8].mxu0 }
 0x178   : > { %3961 = vmatpush1.bf16.msra.mxu1 %v3791_v34  ;;  %6089 = vrot.lane.b32.xlu0 %v17717_v41, %s17204_s8  ;;  %v18295_v17 = vpop.permute.xlu1 %4391  ;;  %v18297_v31 = vpop.f32.mrb[9].mxu0  ;;  %v6072_v41 = vrot.slane %v6025_v28, %v17266_v5 }
 0x179   : > { %16657 = vmatprep.subr.msk.bf16.mxu1 %vm257_vm1, %v4085_v30  ;;  %3992 = vmatprep.mubr.bf16.mxu1 %v17187_v12  ;;  %v490_v32 = vpop.f32.mrb[10].mxu0 }
 0x17a   : > { %v18304_v18 = vpop.permute.xlu0 %4393  ;;  %6091 = vrot.lane.b32.xlu1 %v17741_v49, %s17204_s8  ;;  %v560_v33 = vpop.f32.mrb[8].mxu1  ;;  %v4095_v49 = vsel %vm257_vm1, %v4082_v40, 0 }
 0x17b   : > { %v18310_v35 = vadd.f32 %v560_v33, %v18195_v47  ;;  %v562_v20 = vpop.f32.mrb[9].mxu1  ;;  %v491_v37 = vpop.f32.mrb[11].mxu0  ;;  %v6080_v47 = vcombine.high %v6072_v41, %v6072_v41  ;;  %v4411_v34 = vsel %vm4409_vm14, %v18295_v17, %v18304_v18 }
 0x17c   : > { %6093 = vrot.lane.b32.xlu0 %v17744_v50, %s17204_s8  ;;  %16650 = vmatmul.mubr.msk.bf16.vlgmr.msra.gmra.mrb[116].mxu0 %vm253_vm2, %v18230_v1  ;;  %v18320_v39 = vpop.permute.xlu1 %4395  ;;  %v18323_v42 = vadd.f32 %v562_v20, %v18204_v53  ;;  %v564_v43 = vpop.f32.mrb[10].mxu1  ;;  %v6370_v53 = vcombine.high %v6362_v44, %v6362_v44 }
 0x17d   : > { %4125 = vmatpush1.bf16.msra.mxu0 %v4095_v49  ;;  %4156 = vmatprep.mubr.bf16.mxu0 %v17187_v12  ;;  %v565_v50 = vpop.f32.mrb[11].mxu1 }
 0x17e   : > { %16659 = vmatprep.subr.msk.bf16.mxu0 %vm257_vm1, %v4087_v45  ;;  %v18331_v46 = vpop.permute.xlu0 %4397  ;;  %6095 = vrot.lane.b32.xlu1 %v17762_v55, %s17204_s8  ;;  %v18346_v55 = vrot.slane %v6362_v44, %v17266_v5  ;;  %v18371_v7 = vrot.slane %v6370_v53, %v17266_v5  ;;  %v6364_v50 = vld [vmem:[%s17271_s17 + $0x10] sm:$0x3f] }
 0x17f   : > { %16652 = vmatmul.mubr.msk.bf16.vlgmr.msra.gmra.mrb[116].mxu1 %vm253_vm2, %v18230_v1  ;;  %v601_v52 = vpop.f32.mrb[12].mxu0  ;;  %v6411_v62 = vrot.slane %v6364_v50, %v17266_v5 }
 0x180   : > { %4166 = vmatpush1.bf16.msra.mxu1 %v4101_v48  ;;  %6097 = vrot.lane.b32.xlu0 %v6072_v41, %s17204_s8  ;;  %v18343_v56 = vpop.permute.xlu1 %4399  ;;  %v18349_v58 = vadd.f32 %v601_v52, %v18215_v59  ;;  %v603_v61 = vpop.f32.mrb[13].mxu0  ;;  %v18402_v16 = vcombine.high %v18371_v7, %v18371_v7  ;;  %v4090_v41 = vsel %vm4081_vm13, %v18257_v22, %v18273_v19 }
 0x181   : > { %16661 = vmatprep.subr.msk.bf16.mxu1 %vm257_vm1, %v4089_v54  ;;  %4197 = vmatprep.mubr.bf16.mxu1 %v17187_v12  ;;  %v18362_v1 = vadd.f32 %v603_v61, %v18217_v60  ;;  %v605_v2 = vpop.f32.mrb[14].mxu0  ;;  %v4088_v60 = vsel %vm4081_vm13, %v18237_v6, %v18247_v9  ;;  %v6363_v9 = vld [vmem:[%s17271_s17 + $0x8] sm:$0xff]  ;;  %v4119_v49 = vsel %vm257_vm1, %v4090_v41, 0  ;;  %vm8815_vm13 = vcmask 72704  }
 0x182   : > { %v18364_v59 = vpop.permute.xlu0 %4401  ;;  %6099 = vrot.lane.b32.xlu1 %v6080_v47, %s17204_s8  ;;  %v642_v3 = vpop.f32.mrb[12].mxu1  ;;  %v6387_v26 = vcombine.high %v6363_v9, %v6363_v9  ;;  %v18415_v32 = vrot.slane %v6363_v9, %v17266_v5  ;;  %v4412_v2 = vsel %vm4409_vm14, %v18304_v18, %v18320_v39 }
 0x183   : > { %v18368_v57 = vadd.f32 %v642_v3, %v18243_v8  ;;  %v606_v0 = vpop.f32.mrb[15].mxu0  ;;  %v644_v4 = vpop.f32.mrb[13].mxu1  ;;  %v18384_v8 = vcombine.high %v18346_v55, %v18346_v55  ;;  %v4415_v53 = vsel %vm4409_vm14, %v18343_v56, %v18364_v59 }
 0x184   : > { %6101 = vrot.lane.b32.xlu0 %v6079_v51, %s17204_s8  ;;  %16656 = vmatmul.mubr.msk.bf16.vlgmr.msra.gmra.mrb[120].mxu0 %vm253_vm2, %v18358_v63  ;;  %v18380_v15 = vpop.permute.xlu1 %4403  ;;  %v18387_v23 = vadd.f32 %v644_v4, %v18249_v14  ;;  %v646_v24 = vpop.f32.mrb[14].mxu1  ;;  %v4113_v14 = vsel %vm257_vm1, %v4088_v60, 0  ;;  %v18450_v44 = vcombine.high %v18415_v32, %v18415_v32  ;;  %v6404_v60 = vcombine.high %v6364_v50, %v6364_v50  ;;  %s17212_s8 = smov 9  }
 0x185   : > { %4207 = vmatpush1.bf16.msra.mxu0 %v4107_v21  ;;  %4238 = vmatprep.mubr.bf16.mxu0 %v17187_v12  ;;  %v647_v6 = vpop.f32.mrb[15].mxu1 }
 0x186   : > { %16663 = vmatprep.subr.msk.bf16.mxu0 %vm257_vm1, %v18273_v19  ;;  %v18393_v25 = vpop.permute.xlu0 %4405  ;;  %6420 = vrot.lane.b32.xlu1 %v18346_v55, %s17205_s11  ;;  %v18433_v19 = vrot.slane %v6387_v26, %v17266_v5  ;;  %v4429_v6 = vsel %vm257_vm1, %v4412_v2, 0 }
 0x187   : > { %16658 = vmatmul.mubr.msk.bf16.vlgmr.msra.gmra.mrb[120].mxu1 %vm253_vm2, %v18358_v63  ;;  %v683_v10 = vpop.f32.mrb[16].mxu0 }
 0x188   : > { %4248 = vmatpush1.bf16.msra.mxu1 %v4113_v14  ;;  %6422 = vrot.lane.b32.xlu0 %v18384_v8, %s17205_s11  ;;  %v18409_v28 = vpop.permute.xlu1 %4407  ;;  %v18412_v30 = vadd.f32 %v683_v10, %v18261_v29  ;;  %v685_v40 = vpop.f32.mrb[17].mxu0  ;;  %v18467_v51 = vcombine.high %v18433_v19, %v18433_v19  ;;  %v6418_v10 = vrot.slane %v6404_v60, %v17266_v5 }
 0x189   : > { %16667 = vmatprep.subr.msk.bf16.mxu1 %vm257_vm1, %v4411_v34  ;;  %v18422_v33 = vadd.f32 %v685_v40, %v18263_v11  ;;  %v687_v36 = vpop.f32.mrb[18].mxu0  ;;  %4279 = vmatprep.mubr.bf16.mxu1 %v17187_v12  ;;  %v4410_v11 = vsel %vm4409_vm14, %v18280_v27, %v18295_v17  ;;  %v4413_v27 = vsel %vm4409_vm14, %v18320_v39, %v18331_v46 }
 0x18a   : > { %v18425_v20 = vpop.permute.xlu0 %4725  ;;  %6424 = vrot.lane.b32.xlu1 %v18371_v7, %s17205_s11  ;;  %v724_v29 = vpop.f32.mrb[16].mxu1  ;;  %v4414_v39 = vsel %vm4409_vm14, %v18331_v46, %v18343_v56  ;;  %v6419_v46 = vcombine.high %v6411_v62, %v6411_v62  ;;  %v4417_v56 = vsel %vm4409_vm14, %v18380_v15, %v18393_v25 }
 0x18b   : > { %v18430_v37 = vadd.f32 %v724_v29, %v18288_v13  ;;  %v688_v38 = vpop.f32.mrb[19].mxu0  ;;  %v726_v22 = vpop.f32.mrb[17].mxu1  ;;  %v4435_v26 = vsel %vm257_vm1, %v4414_v39, 0  ;;  %v4416_v29 = vsel %vm4409_vm14, %v18364_v59, %v18380_v15  ;;  %v4418_v59 = vsel %vm4409_vm14, %v18393_v25, %v18409_v28 }
 0x18c   : > { %6426 = vrot.lane.b32.xlu0 %v18402_v16, %s17205_s11  ;;  %16660 = vmatmul.mubr.msk.bf16.vlgmr.msra.gmra.mrb[124].mxu0 %vm253_vm2, %v18358_v63  ;;  %v18443_v13 = vpop.permute.xlu1 %4727  ;;  %v18446_v43 = vadd.f32 %v726_v22, %v18297_v31  ;;  %v728_v45 = vpop.f32.mrb[18].mxu1  ;;  %v4423_v31 = vsel %vm257_vm1, %v4410_v11, 0  ;;  %v4447_v50 = vsel %vm257_vm1, %v4418_v59, 0  ;;  %vm9154_vm14 = vcmask 64512  }
 0x18d   : > { %4289 = vmatpush1.bf16.msra.mxu0 %v4119_v49  ;;  %v729_v17 = vpop.f32.mrb[19].mxu1  ;;  %4320 = vmatprep.mubr.bf16.mxu0 %v17187_v12  ;;  %v4748_v2 = vsel %vm4747_vm15, %v18425_v20, %v18443_v13  ;;  %v6703_v20 = vld [vmem:[%s17271_s17 + $0x10] sm:$0x3f] }
 0x18e   : > { %16669 = vmatprep.subr.msk.bf16.mxu0 %vm257_vm1, %v4413_v27  ;;  %v18458_v47 = vpop.permute.xlu0 %4729  ;;  %6428 = vrot.lane.b32.xlu1 %v18415_v32, %s17205_s11 }
 0x18f   : > { %16662 = vmatmul.mubr.msk.bf16.vlgmr.msra.gmra.mrb[124].mxu1 %vm253_vm2, %v18358_v63  ;;  %v878_v48 = vpop.f32.mrb[20].mxu0  ;;  %v4749_v25 = vsel %vm4747_vm15, %v18443_v13, %v18458_v47 }
 0x190   : > { %4453 = vmatpush1.bf16.msra.mxu1 %v4423_v31  ;;  %v18470_v52 = vadd.f32 %v878_v48, %v18310_v35  ;;  %6430 = vrot.lane.b32.xlu0 %v18450_v44, %s17205_s11  ;;  %v880_v54 = vpop.f32.mrb[21].mxu0  ;;  %v18477_v61 = vpop.permute.xlu1 %4731 }
 0x191   : > { %16671 = vmatprep.subr.msk.bf16.mxu1 %vm257_vm1, %v4415_v53  ;;  %v18485_v35 = vadd.f32 %v880_v54, %v18323_v42  ;;  %v882_v3 = vpop.f32.mrb[22].mxu0  ;;  %4484 = vmatprep.mubr.bf16.mxu1 %v17187_v12  ;;  %v4750_v13 = vsel %vm4747_vm15, %v18458_v47, %v18477_v61 }
 0x192   : > { %v919_v0 = vpop.f32.mrb[20].mxu1  ;;  %v18488_v4 = vpop.permute.xlu0 %4733  ;;  %6432 = vrot.lane.b32.xlu1 %v18433_v19, %s17205_s11 }
 0x193   : > { %v18493_v21 = vadd.f32 %v919_v0, %v18349_v58  ;;  %v921_v24 = vpop.f32.mrb[21].mxu1  ;;  %v883_v18 = vpop.f32.mrb[23].mxu0  ;;  %v18511_v58 = vld [vmem:[%s21999_s1 + $0x34] sm:$0xf]  ;;  %v4751_v53 = vsel %vm4747_vm15, %v18477_v61, %v18488_v4 }
 0x194   : > { %v18499_v42 = vadd.f32 %v921_v24, %v18362_v1  ;;  %6434 = vrot.lane.b32.xlu0 %v18467_v51, %s17205_s11  ;;  %16664 = vmatmul.mubr.msk.bf16.vlgmr.msra.gmra.mrb[128].mxu0 %vm253_vm2, %v18358_v63  ;;  %v18506_v9 = vpop.permute.xlu1 %4735  ;;  %v923_v14 = vpop.f32.mrb[22].mxu1 }
 0x195   : > { %4494 = vmatpush1.bf16.msra.mxu0 %v4429_v6  ;;  %v924_v1 = vpop.f32.mrb[23].mxu1  ;;  %4525 = vmatprep.mubr.bf16.mxu0 %v17187_v12  ;;  %v4762_v6 = vsel %vm257_vm1, %v4748_v2, 0 }
 0x196   : > { %16673 = vmatprep.subr.msk.bf16.mxu0 %vm257_vm1, %v4417_v56  ;;  %v18518_v63 = vpop.permute.xlu0 %4737  ;;  %6436 = vrot.lane.b32.xlu1 %v6411_v62, %s17205_s11  ;;  %v4768_v56 = vsel %vm257_vm1, %v4750_v13, 0 }
 0x197   : > { %16668 = vmatmul.mubr.msk.bf16.vlgmr.msra.gmra.mrb[128].mxu1 %vm253_vm2, %v18511_v58  ;;  %v960_v34 = vpop.f32.mrb[24].mxu0 }
 0x198   : > { %4535 = vmatpush1.bf16.msra.mxu1 %v4435_v26  ;;  %v18526_v40 = vadd.f32 %v960_v34, %v18368_v57  ;;  %6438 = vrot.lane.b32.xlu0 %v6419_v46, %s17205_s11  ;;  %v962_v41 = vpop.f32.mrb[25].mxu0  ;;  %v18529_v36 = vpop.permute.xlu1 %4739  ;;  %v4753_v46 = vsel %vm4747_vm15, %v18506_v9, %v18518_v63 }
 0x199   : > { %16675 = vmatprep.subr.msk.bf16.mxu1 %vm257_vm1, %v18409_v28  ;;  %v18537_v38 = vadd.f32 %v962_v41, %v18387_v23  ;;  %v964_v22 = vpop.f32.mrb[26].mxu0  ;;  %4566 = vmatprep.mubr.bf16.mxu1 %v17187_v12  ;;  %v4441_v23 = vsel %vm257_vm1, %v4416_v29, 0  ;;  %v6743_v29 = vcombine.high %v6703_v20, %v6703_v20 }
 0x19a   : > { %v1001_v57 = vpop.f32.mrb[24].mxu1  ;;  %v18540_v11 = vpop.permute.xlu0 %4741  ;;  %6440 = vrot.lane.b32.xlu1 %v6418_v10, %s17205_s11  ;;  %v18643_v22 = vld [vmem:[%s21999_s1 + $0x38] sm:$0xf]  ;;  %s17221_s11 = smov 66  }
 0x19b   : > { %v18544_v49 = vadd.f32 %v1001_v57, %v18412_v30  ;;  %v1003_v45 = vpop.f32.mrb[25].mxu1  ;;  %v965_v27 = vpop.f32.mrb[27].mxu0  ;;  %v4755_v26 = vsel %vm4747_vm15, %v18529_v36, %v18540_v11 }
 0x19c   : > { %v18550_v15 = vadd.f32 %v1003_v45, %v18422_v33  ;;  %6759 = vrot.lane.b32.xlu0 %v18346_v55, %s17206_s16  ;;  %16670 = vmatmul.mubr.msk.bf16.vlgmr.msra.gmra.mrb[132].mxu0 %vm253_vm2, %v18511_v58  ;;  %v18557_v30 = vpop.permute.xlu1 %4743  ;;  %v1005_v17 = vpop.f32.mrb[26].mxu1 }
 0x19d   : > { %4576 = vmatpush1.bf16.msra.mxu0 %v4441_v23  ;;  %v1006_v28 = vpop.f32.mrb[27].mxu1  ;;  %4607 = vmatprep.mubr.bf16.mxu0 %v17187_v12  ;;  %v4754_v23 = vsel %vm4747_vm15, %v18518_v63, %v18529_v36 }
 0x19e   : > { %16678 = vmatprep.subr.msk.bf16.mxu0 %vm257_vm1, %v4749_v25  ;;  %v18564_v33 = vpop.permute.xlu0 %4745  ;;  %6761 = vrot.lane.b32.xlu1 %v18384_v8, %s17206_s16 }
 0x19f   : > { %16672 = vmatmul.mubr.msk.bf16.vlgmr.msra.gmra.mrb[132].mxu1 %vm253_vm2, %v18511_v58  ;;  %v1042_v31 = vpop.f32.mrb[28].mxu0 }
 0x1a0   : > { %4617 = vmatpush1.bf16.msra.mxu1 %v4447_v50  ;;  %v18572_v48 = vadd.f32 %v1042_v31, %v18430_v37  ;;  %6763 = vrot.lane.b32.xlu0 %v18371_v7, %s17206_s16  ;;  %v1044_v54 = vpop.f32.mrb[29].mxu0  ;;  %v18579_v62 = vpop.permute.xlu1 %5064  ;;  %v6757_v50 = vrot.slane %v6743_v29, %v17266_v5  ;;  %v4757_v31 = vsel %vm4747_vm15, %v18557_v30, %v18564_v33 }
 0x1a1   : > { %16680 = vmatprep.subr.msk.bf16.mxu1 %vm257_vm1, %v4751_v53  ;;  %v18586_v37 = vadd.f32 %v1044_v54, %v18446_v43  ;;  %v1046_v3 = vpop.f32.mrb[30].mxu0  ;;  %4648 = vmatprep.mubr.bf16.mxu1 %v17187_v12 }
 0x1a2   : > { %v1206_v0 = vpop.f32.mrb[28].mxu1  ;;  %v18589_v60 = vpop.permute.xlu0 %5066  ;;  %6765 = vrot.lane.b32.xlu1 %v18402_v16, %s17206_s16 }
 0x1a3   : > { %v18594_v24 = vadd.f32 %v1206_v0, %v18470_v52  ;;  %v1208_v18 = vpop.f32.mrb[29].mxu1  ;;  %v1047_v39 = vpop.f32.mrb[31].mxu0  ;;  %v4756_v0 = vsel %vm4747_vm15, %v18540_v11, %v18557_v30 }
 0x1a4   : > { %v18601_v43 = vadd.f32 %v1208_v18, %v18485_v35  ;;  %6767 = vrot.lane.b32.xlu0 %v18415_v32, %s17206_s16  ;;  %16674 = vmatmul.mubr.msk.bf16.vlgmr.msra.gmra.mrb[136].mxu0 %vm253_vm2, %v18511_v58  ;;  %v18608_v52 = vpop.permute.xlu1 %5068  ;;  %v1210_v14 = vpop.f32.mrb[30].mxu1  ;;  %v6750_v35 = vrot.slane %v6703_v20, %v17266_v5 }
 0x1a5   : > { %4792 = vmatpush1.bf16.msra.mxu0 %v4762_v6  ;;  %v1211_v47 = vpop.f32.mrb[31].mxu1  ;;  %4823 = vmatprep.mubr.bf16.mxu0 %v17187_v12  ;;  %v5088_v54 = vsel %vm5086_vm0, %v18589_v60, %v18608_v52  ;;  %v4786_v14 = vsel %vm257_vm1, %v4756_v0, 0 }
 0x1a6   : > { %16682 = vmatprep.subr.msk.bf16.mxu0 %vm257_vm1, %v4753_v46  ;;  %v18615_v61 = vpop.permute.xlu0 %5070  ;;  %6769 = vrot.lane.b32.xlu1 %v18450_v44, %s17206_s16 }
 0x1a7   : > { %16676 = vmatmul.mubr.msk.bf16.vlgmr.msra.gmra.mrb[136].mxu1 %vm253_vm2, %v18511_v58  ;;  %v1247_v1 = vpop.f32.mrb[32].mxu0  ;;  %v4752_v58 = vsel %vm4747_vm15, %v18488_v4, %v18506_v9  ;;  %v6758_v4 = vcombine.high %v6750_v35, %v6750_v35  ;;  %v5089_v29 = vsel %vm5086_vm0, %v18608_v52, %v18615_v61  ;;  %vm9483_vm15 = vcmask 850944  }
 0x1a8   : > { %4833 = vmatpush1.bf16.msra.mxu1 %v4768_v56  ;;  %v18624_v10 = vadd.f32 %v1247_v1, %v18493_v21  ;;  %6771 = vrot.lane.b32.xlu0 %v18433_v19, %s17206_s16  ;;  %v1249_v34 = vpop.f32.mrb[33].mxu0  ;;  %v18631_v41 = vpop.permute.xlu1 %5072  ;;  %v4774_v25 = vsel %vm257_vm1, %v4752_v58, 0 }
 0x1a9   : > { %16684 = vmatprep.subr.msk.bf16.mxu1 %vm257_vm1, %v4755_v26  ;;  %v18638_v21 = vadd.f32 %v1249_v34, %v18499_v42  ;;  %v1251_v57 = vpop.f32.mrb[34].mxu0  ;;  %4864 = vmatprep.mubr.bf16.mxu1 %v17187_v12  ;;  %v5090_v47 = vsel %vm5086_vm0, %v18615_v61, %v18631_v41 }
 0x1aa   : > { %v1288_v45 = vpop.f32.mrb[32].mxu1  ;;  %v18646_v27 = vpop.permute.xlu0 %5074  ;;  %6773 = vrot.lane.b32.xlu1 %v18467_v51, %s17206_s16  ;;  %v7042_v57 = vld [vmem:[%s17271_s17 + $0x10] sm:$0x3f] }
 0x1ab   : > { %v18651_v9 = vadd.f32 %v1288_v45, %v18526_v40  ;;  %v1290_v42 = vpop.f32.mrb[33].mxu1  ;;  %v1252_v59 = vpop.f32.mrb[35].mxu0 }
 0x1ac   : > { %v18657_v17 = vadd.f32 %v1290_v42, %v18537_v38  ;;  %6775 = vrot.lane.b32.xlu0 %v6750_v35, %s17206_s16  ;;  %16679 = vmatmul.mubr.msk.bf16.vlgmr.msra.gmra.mrb[140].mxu0 %vm253_vm2, %v18643_v22  ;;  %v18663_v28 = vpop.permute.xlu1 %5076  ;;  %v1292_v40 = vpop.f32.mrb[34].mxu1  ;;  %v4780_v38 = vsel %vm257_vm1, %v4754_v23, 0  ;;  %v5107_v23 = vsel %vm257_vm1, %v5089_v29, 0 }
 0x1ad   : > { %4874 = vmatpush1.bf16.msra.mxu0 %v4774_v25  ;;  %v1293_v63 = vpop.f32.mrb[35].mxu1  ;;  %4905 = vmatprep.mubr.bf16.mxu0 %v17187_v12  ;;  %v5092_v1 = vsel %vm5086_vm0, %v18646_v27, %v18663_v28 }
 0x1ae   : > { %16686 = vmatprep.subr.msk.bf16.mxu0 %vm257_vm1, %v4757_v31  ;;  %v18671_v36 = vpop.permute.xlu0 %5078  ;;  %6777 = vrot.lane.b32.xlu1 %v6758_v4, %s17206_s16 }
 0x1af   : > { %16681 = vmatmul.mubr.msk.bf16.vlgmr.msra.gmra.mrb[140].mxu1 %vm253_vm2, %v18643_v22  ;;  %v1329_v53 = vpop.f32.mrb[36].mxu0 }
 0x1b0   : > { %4915 = vmatpush1.bf16.msra.mxu1 %v4780_v38  ;;  %v18678_v33 = vadd.f32 %v1329_v53, %v18544_v49  ;;  %6779 = vrot.lane.b32.xlu0 %v6757_v50, %s17206_s16  ;;  %v1331_v2 = vpop.f32.mrb[37].mxu0  ;;  %v18684_v3 = vpop.permute.xlu1 %5080  ;;  %v7082_v50 = vcombine.high %v7042_v57, %v7042_v57  ;;  %s17222_s16 = smov 65  }
 0x1b1   : > { %16689 = vmatprep.subr.msk.bf16.mxu1 %vm257_vm1, %v5088_v54  ;;  %v18691_v18 = vadd.f32 %v1331_v2, %v18550_v15  ;;  %v1333_v49 = vpop.f32.mrb[38].mxu0  ;;  %4946 = vmatprep.mubr.bf16.mxu1 %v17187_v12  ;;  %v5087_v15 = vsel %vm5086_vm0, %v18579_v62, %v18589_v60 }
 0x1b2   : > { %v1370_v39 = vpop.f32.mrb[36].mxu1  ;;  %v18694_v20 = vpop.permute.xlu0 %5082  ;;  %7098 = vrot.lane.b32.xlu1 %v18346_v55, %s17207_s20  ;;  %v5093_v49 = vsel %vm5086_vm0, %v18663_v28, %v18671_v36 }
 0x1b3   : > { %v18699_v13 = vadd.f32 %v1370_v39, %v18572_v48  ;;  %v1372_v6 = vpop.f32.mrb[37].mxu1  ;;  %v1334_v11 = vpop.f32.mrb[39].mxu0 }
 0x1b4   : > { %v18705_v30 = vadd.f32 %v1372_v6, %v18586_v37  ;;  %7100 = vrot.lane.b32.xlu0 %v18384_v8, %s17207_s20  ;;  %16683 = vmatmul.mubr.msk.bf16.vlgmr.msra.gmra.mrb[144].mxu0 %vm253_vm2, %v18643_v22  ;;  %v5085_v46 = vpop.permute.xlu1 %5084  ;;  %v1374_v48 = vpop.f32.mrb[38].mxu1  ;;  %v5101_v37 = vsel %vm257_vm1, %v5087_v15, 0  ;;  %v7096_v15 = vrot.slane %v7082_v50, %v17266_v5 }
 0x1b5   : > { %4956 = vmatpush1.bf16.msra.mxu0 %v4786_v14  ;;  %v1375_v35 = vpop.f32.mrb[39].mxu1  ;;  %4987 = vmatprep.mubr.bf16.mxu0 %v17187_v12  ;;  %v5096_v38 = vsel %vm5086_vm0, %v18694_v20, %v5085_v46  ;;  %v5119_v48 = vsel %vm257_vm1, %v5093_v49, 0 }
 0x1b6   : > { %16691 = vmatprep.subr.msk.bf16.mxu0 %vm257_vm1, %v5090_v47  ;;  %v18717_v62 = vpop.permute.xlu0 %5403  ;;  %7102 = vrot.lane.b32.xlu1 %v18371_v7, %s17207_s20 }
 0x1b7   : > { %16685 = vmatmul.mubr.msk.bf16.vlgmr.msra.gmra.mrb[144].mxu1 %vm253_vm2, %v18643_v22  ;;  %v1534_v60 = vpop.f32.mrb[40].mxu0 }
 0x1b8   : > { %5131 = vmatpush1.bf16.msra.mxu1 %v5101_v37  ;;  %v18725_v56 = vadd.f32 %v1534_v60, %v18594_v24  ;;  %7104 = vrot.lane.b32.xlu0 %v18402_v16, %s17207_s20  ;;  %v1536_v26 = vpop.f32.mrb[41].mxu0  ;;  %v18732_v34 = vpop.permute.xlu1 %5405 }
 0x1b9   : > { %16693 = vmatprep.subr.msk.bf16.mxu1 %vm257_vm1, %v5092_v1  ;;  %v18739_v58 = vadd.f32 %v1536_v26, %v18601_v43  ;;  %v1538_v24 = vpop.f32.mrb[42].mxu0  ;;  %5162 = vmatprep.mubr.bf16.mxu1 %v17187_v12  ;;  %v5091_v43 = vsel %vm5086_vm0, %v18631_v41, %v18646_v27  ;;  %v7089_v41 = vrot.slane %v7042_v57, %v17266_v5 }
 0x1ba   : > { %v1575_v45 = vpop.f32.mrb[40].mxu1  ;;  %v18743_v4 = vpop.permute.xlu0 %5407  ;;  %7106 = vrot.lane.b32.xlu1 %v18415_v32, %s17207_s20  ;;  %v5113_v31 = vsel %vm257_vm1, %v5091_v43, 0  ;;  %v5426_v24 = vsel %vm5425_vm3, %v18717_v62, %v18732_v34 }
 0x1bb   : > { %v18748_v42 = vadd.f32 %v1575_v45, %v18624_v10  ;;  %v1577_v59 = vpop.f32.mrb[41].mxu1  ;;  %v1539_v52 = vpop.f32.mrb[43].mxu0  ;;  %v18766_v10 = vld [vmem:[%s21999_s1 + $0x3c] sm:$0xf]  ;;  %v7097_v0 = vcombine.high %v7089_v41, %v7089_v41  ;;  %v5427_v35 = vsel %vm5425_vm3, %v18732_v34, %v18743_v4  ;;  %v5440_v34 = vsel %vm257_vm1, %v5426_v24, 0 }
 0x1bc   : > { %v18754_v61 = vadd.f32 %v1577_v59, %v18638_v21  ;;  %7108 = vrot.lane.b32.xlu0 %v18450_v44, %s17207_s20  ;;  %16687 = vmatmul.mubr.msk.bf16.vlgmr.msra.gmra.mrb[148].mxu0 %vm253_vm2, %v18643_v22  ;;  %v18761_v25 = vpop.permute.xlu1 %5409  ;;  %v1579_v40 = vpop.f32.mrb[42].mxu1  ;;  %v5094_v21 = vsel %vm5086_vm0, %v18671_v36, %v18684_v3 }
 0x1bd   : > { %5172 = vmatpush1.bf16.msra.mxu0 %v5107_v23  ;;  %v1580_v27 = vpop.f32.mrb[43].mxu1  ;;  %5203 = vmatprep.mubr.bf16.mxu0 %v17187_v12  ;;  %v5428_v62 = vsel %vm5425_vm3, %v18743_v4, %v18761_v25 }
 0x1be   : > { %16695 = vmatprep.subr.msk.bf16.mxu0 %vm257_vm1, %v5094_v21  ;;  %v18774_v22 = vpop.permute.xlu0 %5411  ;;  %7110 = vrot.lane.b32.xlu1 %v18433_v19, %s17207_s20  ;;  %v7381_v27 = vld [vmem:[%s17271_s17 + $0x10] sm:$0x3f] }
 0x1bf   : > { %16690 = vmatmul.mubr.msk.bf16.vlgmr.msra.gmra.mrb[148].mxu1 %vm253_vm2, %v18766_v10  ;;  %v1616_v63 = vpop.f32.mrb[44].mxu0  ;;  %v5429_v1 = vsel %vm5425_vm3, %v18761_v25, %v18774_v22 }
 0x1c0   : > { %5213 = vmatpush1.bf16.msra.mxu1 %v5113_v31  ;;  %v18784_v53 = vadd.f32 %v1616_v63, %v18651_v9  ;;  %7112 = vrot.lane.b32.xlu0 %v18467_v51, %s17207_s20  ;;  %v1618_v54 = vpop.f32.mrb[45].mxu0  ;;  %v18788_v2 = vpop.permute.xlu1 %5413 }
 0x1c1   : > { %16697 = vmatprep.subr.msk.bf16.mxu1 %vm257_vm1, %v5096_v38  ;;  %v18795_v39 = vadd.f32 %v1618_v54, %v18657_v17  ;;  %v1620_v6 = vpop.f32.mrb[46].mxu0  ;;  %5244 = vmatprep.mubr.bf16.mxu1 %v17187_v12  ;;  %v5095_v17 = vsel %vm5086_vm0, %v18684_v3, %v18694_v20  ;;  %vm9811_vm0 = vcmask 842752  }
 0x1c2   : > { %v1657_v9 = vpop.f32.mrb[44].mxu1  ;;  %v18798_v11 = vpop.permute.xlu0 %5415  ;;  %7114 = vrot.lane.b32.xlu1 %v7089_v41, %s17207_s20  ;;  %v5125_v20 = vsel %vm257_vm1, %v5095_v17, 0  ;;  %v5446_v41 = vsel %vm257_vm1, %v5428_v62, 0 }
 0x1c3   : > { %v18803_v14 = vadd.f32 %v1657_v9, %v18678_v33  ;;  %v1659_v46 = vpop.f32.mrb[45].mxu1  ;;  %v1621_v28 = vpop.f32.mrb[47].mxu0  ;;  %v5431_v4 = vsel %vm5425_vm3, %v18788_v2, %v18798_v11 }
 0x1c4   : > { %v18809_v36 = vadd.f32 %v1659_v46, %v18691_v18  ;;  %7116 = vrot.lane.b32.xlu0 %v7097_v0, %s17207_s20  ;;  %16692 = vmatmul.mubr.msk.bf16.vlgmr.msra.gmra.mrb[152].mxu0 %vm253_vm2, %v18766_v10  ;;  %v18815_v47 = vpop.permute.xlu1 %5417  ;;  %v1661_v33 = vpop.f32.mrb[46].mxu1 }
 0x1c5   : > { %5254 = vmatpush1.bf16.msra.mxu0 %v5119_v48  ;;  %v1662_v3 = vpop.f32.mrb[47].mxu1  ;;  %5285 = vmatprep.mubr.bf16.mxu0 %v17187_v12  ;;  %v7421_v48 = vcombine.high %v7381_v27, %v7381_v27 }
 0x1c6   : > { %16700 = vmatprep.subr.msk.bf16.mxu0 %vm257_vm1, %v5427_v35  ;;  %v18822_v18 = vpop.permute.xlu0 %5419  ;;  %7118 = vrot.lane.b32.xlu1 %v7096_v15, %s17207_s20  ;;  %v5432_v15 = vsel %vm5425_vm3, %v18798_v11, %v18815_v47  ;;  %s17223_s20 = smov 64  }
 0x1c7   : > { %16694 = vmatmul.mubr.msk.bf16.vlgmr.msra.gmra.mrb[152].mxu1 %vm253_vm2, %v18766_v10  ;;  %v1698_v37 = vpop.f32.mrb[48].mxu0  ;;  %v5433_v31 = vsel %vm5425_vm3, %v18815_v47, %v18822_v18  ;;  %v5458_v35 = vsel %vm257_vm1, %v5432_v15, 0  ;;  %v7435_v24 = vrot.slane %v7421_v48, %v17266_v5 }
 0x1c8   : > { %5295 = vmatpush1.bf16.msra.mxu1 %v5125_v20  ;;  %v18829_v60 = vadd.f32 %v1698_v37, %v18699_v13  ;;  %7437 = vrot.lane.b32.xlu0 %v18346_v55, %s17208_s23  ;;  %v1700_v26 = vpop.f32.mrb[49].mxu0  ;;  %v18836_v29 = vpop.permute.xlu1 %5421 }
 0x1c9   : > { %16702 = vmatprep.subr.msk.bf16.mxu1 %vm257_vm1, %v5429_v1  ;;  %v18843_v13 = vadd.f32 %v1700_v26, %v18705_v30  ;;  %v1702_v57 = vpop.f32.mrb[50].mxu0  ;;  %5326 = vmatprep.mubr.bf16.mxu1 %v17187_v12 }
 0x1ca   : > { %v1862_v45 = vpop.f32.mrb[48].mxu1  ;;  %v5424_v59 = vpop.permute.xlu0 %5423  ;;  %7439 = vrot.lane.b32.xlu1 %v18384_v8, %s17208_s23  ;;  %v5434_v57 = vsel %vm5425_vm3, %v18822_v18, %v18836_v29 }
 0x1cb   : > { %v18849_v52 = vadd.f32 %v1862_v45, %v18725_v56  ;;  %v1864_v43 = vpop.f32.mrb[49].mxu1  ;;  %v1703_v23 = vpop.f32.mrb[51].mxu0  ;;  %v5435_v33 = vsel %vm5425_vm3, %v18836_v29, %v5424_v59  ;;  %v5464_v29 = vsel %vm257_vm1, %v5434_v57, 0 }
 0x1cc   : > { %v18855_v30 = vadd.f32 %v1864_v43, %v18739_v58  ;;  %7441 = vrot.lane.b32.xlu0 %v18371_v7, %s17208_s23  ;;  %16696 = vmatmul.mubr.msk.bf16.vlgmr.msra.gmra.mrb[156].mxu0 %vm253_vm2, %v18766_v10  ;;  %v18862_v56 = vpop.permute.xlu1 %5742  ;;  %v1866_v40 = vpop.f32.mrb[50].mxu1 }
 0x1cd   : > { %5470 = vmatpush1.bf16.msra.mxu0 %v5440_v34  ;;  %v1867_v25 = vpop.f32.mrb[51].mxu1  ;;  %5501 = vmatprep.mubr.bf16.mxu0 %v17187_v12 }
 0x1ce   : > { %16704 = vmatprep.subr.msk.bf16.mxu0 %vm257_vm1, %v5431_v4  ;;  %v18869_v58 = vpop.permute.xlu0 %5744  ;;  %7443 = vrot.lane.b32.xlu1 %v18402_v16, %s17208_s23 }
 0x1cf   : > { %16698 = vmatmul.mubr.msk.bf16.vlgmr.msra.gmra.mrb[156].mxu1 %vm253_vm2, %v18766_v10  ;;  %v1903_v21 = vpop.f32.mrb[52].mxu0  ;;  %v5430_v10 = vsel %vm5425_vm3, %v18774_v22, %v18788_v2  ;;  %v7428_v22 = vrot.slane %v7381_v27, %v17266_v5  ;;  %v5765_v18 = vsel %vm5764_vm4, %v18862_v56, %v18869_v58  ;;  %vm10139_vm3 = vcmask 834560  }
 0x1d0   : > { %5511 = vmatpush1.bf16.msra.mxu1 %v5446_v41  ;;  %v18878_v50 = vadd.f32 %v1903_v21, %v18748_v42  ;;  %7445 = vrot.lane.b32.xlu0 %v18415_v32, %s17208_s23  ;;  %v1905_v63 = vpop.f32.mrb[53].mxu0  ;;  %v18885_v38 = vpop.permute.xlu1 %5746  ;;  %v18897_v42 = vld [vmem:[%s21999_s1 + $0x40] sm:$0xf]  ;;  %v5452_v28 = vsel %vm257_vm1, %v5430_v10, 0  ;;  %v5779_v56 = vsel %vm257_vm1, %v5765_v18, 0 }
 0x1d1   : > { %16706 = vmatprep.subr.msk.bf16.mxu1 %vm257_vm1, %v5433_v31  ;;  %v18892_v54 = vadd.f32 %v1905_v63, %v18754_v61  ;;  %v1907_v0 = vpop.f32.mrb[54].mxu0  ;;  %5542 = vmatprep.mubr.bf16.mxu1 %v17187_v12  ;;  %v7436_v47 = vcombine.high %v7428_v22, %v7428_v22  ;;  %v5766_v37 = vsel %vm5764_vm4, %v18869_v58, %v18885_v38 }
 0x1d2   : > { %v1944_v49 = vpop.f32.mrb[52].mxu1  ;;  %v18900_v6 = vpop.permute.xlu0 %5748  ;;  %7447 = vrot.lane.b32.xlu1 %v18450_v44, %s17208_s23 }
 0x1d3   : > { %v18906_v2 = vadd.f32 %v1944_v49, %v18784_v53  ;;  %v1946_v61 = vpop.f32.mrb[53].mxu1  ;;  %v1908_v9 = vpop.f32.mrb[55].mxu0 }
 0x1d4   : > { %v18912_v46 = vadd.f32 %v1946_v61, %v18795_v39  ;;  %7449 = vrot.lane.b32.xlu0 %v18433_v19, %s17208_s23  ;;  %16701 = vmatmul.mubr.msk.bf16.vlgmr.msra.gmra.mrb[160].mxu0 %vm253_vm2, %v18897_v42  ;;  %v18919_v17 = vpop.permute.xlu1 %5750  ;;  %v1948_v53 = vpop.f32.mrb[54].mxu1 }
 0x1d5   : > { %5552 = vmatpush1.bf16.msra.mxu0 %v5452_v28  ;;  %v1949_v11 = vpop.f32.mrb[55].mxu1  ;;  %5583 = vmatprep.mubr.bf16.mxu0 %v17187_v12  ;;  %v5768_v4 = vsel %vm5764_vm4, %v18900_v6, %v18919_v17 }
 0x1d6   : > { %16708 = vmatprep.subr.msk.bf16.mxu0 %vm257_vm1, %v5435_v33  ;;  %v5753_v39 = vpop.permute.xlu0 %5752  ;;  %7451 = vrot.lane.b32.xlu1 %v18467_v51, %s17208_s23 }
 0x1d7   : > { %16703 = vmatmul.mubr.msk.bf16.vlgmr.msra.gmra.mrb[160].mxu1 %vm253_vm2, %v18897_v42  ;;  %v1985_v3 = vpop.f32.mrb[56].mxu0 }
 0x1d8   : > { %5593 = vmatpush1.bf16.msra.mxu1 %v5458_v35  ;;  %v18931_v20 = vadd.f32 %v1985_v3, %v18803_v14  ;;  %7453 = vrot.lane.b32.xlu0 %v7428_v22, %s17208_s23  ;;  %v1987_v1 = vpop.f32.mrb[57].mxu0  ;;  %v18937_v26 = vpop.permute.xlu1 %5754 }
 0x1d9   : > { %16711 = vmatprep.subr.msk.bf16.mxu1 %vm257_vm1, %v5766_v37  ;;  %v18945_v14 = vadd.f32 %v1987_v1, %v18809_v36  ;;  %v1989_v45 = vpop.f32.mrb[58].mxu0  ;;  %5624 = vmatprep.mubr.bf16.mxu1 %v17187_v12  ;;  %v5770_v21 = vsel %vm5764_vm4, %v5753_v39, %v18937_v26 }
 0x1da   : > { %v2026_v59 = vpop.f32.mrb[56].mxu1  ;;  %v18948_v43 = vpop.permute.xlu0 %5756  ;;  %7455 = vrot.lane.b32.xlu1 %v7436_v47, %s17208_s23 }
 0x1db   : > { %v18952_v23 = vadd.f32 %v2026_v59, %v18829_v60  ;;  %v2028_v62 = vpop.f32.mrb[57].mxu1  ;;  %v1990_v34 = vpop.f32.mrb[59].mxu0  ;;  %v5771_v11 = vsel %vm5764_vm4, %v18937_v26, %v18948_v43  ;;  %v8057_v26 = vld [vmem:[%s17271_s17] sm:$0xff] }
 0x1dc   : > { %v18958_v36 = vadd.f32 %v2028_v62, %v18843_v13  ;;  %7457 = vrot.lane.b32.xlu0 %v7435_v24, %s17208_s23  ;;  %16705 = vmatmul.mubr.msk.bf16.vlgmr.msra.gmra.mrb[164].mxu0 %vm253_vm2, %v18897_v42  ;;  %v18964_v40 = vpop.permute.xlu1 %5758  ;;  %v2030_v60 = vpop.f32.mrb[58].mxu1  ;;  %v19077_v62 = vrot.slane %v8057_v26, %v17266_v5  ;;  %v8065_v34 = vcombine.high %v8057_v26, %v8057_v26  ;;  %s17224_s23 = smov 63  }
 0x1dd   : > { %5634 = vmatpush1.bf16.msra.mxu0 %v5464_v29  ;;  %v2031_v25 = vpop.f32.mrb[59].mxu1  ;;  %5665 = vmatprep.mubr.bf16.mxu0 %v17187_v12 }
 0x1de   : > { %16713 = vmatprep.subr.msk.bf16.mxu0 %vm257_vm1, %v5768_v4  ;;  %v18971_v13 = vpop.permute.xlu0 %5760  ;;  %7776 = vrot.lane.b32.xlu1 %v18346_v55, %s17209_s26  ;;  %v5767_v55 = vsel %vm5764_vm4, %v18885_v38, %v18900_v6  ;;  %v5769_v6 = vsel %vm5764_vm4, %v18919_v17, %v5753_v39 }
 0x1df   : > { %16707 = vmatmul.mubr.msk.bf16.vlgmr.msra.gmra.mrb[164].mxu1 %vm253_vm2, %v18897_v42  ;;  %v2190_v58 = vpop.f32.mrb[60].mxu0  ;;  %v5791_v15 = vsel %vm257_vm1, %v5769_v6, 0 }
 0x1e0   : > { %5809 = vmatpush1.bf16.msra.mxu1 %v5779_v56  ;;  %v18979_v41 = vadd.f32 %v2190_v58, %v18849_v52  ;;  %7778 = vrot.lane.b32.xlu0 %v18384_v8, %s17209_s26  ;;  %v2192_v27 = vpop.f32.mrb[61].mxu0  ;;  %v5763_v31 = vpop.permute.xlu1 %5762 }
 0x1e1   : > { %16715 = vmatprep.subr.msk.bf16.mxu1 %vm257_vm1, %v5770_v21  ;;  %v18990_v63 = vadd.f32 %v2192_v27, %v18855_v30  ;;  %v2194_v10 = vpop.f32.mrb[62].mxu0  ;;  %5840 = vmatprep.mubr.bf16.mxu1 %v17187_v12  ;;  %v5774_v17 = vsel %vm5764_vm4, %v18971_v13, %v5763_v31  ;;  %v19101_v27 = vcombine.high %v19077_v62, %v19077_v62 }
 0x1e2   : > { %v2231_v52 = vpop.f32.mrb[60].mxu1  ;;  %v18993_v0 = vpop.permute.xlu0 %6081  ;;  %7780 = vrot.lane.b32.xlu1 %v18371_v7, %s17209_s26  ;;  %v5785_v7 = vsel %vm257_vm1, %v5767_v55, 0  ;;  %v19104_v31 = vrot.slane %v8065_v34, %v17266_v5 }
 0x1e3   : > { %v18998_v8 = vadd.f32 %v2231_v52, %v18878_v50  ;;  %v2233_v49 = vpop.f32.mrb[61].mxu1  ;;  %v2195_v38 = vpop.f32.mrb[63].mxu0  ;;  %v19015_v50 = vld [vmem:[%s21999_s1 + $0x44] sm:$0xf]  ;;  %v8058_v52 = vld [vmem:[%s17271_s17 + $0x8] sm:$0xff] }
 0x1e4   : > { %v19003_v30 = vadd.f32 %v2233_v49, %v18892_v54  ;;  %7782 = vrot.lane.b32.xlu0 %v18402_v16, %s17209_s26  ;;  %16709 = vmatmul.mubr.msk.bf16.vlgmr.msra.gmra.mrb[168].mxu0 %vm253_vm2, %v18897_v42  ;;  %v19010_v22 = vpop.permute.xlu1 %6083  ;;  %v2235_v61 = vpop.f32.mrb[62].mxu1  ;;  %v5772_v54 = vsel %vm5764_vm4, %v18948_v43, %v18964_v40  ;;  %v7720_v16 = vld [vmem:[%s17271_s17 + $0x10] sm:$0x3f] }
 0x1e5   : > { %5850 = vmatpush1.bf16.msra.mxu0 %v5785_v7  ;;  %v2236_v9 = vpop.f32.mrb[63].mxu1  ;;  %5881 = vmatprep.mubr.bf16.mxu0 %v17187_v12  ;;  %v19131_v61 = vcombine.high %v19104_v31, %v19104_v31 }
 0x1e6   : > { %16717 = vmatprep.subr.msk.bf16.mxu0 %vm257_vm1, %v5772_v54  ;;  %v19023_v42 = vpop.permute.xlu0 %6085  ;;  %7784 = vrot.lane.b32.xlu1 %v18415_v32, %s17209_s26  ;;  %v7767_v32 = vrot.slane %v7720_v16, %v17266_v5  ;;  %v19134_v54 = vrot.slane %v8058_v52, %v17266_v5  ;;  %v8082_v9 = vcombine.high %v8058_v52, %v8058_v52 }
 0x1e7   : > { %16712 = vmatmul.mubr.msk.bf16.vlgmr.msra.gmra.mrb[168].mxu1 %vm253_vm2, %v19015_v50  ;;  %v2272_v28 = vpop.f32.mrb[64].mxu0  ;;  %v6105_v59 = vsel %vm6103_vm5, %v19010_v22, %v19023_v42 }
 0x1e8   : > { %5891 = vmatpush1.bf16.msra.mxu1 %v5791_v15  ;;  %v19033_v53 = vadd.f32 %v2272_v28, %v18906_v2  ;;  %7786 = vrot.lane.b32.xlu0 %v18450_v44, %s17209_s26  ;;  %v2274_v48 = vpop.f32.mrb[65].mxu0  ;;  %v6088_v33 = vpop.permute.xlu1 %6087  ;;  %v7760_v44 = vcombine.high %v7720_v16, %v7720_v16  ;;  %v7775_v45 = vcombine.high %v7767_v32, %v7767_v32 }
 0x1e9   : > { %16719 = vmatprep.subr.msk.bf16.mxu1 %vm257_vm1, %v5774_v17  ;;  %v19043_v39 = vadd.f32 %v2274_v48, %v18912_v46  ;;  %v2276_v47 = vpop.f32.mrb[66].mxu0  ;;  %5922 = vmatprep.mubr.bf16.mxu1 %v17187_v12  ;;  %v5773_v46 = vsel %vm5764_vm4, %v18964_v40, %v18971_v13  ;;  %v6104_v13 = vsel %vm6103_vm5, %v18993_v0, %v19010_v22  ;;  %vm10467_vm4 = vcmask 826368  }
 0x1ea   : > { %v2313_v2 = vpop.f32.mrb[64].mxu1  ;;  %v19046_v35 = vpop.permute.xlu0 %6089  ;;  %7788 = vrot.lane.b32.xlu1 %v18433_v19, %s17209_s26  ;;  %v5797_v19 = vsel %vm257_vm1, %v5771_v11, 0  ;;  %v5803_v18 = vsel %vm257_vm1, %v5773_v46, 0  ;;  %v6106_v0 = vsel %vm6103_vm5, %v19023_v42, %v6088_v33  ;;  %v6118_v38 = vsel %vm257_vm1, %v6104_v13, 0 }
 0x1eb   : > { %v19051_v3 = vadd.f32 %v2313_v2, %v18931_v20  ;;  %v2315_v37 = vpop.f32.mrb[65].mxu1  ;;  %v2277_v1 = vpop.f32.mrb[67].mxu0  ;;  %v6107_v60 = vsel %vm6103_vm5, %v6088_v33, %v19046_v35  ;;  %v6124_v16 = vsel %vm257_vm1, %v6106_v0, 0  ;;  %v19163_v2 = vcombine.high %v19134_v54, %v19134_v54 }
 0x1ec   : > { %v19058_v24 = vadd.f32 %v2315_v37, %v18945_v14  ;;  %7790 = vrot.lane.b32.xlu0 %v18467_v51, %s17209_s26  ;;  %16714 = vmatmul.mubr.msk.bf16.vlgmr.msra.gmra.mrb[172].mxu0 %vm253_vm2, %v19015_v50  ;;  %v19065_v20 = vpop.permute.xlu1 %6091  ;;  %v2317_v57 = vpop.f32.mrb[66].mxu1  ;;  %v7774_v14 = vrot.slane %v7760_v44, %v17266_v5  ;;  %v8059_v1 = vld [vmem:[%s17271_s17 + $0x10] sm:$0x3f] }
 0x1ed   : > { %5932 = vmatpush1.bf16.msra.mxu0 %v5797_v19  ;;  %v2318_v43 = vpop.f32.mrb[67].mxu1  ;;  %5963 = vmatprep.mubr.bf16.mxu0 %v17187_v12 }
 0x1ee   : > { %16722 = vmatprep.subr.msk.bf16.mxu0 %vm257_vm1, %v6105_v59  ;;  %v19072_v51 = vpop.permute.xlu0 %6093  ;;  %7792 = vrot.lane.b32.xlu1 %v7767_v32, %s17209_s26 }
 0x1ef   : > { %16716 = vmatmul.mubr.msk.bf16.vlgmr.msra.gmra.mrb[172].mxu1 %vm253_vm2, %v19015_v50  ;;  %v2354_v29 = vpop.f32.mrb[68].mxu0  ;;  %v6109_v7 = vsel %vm6103_vm5, %v19065_v20, %v19072_v51 }
 0x1f0   : > { %5973 = vmatpush1.bf16.msra.mxu1 %v5803_v18  ;;  %v19083_v40 = vadd.f32 %v2354_v29, %v18952_v23  ;;  %7794 = vrot.lane.b32.xlu0 %v7775_v45, %s17209_s26  ;;  %v2356_v4 = vpop.f32.mrb[69].mxu0  ;;  %v6096_v25 = vpop.permute.xlu1 %6095 }
 0x1f1   : > { %16724 = vmatprep.subr.msk.bf16.mxu1 %vm257_vm1, %v6107_v60  ;;  %v19093_v56 = vadd.f32 %v2356_v4, %v18958_v36  ;;  %v2358_v58 = vpop.f32.mrb[70].mxu0  ;;  %6004 = vmatprep.mubr.bf16.mxu1 %v17187_v12  ;;  %v6110_v26 = vsel %vm6103_vm5, %v19072_v51, %v6096_v25  ;;  %v8106_v51 = vrot.slane %v8059_v1, %v17266_v5 }
 0x1f2   : > { %v2518_v23 = vpop.f32.mrb[68].mxu1  ;;  %v19096_v21 = vpop.permute.xlu0 %6097  ;;  %7796 = vrot.lane.b32.xlu1 %v7774_v14, %s17209_s26  ;;  %v6136_v14 = vsel %vm257_vm1, %v6110_v26, 0  ;;  %v8099_v4 = vcombine.high %v8059_v1, %v8059_v1  ;;  %s17225_s26 = smov 62  }
 0x1f3   : > { %v19107_v55 = vadd.f32 %v2518_v23, %v18979_v41  ;;  %v2520_v36 = vpop.f32.mrb[69].mxu1  ;;  %v2359_v10 = vpop.f32.mrb[71].mxu0  ;;  %v6111_v28 = vsel %vm6103_vm5, %v6096_v25, %v19096_v21 }
 0x1f4   : > { %v19113_v49 = vadd.f32 %v2520_v36, %v18990_v63  ;;  %8115 = vrot.lane.b32.xlu0 %v19077_v62, %s17210_s29  ;;  %16718 = vmatmul.mubr.msk.bf16.vlgmr.msra.gmra.mrb[176].mxu0 %vm253_vm2, %v19015_v50  ;;  %v19120_v41 = vpop.permute.xlu1 %6099  ;;  %v2522_v6 = vpop.f32.mrb[70].mxu1  ;;  %v8114_v36 = vcombine.high %v8106_v51, %v8106_v51 }
 0x1f5   : > { %6148 = vmatpush1.bf16.msra.mxu0 %v6118_v38  ;;  %v2523_v22 = vpop.f32.mrb[71].mxu1  ;;  %6179 = vmatprep.mubr.bf16.mxu0 %v17187_v12  ;;  %v6112_v25 = vsel %vm6103_vm5, %v19096_v21, %v19120_v41 }
 0x1f6   : > { %16726 = vmatprep.subr.msk.bf16.mxu0 %vm257_vm1, %v6109_v7  ;;  %v6102_v63 = vpop.permute.xlu0 %6101  ;;  %8117 = vrot.lane.b32.xlu1 %v19101_v27, %s17210_s29  ;;  %v8113_v7 = vrot.slane %v8099_v4, %v17266_v5  ;;  %v8398_v4 = vld [vmem:[%s17271_s17 + $0x10] sm:$0x3f] }
 0x1f7   : > { %16720 = vmatmul.mubr.msk.bf16.vlgmr.msra.gmra.mrb[176].mxu1 %vm253_vm2, %v19015_v50  ;;  %v2559_v42 = vpop.f32.mrb[72].mxu0  ;;  %v6108_v50 = vsel %vm6103_vm5, %v19046_v35, %v19065_v20  ;;  %v6113_v57 = vsel %vm6103_vm5, %v19120_v41, %v6102_v63  ;;  %vm10795_vm5 = vcmask 818176  }
 0x1f8   : > { %6189 = vmatpush1.bf16.msra.mxu1 %v6124_v16  ;;  %v19140_v15 = vadd.f32 %v2559_v42, %v18998_v8  ;;  %8119 = vrot.lane.b32.xlu0 %v19104_v31, %s17210_s29  ;;  %v2561_v17 = vpop.f32.mrb[73].mxu0  ;;  %v6421_v48 = vpop.permute.xlu1 %6420  ;;  %v19156_v8 = vld [vmem:[%s21999_s1 + $0x48] sm:$0xf]  ;;  %v6130_v19 = vsel %vm257_vm1, %v6108_v50, 0 }
 0x1f9   : > { %16728 = vmatprep.subr.msk.bf16.mxu1 %vm257_vm1, %v6111_v28  ;;  %v19151_v33 = vadd.f32 %v2561_v17, %v19003_v30  ;;  %v2563_v32 = vpop.f32.mrb[74].mxu0  ;;  %6220 = vmatprep.mubr.bf16.mxu1 %v17187_v12  ;;  %v19166_v30 = vrot.slane %v8082_v9, %v17266_v5 }
 0x1fa   : > { %v2600_v11 = vpop.f32.mrb[72].mxu1  ;;  %v6423_v47 = vpop.permute.xlu0 %6422  ;;  %8121 = vrot.lane.b32.xlu1 %v19131_v61, %s17210_s29 }
 0x1fb   : > { %v19169_v35 = vadd.f32 %v2600_v11, %v19033_v53  ;;  %v2602_v44 = vpop.f32.mrb[73].mxu1  ;;  %v2564_v37 = vpop.f32.mrb[75].mxu0  ;;  %v19191_v43 = vcombine.high %v19166_v30, %v19166_v30  ;;  %v6443_v21 = vsel %vm6442_vm6, %v6421_v48, %v6423_v47 }
 0x1fc   : > { %v19175_v46 = vadd.f32 %v2602_v44, %v19043_v39  ;;  %8123 = vrot.lane.b32.xlu0 %v19134_v54, %s17210_s29  ;;  %16723 = vmatmul.mubr.msk.bf16.vlgmr.msra.gmra.mrb[180].mxu0 %vm253_vm2, %v19156_v8  ;;  %v6425_v20 = vpop.permute.xlu1 %6424  ;;  %v2604_v53 = vpop.f32.mrb[74].mxu1  ;;  %v6457_v9 = vsel %vm257_vm1, %v6443_v21, 0 }
 0x1fd   : > { %6230 = vmatpush1.bf16.msra.mxu0 %v6130_v19  ;;  %v2605_v45 = vpop.f32.mrb[75].mxu1  ;;  %6261 = vmatprep.mubr.bf16.mxu0 %v17187_v12  ;;  %v6444_v59 = vsel %vm6442_vm6, %v6423_v47, %v6425_v20 }
 0x1fe   : > { %16730 = vmatprep.subr.msk.bf16.mxu0 %vm257_vm1, %v6113_v57  ;;  %v6427_v39 = vpop.permute.xlu0 %6426  ;;  %8125 = vrot.lane.b32.xlu1 %v19163_v2, %s17210_s29 }
 0x1ff   : > { %16725 = vmatmul.mubr.msk.bf16.vlgmr.msra.gmra.mrb[180].mxu1 %vm253_vm2, %v19156_v8  ;;  %v2641_v34 = vpop.f32.mrb[76].mxu0  ;;  %v6445_v48 = vsel %vm6442_vm6, %v6425_v20, %v6427_v39 }
 0x200   : > { %6271 = vmatpush1.bf16.msra.mxu1 %v6136_v14  ;;  %v19198_v18 = vadd.f32 %v2641_v34, %v19051_v3  ;;  %8127 = vrot.lane.b32.xlu0 %v19166_v30, %s17210_s29  ;;  %v2643_v29 = vpop.f32.mrb[77].mxu0  ;;  %v6429_v60 = vpop.permute.xlu1 %6428 }
 0x201   : > { %16733 = vmatprep.subr.msk.bf16.mxu1 %vm257_vm1, %v6444_v59  ;;  %v19207_v13 = vadd.f32 %v2643_v29, %v19058_v24  ;;  %v2645_v58 = vpop.f32.mrb[78].mxu0  ;;  %6302 = vmatprep.mubr.bf16.mxu1 %v17187_v12  ;;  %v6142_v24 = vsel %vm257_vm1, %v6112_v25, 0 }
 0x202   : > { %v2682_v3 = vpop.f32.mrb[76].mxu1  ;;  %v6431_v23 = vpop.permute.xlu0 %6430  ;;  %8129 = vrot.lane.b32.xlu1 %v19191_v43, %s17210_s29 }
 0x203   : > { %v19213_v10 = vadd.f32 %v2682_v3, %v19083_v40  ;;  %v2684_v52 = vpop.f32.mrb[77].mxu1  ;;  %v2646_v0 = vpop.f32.mrb[79].mxu0  ;;  %v6446_v40 = vsel %vm6442_vm6, %v6427_v39, %v6429_v60  ;;  %v6447_v1 = vsel %vm6442_vm6, %v6429_v60, %v6431_v23 }
 0x204   : > { %v19217_v38 = vadd.f32 %v2684_v52, %v19093_v56  ;;  %8131 = vrot.lane.b32.xlu0 %v8106_v51, %s17210_s29  ;;  %16727 = vmatmul.mubr.msk.bf16.vlgmr.msra.gmra.mrb[184].mxu0 %vm253_vm2, %v19156_v8  ;;  %v6433_v41 = vpop.permute.xlu1 %6432  ;;  %v2686_v6 = vpop.f32.mrb[78].mxu1  ;;  %v6469_v45 = vsel %vm257_vm1, %v6447_v1, 0 }
 0x205   : > { %6312 = vmatpush1.bf16.msra.mxu0 %v6142_v24  ;;  %v2687_v22 = vpop.f32.mrb[79].mxu1  ;;  %6343 = vmatprep.mubr.bf16.mxu0 %v17187_v12  ;;  %v6448_v63 = vsel %vm6442_vm6, %v6431_v23, %v6433_v41  ;;  %v8445_v24 = vrot.slane %v8398_v4, %v17266_v5  ;;  %v8438_v6 = vcombine.high %v8398_v4, %v8398_v4 }
 0x206   : > { %16735 = vmatprep.subr.msk.bf16.mxu0 %vm257_vm1, %v6446_v40  ;;  %v6435_v56 = vpop.permute.xlu0 %6434  ;;  %8133 = vrot.lane.b32.xlu1 %v8114_v36, %s17210_s29 }
 0x207   : > { %16729 = vmatmul.mubr.msk.bf16.vlgmr.msra.gmra.mrb[184].mxu1 %vm253_vm2, %v19156_v8  ;;  %v2846_v16 = vpop.f32.mrb[80].mxu0  ;;  %v6449_v34 = vsel %vm6442_vm6, %v6433_v41, %v6435_v56 }
 0x208   : > { %6487 = vmatpush1.bf16.msra.mxu1 %v6457_v9  ;;  %v19233_v42 = vadd.f32 %v2846_v16, %v19107_v55  ;;  %8135 = vrot.lane.b32.xlu0 %v8113_v7, %s17210_s29  ;;  %v2848_v28 = vpop.f32.mrb[81].mxu0  ;;  %v6437_v17 = vpop.permute.xlu1 %6436  ;;  %v6475_v0 = vsel %vm257_vm1, %v6449_v34, 0  ;;  %v8453_v16 = vcombine.high %v8445_v24, %v8445_v24 }
 0x209   : > { %16737 = vmatprep.subr.msk.bf16.mxu1 %vm257_vm1, %v6448_v63  ;;  %v19239_v50 = vadd.f32 %v2848_v28, %v19113_v49  ;;  %v2850_v32 = vpop.f32.mrb[82].mxu0  ;;  %6518 = vmatprep.mubr.bf16.mxu1 %v17187_v12  ;;  %v6463_v49 = vsel %vm257_vm1, %v6445_v48, 0  ;;  %v6450_v53 = vsel %vm6442_vm6, %v6435_v56, %v6437_v17 }
 0x20a   : > { %v2887_v11 = vpop.f32.mrb[80].mxu1  ;;  %v6439_v47 = vpop.permute.xlu0 %6438  ;;  %8454 = vrot.lane.b32.xlu1 %v19077_v62, %s17211_s5 }
 0x20b   : > { %v19245_v55 = vadd.f32 %v2887_v11, %v19140_v15  ;;  %v2889_v44 = vpop.f32.mrb[81].mxu1  ;;  %v2851_v37 = vpop.f32.mrb[83].mxu0  ;;  %v19259_v15 = vld [vmem:[%s21999_s1 + $0x4c] sm:$0xf] }
 0x20c   : > { %v19249_v26 = vadd.f32 %v2889_v44, %v19151_v33  ;;  %8456 = vrot.lane.b32.xlu0 %v19101_v27, %s17211_s5  ;;  %16731 = vmatmul.mubr.msk.bf16.vlgmr.msra.gmra.mrb[188].mxu0 %vm253_vm2, %v19156_v8  ;;  %v6441_v19 = vpop.permute.xlu1 %6440  ;;  %v2891_v20 = vpop.f32.mrb[82].mxu1 }
 0x20d   : > { %6528 = vmatpush1.bf16.msra.mxu0 %v6463_v49  ;;  %v2892_v33 = vpop.f32.mrb[83].mxu1  ;;  %6559 = vmatprep.mubr.bf16.mxu0 %v17187_v12  ;;  %v6452_v57 = vsel %vm6442_vm6, %v6439_v47, %v6441_v19 }
 0x20e   : > { %16739 = vmatprep.subr.msk.bf16.mxu0 %vm257_vm1, %v6450_v53  ;;  %v6760_v8 = vpop.permute.xlu0 %6759  ;;  %8458 = vrot.lane.b32.xlu1 %v19104_v31, %s17211_s5 }
 0x20f   : > { %16734 = vmatmul.mubr.msk.bf16.vlgmr.msra.gmra.mrb[188].mxu1 %vm253_vm2, %v19259_v15  ;;  %v2928_v39 = vpop.f32.mrb[84].mxu0 }
 0x210   : > { %6569 = vmatpush1.bf16.msra.mxu1 %v6469_v45  ;;  %v19271_v59 = vadd.f32 %v2928_v39, %v19169_v35  ;;  %8460 = vrot.lane.b32.xlu0 %v19131_v61, %s17211_s5  ;;  %v2930_v51 = vpop.f32.mrb[85].mxu0  ;;  %v6762_v14 = vpop.permute.xlu1 %6761 }
 0x211   : > { %16741 = vmatprep.subr.msk.bf16.mxu1 %vm257_vm1, %v6452_v57  ;;  %v19278_v29 = vadd.f32 %v2930_v51, %v19175_v46  ;;  %v2932_v60 = vpop.f32.mrb[86].mxu0  ;;  %6600 = vmatprep.mubr.bf16.mxu1 %v17187_v12  ;;  %v6451_v46 = vsel %vm6442_vm6, %v6437_v17, %v6439_v47  ;;  %v6782_v28 = vsel %vm6781_vm7, %v6760_v8, %v6762_v14  ;;  %vm11123_vm6 = vcmask 809984  }
 0x212   : > { %v2969_v25 = vpop.f32.mrb[84].mxu1  ;;  %v6764_v35 = vpop.permute.xlu0 %6763  ;;  %8462 = vrot.lane.b32.xlu1 %v19134_v54, %s17211_s5  ;;  %v6481_v7 = vsel %vm257_vm1, %v6451_v46, 0  ;;  %v6796_v19 = vsel %vm257_vm1, %v6782_v28, 0 }
 0x213   : > { %v19285_v58 = vadd.f32 %v2969_v25, %v19198_v18  ;;  %v2971_v3 = vpop.f32.mrb[85].mxu1  ;;  %v6783_v23 = vsel %vm6781_vm7, %v6762_v14, %v6764_v35  ;;  %v2933_v36 = vpop.f32.mrb[87].mxu0 }
 0x214   : > { %v19290_v52 = vadd.f32 %v2971_v3, %v19207_v13  ;;  %8464 = vrot.lane.b32.xlu0 %v19163_v2, %s17211_s5  ;;  %16736 = vmatmul.mubr.msk.bf16.vlgmr.msra.gmra.mrb[192].mxu0 %vm253_vm2, %v19259_v15  ;;  %v6766_v21 = vpop.permute.xlu1 %6765  ;;  %v2973_v18 = vpop.f32.mrb[86].mxu1 }
 0x215   : > { %6610 = vmatpush1.bf16.msra.mxu0 %v6475_v0  ;;  %v2974_v41 = vpop.f32.mrb[87].mxu1  ;;  %6641 = vmatprep.mubr.bf16.mxu0 %v17187_v12 }
 0x216   : > { %16744 = vmatprep.subr.msk.bf16.mxu0 %vm257_vm1, %v6783_v23  ;;  %v6768_v13 = vpop.permute.xlu0 %6767  ;;  %8466 = vrot.lane.b32.xlu1 %v19166_v30, %s17211_s5  ;;  %v8737_v41 = vld [vmem:[%s17271_s17 + $0x10] sm:$0x3f] }
 0x217   : > { %16738 = vmatmul.mubr.msk.bf16.vlgmr.msra.gmra.mrb[192].mxu1 %vm253_vm2, %v19259_v15  ;;  %v3010_v40 = vpop.f32.mrb[88].mxu0  ;;  %v6785_v22 = vsel %vm6781_vm7, %v6766_v21, %v6768_v13 }
 0x218   : > { %6651 = vmatpush1.bf16.msra.mxu1 %v6481_v7  ;;  %v19307_v56 = vadd.f32 %v3010_v40, %v19213_v10  ;;  %8468 = vrot.lane.b32.xlu0 %v19191_v43, %s17211_s5  ;;  %v3012_v63 = vpop.f32.mrb[89].mxu0  ;;  %v6770_v9 = vpop.permute.xlu1 %6769  ;;  %v8452_v10 = vrot.slane %v8438_v6, %v17266_v5 }
 0x219   : > { %v19313_v17 = vadd.f32 %v3012_v63, %v19217_v38  ;;  %16746 = vmatprep.subr.msk.bf16.mxu1 %vm257_vm1, %v6785_v22  ;;  %v3014_v48 = vpop.f32.mrb[90].mxu0  ;;  %6682 = vmatprep.mubr.bf16.mxu1 %v17187_v12  ;;  %v6784_v38 = vsel %vm6781_vm7, %v6764_v35, %v6766_v21  ;;  %v6786_v14 = vsel %vm6781_vm7, %v6768_v13, %v6770_v9 }
 0x21a   : > { %v3174_v32 = vpop.f32.mrb[88].mxu1  ;;  %v6772_v11 = vpop.permute.xlu0 %6771  ;;  %8470 = vrot.lane.b32.xlu1 %v8445_v24, %s17211_s5  ;;  %v6808_v46 = vsel %vm257_vm1, %v6786_v14, 0 }
 0x21b   : > { %v19320_v47 = vadd.f32 %v3174_v32, %v19233_v42  ;;  %v3176_v44 = vpop.f32.mrb[89].mxu1  ;;  %v6787_v37 = vsel %vm6781_vm7, %v6770_v9, %v6772_v11  ;;  %v3015_v1 = vpop.f32.mrb[91].mxu0 }
 0x21c   : > { %v19325_v49 = vadd.f32 %v3176_v44, %v19239_v50  ;;  %8472 = vrot.lane.b32.xlu0 %v8453_v16, %s17211_s5  ;;  %16740 = vmatmul.mubr.msk.bf16.vlgmr.msra.gmra.mrb[196].mxu0 %vm253_vm2, %v19259_v15  ;;  %v6774_v20 = vpop.permute.xlu1 %6773  ;;  %v3178_v53 = vpop.f32.mrb[90].mxu1  ;;  %v6802_v50 = vsel %vm257_vm1, %v6784_v38, 0  ;;  %v8777_v38 = vcombine.high %v8737_v41, %v8737_v41 }
 0x21d   : > { %6826 = vmatpush1.bf16.msra.mxu0 %v6796_v19  ;;  %v3179_v42 = vpop.f32.mrb[91].mxu1  ;;  %6857 = vmatprep.mubr.bf16.mxu0 %v17187_v12  ;;  %v6788_v23 = vsel %vm6781_vm7, %v6772_v11, %v6774_v20 }
 0x21e   : > { %16748 = vmatprep.subr.msk.bf16.mxu0 %vm257_vm1, %v6787_v37  ;;  %v6776_v33 = vpop.permute.xlu0 %6775  ;;  %8474 = vrot.lane.b32.xlu1 %v8452_v10, %s17211_s5 }
 0x21f   : > { %16742 = vmatmul.mubr.msk.bf16.vlgmr.msra.gmra.mrb[196].mxu1 %vm253_vm2, %v19259_v15  ;;  %v3215_v57 = vpop.f32.mrb[92].mxu0  ;;  %v6789_v8 = vsel %vm6781_vm7, %v6774_v20, %v6776_v33  ;;  %v19351_v15 = vld [vmem:[%s21999_s1 + $0x50] sm:$0xf] }
 0x220   : > { %6867 = vmatpush1.bf16.msra.mxu1 %v6802_v50  ;;  %v19339_v45 = vadd.f32 %v3215_v57, %v19245_v55  ;;  %8793 = vrot.lane.b32.xlu0 %v19077_v62, %s17212_s8  ;;  %v3217_v39 = vpop.f32.mrb[93].mxu0  ;;  %v6778_v51 = vpop.permute.xlu1 %6777 }
 0x221   : > { %v19345_v34 = vadd.f32 %v3217_v39, %v19249_v26  ;;  %16750 = vmatprep.subr.msk.bf16.mxu1 %vm257_vm1, %v6789_v8  ;;  %v3219_v55 = vpop.f32.mrb[94].mxu0  ;;  %6898 = vmatprep.mubr.bf16.mxu1 %v17187_v12  ;;  %v6790_v40 = vsel %vm6781_vm7, %v6776_v33, %v6778_v51  ;;  %v8791_v8 = vrot.slane %v8777_v38, %v17266_v5 }
 0x222   : > { %v3256_v60 = vpop.f32.mrb[92].mxu1  ;;  %v6780_v4 = vpop.permute.xlu0 %6779  ;;  %8795 = vrot.lane.b32.xlu1 %v19101_v27, %s17212_s8  ;;  %v6820_v44 = vsel %vm257_vm1, %v6790_v40, 0 }
 0x223   : > { %v19357_v25 = vadd.f32 %v3256_v60, %v19271_v59  ;;  %v6791_v26 = vsel %vm6781_vm7, %v6778_v51, %v6780_v4  ;;  %v3258_v35 = vpop.f32.mrb[93].mxu1  ;;  %v3220_v3 = vpop.f32.mrb[95].mxu0  ;;  %vm11451_vm7 = vcmask 801792  }
 0x224   : > { %v19362_v36 = vadd.f32 %v3258_v35, %v19278_v29  ;;  %8797 = vrot.lane.b32.xlu0 %v19104_v31, %s17212_s8  ;;  %16745 = vmatmul.mubr.msk.bf16.vlgmr.msra.gmra.mrb[200].mxu0 %vm253_vm2, %v19351_v15  ;;  %v7099_v59 = vpop.permute.xlu1 %7098  ;;  %v3260_v0 = vpop.f32.mrb[94].mxu1  ;;  %v6814_v29 = vsel %vm257_vm1, %v6788_v23, 0 }
 0x225   : > { %6908 = vmatpush1.bf16.msra.mxu0 %v6808_v46  ;;  %v3261_v21 = vpop.f32.mrb[95].mxu1  ;;  %6939 = vmatprep.mubr.bf16.mxu0 %v17187_v12 }
 0x226   : > { %16752 = vmatprep.subr.msk.bf16.mxu0 %vm257_vm1, %v6791_v26  ;;  %v7101_v18 = vpop.permute.xlu0 %7100  ;;  %8799 = vrot.lane.b32.xlu1 %v19131_v61, %s17212_s8 }
 0x227   : > { %16747 = vmatmul.mubr.msk.bf16.vlgmr.msra.gmra.mrb[200].mxu1 %vm253_vm2, %v19351_v15  ;;  %v3297_v24 = vpop.f32.mrb[96].mxu0  ;;  %v7121_v11 = vsel %vm7120_vm8, %v7099_v59, %v7101_v18 }
 0x228   : > { %6949 = vmatpush1.bf16.msra.mxu1 %v6814_v29  ;;  %v19378_v13 = vadd.f32 %v3297_v24, %v19285_v58  ;;  %8801 = vrot.lane.b32.xlu0 %v19134_v54, %s17212_s8  ;;  %v3299_v6 = vpop.f32.mrb[97].mxu0  ;;  %v7103_v7 = vpop.permute.xlu1 %7102  ;;  %v8784_v58 = vrot.slane %v8737_v41, %v17266_v5  ;;  %v7135_v53 = vsel %vm257_vm1, %v7121_v11, 0 }
 0x229   : > { %v19384_v22 = vadd.f32 %v3299_v6, %v19290_v52  ;;  %v7122_v63 = vsel %vm7120_vm8, %v7101_v18, %v7103_v7  ;;  %v3301_v9 = vpop.f32.mrb[98].mxu0  ;;  %6980 = vmatprep.mubr.bf16.mxu1 %v17187_v12 }
 0x22a   : > { %v3338_v16 = vpop.f32.mrb[96].mxu1  ;;  %v7105_v28 = vpop.permute.xlu0 %7104  ;;  %8803 = vrot.lane.b32.xlu1 %v19163_v2, %s17212_s8  ;;  %16755 = vmatprep.subr.msk.bf16.mxu1 %vm257_vm1, %v7122_v63 }
 0x22b   : > { %v19393_v48 = vadd.f32 %v3338_v16, %v19307_v56  ;;  %v3340_v32 = vpop.f32.mrb[97].mxu1  ;;  %v3302_v52 = vpop.f32.mrb[99].mxu0  ;;  %v7123_v39 = vsel %vm7120_vm8, %v7103_v7, %v7105_v28 }
 0x22c   : > { %v19397_v10 = vadd.f32 %v3340_v32, %v19313_v17  ;;  %8805 = vrot.lane.b32.xlu0 %v19166_v30, %s17212_s8  ;;  %16749 = vmatmul.mubr.msk.bf16.vlgmr.msra.gmra.mrb[204].mxu0 %vm253_vm2, %v19351_v15  ;;  %v7107_v37 = vpop.permute.xlu1 %7106  ;;  %v3342_v1 = vpop.f32.mrb[98].mxu1  ;;  %v8792_v17 = vcombine.high %v8784_v58, %v8784_v58  ;;  %v7141_v23 = vsel %vm257_vm1, %v7123_v39, 0  ;;  %v9076_v52 = vld [vmem:[%s17271_s17 + $0x10] sm:$0x3f] }
 0x22d   : > { %6990 = vmatpush1.bf16.msra.mxu0 %v6820_v44  ;;  %v7124_v56 = vsel %vm7120_vm8, %v7105_v28, %v7107_v37  ;;  %v3343_v19 = vpop.f32.mrb[99].mxu1  ;;  %7021 = vmatprep.mubr.bf16.mxu0 %v17187_v12 }
 0x22e   : > { %v7109_v20 = vpop.permute.xlu0 %7108  ;;  %8807 = vrot.lane.b32.xlu1 %v19191_v43, %s17212_s8  ;;  %16757 = vmatprep.subr.msk.bf16.mxu0 %vm257_vm1, %v7124_v56 }
 0x22f   : > { %16751 = vmatmul.mubr.msk.bf16.vlgmr.msra.gmra.mrb[204].mxu1 %vm253_vm2, %v19351_v15  ;;  %v3502_v42 = vpop.f32.mrb[100].mxu0  ;;  %v7125_v3 = vsel %vm7120_vm8, %v7107_v37, %v7109_v20 }
 0x230   : > { %7165 = vmatpush1.bf16.msra.mxu1 %v7135_v53  ;;  %v19413_v33 = vadd.f32 %v3502_v42, %v19320_v47  ;;  %8809 = vrot.lane.b32.xlu0 %v8784_v58, %s17212_s8  ;;  %v3504_v50 = vpop.f32.mrb[101].mxu0  ;;  %v7111_v57 = vpop.permute.xlu1 %7110 }
 0x231   : > { %v19419_v51 = vadd.f32 %v3504_v50, %v19325_v49  ;;  %v7126_v14 = vsel %vm7120_vm8, %v7109_v20, %v7111_v57  ;;  %v3506_v55 = vpop.f32.mrb[102].mxu0  ;;  %7196 = vmatprep.mubr.bf16.mxu1 %v17187_v12 }
 0x232   : > { %v3543_v60 = vpop.f32.mrb[100].mxu1  ;;  %v7113_v4 = vpop.permute.xlu0 %7112  ;;  %8811 = vrot.lane.b32.xlu1 %v8792_v17, %s17212_s8  ;;  %16759 = vmatprep.subr.msk.bf16.mxu1 %vm257_vm1, %v7126_v14 }
 0x233   : > { %v19426_v47 = vadd.f32 %v3543_v60, %v19339_v45  ;;  %v3545_v26 = vpop.f32.mrb[101].mxu1  ;;  %v3507_v35 = vpop.f32.mrb[103].mxu0  ;;  %v19439_v45 = vld [vmem:[%s21999_s1 + $0x54] sm:$0xf]  ;;  %v7127_v6 = vsel %vm7120_vm8, %v7111_v57, %v7113_v4 }
 0x234   : > { %v19430_v49 = vadd.f32 %v3545_v26, %v19345_v34  ;;  %8813 = vrot.lane.b32.xlu0 %v8791_v8, %s17212_s8  ;;  %16753 = vmatmul.mubr.msk.bf16.vlgmr.msra.gmra.mrb[208].mxu0 %vm253_vm2, %v19351_v15  ;;  %v7115_v46 = vpop.permute.xlu1 %7114  ;;  %v3547_v59 = vpop.f32.mrb[102].mxu1  ;;  %v7147_v15 = vsel %vm257_vm1, %v7125_v3, 0  ;;  %s17220_s8 = smov 98  }
 0x235   : > { %7206 = vmatpush1.bf16.msra.mxu0 %v7141_v23  ;;  %v7128_v0 = vsel %vm7120_vm8, %v7113_v4, %v7115_v46  ;;  %v3548_v21 = vpop.f32.mrb[103].mxu1  ;;  %7237 = vmatprep.mubr.bf16.mxu0 %v17187_v12 }
 0x236   : > { %v7117_v34 = vpop.permute.xlu0 %7116  ;;  %9132 = vrot.lane.b32.xlu1 %v19077_v62, %s17213_s15  ;;  %16761 = vmatprep.subr.msk.bf16.mxu0 %vm257_vm1, %v7128_v0 }
 0x237   : > { %16756 = vmatmul.mubr.msk.bf16.vlgmr.msra.gmra.mrb[208].mxu1 %vm253_vm2, %v19439_v45  ;;  %v3584_v18 = vpop.f32.mrb[104].mxu0 }
 0x238   : > { %7247 = vmatpush1.bf16.msra.mxu1 %v7147_v15  ;;  %v19450_v29 = vadd.f32 %v3584_v18, %v19357_v25  ;;  %9134 = vrot.lane.b32.xlu0 %v19101_v27, %s17213_s15  ;;  %v3586_v24 = vpop.f32.mrb[105].mxu0  ;;  %v7119_v41 = vpop.permute.xlu1 %7118 }
 0x239   : > { %v19456_v62 = vadd.f32 %v3586_v24, %v19362_v36  ;;  %v7130_v7 = vsel %vm7120_vm8, %v7117_v34, %v7119_v41  ;;  %v3588_v40 = vpop.f32.mrb[106].mxu0  ;;  %7278 = vmatprep.mubr.bf16.mxu1 %v17187_v12  ;;  %v7129_v36 = vsel %vm7120_vm8, %v7115_v46, %v7117_v34  ;;  %vm11779_vm8 = vcmask 539648  }
 0x23a   : > { %v3625_v63 = vpop.f32.mrb[104].mxu1  ;;  %v7438_v9 = vpop.permute.xlu0 %7437  ;;  %9136 = vrot.lane.b32.xlu1 %v19104_v31, %s17213_s15  ;;  %16763 = vmatprep.subr.msk.bf16.mxu1 %vm257_vm1, %v7130_v7  ;;  %v7153_v31 = vsel %vm257_vm1, %v7127_v6, 0 }
 0x23b   : > { %v19464_v27 = vadd.f32 %v3625_v63, %v19378_v13  ;;  %v3627_v25 = vpop.f32.mrb[105].mxu1  ;;  %v3589_v16 = vpop.f32.mrb[107].mxu0  ;;  %v9414_v63 = vld [vmem:[%s17271_s17 + $0xa] sm:$0xff] }
 0x23c   : > { %v19468_v28 = vadd.f32 %v3627_v25, %v19384_v22  ;;  %9138 = vrot.lane.b32.xlu0 %v19131_v61, %s17213_s15  ;;  %16758 = vmatmul.mubr.msk.bf16.vlgmr.msra.gmra.mrb[212].mxu0 %vm253_vm2, %v19439_v45  ;;  %v7440_v58 = vpop.permute.xlu1 %7439  ;;  %v3629_v32 = vpop.f32.mrb[106].mxu1  ;;  %v7159_v61 = vsel %vm257_vm1, %v7129_v36, 0 }
 0x23d   : > { %7288 = vmatpush1.bf16.msra.mxu0 %v7153_v31  ;;  %v3630_v13 = vpop.f32.mrb[107].mxu1  ;;  %7319 = vmatprep.mubr.bf16.mxu0 %v17187_v12  ;;  %v7460_v56 = vsel %vm7459_vm9, %v7438_v9, %v7440_v58  ;;  %v19568_v32 = vrot.slane %v9414_v63, %v17266_v5 }
 0x23e   : > { %v7442_v11 = vpop.permute.xlu0 %7441  ;;  %9140 = vrot.lane.b32.xlu1 %v19134_v54, %s17213_s15  ;;  %v9123_v54 = vrot.slane %v9076_v52, %v17266_v5  ;;  %v9438_v13 = vcombine.high %v9414_v63, %v9414_v63 }
 0x23f   : > { %16760 = vmatmul.mubr.msk.bf16.vlgmr.msra.gmra.mrb[212].mxu1 %vm253_vm2, %v19439_v45  ;;  %v3666_v22 = vpop.f32.mrb[108].mxu0  ;;  %v7461_v44 = vsel %vm7459_vm9, %v7440_v58, %v7442_v11 }
 0x240   : > { %7329 = vmatpush1.bf16.msra.mxu1 %v7159_v61  ;;  %v19484_v37 = vadd.f32 %v3666_v22, %v19393_v48  ;;  %9142 = vrot.lane.b32.xlu0 %v19163_v2, %s17213_s15  ;;  %v3668_v1 = vpop.f32.mrb[109].mxu0  ;;  %v7444_v38 = vpop.permute.xlu1 %7443  ;;  %v9116_v2 = vcombine.high %v9076_v52, %v9076_v52  ;;  %v9131_v55 = vcombine.high %v9123_v54, %v9123_v54 }
 0x241   : > { %v19491_v19 = vadd.f32 %v3668_v1, %v19397_v10  ;;  %16766 = vmatprep.subr.msk.bf16.mxu0 %vm257_vm1, %v7461_v44  ;;  %v3670_v20 = vpop.f32.mrb[110].mxu0  ;;  %7360 = vmatprep.mubr.bf16.mxu1 %v17187_v12  ;;  %v9413_v10 = vld [vmem:[%s17271_s17 + $0x2] sm:$0xff]  ;;  %v7462_v8 = vsel %vm7459_vm9, %v7442_v11, %v7444_v38 }
 0x242   : > { %v3830_v48 = vpop.f32.mrb[108].mxu1  ;;  %v7446_v17 = vpop.permute.xlu0 %7445  ;;  %9144 = vrot.lane.b32.xlu1 %v19166_v30, %s17213_s15  ;;  %v7474_v30 = vsel %vm257_vm1, %v7460_v56, 0  ;;  %v9421_v26 = vcombine.high %v9413_v10, %v9413_v10  ;;  %v7480_v35 = vsel %vm257_vm1, %v7462_v8, 0 }
 0x243   : > { %v19498_v53 = vadd.f32 %v3830_v48, %v19413_v33  ;;  %v3832_v42 = vpop.f32.mrb[109].mxu1  ;;  %v7463_v50 = vsel %vm7459_vm9, %v7444_v38, %v7446_v17  ;;  %v3671_v57 = vpop.f32.mrb[111].mxu0 }
 0x244   : > { %v19504_v39 = vadd.f32 %v3832_v42, %v19419_v51  ;;  %9146 = vrot.lane.b32.xlu0 %v19191_v43, %s17213_s15  ;;  %16762 = vmatmul.mubr.msk.bf16.vlgmr.msra.gmra.mrb[216].mxu0 %vm253_vm2, %v19439_v45  ;;  %v7448_v33 = vpop.permute.xlu1 %7447  ;;  %v3834_v14 = vpop.f32.mrb[110].mxu1  ;;  %v9130_v51 = vrot.slane %v9116_v2, %v17266_v5  ;;  %v19516_v43 = vrot.slane %v9413_v10, %v17266_v5 }
 0x245   : > { %7504 = vmatpush1.bf16.msra.mxu0 %v7474_v30  ;;  %16768 = vmatprep.subr.msk.bf16.mxu1 %vm257_vm1, %v7463_v50  ;;  %v3835_v60 = vpop.f32.mrb[111].mxu1  ;;  %v7464_v21 = vsel %vm7459_vm9, %v7446_v17, %v7448_v33  ;;  %v19592_v17 = vrot.slane %v9438_v13, %v17266_v5 }
 0x246   : > { %v7450_v4 = vpop.permute.xlu0 %7449  ;;  %9148 = vrot.lane.b32.xlu1 %v9123_v54, %s17213_s15  ;;  %7535 = vmatprep.mubr.bf16.mxu0 %v17187_v12  ;;  %v19540_v24 = vcombine.high %v19516_v43, %v19516_v43 }
 0x247   : > { %16764 = vmatmul.mubr.msk.bf16.vlgmr.msra.gmra.mrb[216].mxu1 %vm253_vm2, %v19439_v45  ;;  %v3871_v3 = vpop.f32.mrb[112].mxu0  ;;  %v7465_v23 = vsel %vm7459_vm9, %v7448_v33, %v7450_v4  ;;  %v19534_v45 = vld [vmem:[%s21999_s1 + $0x58] sm:$0xf] }
 0x248   : > { %7545 = vmatpush1.bf16.msra.mxu1 %v7480_v35  ;;  %v19523_v46 = vadd.f32 %v3871_v3, %v19426_v47  ;;  %9150 = vrot.lane.b32.xlu0 %v9131_v55, %s17213_s15  ;;  %v3873_v59 = vpop.f32.mrb[113].mxu0  ;;  %v7452_v0 = vpop.permute.xlu1 %7451 }
 0x249   : > { %v19528_v34 = vadd.f32 %v3873_v59, %v19430_v49  ;;  %16770 = vmatprep.subr.msk.bf16.mxu0 %vm257_vm1, %v7465_v23  ;;  %v3875_v15 = vpop.f32.mrb[114].mxu0  ;;  %7576 = vmatprep.mubr.bf16.mxu1 %v17187_v12  ;;  %v19543_v49 = vrot.slane %v9421_v26, %v17266_v5  ;;  %v7466_v9 = vsel %vm7459_vm9, %v7450_v4, %v7452_v0  ;;  %v19619_v4 = vld.sshfl [vmem:[%s17271_s17 + $0x12] sm:$0x33 pattern:$0x76325410] }
 0x24a   : > { %v3912_v47 = vpop.f32.mrb[112].mxu1  ;;  %v7454_v18 = vpop.permute.xlu0 %7453  ;;  %9152 = vrot.lane.b32.xlu1 %v9130_v51, %s17213_s15  ;;  %v7492_v11 = vsel %vm257_vm1, %v7466_v9, 0  ;;  %s17229_s15 = smov 27  }
 0x24b   : > { %v19546_v41 = vadd.f32 %v3912_v47, %v19450_v29  ;;  %v3914_v6 = vpop.f32.mrb[113].mxu1  ;;  %v7467_v7 = vsel %vm7459_vm9, %v7452_v0, %v7454_v18  ;;  %v3876_v40 = vpop.f32.mrb[115].mxu0  ;;  %v7486_v29 = vsel %vm257_vm1, %v7464_v21, 0 }
 0x24c   : > { %v19552_v25 = vadd.f32 %v3914_v6, %v19456_v62  ;;  %9463 = vrot.lane.b32.xlu0 %v19516_v43, %s17214_s19  ;;  %16767 = vmatmul.mubr.msk.bf16.vlgmr.msra.gmra.mrb[220].mxu0 %vm253_vm2, %v19534_v45  ;;  %v7456_v16 = vpop.permute.xlu1 %7455  ;;  %v3916_v36 = vpop.f32.mrb[114].mxu1  ;;  %v19564_v62 = vcombine.high %v19543_v49, %v19543_v49 }
 0x24d   : > { %7586 = vmatpush1.bf16.msra.mxu0 %v7486_v29  ;;  %16772 = vmatprep.subr.msk.bf16.mxu1 %vm257_vm1, %v7467_v7  ;;  %v3917_v31 = vpop.f32.mrb[115].mxu1  ;;  %v7468_v38 = vsel %vm7459_vm9, %v7454_v18, %v7456_v16 }
 0x24e   : > { %v7458_v58 = vpop.permute.xlu0 %7457  ;;  %9465 = vrot.lane.b32.xlu1 %v19540_v24, %s17214_s19  ;;  %7617 = vmatprep.mubr.bf16.mxu0 %v17187_v12  ;;  %v7498_v10 = vsel %vm257_vm1, %v7468_v38, 0 }
 0x24f   : > { %v7469_v52 = vsel %vm7459_vm9, %v7456_v16, %v7458_v58  ;;  %16769 = vmatmul.mubr.msk.bf16.vlgmr.msra.gmra.mrb[220].mxu1 %vm253_vm2, %v19534_v45  ;;  %v3953_v61 = vpop.f32.mrb[116].mxu0  ;;  %vm12107_vm9 = vcmask 531456  }
 0x250   : > { %7627 = vmatpush1.bf16.msra.mxu1 %v7492_v11  ;;  %v19575_v22 = vadd.f32 %v3953_v61, %v19464_v27  ;;  %9467 = vrot.lane.b32.xlu0 %v19543_v49, %s17214_s19  ;;  %v3955_v44 = vpop.f32.mrb[117].mxu0  ;;  %v7777_v1 = vpop.permute.xlu1 %7776  ;;  %v19589_v27 = vcombine.high %v19568_v32, %v19568_v32 }
 0x251   : > { %v19581_v54 = vadd.f32 %v3955_v44, %v19468_v28  ;;  %16774 = vmatprep.subr.msk.bf16.mxu0 %vm257_vm1, %v7469_v52  ;;  %v3957_v56 = vpop.f32.mrb[118].mxu0  ;;  %7658 = vmatprep.mubr.bf16.mxu1 %v17187_v12 }
 0x252   : > { %v3994_v20 = vpop.f32.mrb[116].mxu1  ;;  %v7779_v48 = vpop.permute.xlu0 %7778  ;;  %9469 = vrot.lane.b32.xlu1 %v19564_v62, %s17214_s19 }
 0x253   : > { %v19595_v28 = vadd.f32 %v3994_v20, %v19484_v37  ;;  %v3996_v2 = vpop.f32.mrb[117].mxu1  ;;  %v3958_v42 = vpop.f32.mrb[119].mxu0  ;;  %v7799_v50 = vsel %vm7798_vm10, %v7777_v1, %v7779_v48 }
 0x254   : > { %v19599_v57 = vadd.f32 %v3996_v2, %v19491_v19  ;;  %9471 = vrot.lane.b32.xlu0 %v19568_v32, %s17214_s19  ;;  %16771 = vmatmul.mubr.msk.bf16.vlgmr.msra.gmra.mrb[224].mxu0 %vm253_vm2, %v19534_v45  ;;  %v7781_v8 = vpop.permute.xlu1 %7780  ;;  %v3998_v30 = vpop.f32.mrb[118].mxu1  ;;  %v19613_v19 = vcombine.high %v19592_v17, %v19592_v17  ;;  %v7813_v60 = vsel %vm257_vm1, %v7799_v50, 0 }
 0x255   : > { %7668 = vmatpush1.bf16.msra.mxu0 %v7498_v10  ;;  %v7800_v37 = vsel %vm7798_vm10, %v7779_v48, %v7781_v8  ;;  %v3999_v33 = vpop.f32.mrb[119].mxu1  ;;  %7699 = vmatprep.mubr.bf16.mxu0 %v17187_v12 }
 0x256   : > { %v7783_v14 = vpop.permute.xlu0 %7782  ;;  %9473 = vrot.lane.b32.xlu1 %v19589_v27, %s17214_s19  ;;  %16777 = vmatprep.subr.msk.bf16.mxu1 %vm257_vm1, %v7800_v37 }
 0x257   : > { %16773 = vmatmul.mubr.msk.bf16.vlgmr.msra.gmra.mrb[224].mxu1 %vm253_vm2, %v19534_v45  ;;  %v4158_v55 = vpop.f32.mrb[120].mxu0  ;;  %v7801_v3 = vsel %vm7798_vm10, %v7781_v8, %v7783_v14 }
 0x258   : > { %v19622_v51 = vadd.f32 %v4158_v55, %v19498_v53  ;;  %7843 = vmatpush1.bf16.msra.mxu1 %v7813_v60  ;;  %9475 = vrot.lane.b32.xlu0 %v19592_v17, %s17214_s19  ;;  %v4160_v26 = vpop.f32.mrb[121].mxu0  ;;  %v7785_v35 = vpop.permute.xlu1 %7784  ;;  %v19637_v53 = vcombine.high %v19619_v4, %v19619_v4  ;;  %v7819_v40 = vsel %vm257_vm1, %v7801_v3, 0 }
 0x259   : > { %v19628_v23 = vadd.f32 %v4160_v26, %v19504_v39  ;;  %v7802_v59 = vsel %vm7798_vm10, %v7783_v14, %v7785_v35  ;;  %v4162_v0 = vpop.f32.mrb[122].mxu0  ;;  %7874 = vmatprep.mubr.bf16.mxu1 %v17187_v12 }
 0x25a   : > { %v4199_v21 = vpop.f32.mrb[120].mxu1  ;;  %v7787_v15 = vpop.permute.xlu0 %7786  ;;  %9477 = vrot.lane.b32.xlu1 %v19613_v19, %s17214_s19  ;;  %16779 = vmatprep.subr.msk.bf16.mxu0 %vm257_vm1, %v7802_v59 }
 0x25b   : > { %v19640_v47 = vadd.f32 %v4199_v21, %v19523_v46  ;;  %v4201_v39 = vpop.f32.mrb[121].mxu1  ;;  %v4163_v18 = vpop.f32.mrb[123].mxu0  ;;  %v7803_v6 = vsel %vm7798_vm10, %v7785_v35, %v7787_v15  ;;  %v19654_v46 = vld [vmem:[%s21999_s1 + $0x5c] sm:$0xf] }
 0x25c   : > { %v19644_v7 = vadd.f32 %v4201_v39, %v19528_v34  ;;  %9479 = vrot.lane.b32.xlu0 %v19619_v4, %s17214_s19  ;;  %16775 = vmatmul.mubr.msk.bf16.vlgmr.msra.gmra.mrb[228].mxu0 %vm253_vm2, %v19534_v45  ;;  %v7789_v63 = vpop.permute.xlu1 %7788  ;;  %v4203_v9 = vpop.f32.mrb[122].mxu1  ;;  %v7825_v36 = vsel %vm257_vm1, %v7803_v6, 0 }
 0x25d   : > { %7884 = vmatpush1.bf16.msra.mxu0 %v7819_v40  ;;  %v7804_v29 = vsel %vm7798_vm10, %v7787_v15, %v7789_v63  ;;  %v4204_v34 = vpop.f32.mrb[123].mxu1  ;;  %7915 = vmatprep.mubr.bf16.mxu0 %v17187_v12 }
 0x25e   : > { %v7791_v16 = vpop.permute.xlu0 %7790  ;;  %9481 = vrot.lane.b32.xlu1 %v19637_v53, %s17214_s19  ;;  %16781 = vmatprep.subr.msk.bf16.mxu1 %vm257_vm1, %v7804_v29  ;;  %s17230_s19 = smov 26  }
 0x25f   : > { %16778 = vmatmul.mubr.msk.bf16.vlgmr.msra.gmra.mrb[228].mxu1 %vm253_vm2, %v19654_v46  ;;  %v4240_v45 = vpop.f32.mrb[124].mxu0  ;;  %v7805_v52 = vsel %vm7798_vm10, %v7789_v63, %v7791_v16 }
 0x260   : > { %v19665_v31 = vadd.f32 %v4240_v45, %v19546_v41  ;;  %7925 = vmatpush1.bf16.msra.mxu1 %v7825_v36  ;;  %9791 = vrot.lane.b32.xlu0 %v19516_v43, %s17215_s22  ;;  %v4242_v58 = vpop.f32.mrb[125].mxu0  ;;  %v7793_v13 = vpop.permute.xlu1 %7792  ;;  %v7831_v2 = vsel %vm257_vm1, %v7805_v52, 0 }
 0x261   : > { %v19671_v11 = vadd.f32 %v4242_v58, %v19552_v25  ;;  %v7806_v61 = vsel %vm7798_vm10, %v7791_v16, %v7793_v13  ;;  %v4244_v44 = vpop.f32.mrb[126].mxu0  ;;  %7956 = vmatprep.mubr.bf16.mxu1 %v17187_v12 }
 0x262   : > { %v4281_v1 = vpop.f32.mrb[124].mxu1  ;;  %v7795_v41 = vpop.permute.xlu0 %7794  ;;  %9793 = vrot.lane.b32.xlu1 %v19540_v24, %s17215_s22  ;;  %16783 = vmatprep.subr.msk.bf16.mxu0 %vm257_vm1, %v7806_v61 }
 0x263   : > { %v19679_v38 = vadd.f32 %v4281_v1, %v19575_v22  ;;  %v4283_v56 = vpop.f32.mrb[125].mxu1  ;;  %v4245_v20 = vpop.f32.mrb[127].mxu0  ;;  %v7807_v25 = vsel %vm7798_vm10, %v7793_v13, %v7795_v41 }
 0x264   : > { %v19683_v48 = vadd.f32 %v4283_v56, %v19581_v54  ;;  %9795 = vrot.lane.b32.xlu0 %v19543_v49, %s17215_s22  ;;  %16780 = vmatmul.mubr.msk.bf16.vlgmr.msra.gmra.mrb[232].mxu0 %vm253_vm2, %v19654_v46  ;;  %v7797_v42 = vpop.permute.xlu1 %7796  ;;  %v4285_v50 = vpop.f32.mrb[126].mxu1  ;;  %v7837_v30 = vsel %vm257_vm1, %v7807_v25, 0 }
 0x265   : > { %7966 = vmatpush1.bf16.msra.mxu0 %v7831_v2  ;;  %v7808_v22 = vsel %vm7798_vm10, %v7795_v41, %v7797_v42  ;;  %v4286_v10 = vpop.f32.mrb[127].mxu1  ;;  %7997 = vmatprep.mubr.bf16.mxu0 %v17187_v12  ;;  %vm12435_vm10 = vcmask 523264  }
 0x266   : > { %v8116_v8 = vpop.permute.xlu0 %8115  ;;  %9797 = vrot.lane.b32.xlu1 %v19564_v62, %s17215_s22  ;;  %16785 = vmatprep.subr.msk.bf16.mxu1 %vm257_vm1, %v7808_v22 }
 0x267   : > { %16782 = vmatmul.mubr.msk.bf16.vlgmr.msra.gmra.mrb[232].mxu1 %vm253_vm2, %v19654_v46  ;;  %v4322_v54 = vpop.f32.mrb[128].mxu0 }
 0x268   : > { %v19699_v37 = vadd.f32 %v4322_v54, %v19595_v28  ;;  %8007 = vmatpush1.bf16.msra.mxu1 %v7837_v30  ;;  %9799 = vrot.lane.b32.xlu0 %v19568_v32, %s17215_s22  ;;  %v4324_v33 = vpop.f32.mrb[129].mxu0  ;;  %v8118_v14 = vpop.permute.xlu1 %8117 }
 0x269   : > { %v19704_v55 = vadd.f32 %v4324_v33, %v19599_v57  ;;  %v4326_v60 = vpop.f32.mrb[130].mxu0  ;;  %8038 = vmatprep.mubr.bf16.mxu1 %v17187_v12  ;;  %v8138_v26 = vsel %vm8137_vm11, %v8116_v8, %v8118_v14 }
 0x26a   : > { %v4486_v35 = vpop.f32.mrb[128].mxu1  ;;  %v8120_v3 = vpop.permute.xlu0 %8119  ;;  %9801 = vrot.lane.b32.xlu1 %v19589_v27, %s17215_s22  ;;  %v8152_v18 = vsel %vm257_vm1, %v8138_v26, 0 }
 0x26b   : > { %v19711_v28 = vadd.f32 %v4486_v35, %v19622_v51  ;;  %v4488_v59 = vpop.f32.mrb[129].mxu1  ;;  %v8139_v0 = vsel %vm8137_vm11, %v8118_v14, %v8120_v3  ;;  %v4327_v21 = vpop.f32.mrb[131].mxu0 }
 0x26c   : > { %v19715_v57 = vadd.f32 %v4488_v59, %v19628_v23  ;;  %9803 = vrot.lane.b32.xlu0 %v19592_v17, %s17215_s22  ;;  %16784 = vmatmul.mubr.msk.bf16.vlgmr.msra.gmra.mrb[236].mxu0 %vm253_vm2, %v19654_v46  ;;  %v8122_v15 = vpop.permute.xlu1 %8121  ;;  %v4490_v39 = vpop.f32.mrb[130].mxu1 }
 0x26d   : > { %16788 = vmatprep.subr.msk.bf16.mxu0 %vm257_vm1, %v8139_v0  ;;  %v8140_v51 = vsel %vm8137_vm11, %v8120_v3, %v8122_v15  ;;  %v4491_v6 = vpop.f32.mrb[131].mxu1  ;;  %8213 = vmatprep.mubr.bf16.mxu0 %v17187_v12 }
 0x26e   : > { %8182 = vmatpush1.bf16.msra.mxu0 %v8152_v18  ;;  %v8124_v23 = vpop.permute.xlu0 %8123  ;;  %9805 = vrot.lane.b32.xlu1 %v19613_v19, %s17215_s22  ;;  %v8158_v16 = vsel %vm257_vm1, %v8140_v51, 0 }
 0x26f   : > { %16786 = vmatmul.mubr.msk.bf16.vlgmr.msra.gmra.mrb[236].mxu1 %vm253_vm2, %v19654_v46  ;;  %v4527_v40 = vpop.f32.mrb[132].mxu0  ;;  %v8141_v63 = vsel %vm8137_vm11, %v8122_v15, %v8124_v23  ;;  %v19743_v46 = vld [vmem:[%s21999_s1 + $0x60] sm:$0xf] }
 0x270   : > { %v19731_v9 = vadd.f32 %v4527_v40, %v19640_v47  ;;  %9807 = vrot.lane.b32.xlu0 %v19619_v4, %s17215_s22  ;;  %v4529_v29 = vpop.f32.mrb[133].mxu0  ;;  %16790 = vmatprep.subr.msk.bf16.mxu1 %vm257_vm1, %v8141_v63  ;;  %v8126_v34 = vpop.permute.xlu1 %8125 }
 0x271   : > { %v19738_v45 = vadd.f32 %v4529_v29, %v19644_v7  ;;  %8223 = vmatpush1.bf16.msra.mxu1 %v8158_v16  ;;  %v4531_v47 = vpop.f32.mrb[134].mxu0  ;;  %8254 = vmatprep.mubr.bf16.mxu1 %v17187_v12  ;;  %v8142_v36 = vsel %vm8137_vm11, %v8124_v23, %v8126_v34 }
 0x272   : > { %v4568_v58 = vpop.f32.mrb[132].mxu1  ;;  %v8128_v13 = vpop.permute.xlu0 %8127  ;;  %9809 = vrot.lane.b32.xlu1 %v19637_v53, %s17215_s22  ;;  %v8164_v20 = vsel %vm257_vm1, %v8142_v36, 0  ;;  %s17231_s22 = smov 25  }
 0x273   : > { %v19750_v52 = vadd.f32 %v4568_v58, %v19665_v31  ;;  %v4570_v7 = vpop.f32.mrb[133].mxu1  ;;  %v8143_v61 = vsel %vm8137_vm11, %v8126_v34, %v8128_v13  ;;  %v4532_v44 = vpop.f32.mrb[135].mxu0 }
 0x274   : > { %v19754_v1 = vadd.f32 %v4570_v7, %v19671_v11  ;;  %10119 = vrot.lane.b32.xlu0 %v19516_v43, %s17216_s25  ;;  %16789 = vmatmul.mubr.msk.bf16.vlgmr.msra.gmra.mrb[240].mxu0 %vm253_vm2, %v19743_v46  ;;  %v8130_v41 = vpop.permute.xlu1 %8129  ;;  %v4572_v56 = vpop.f32.mrb[134].mxu1 }
 0x275   : > { %16792 = vmatprep.subr.msk.bf16.mxu0 %vm257_vm1, %v8143_v61  ;;  %v8144_v31 = vsel %vm8137_vm11, %v8128_v13, %v8130_v41  ;;  %v4573_v25 = vpop.f32.mrb[135].mxu1  ;;  %8295 = vmatprep.mubr.bf16.mxu0 %v17187_v12 }
 0x276   : > { %8264 = vmatpush1.bf16.msra.mxu0 %v8164_v20  ;;  %v8132_v11 = vpop.permute.xlu0 %8131  ;;  %10121 = vrot.lane.b32.xlu1 %v19540_v24, %s17216_s25  ;;  %v8170_v8 = vsel %vm257_vm1, %v8144_v31, 0 }
 0x277   : > { %16791 = vmatmul.mubr.msk.bf16.vlgmr.msra.gmra.mrb[240].mxu1 %vm253_vm2, %v19743_v46  ;;  %v4609_v2 = vpop.f32.mrb[136].mxu0  ;;  %v8145_v42 = vsel %vm8137_vm11, %v8130_v41, %v8132_v11 }
 0x278   : > { %v19770_v50 = vadd.f32 %v4609_v2, %v19679_v38  ;;  %10123 = vrot.lane.b32.xlu0 %v19543_v49, %s17216_s25  ;;  %v4611_v22 = vpop.f32.mrb[137].mxu0  ;;  %16794 = vmatprep.subr.msk.bf16.mxu1 %vm257_vm1, %v8145_v42  ;;  %v8134_v10 = vpop.permute.xlu1 %8133 }
 0x279   : > { %v19777_v54 = vadd.f32 %v4611_v22, %v19683_v48  ;;  %8305 = vmatpush1.bf16.msra.mxu1 %v8170_v8  ;;  %v4613_v30 = vpop.f32.mrb[138].mxu0  ;;  %8336 = vmatprep.mubr.bf16.mxu1 %v17187_v12  ;;  %v8146_v33 = vsel %vm8137_vm11, %v8132_v11, %v8134_v10 }
 0x27a   : > { %v4650_v38 = vpop.f32.mrb[136].mxu1  ;;  %v8136_v14 = vpop.permute.xlu0 %8135  ;;  %10125 = vrot.lane.b32.xlu1 %v19564_v62, %s17216_s25 }
 0x27b   : > { %v19784_v60 = vadd.f32 %v4650_v38, %v19699_v37  ;;  %v8147_v26 = vsel %vm8137_vm11, %v8134_v10, %v8136_v14  ;;  %v4652_v35 = vpop.f32.mrb[137].mxu1  ;;  %v4614_v3 = vpop.f32.mrb[139].mxu0  ;;  %v8176_v37 = vsel %vm257_vm1, %v8146_v33, 0  ;;  %vm12773_vm11 = vcmask 515072  }
 0x27c   : > { %v19788_v48 = vadd.f32 %v4652_v35, %v19704_v55  ;;  %10127 = vrot.lane.b32.xlu0 %v19568_v32, %s17216_s25  ;;  %16793 = vmatmul.mubr.msk.bf16.vlgmr.msra.gmra.mrb[244].mxu0 %vm253_vm2, %v19743_v46  ;;  %v8455_v59 = vpop.permute.xlu1 %8454  ;;  %v4654_v0 = vpop.f32.mrb[138].mxu1 }
 0x27d   : > { %16796 = vmatprep.subr.msk.bf16.mxu0 %vm257_vm1, %v8147_v26  ;;  %v4655_v21 = vpop.f32.mrb[139].mxu1  ;;  %8377 = vmatprep.mubr.bf16.mxu0 %v17187_v12 }
 0x27e   : > { %8346 = vmatpush1.bf16.msra.mxu0 %v8176_v37  ;;  %v8457_v15 = vpop.permute.xlu0 %8456  ;;  %10129 = vrot.lane.b32.xlu1 %v19589_v27, %s17216_s25 }
 0x27f   : > { %v8477_v55 = vsel %vm8476_vm12, %v8455_v59, %v8457_v15  ;;  %16795 = vmatmul.mubr.msk.bf16.vlgmr.msra.gmra.mrb[244].mxu1 %vm253_vm2, %v19743_v46  ;;  %v4825_v39 = vpop.f32.mrb[140].mxu0 }
 0x280   : > { %v19803_v51 = vadd.f32 %v4825_v39, %v19711_v28  ;;  %10131 = vrot.lane.b32.xlu0 %v19592_v17, %s17216_s25  ;;  %v4827_v18 = vpop.f32.mrb[141].mxu0  ;;  %v8459_v6 = vpop.permute.xlu1 %8458  ;;  %8552 = vmatprep.mubr.bf16.mxu1 %v17187_v12  ;;  %v8491_v28 = vsel %vm257_vm1, %v8477_v55, 0 }
 0x281   : > { %v19809_v23 = vadd.f32 %v4827_v18, %v19715_v57  ;;  %v8478_v40 = vsel %vm8476_vm12, %v8457_v15, %v8459_v6  ;;  %v4829_v63 = vpop.f32.mrb[142].mxu0 }
 0x282   : > { %v4866_v29 = vpop.f32.mrb[140].mxu1  ;;  %v8461_v34 = vpop.permute.xlu0 %8460  ;;  %10133 = vrot.lane.b32.xlu1 %v19613_v19, %s17216_s25  ;;  %16799 = vmatprep.subr.msk.bf16.mxu1 %vm257_vm1, %v8478_v40 }
 0x283   : > { %v19817_v16 = vadd.f32 %v4866_v29, %v19731_v9  ;;  %v8479_v47 = vsel %vm8476_vm12, %v8459_v6, %v8461_v34  ;;  %v4868_v36 = vpop.f32.mrb[141].mxu1  ;;  %8521 = vmatpush1.bf16.msra.mxu1 %v8491_v28  ;;  %v4830_v57 = vpop.f32.mrb[143].mxu0  ;;  %v19830_v9 = vld [vmem:[%s21999_s1 + $0x64] sm:$0xf] }
 0x284   : > { %v19821_v58 = vadd.f32 %v4868_v36, %v19738_v45  ;;  %10135 = vrot.lane.b32.xlu0 %v19619_v4, %s17216_s25  ;;  %16797 = vmatmul.mubr.msk.bf16.vlgmr.msra.gmra.mrb[248].mxu0 %vm253_vm2, %v19743_v46  ;;  %v8463_v13 = vpop.permute.xlu1 %8462  ;;  %v4870_v7 = vpop.f32.mrb[142].mxu1  ;;  %v8497_v46 = vsel %vm257_vm1, %v8479_v47, 0 }
 0x285   : > { %v8480_v61 = vsel %vm8476_vm12, %v8461_v34, %v8463_v13  ;;  %v4871_v44 = vpop.f32.mrb[143].mxu1  ;;  %8593 = vmatprep.mubr.bf16.mxu0 %v17187_v12 }
 0x286   : > { %v8465_v45 = vpop.permute.xlu0 %8464  ;;  %10137 = vrot.lane.b32.xlu1 %v19637_v53, %s17216_s25  ;;  %16801 = vmatprep.subr.msk.bf16.mxu0 %vm257_vm1, %v8480_v61  ;;  %s17232_s25 = smov 24  }
 0x287   : > { %v8481_v41 = vsel %vm8476_vm12, %v8463_v13, %v8465_v45  ;;  %16800 = vmatmul.mubr.msk.bf16.vlgmr.msra.gmra.mrb[248].mxu1 %vm253_vm2, %v19830_v9  ;;  %v4907_v56 = vpop.f32.mrb[144].mxu0  ;;  %8562 = vmatpush1.bf16.msra.mxu0 %v8497_v46 }
 0x288   : > { %v19842_v31 = vadd.f32 %v4907_v56, %v19750_v52  ;;  %10447 = vrot.lane.b32.xlu0 %v19516_v43, %s17217_s28  ;;  %v4909_v20 = vpop.f32.mrb[145].mxu0  ;;  %v8467_v25 = vpop.permute.xlu1 %8466  ;;  %8634 = vmatprep.mubr.bf16.mxu1 %v17187_v12  ;;  %v8503_v52 = vsel %vm257_vm1, %v8481_v41, 0 }
 0x289   : > { %v19848_v11 = vadd.f32 %v4909_v20, %v19754_v1  ;;  %v8482_v2 = vsel %vm8476_vm12, %v8465_v45, %v8467_v25  ;;  %v4911_v42 = vpop.f32.mrb[146].mxu0 }
 0x28a   : > { %v4948_v22 = vpop.f32.mrb[144].mxu1  ;;  %v8469_v10 = vpop.permute.xlu0 %8468  ;;  %10449 = vrot.lane.b32.xlu1 %v19540_v24, %s17217_s28  ;;  %16803 = vmatprep.subr.msk.bf16.mxu1 %vm257_vm1, %v8482_v2 }
 0x28b   : > { %v19856_v8 = vadd.f32 %v4948_v22, %v19770_v50  ;;  %v8483_v30 = vsel %vm8476_vm12, %v8467_v25, %v8469_v10  ;;  %v4950_v33 = vpop.f32.mrb[145].mxu1  ;;  %8603 = vmatpush1.bf16.msra.mxu1 %v8503_v52  ;;  %v4912_v1 = vpop.f32.mrb[147].mxu0 }
 0x28c   : > { %v19860_v38 = vadd.f32 %v4950_v33, %v19777_v54  ;;  %10451 = vrot.lane.b32.xlu0 %v19543_v49, %s17217_s28  ;;  %16802 = vmatmul.mubr.msk.bf16.vlgmr.msra.gmra.mrb[252].mxu0 %vm253_vm2, %v19830_v9  ;;  %v8471_v14 = vpop.permute.xlu1 %8470  ;;  %v4952_v26 = vpop.f32.mrb[146].mxu1  ;;  %v8509_v54 = vsel %vm257_vm1, %v8483_v30, 0 }
 0x28d   : > { %v8484_v35 = vsel %vm8476_vm12, %v8469_v10, %v8471_v14  ;;  %v4953_v50 = vpop.f32.mrb[147].mxu1  ;;  %8675 = vmatprep.mubr.bf16.mxu0 %v17187_v12 }
 0x28e   : > { %v8473_v3 = vpop.permute.xlu0 %8472  ;;  %10453 = vrot.lane.b32.xlu1 %v19564_v62, %s17217_s28  ;;  %16805 = vmatprep.subr.msk.bf16.mxu0 %vm257_vm1, %v8484_v35 }
 0x28f   : > { %v8485_v59 = vsel %vm8476_vm12, %v8471_v14, %v8473_v3  ;;  %16804 = vmatmul.mubr.msk.bf16.vlgmr.msra.gmra.mrb[252].mxu1 %vm253_vm2, %v19830_v9  ;;  %v4989_v0 = vpop.f32.mrb[148].mxu0  ;;  %8644 = vmatpush1.bf16.msra.mxu0 %v8509_v54 }
 0x290   : > { %v19876_v37 = vadd.f32 %v4989_v0, %v19784_v60  ;;  %10455 = vrot.lane.b32.xlu0 %v19568_v32, %s17217_s28  ;;  %v4991_v21 = vpop.f32.mrb[149].mxu0  ;;  %v8475_v15 = vpop.permute.xlu1 %8474  ;;  %8716 = vmatprep.mubr.bf16.mxu1 %v17187_v12  ;;  %v8515_v60 = vsel %vm257_vm1, %v8485_v59, 0 }
 0x291   : > { %v19882_v55 = vadd.f32 %v4991_v21, %v19788_v48  ;;  %v8486_v39 = vsel %vm8476_vm12, %v8473_v3, %v8475_v15  ;;  %v4993_v18 = vpop.f32.mrb[150].mxu0  ;;  %vm13112_vm12 = vcmask 506880  }
 0x292   : > { %v5164_v6 = vpop.f32.mrb[148].mxu1  ;;  %v8794_v40 = vpop.permute.xlu0 %8793  ;;  %10457 = vrot.lane.b32.xlu1 %v19589_v27, %s17217_s28  ;;  %16807 = vmatprep.subr.msk.bf16.mxu1 %vm257_vm1, %v8486_v39 }
 0x293   : > { %v19890_v63 = vadd.f32 %v5164_v6, %v19803_v51  ;;  %v5166_v29 = vpop.f32.mrb[149].mxu1  ;;  %8685 = vmatpush1.bf16.msra.mxu1 %v8515_v60  ;;  %v4994_v48 = vpop.f32.mrb[151].mxu0 }
 0x294   : > { %v19893_v34 = vadd.f32 %v5166_v29, %v19809_v23  ;;  %10459 = vrot.lane.b32.xlu0 %v19592_v17, %s17217_s28  ;;  %16806 = vmatmul.mubr.msk.bf16.vlgmr.msra.gmra.mrb[0].mxu0 %vm253_vm2, %v19830_v9  ;;  %v8796_v28 = vpop.permute.xlu1 %8795  ;;  %v5168_v47 = vpop.f32.mrb[150].mxu1 }
 0x295   : > { %v8816_v36 = vsel %vm8815_vm13, %v8794_v40, %v8796_v28  ;;  %v5169_v57 = vpop.f32.mrb[151].mxu1  ;;  %8891 = vmatprep.mubr.bf16.mxu0 %v17187_v12 }
 0x296   : > { %v8798_v51 = vpop.permute.xlu0 %8797  ;;  %10461 = vrot.lane.b32.xlu1 %v19613_v19, %s17217_s28  ;;  %v8830_v45 = vsel %vm257_vm1, %v8816_v36, 0 }
 0x297   : > { %16808 = vmatmul.mubr.msk.bf16.vlgmr.msra.gmra.mrb[0].mxu1 %vm253_vm2, %v19830_v9  ;;  %v5205_v23 = vpop.f32.mrb[152].mxu0  ;;  %v8817_v13 = vsel %vm8815_vm13, %v8796_v28, %v8798_v51  ;;  %v19919_v9 = vld [vmem:[%s21999_s1 + $0x68] sm:$0xf] }
 0x298   : > { %v19907_v7 = vadd.f32 %v5205_v23, %v19817_v16  ;;  %10463 = vrot.lane.b32.xlu0 %v19619_v4, %s17217_s28  ;;  %v5207_v61 = vpop.f32.mrb[153].mxu0  ;;  %16810 = vmatprep.subr.msk.bf16.mxu0 %vm257_vm1, %v8817_v13  ;;  %v8800_v44 = vpop.permute.xlu1 %8799 }
 0x299   : > { %v19914_v46 = vadd.f32 %v5207_v61, %v19821_v58  ;;  %8860 = vmatpush1.bf16.msra.mxu0 %v8830_v45  ;;  %v5209_v16 = vpop.f32.mrb[154].mxu0  ;;  %8932 = vmatprep.mubr.bf16.mxu1 %v17187_v12  ;;  %v8818_v41 = vsel %vm8815_vm13, %v8798_v51, %v8800_v44 }
 0x29a   : > { %v5246_v56 = vpop.f32.mrb[152].mxu1  ;;  %v8802_v20 = vpop.permute.xlu0 %8801  ;;  %10465 = vrot.lane.b32.xlu1 %v19637_v53, %s17217_s28  ;;  %v8836_v30 = vsel %vm257_vm1, %v8818_v41, 0  ;;  %s17233_s28 = smov 23  }
 0x29b   : > { %v19926_v25 = vadd.f32 %v5246_v56, %v19842_v31  ;;  %v5248_v58 = vpop.f32.mrb[153].mxu1  ;;  %v8819_v2 = vsel %vm8815_vm13, %v8800_v44, %v8802_v20  ;;  %v5210_v42 = vpop.f32.mrb[155].mxu0 }
 0x29c   : > { %v19930_v22 = vadd.f32 %v5248_v58, %v19848_v11  ;;  %10775 = vrot.lane.b32.xlu0 %v19516_v43, %s17218_s4  ;;  %16811 = vmatmul.mubr.msk.bf16.vlgmr.msra.gmra.mrb[4].mxu0 %vm253_vm2, %v19919_v9  ;;  %v8804_v10 = vpop.permute.xlu1 %8803  ;;  %v5250_v52 = vpop.f32.mrb[154].mxu1 }
 0x29d   : > { %16812 = vmatprep.subr.msk.bf16.mxu1 %vm257_vm1, %v8819_v2  ;;  %v8820_v31 = vsel %vm8815_vm13, %v8802_v20, %v8804_v10  ;;  %v5251_v33 = vpop.f32.mrb[155].mxu1  ;;  %8973 = vmatprep.mubr.bf16.mxu0 %v17187_v12 }
 0x29e   : > { %8901 = vmatpush1.bf16.msra.mxu1 %v8836_v30  ;;  %v8806_v11 = vpop.permute.xlu0 %8805  ;;  %10777 = vrot.lane.b32.xlu1 %v19540_v24, %s17218_s4  ;;  %v8842_v3 = vsel %vm257_vm1, %v8820_v31, 0 }
 0x29f   : > { %v5287_v1 = vpop.f32.mrb[156].mxu0  ;;  %v8821_v14 = vsel %vm8815_vm13, %v8804_v10, %v8806_v11 }
 0x2a0   : > { %v19944_v26 = vadd.f32 %v5287_v1, %v19856_v8  ;;  %10779 = vrot.lane.b32.xlu0 %v19543_v49, %s17218_s4  ;;  %v5289_v35 = vpop.f32.mrb[157].mxu0  ;;  %16814 = vmatprep.subr.msk.bf16.mxu0 %vm257_vm1, %v8821_v14  ;;  %v8808_v50 = vpop.permute.xlu1 %8807 }
 0x2a1   : > { %v19951_v54 = vadd.f32 %v5289_v35, %v19860_v38  ;;  %16813 = vmatmul.mubr.msk.bf16.vlgmr.msra.gmra.mrb[4].mxu1 %vm253_vm2, %v19919_v9  ;;  %8942 = vmatpush1.bf16.msra.mxu0 %v8842_v3  ;;  %v5291_v59 = vpop.f32.mrb[158].mxu0  ;;  %v8822_v8 = vsel %vm8815_vm13, %v8806_v11, %v8808_v50 }
 0x2a2   : > { %v5328_v0 = vpop.f32.mrb[156].mxu1  ;;  %v8810_v21 = vpop.permute.xlu0 %8809  ;;  %10781 = vrot.lane.b32.xlu1 %v19564_v62, %s17218_s4  ;;  %9014 = vmatprep.mubr.bf16.mxu1 %v17187_v12  ;;  %v8848_v29 = vsel %vm257_vm1, %v8822_v8, 0 }
 0x2a3   : > { %v19960_v15 = vadd.f32 %v5328_v0, %v19876_v37  ;;  %v5330_v39 = vpop.f32.mrb[157].mxu1  ;;  %v8823_v38 = vsel %vm8815_vm13, %v8808_v50, %v8810_v21  ;;  %v5292_v18 = vpop.f32.mrb[159].mxu0 }
 0x2a4   : > { %v19964_v6 = vadd.f32 %v5330_v39, %v19882_v55  ;;  %10783 = vrot.lane.b32.xlu0 %v19568_v32, %s17218_s4  ;;  %16815 = vmatmul.mubr.msk.bf16.vlgmr.msra.gmra.mrb[8].mxu0 %vm253_vm2, %v19919_v9  ;;  %v8812_v40 = vpop.permute.xlu1 %8811  ;;  %v5332_v60 = vpop.f32.mrb[158].mxu1 }
 0x2a5   : > { %16816 = vmatprep.subr.msk.bf16.mxu1 %vm257_vm1, %v8823_v38  ;;  %v8824_v37 = vsel %vm8815_vm13, %v8810_v21, %v8812_v40  ;;  %v5333_v48 = vpop.f32.mrb[159].mxu1  ;;  %9055 = vmatprep.mubr.bf16.mxu0 %v17187_v12 }
 0x2a6   : > { %8983 = vmatpush1.bf16.msra.mxu1 %v8848_v29  ;;  %v8814_v55 = vpop.permute.xlu0 %8813  ;;  %10785 = vrot.lane.b32.xlu1 %v19589_v27, %s17218_s4  ;;  %v8854_v23 = vsel %vm257_vm1, %v8824_v37, 0 }
 0x2a7   : > { %v8825_v28 = vsel %vm8815_vm13, %v8812_v40, %v8814_v55  ;;  %v5503_v47 = vpop.f32.mrb[160].mxu0  ;;  %vm13451_vm13 = vcmask 498688  }
 0x2a8   : > { %v19978_v36 = vadd.f32 %v5503_v47, %v19890_v63  ;;  %10787 = vrot.lane.b32.xlu0 %v19592_v17, %s17218_s4  ;;  %v5505_v57 = vpop.f32.mrb[161].mxu0  ;;  %16818 = vmatprep.subr.msk.bf16.mxu0 %vm257_vm1, %v8825_v28  ;;  %v9133_v51 = vpop.permute.xlu1 %9132 }
 0x2a9   : > { %v19985_v13 = vadd.f32 %v5505_v57, %v19893_v34  ;;  %16817 = vmatmul.mubr.msk.bf16.vlgmr.msra.gmra.mrb[8].mxu1 %vm253_vm2, %v19919_v9  ;;  %9024 = vmatpush1.bf16.msra.mxu0 %v8854_v23  ;;  %v5507_v61 = vpop.f32.mrb[162].mxu0  ;;  %v11381_v57 = vld [vmem:[%s17271_s17 + $0x2] sm:$0xff] }
 0x2aa   : > { %v5544_v63 = vpop.f32.mrb[160].mxu1  ;;  %v9135_v44 = vpop.permute.xlu0 %9134  ;;  %10789 = vrot.lane.b32.xlu1 %v19613_v19, %s17218_s4  ;;  %9230 = vmatprep.mubr.bf16.mxu1 %v17187_v12 }
 0x2ab   : > { %v19993_v45 = vadd.f32 %v5544_v63, %v19907_v7  ;;  %v9155_v16 = vsel %vm9154_vm14, %v9133_v51, %v9135_v44  ;;  %v5546_v41 = vpop.f32.mrb[161].mxu1  ;;  %v5508_v34 = vpop.f32.mrb[163].mxu0 }
 0x2ac   : > { %v19997_v56 = vadd.f32 %v5546_v41, %v19914_v46  ;;  %10791 = vrot.lane.b32.xlu0 %v19619_v4, %s17218_s4  ;;  %16819 = vmatmul.mubr.msk.bf16.vlgmr.msra.gmra.mrb[12].mxu0 %vm253_vm2, %v19919_v9  ;;  %v9137_v20 = vpop.permute.xlu1 %9136  ;;  %v5548_v58 = vpop.f32.mrb[162].mxu1  ;;  %v9169_v46 = vsel %vm257_vm1, %v9155_v16, 0  ;;  %v20012_v9 = vld [vmem:[%s21999_s1 + $0x6c] sm:$0xf]  ;;  %v11389_v16 = vcombine.high %v11381_v57, %v11381_v57 }
 0x2ad   : > { %v9156_v2 = vsel %vm9154_vm14, %v9135_v44, %v9137_v20  ;;  %v5549_v42 = vpop.f32.mrb[163].mxu1  ;;  %9271 = vmatprep.mubr.bf16.mxu0 %v17187_v12 }
 0x2ae   : > { %v9139_v7 = vpop.permute.xlu0 %9138  ;;  %10793 = vrot.lane.b32.xlu1 %v19637_v53, %s17218_s4  ;;  %16821 = vmatprep.subr.msk.bf16.mxu1 %vm257_vm1, %v9156_v2  ;;  %s17226_s4 = smov 61  }
 0x2af   : > { %v5585_v10 = vpop.f32.mrb[164].mxu0  ;;  %9199 = vmatpush1.bf16.msra.mxu1 %v9169_v46  ;;  %v9157_v52 = vsel %vm9154_vm14, %v9137_v20, %v9139_v7 }
 0x2b0   : > { %v20016_v31 = vadd.f32 %v5585_v10, %v19926_v25  ;;  %11103 = vrot.lane.b32.xlu0 %v19516_v43, %s17219_s7  ;;  %v5587_v30 = vpop.f32.mrb[165].mxu0  ;;  %v9141_v33 = vpop.permute.xlu1 %9140 }
 0x2b1   : > { %v20021_v11 = vadd.f32 %v5587_v30, %v19930_v22  ;;  %v9158_v1 = vsel %vm9154_vm14, %v9139_v7, %v9141_v33  ;;  %v5589_v14 = vpop.f32.mrb[166].mxu0  ;;  %v9175_v22 = vsel %vm257_vm1, %v9157_v52, 0 }
 0x2b2   : > { %v5626_v35 = vpop.f32.mrb[164].mxu1  ;;  %v9143_v50 = vpop.permute.xlu0 %9142  ;;  %11105 = vrot.lane.b32.xlu1 %v19540_v24, %s17219_s7  ;;  %16822 = vmatmul.mubr.msk.bf16.vlgmr.msra.gmra.mrb[12].mxu1 %vm253_vm2, %v20012_v9  ;;  %v20122_v14 = vld [vmem:[%s21999_s1 + $0x70] sm:$0xf] }
 0x2b3   : > { %v20029_v25 = vadd.f32 %v5626_v35, %v19944_v26  ;;  %v9159_v43 = vsel %vm9154_vm14, %v9141_v33, %v9143_v50  ;;  %v5628_v3 = vpop.f32.mrb[165].mxu1  ;;  %16823 = vmatprep.subr.msk.bf16.mxu0 %vm257_vm1, %v9158_v1  ;;  %v5590_v59 = vpop.f32.mrb[167].mxu0  ;;  %9312 = vmatprep.mubr.bf16.mxu1 %v17187_v12 }
 0x2b4   : > { %v20036_v8 = vadd.f32 %v5628_v3, %v19951_v54  ;;  %9240 = vmatpush1.bf16.msra.mxu0 %v9175_v22  ;;  %11107 = vrot.lane.b32.xlu0 %v19543_v49, %s17219_s7  ;;  %v9145_v24 = vpop.permute.xlu1 %9144  ;;  %v5630_v26 = vpop.f32.mrb[166].mxu1  ;;  %v9181_v38 = vsel %vm257_vm1, %v9159_v43, 0 }
 0x2b5   : > { %v9160_v0 = vsel %vm9154_vm14, %v9143_v50, %v9145_v24  ;;  %v5631_v21 = vpop.f32.mrb[167].mxu1 }
 0x2b6   : > { %v9147_v39 = vpop.permute.xlu0 %9146  ;;  %11109 = vrot.lane.b32.xlu1 %v19564_v62, %s17219_s7  ;;  %16825 = vmatprep.subr.msk.bf16.mxu1 %vm257_vm1, %v9160_v0 }
 0x2b7   : > { %16824 = vmatmul.mubr.msk.bf16.vlgmr.msra.gmra.mrb[16].mxu0 %vm253_vm2, %v20012_v9  ;;  %v5667_v54 = vpop.f32.mrb[168].mxu0  ;;  %9281 = vmatpush1.bf16.msra.mxu1 %v9181_v38  ;;  %v9161_v49 = vsel %vm9154_vm14, %v9145_v24, %v9147_v39 }
 0x2b8   : > { %v20049_v18 = vadd.f32 %v5667_v54, %v19960_v15  ;;  %11111 = vrot.lane.b32.xlu0 %v19568_v32, %s17219_s7  ;;  %v5669_v40 = vpop.f32.mrb[169].mxu0  ;;  %v9149_v60 = vpop.permute.xlu1 %9148  ;;  %9353 = vmatprep.mubr.bf16.mxu0 %v17187_v12 }
 0x2b9   : > { %v20055_v62 = vadd.f32 %v5669_v40, %v19964_v6  ;;  %v9162_v37 = vsel %vm9154_vm14, %v9147_v39, %v9149_v60  ;;  %v5671_v29 = vpop.f32.mrb[170].mxu0  ;;  %v9187_v6 = vsel %vm257_vm1, %v9161_v49, 0 }
 0x2ba   : > { %v5842_v48 = vpop.f32.mrb[168].mxu1  ;;  %v9151_v55 = vpop.permute.xlu0 %9150  ;;  %11113 = vrot.lane.b32.xlu1 %v19589_v27, %s17219_s7  ;;  %16826 = vmatmul.mubr.msk.bf16.vlgmr.msra.gmra.mrb[16].mxu1 %vm253_vm2, %v20012_v9 }
 0x2bb   : > { %v20063_v32 = vadd.f32 %v5842_v48, %v19978_v36  ;;  %v9163_v15 = vsel %vm9154_vm14, %v9149_v60, %v9151_v55  ;;  %v5844_v28 = vpop.f32.mrb[169].mxu1  ;;  %16827 = vmatprep.subr.msk.bf16.mxu0 %vm257_vm1, %v9162_v37  ;;  %v5672_v47 = vpop.f32.mrb[171].mxu0  ;;  %9394 = vmatprep.mubr.bf16.mxu1 %v17187_v12 }
 0x2bc   : > { %v20071_v51 = vadd.f32 %v5844_v28, %v19985_v13  ;;  %9322 = vmatpush1.bf16.msra.mxu0 %v9187_v6  ;;  %11115 = vrot.lane.b32.xlu0 %v19592_v17, %s17219_s7  ;;  %v9153_v27 = vpop.permute.xlu1 %9152  ;;  %v5846_v36 = vpop.f32.mrb[170].mxu1  ;;  %v9193_v44 = vsel %vm257_vm1, %v9163_v15, 0  ;;  %v20081_v13 = vrot.slane %v11381_v57, %v17266_v5 }
 0x2bd   : > { %v9164_v23 = vsel %vm9154_vm14, %v9151_v55, %v9153_v27  ;;  %v5847_v61 = vpop.f32.mrb[171].mxu1  ;;  %vm13790_vm14 = vcmask 490496  }
 0x2be   : > { %v9464_v63 = vpop.permute.xlu0 %9463  ;;  %11117 = vrot.lane.b32.xlu1 %v19613_v19, %s17219_s7  ;;  %16829 = vmatprep.subr.msk.bf16.mxu1 %vm257_vm1, %v9164_v23  ;;  %v20181_v23 = vld.sshfl [vmem:[%s17271_s17 + $0x12] sm:$0x33 pattern:$0x76325410] }
 0x2bf   : > { %16828 = vmatmul.mubr.msk.bf16.vlgmr.msra.gmra.mrb[20].mxu0 %vm253_vm2, %v20012_v9  ;;  %v5883_v17 = vpop.f32.mrb[172].mxu0  ;;  %9363 = vmatpush1.bf16.msra.mxu1 %v9193_v44 }
 0x2c0   : > { %v20086_v41 = vadd.f32 %v5883_v17, %v19993_v45  ;;  %11119 = vrot.lane.b32.xlu0 %v19619_v4, %s17219_s7  ;;  %v5885_v19 = vpop.f32.mrb[173].mxu0  ;;  %v9466_v34 = vpop.permute.xlu1 %9465  ;;  %9558 = vmatprep.mubr.bf16.mxu0 %v17187_v12  ;;  %v20101_v4 = vcombine.high %v20081_v13, %v20081_v13  ;;  %v20104_v45 = vrot.slane %v11389_v16, %v17266_v5 }
 0x2c1   : > { %v20092_v20 = vadd.f32 %v5885_v19, %v19997_v56  ;;  %v9484_v58 = vsel %vm9483_vm15, %v9464_v63, %v9466_v34  ;;  %v5887_v2 = vpop.f32.mrb[174].mxu0 }
 0x2c2   : > { %v5924_v42 = vpop.f32.mrb[172].mxu1  ;;  %v9468_v7 = vpop.permute.xlu0 %9467  ;;  %11121 = vrot.lane.b32.xlu1 %v19637_v53, %s17219_s7  ;;  %16830 = vmatmul.mubr.msk.bf16.vlgmr.msra.gmra.mrb[20].mxu1 %vm253_vm2, %v20012_v9  ;;  %v11382_v53 = vld [vmem:[%s17271_s17 + $0xa] sm:$0xff]  ;;  %v20129_v50 = vcombine.high %v20104_v45, %v20104_v45  ;;  %s17227_s7 = smov 60  }
 0x2c3   : > { %v20107_v56 = vadd.f32 %v5924_v42, %v20016_v31  ;;  %v5926_v46 = vpop.f32.mrb[173].mxu1  ;;  %v9485_v10 = vsel %vm9483_vm15, %v9466_v34, %v9468_v7  ;;  %v5888_v52 = vpop.f32.mrb[175].mxu0  ;;  %9599 = vmatprep.mubr.bf16.mxu1 %v17187_v12  ;;  %v9497_v31 = vsel %vm257_vm1, %v9484_v58, 0  ;;  %v20132_v43 = vrot.slane %v11382_v53, %v17266_v5 }
 0x2c4   : > { %v20113_v30 = vadd.f32 %v5926_v46, %v20021_v11  ;;  %11431 = vrot.lane.b32.xlu0 %v20081_v13, %s17220_s8  ;;  %16833 = vmatprep.subr.msk.bf16.mxu0 %vm257_vm1, %v9485_v10  ;;  %v9470_v9 = vpop.permute.xlu1 %9469  ;;  %v5928_v33 = vpop.f32.mrb[174].mxu1  ;;  %v11406_v3 = vcombine.high %v11382_v53, %v11382_v53 }
 0x2c5   : > { %9527 = vmatpush1.bf16.msra.mxu0 %v9497_v31  ;;  %v5929_v1 = vpop.f32.mrb[175].mxu1  ;;  %v9486_v11 = vsel %vm9483_vm15, %v9468_v7, %v9470_v9  ;;  %v20153_v40 = vcombine.high %v20132_v43, %v20132_v43 }
 0x2c6   : > { %v9472_v35 = vpop.permute.xlu0 %9471  ;;  %11433 = vrot.lane.b32.xlu1 %v20101_v4, %s17220_s8  ;;  %v9503_v38 = vsel %vm257_vm1, %v9486_v11, 0 }
 0x2c7   : > { %v5965_v22 = vpop.f32.mrb[176].mxu0  ;;  %v9487_v59 = vsel %vm9483_vm15, %v9470_v9, %v9472_v35 }
 0x2c8   : > { %v20136_v24 = vadd.f32 %v5965_v22, %v20029_v25  ;;  %11435 = vrot.lane.b32.xlu0 %v20104_v45, %s17220_s8  ;;  %v5967_v26 = vpop.f32.mrb[177].mxu0  ;;  %16834 = vmatmul.mubr.msk.bf16.vlgmr.msra.gmra.mrb[24].mxu0 %vm253_vm2, %v20122_v14  ;;  %v9474_v0 = vpop.permute.xlu1 %9473 }
 0x2c9   : > { %v20143_v21 = vadd.f32 %v5967_v26, %v20036_v8  ;;  %16835 = vmatprep.subr.msk.bf16.mxu1 %vm257_vm1, %v9487_v59  ;;  %v9488_v39 = vsel %vm9483_vm15, %v9472_v35, %v9474_v0  ;;  %v5969_v54 = vpop.f32.mrb[178].mxu0  ;;  %9640 = vmatprep.mubr.bf16.mxu0 %v17187_v12  ;;  %v20156_v8 = vrot.slane %v11406_v3, %v17266_v5 }
 0x2ca   : > { %v6006_v25 = vpop.f32.mrb[176].mxu1  ;;  %9568 = vmatpush1.bf16.msra.mxu1 %v9503_v38  ;;  %v9476_v49 = vpop.permute.xlu0 %9475  ;;  %11437 = vrot.lane.b32.xlu1 %v20129_v50, %s17220_s8  ;;  %v9509_v28 = vsel %vm257_vm1, %v9488_v39, 0 }
 0x2cb   : > { %v20159_v60 = vadd.f32 %v6006_v25, %v20049_v18  ;;  %v6008_v37 = vpop.f32.mrb[177].mxu1  ;;  %v9489_v29 = vsel %vm9483_vm15, %v9474_v0, %v9476_v49  ;;  %v5970_v48 = vpop.f32.mrb[179].mxu0 }
 0x2cc   : > { %v20163_v55 = vadd.f32 %v6008_v37, %v20055_v62  ;;  %11439 = vrot.lane.b32.xlu0 %v20132_v43, %s17220_s8  ;;  %16837 = vmatprep.subr.msk.bf16.mxu0 %vm257_vm1, %v9489_v29  ;;  %v9478_v15 = vpop.permute.xlu1 %9477  ;;  %v6010_v6 = vpop.f32.mrb[178].mxu1  ;;  %v20176_v62 = vcombine.high %v20156_v8, %v20156_v8 }
 0x2cd   : > { %16836 = vmatmul.mubr.msk.bf16.vlgmr.msra.gmra.mrb[24].mxu1 %vm253_vm2, %v20122_v14  ;;  %9609 = vmatpush1.bf16.msra.mxu0 %v9509_v28  ;;  %v6011_v18 = vpop.f32.mrb[179].mxu1  ;;  %v9490_v47 = vsel %vm9483_vm15, %v9476_v49, %v9478_v15 }
 0x2ce   : > { %v9480_v57 = vpop.permute.xlu0 %9479  ;;  %11441 = vrot.lane.b32.xlu1 %v20153_v40, %s17220_s8  ;;  %9681 = vmatprep.mubr.bf16.mxu1 %v17187_v12  ;;  %v9515_v19 = vsel %vm257_vm1, %v9490_v47, 0 }
 0x2cf   : > { %v6181_v27 = vpop.f32.mrb[180].mxu0  ;;  %v9491_v36 = vsel %vm9483_vm15, %v9478_v15, %v9480_v57 }
 0x2d0   : > { %v20184_v61 = vadd.f32 %v6181_v27, %v20063_v32  ;;  %11443 = vrot.lane.b32.xlu0 %v20156_v8, %s17220_s8  ;;  %v6183_v63 = vpop.f32.mrb[181].mxu0  ;;  %16838 = vmatmul.mubr.msk.bf16.vlgmr.msra.gmra.mrb[28].mxu0 %vm253_vm2, %v20122_v14  ;;  %v9482_v44 = vpop.permute.xlu1 %9481 }
 0x2d1   : > { %v20191_v16 = vadd.f32 %v6183_v63, %v20071_v51  ;;  %16839 = vmatprep.subr.msk.bf16.mxu1 %vm257_vm1, %v9491_v36  ;;  %v9492_v17 = vsel %vm9483_vm15, %v9480_v57, %v9482_v44  ;;  %16841 = vmatprep.subr.msk.bf16.mxu0 %vm257_vm1, %v9482_v44  ;;  %v6185_v32 = vpop.f32.mrb[182].mxu0  ;;  %v20202_v51 = vcombine.high %v20181_v23, %v20181_v23  ;;  %vm14129_vm15 = vcmask 228352  }
 0x2d2   : > { %v6222_v34 = vpop.f32.mrb[180].mxu1  ;;  %9650 = vmatpush1.bf16.msra.mxu1 %v9515_v19  ;;  %v9792_v58 = vpop.permute.xlu0 %9791  ;;  %11445 = vrot.lane.b32.xlu1 %v20176_v62, %s17220_s8  ;;  %v9521_v2 = vsel %vm257_vm1, %v9492_v17, 0 }
 0x2d3   : > { %v20205_v42 = vadd.f32 %v6222_v34, %v20086_v41  ;;  %v6224_v7 = vpop.f32.mrb[181].mxu1  ;;  %9691 = vmatpush1.bf16.msra.mxu0 %v9521_v2  ;;  %v6186_v46 = vpop.f32.mrb[183].mxu0  ;;  %9722 = vmatprep.mubr.bf16.mxu0 %v17187_v12 }
 0x2d4   : > { %v20209_v10 = vadd.f32 %v6224_v7, %v20092_v20  ;;  %11447 = vrot.lane.b32.xlu0 %v20181_v23, %s17220_s8  ;;  %v9794_v52 = vpop.permute.xlu1 %9793  ;;  %v6226_v53 = vpop.f32.mrb[182].mxu1 }
 0x2d5   : > { %16840 = vmatmul.mubr.msk.bf16.vlgmr.msra.gmra.mrb[28].mxu1 %vm253_vm2, %v20122_v14  ;;  %v6227_v9 = vpop.f32.mrb[183].mxu1  ;;  %v9812_v41 = vsel %vm9811_vm0, %v9792_v58, %v9794_v52 }
 0x2d6   : > { %v9796_v31 = vpop.permute.xlu0 %9795  ;;  %11449 = vrot.lane.b32.xlu1 %v20202_v51, %s17220_s8  ;;  %9886 = vmatprep.mubr.bf16.mxu1 %v17187_v12  ;;  %v9825_v59 = vsel %vm257_vm1, %v9812_v41, 0 }
 0x2d7   : > { %v6263_v33 = vpop.f32.mrb[184].mxu0  ;;  %v9813_v20 = vsel %vm9811_vm0, %v9794_v52, %v9796_v31 }
 0x2d8   : > { %v20221_v1 = vadd.f32 %v6263_v33, %v20107_v56  ;;  %11759 = vrot.lane.b32.xlu0 %v20081_v13, %s17221_s11  ;;  %v6265_v11 = vpop.f32.mrb[185].mxu0  ;;  %16842 = vmatmul.mubr.msk.bf16.vlgmr.msra.gmra.mrb[32].mxu0 %vm253_vm2, %v20122_v14  ;;  %v9798_v35 = vpop.permute.xlu1 %9797 }
 0x2d9   : > { %v20228_v3 = vadd.f32 %v6265_v11, %v20113_v30  ;;  %16845 = vmatprep.subr.msk.bf16.mxu1 %vm257_vm1, %v9813_v20  ;;  %v9814_v22 = vsel %vm9811_vm0, %v9796_v31, %v9798_v35  ;;  %v6267_v56 = vpop.f32.mrb[186].mxu0  ;;  %9927 = vmatprep.mubr.bf16.mxu0 %v17187_v12  ;;  %v20239_v30 = vld [vmem:[%s21999_s1 + $0x74] sm:$0xf] }
 0x2da   : > { %v6304_v26 = vpop.f32.mrb[184].mxu1  ;;  %9855 = vmatpush1.bf16.msra.mxu1 %v9825_v59  ;;  %v9800_v0 = vpop.permute.xlu0 %9799  ;;  %11761 = vrot.lane.b32.xlu1 %v20101_v4, %s17221_s11  ;;  %v9831_v37 = vsel %vm257_vm1, %v9814_v22, 0 }
 0x2db   : > { %v20242_v14 = vadd.f32 %v6304_v26, %v20136_v24  ;;  %v6306_v39 = vpop.f32.mrb[185].mxu1  ;;  %v9815_v38 = vsel %vm9811_vm0, %v9798_v35, %v9800_v0  ;;  %v6268_v54 = vpop.f32.mrb[187].mxu0 }
 0x2dc   : > { %v20246_v25 = vadd.f32 %v6306_v39, %v20143_v21  ;;  %11763 = vrot.lane.b32.xlu0 %v20104_v45, %s17221_s11  ;;  %16847 = vmatprep.subr.msk.bf16.mxu0 %vm257_vm1, %v9815_v38  ;;  %v9802_v49 = vpop.permute.xlu1 %9801  ;;  %v6308_v29 = vpop.f32.mrb[186].mxu1 }
 0x2dd   : > { %16846 = vmatmul.mubr.msk.bf16.vlgmr.msra.gmra.mrb[32].mxu1 %vm253_vm2, %v20239_v30  ;;  %9896 = vmatpush1.bf16.msra.mxu0 %v9831_v37  ;;  %v6309_v24 = vpop.f32.mrb[187].mxu1  ;;  %v9816_v48 = vsel %vm9811_vm0, %v9800_v0, %v9802_v49 }
 0x2de   : > { %v9804_v15 = vpop.permute.xlu0 %9803  ;;  %11765 = vrot.lane.b32.xlu1 %v20129_v50, %s17221_s11  ;;  %9968 = vmatprep.mubr.bf16.mxu1 %v17187_v12  ;;  %v9837_v36 = vsel %vm257_vm1, %v9816_v48, 0 }
 0x2df   : > { %v6345_v21 = vpop.f32.mrb[188].mxu0  ;;  %v9817_v28 = vsel %vm9811_vm0, %v9802_v49, %v9804_v15 }
 0x2e0   : > { %v20260_v6 = vadd.f32 %v6345_v21, %v20159_v60  ;;  %11767 = vrot.lane.b32.xlu0 %v20132_v43, %s17221_s11  ;;  %v6347_v18 = vpop.f32.mrb[189].mxu0  ;;  %16848 = vmatmul.mubr.msk.bf16.vlgmr.msra.gmra.mrb[36].mxu0 %vm253_vm2, %v20239_v30  ;;  %v9806_v47 = vpop.permute.xlu1 %9805 }
 0x2e1   : > { %v20267_v57 = vadd.f32 %v6347_v18, %v20163_v55  ;;  %16849 = vmatprep.subr.msk.bf16.mxu1 %vm257_vm1, %v9817_v28  ;;  %v9818_v27 = vsel %vm9811_vm0, %v9804_v15, %v9806_v47  ;;  %v6349_v63 = vpop.f32.mrb[190].mxu0  ;;  %10009 = vmatprep.mubr.bf16.mxu0 %v17187_v12 }
 0x2e2   : > { %v6520_v60 = vpop.f32.mrb[188].mxu1  ;;  %9937 = vmatpush1.bf16.msra.mxu1 %v9837_v36  ;;  %v9808_v44 = vpop.permute.xlu0 %9807  ;;  %11769 = vrot.lane.b32.xlu1 %v20153_v40, %s17221_s11  ;;  %v9843_v2 = vsel %vm257_vm1, %v9818_v27, 0 }
 0x2e3   : > { %v20276_v17 = vadd.f32 %v6520_v60, %v20184_v61  ;;  %v6522_v55 = vpop.f32.mrb[189].mxu1  ;;  %v9819_v19 = vsel %vm9811_vm0, %v9806_v47, %v9808_v44  ;;  %v6350_v32 = vpop.f32.mrb[191].mxu0 }
 0x2e4   : > { %v20280_v34 = vadd.f32 %v6522_v55, %v20191_v16  ;;  %11771 = vrot.lane.b32.xlu0 %v20156_v8, %s17221_s11  ;;  %16851 = vmatprep.subr.msk.bf16.mxu0 %vm257_vm1, %v9819_v19  ;;  %v9810_v58 = vpop.permute.xlu1 %9809  ;;  %v6524_v7 = vpop.f32.mrb[190].mxu1 }
 0x2e5   : > { %16850 = vmatmul.mubr.msk.bf16.vlgmr.msra.gmra.mrb[36].mxu1 %vm253_vm2, %v20239_v30  ;;  %v9820_v61 = vsel %vm9811_vm0, %v9808_v44, %v9810_v58  ;;  %9978 = vmatpush1.bf16.msra.mxu0 %v9843_v2  ;;  %v6525_v46 = vpop.f32.mrb[191].mxu1  ;;  %vm14468_vm0 = vcmask 220160  }
 0x2e6   : > { %v10120_v52 = vpop.permute.xlu0 %10119  ;;  %11773 = vrot.lane.b32.xlu1 %v20176_v62, %s17221_s11  ;;  %16853 = vmatprep.subr.msk.bf16.mxu1 %vm257_vm1, %v9810_v58  ;;  %v9849_v16 = vsel %vm257_vm1, %v9820_v61, 0 }
 0x2e7   : > { %v6561_v53 = vpop.f32.mrb[192].mxu0  ;;  %10019 = vmatpush1.bf16.msra.mxu1 %v9849_v16  ;;  %10050 = vmatprep.mubr.bf16.mxu1 %v17187_v12 }
 0x2e8   : > { %v20295_v9 = vadd.f32 %v6561_v53, %v20205_v42  ;;  %11775 = vrot.lane.b32.xlu0 %v20181_v23, %s17221_s11  ;;  %v6563_v41 = vpop.f32.mrb[193].mxu0  ;;  %16852 = vmatmul.mubr.msk.bf16.vlgmr.msra.gmra.mrb[40].mxu0 %vm253_vm2, %v20239_v30  ;;  %v10122_v31 = vpop.permute.xlu1 %10121 }
 0x2e9   : > { %v20302_v33 = vadd.f32 %v6563_v41, %v20209_v10  ;;  %v10140_v20 = vsel %vm10139_vm3, %v10120_v52, %v10122_v31  ;;  %v6565_v11 = vpop.f32.mrb[194].mxu0  ;;  %10214 = vmatprep.mubr.bf16.mxu0 %v17187_v12 }
 0x2ea   : > { %v6602_v35 = vpop.f32.mrb[192].mxu1  ;;  %v10124_v22 = vpop.permute.xlu0 %10123  ;;  %11777 = vrot.lane.b32.xlu1 %v20202_v51, %s17221_s11  ;;  %v10153_v39 = vsel %vm257_vm1, %v10140_v20, 0 }
 0x2eb   : > { %v20309_v42 = vadd.f32 %v6602_v35, %v20221_v1  ;;  %v6604_v59 = vpop.f32.mrb[193].mxu1  ;;  %v10141_v56 = vsel %vm10139_vm3, %v10122_v31, %v10124_v22  ;;  %v6566_v26 = vpop.f32.mrb[195].mxu0 }
 0x2ec   : > { %v20313_v10 = vadd.f32 %v6604_v59, %v20228_v3  ;;  %12087 = vrot.lane.b32.xlu0 %v20081_v13, %s17222_s16  ;;  %16857 = vmatprep.subr.msk.bf16.mxu0 %vm257_vm1, %v10141_v56  ;;  %v10126_v0 = vpop.permute.xlu1 %10125  ;;  %v6606_v38 = vpop.f32.mrb[194].mxu1  ;;  %v20324_v3 = vld [vmem:[%s21999_s1 + $0x78] sm:$0xf] }
 0x2ed   : > { %16854 = vmatmul.mubr.msk.bf16.vlgmr.msra.gmra.mrb[40].mxu1 %vm253_vm2, %v20239_v30  ;;  %10183 = vmatpush1.bf16.msra.mxu0 %v10153_v39  ;;  %v6607_v1 = vpop.f32.mrb[195].mxu1  ;;  %v10142_v54 = vsel %vm10139_vm3, %v10124_v22, %v10126_v0 }
 0x2ee   : > { %v10128_v49 = vpop.permute.xlu0 %10127  ;;  %12089 = vrot.lane.b32.xlu1 %v20101_v4, %s17222_s16  ;;  %10255 = vmatprep.mubr.bf16.mxu1 %v17187_v12  ;;  %v10159_v28 = vsel %vm257_vm1, %v10142_v54, 0 }
 0x2ef   : > { %v6643_v37 = vpop.f32.mrb[196].mxu0  ;;  %v10143_v29 = vsel %vm10139_vm3, %v10126_v0, %v10128_v49 }
 0x2f0   : > { %v20332_v30 = vadd.f32 %v6643_v37, %v20242_v14  ;;  %12091 = vrot.lane.b32.xlu0 %v20104_v45, %s17222_s16  ;;  %v6645_v24 = vpop.f32.mrb[197].mxu0  ;;  %16858 = vmatmul.mubr.msk.bf16.vlgmr.msra.gmra.mrb[44].mxu0 %vm253_vm2, %v20324_v3  ;;  %v10130_v48 = vpop.permute.xlu1 %10129 }
 0x2f1   : > { %v20339_v15 = vadd.f32 %v6645_v24, %v20246_v25  ;;  %16859 = vmatprep.subr.msk.bf16.mxu1 %vm257_vm1, %v10143_v29  ;;  %v10144_v21 = vsel %vm10139_vm3, %v10128_v49, %v10130_v48  ;;  %v6647_v18 = vpop.f32.mrb[198].mxu0  ;;  %10296 = vmatprep.mubr.bf16.mxu0 %v17187_v12 }
 0x2f2   : > { %v6684_v14 = vpop.f32.mrb[196].mxu1  ;;  %10224 = vmatpush1.bf16.msra.mxu1 %v10159_v28  ;;  %v10132_v47 = vpop.permute.xlu0 %10131  ;;  %12093 = vrot.lane.b32.xlu1 %v20129_v50, %s17222_s16  ;;  %v10165_v55 = vsel %vm257_vm1, %v10144_v21, 0 }
 0x2f3   : > { %v20348_v27 = vadd.f32 %v6684_v14, %v20260_v6  ;;  %v6686_v25 = vpop.f32.mrb[197].mxu1  ;;  %v10145_v36 = vsel %vm10139_vm3, %v10130_v48, %v10132_v47  ;;  %v6648_v63 = vpop.f32.mrb[199].mxu0 }
 0x2f4   : > { %v20352_v60 = vadd.f32 %v6686_v25, %v20267_v57  ;;  %12095 = vrot.lane.b32.xlu0 %v20132_v43, %s17222_s16  ;;  %16861 = vmatprep.subr.msk.bf16.mxu0 %vm257_vm1, %v10145_v36  ;;  %v10134_v44 = vpop.permute.xlu1 %10133  ;;  %v6688_v19 = vpop.f32.mrb[198].mxu1 }
 0x2f5   : > { %16860 = vmatmul.mubr.msk.bf16.vlgmr.msra.gmra.mrb[44].mxu1 %vm253_vm2, %v20324_v3  ;;  %10265 = vmatpush1.bf16.msra.mxu0 %v10165_v55  ;;  %v6689_v6 = vpop.f32.mrb[199].mxu1  ;;  %v10146_v32 = vsel %vm10139_vm3, %v10132_v47, %v10134_v44 }
 0x2f6   : > { %v10136_v58 = vpop.permute.xlu0 %10135  ;;  %12097 = vrot.lane.b32.xlu1 %v20153_v40, %s17222_s16  ;;  %10337 = vmatprep.mubr.bf16.mxu1 %v17187_v12  ;;  %v10171_v53 = vsel %vm257_vm1, %v10146_v32, 0 }
 0x2f7   : > { %v6859_v57 = vpop.f32.mrb[200].mxu0  ;;  %v10147_v2 = vsel %vm10139_vm3, %v10134_v44, %v10136_v58 }
 0x2f8   : > { %v20366_v7 = vadd.f32 %v6859_v57, %v20276_v17  ;;  %12099 = vrot.lane.b32.xlu0 %v20156_v8, %s17222_s16  ;;  %v6861_v61 = vpop.f32.mrb[201].mxu0  ;;  %16862 = vmatmul.mubr.msk.bf16.vlgmr.msra.gmra.mrb[48].mxu0 %vm253_vm2, %v20324_v3  ;;  %v10138_v46 = vpop.permute.xlu1 %10137 }
 0x2f9   : > { %v20373_v52 = vadd.f32 %v6861_v61, %v20280_v34  ;;  %16863 = vmatprep.subr.msk.bf16.mxu1 %vm257_vm1, %v10147_v2  ;;  %v10148_v16 = vsel %vm10139_vm3, %v10136_v58, %v10138_v46  ;;  %16865 = vmatprep.subr.msk.bf16.mxu0 %vm257_vm1, %v10138_v46  ;;  %v6863_v17 = vpop.f32.mrb[202].mxu0  ;;  %vm14807_vm3 = vcmask 211968  }
 0x2fa   : > { %v6900_v41 = vpop.f32.mrb[200].mxu1  ;;  %10306 = vmatpush1.bf16.msra.mxu1 %v10171_v53  ;;  %v10448_v31 = vpop.permute.xlu0 %10447  ;;  %12101 = vrot.lane.b32.xlu1 %v20176_v62, %s17222_s16  ;;  %v10177_v20 = vsel %vm257_vm1, %v10148_v16, 0 }
 0x2fb   : > { %v20383_v34 = vadd.f32 %v6900_v41, %v20295_v9  ;;  %v6902_v11 = vpop.f32.mrb[201].mxu1  ;;  %10347 = vmatpush1.bf16.msra.mxu0 %v10177_v20  ;;  %v6864_v35 = vpop.f32.mrb[203].mxu0  ;;  %10378 = vmatprep.mubr.bf16.mxu0 %v17187_v12 }
 0x2fc   : > { %v20387_v22 = vadd.f32 %v6902_v11, %v20302_v33  ;;  %12103 = vrot.lane.b32.xlu0 %v20181_v23, %s17222_s16  ;;  %v10450_v59 = vpop.permute.xlu1 %10449  ;;  %v6904_v56 = vpop.f32.mrb[202].mxu1 }
 0x2fd   : > { %16864 = vmatmul.mubr.msk.bf16.vlgmr.msra.gmra.mrb[48].mxu1 %vm253_vm2, %v20324_v3  ;;  %v6905_v26 = vpop.f32.mrb[203].mxu1  ;;  %v10468_v9 = vsel %vm10467_vm4, %v10448_v31, %v10450_v59 }
 0x2fe   : > { %v10452_v0 = vpop.permute.xlu0 %10451  ;;  %12105 = vrot.lane.b32.xlu1 %v20202_v51, %s17222_s16  ;;  %10542 = vmatprep.mubr.bf16.mxu1 %v17187_v12  ;;  %v10481_v29 = vsel %vm257_vm1, %v10468_v9, 0 }
 0x2ff   : > { %v6941_v39 = vpop.f32.mrb[204].mxu0  ;;  %v10469_v33 = vsel %vm10467_vm4, %v10450_v59, %v10452_v0 }
 0x300   : > { %v20399_v38 = vadd.f32 %v6941_v39, %v20309_v42  ;;  %12415 = vrot.lane.b32.xlu0 %v20081_v13, %s17223_s20  ;;  %v6943_v1 = vpop.f32.mrb[205].mxu0  ;;  %16866 = vmatmul.mubr.msk.bf16.vlgmr.msra.gmra.mrb[52].mxu0 %vm253_vm2, %v20324_v3  ;;  %v10454_v54 = vpop.permute.xlu1 %10453 }
 0x301   : > { %v20406_v49 = vadd.f32 %v6943_v1, %v20313_v10  ;;  %16869 = vmatprep.subr.msk.bf16.mxu1 %vm257_vm1, %v10469_v33  ;;  %v10470_v37 = vsel %vm10467_vm4, %v10452_v0, %v10454_v54  ;;  %v6945_v42 = vpop.f32.mrb[206].mxu0  ;;  %10583 = vmatprep.mubr.bf16.mxu0 %v17187_v12  ;;  %v20417_v10 = vld [vmem:[%s21999_s1 + $0x7c] sm:$0xf] }
 0x302   : > { %v6982_v24 = vpop.f32.mrb[204].mxu1  ;;  %10511 = vmatpush1.bf16.msra.mxu1 %v10481_v29  ;;  %v10456_v48 = vpop.permute.xlu0 %10455  ;;  %12417 = vrot.lane.b32.xlu1 %v20101_v4, %s17223_s20  ;;  %v10487_v25 = vsel %vm257_vm1, %v10470_v37, 0 }
 0x303   : > { %v20420_v3 = vadd.f32 %v6982_v24, %v20332_v30  ;;  %v6984_v21 = vpop.f32.mrb[205].mxu1  ;;  %v10471_v28 = vsel %vm10467_vm4, %v10454_v54, %v10456_v48  ;;  %v6946_v18 = vpop.f32.mrb[207].mxu0 }
 0x304   : > { %v20424_v14 = vadd.f32 %v6984_v21, %v20339_v15  ;;  %12419 = vrot.lane.b32.xlu0 %v20104_v45, %s17223_s20  ;;  %16871 = vmatprep.subr.msk.bf16.mxu0 %vm257_vm1, %v10471_v28  ;;  %v10458_v47 = vpop.permute.xlu1 %10457  ;;  %v6986_v36 = vpop.f32.mrb[206].mxu1 }
 0x305   : > { %16870 = vmatmul.mubr.msk.bf16.vlgmr.msra.gmra.mrb[52].mxu1 %vm253_vm2, %v20417_v10  ;;  %10552 = vmatpush1.bf16.msra.mxu0 %v10487_v25  ;;  %v6987_v30 = vpop.f32.mrb[207].mxu1  ;;  %v10472_v63 = vsel %vm10467_vm4, %v10456_v48, %v10458_v47 }
 0x306   : > { %v10460_v44 = vpop.permute.xlu0 %10459  ;;  %12421 = vrot.lane.b32.xlu1 %v20129_v50, %s17223_s20  ;;  %10624 = vmatprep.mubr.bf16.mxu1 %v17187_v12  ;;  %v10493_v2 = vsel %vm257_vm1, %v10472_v63, 0 }
 0x307   : > { %v7023_v15 = vpop.f32.mrb[208].mxu0  ;;  %v10473_v55 = vsel %vm10467_vm4, %v10458_v47, %v10460_v44 }
 0x308   : > { %v20438_v19 = vadd.f32 %v7023_v15, %v20348_v27  ;;  %12423 = vrot.lane.b32.xlu0 %v20132_v43, %s17223_s20  ;;  %v7025_v6 = vpop.f32.mrb[209].mxu0  ;;  %16872 = vmatmul.mubr.msk.bf16.vlgmr.msra.gmra.mrb[56].mxu0 %vm253_vm2, %v20417_v10  ;;  %v10462_v32 = vpop.permute.xlu1 %10461 }
 0x309   : > { %v20445_v58 = vadd.f32 %v7025_v6, %v20352_v60  ;;  %16873 = vmatprep.subr.msk.bf16.mxu1 %vm257_vm1, %v10473_v55  ;;  %v10474_v57 = vsel %vm10467_vm4, %v10460_v44, %v10462_v32  ;;  %v7027_v61 = vpop.f32.mrb[210].mxu0  ;;  %10665 = vmatprep.mubr.bf16.mxu0 %v17187_v12  ;;  %v12695_v6 = vld [vmem:[%s17271_s17 + $0x12] sm:$0x3f] }
 0x30a   : > { %v7198_v27 = vpop.f32.mrb[208].mxu1  ;;  %10593 = vmatpush1.bf16.msra.mxu1 %v10493_v2  ;;  %v10464_v46 = vpop.permute.xlu0 %10463  ;;  %12425 = vrot.lane.b32.xlu1 %v20153_v40, %s17223_s20  ;;  %v10499_v20 = vsel %vm257_vm1, %v10474_v57, 0 }
 0x30b   : > { %v20454_v16 = vadd.f32 %v7198_v27, %v20366_v7  ;;  %v7200_v60 = vpop.f32.mrb[209].mxu1  ;;  %v10475_v53 = vsel %vm10467_vm4, %v10462_v32, %v10464_v46  ;;  %v7028_v17 = vpop.f32.mrb[211].mxu0 }
 0x30c   : > { %v20458_v41 = vadd.f32 %v7200_v60, %v20373_v52  ;;  %12427 = vrot.lane.b32.xlu0 %v20156_v8, %s17223_s20  ;;  %16875 = vmatprep.subr.msk.bf16.mxu0 %vm257_vm1, %v10475_v53  ;;  %v10466_v31 = vpop.permute.xlu1 %10465  ;;  %v7202_v11 = vpop.f32.mrb[210].mxu1 }
 0x30d   : > { %16874 = vmatmul.mubr.msk.bf16.vlgmr.msra.gmra.mrb[56].mxu1 %vm253_vm2, %v20417_v10  ;;  %v10476_v7 = vsel %vm10467_vm4, %v10464_v46, %v10466_v31  ;;  %10634 = vmatpush1.bf16.msra.mxu0 %v10499_v20  ;;  %v7203_v35 = vpop.f32.mrb[211].mxu1  ;;  %vm15146_vm4 = vcmask 203776  }
 0x30e   : > { %v10776_v59 = vpop.permute.xlu0 %10775  ;;  %12429 = vrot.lane.b32.xlu1 %v20176_v62, %s17223_s20  ;;  %16877 = vmatprep.subr.msk.bf16.mxu1 %vm257_vm1, %v10466_v31  ;;  %v10505_v52 = vsel %vm257_vm1, %v10476_v7, 0  ;;  %v13032_v7 = vld [vmem:[%s17271_s17 + $0x2] sm:$0xff] }
 0x30f   : > { %v7239_v56 = vpop.f32.mrb[212].mxu0  ;;  %10675 = vmatpush1.bf16.msra.mxu1 %v10505_v52  ;;  %10706 = vmatprep.mubr.bf16.mxu1 %v17187_v12 }
 0x310   : > { %v20473_v26 = vadd.f32 %v7239_v56, %v20383_v34  ;;  %12431 = vrot.lane.b32.xlu0 %v20181_v23, %s17223_s20  ;;  %v7241_v9 = vpop.f32.mrb[213].mxu0  ;;  %16876 = vmatmul.mubr.msk.bf16.vlgmr.msra.gmra.mrb[60].mxu0 %vm253_vm2, %v20417_v10  ;;  %v10778_v0 = vpop.permute.xlu1 %10777 }
 0x311   : > { %v20480_v39 = vadd.f32 %v7241_v9, %v20387_v22  ;;  %v10796_v33 = vsel %vm10795_vm5, %v10776_v59, %v10778_v0  ;;  %v7243_v1 = vpop.f32.mrb[214].mxu0  ;;  %10870 = vmatprep.mubr.bf16.mxu0 %v17187_v12 }
 0x312   : > { %v7280_v54 = vpop.f32.mrb[212].mxu1  ;;  %v10780_v37 = vpop.permute.xlu0 %10779  ;;  %12433 = vrot.lane.b32.xlu1 %v20202_v51, %s17223_s20  ;;  %v10809_v48 = vsel %vm257_vm1, %v10796_v33, 0 }
 0x313   : > { %v20487_v23 = vadd.f32 %v7280_v54, %v20399_v38  ;;  %v7282_v34 = vpop.f32.mrb[213].mxu1  ;;  %v10797_v29 = vsel %vm10795_vm5, %v10778_v0, %v10780_v37  ;;  %v7244_v42 = vpop.f32.mrb[215].mxu0  ;;  %v13040_v0 = vcombine.high %v13032_v7, %v13032_v7 }
 0x314   : > { %v20491_v22 = vadd.f32 %v7282_v34, %v20406_v49  ;;  %12751 = vrot.lane.b32.xlu0 %v20081_v13, %s17224_s23  ;;  %16881 = vmatprep.subr.msk.bf16.mxu0 %vm257_vm1, %v10797_v29  ;;  %v10782_v24 = vpop.permute.xlu1 %10781  ;;  %v7284_v51 = vpop.f32.mrb[214].mxu1  ;;  %v20502_v49 = vld [vmem:[%s21999_s1 + $0x80] sm:$0xf] }
 0x315   : > { %16878 = vmatmul.mubr.msk.bf16.vlgmr.msra.gmra.mrb[60].mxu1 %vm253_vm2, %v20417_v10  ;;  %10839 = vmatpush1.bf16.msra.mxu0 %v10809_v48  ;;  %v7285_v38 = vpop.f32.mrb[215].mxu1  ;;  %v10798_v21 = vsel %vm10795_vm5, %v10780_v37, %v10782_v24  ;;  %v20573_v37 = vrot.slane %v13032_v7, %v17266_v5 }
 0x316   : > { %v10784_v28 = vpop.permute.xlu0 %10783  ;;  %12753 = vrot.lane.b32.xlu1 %v20101_v4, %s17224_s23  ;;  %10911 = vmatprep.mubr.bf16.mxu1 %v17187_v12  ;;  %v10815_v30 = vsel %vm257_vm1, %v10798_v21, 0 }
 0x317   : > { %v7321_v13 = vpop.f32.mrb[216].mxu0  ;;  %v10799_v18 = vsel %vm10795_vm5, %v10782_v24, %v10784_v28  ;;  %v20582_v24 = vrot.slane %v13040_v0, %v17266_v5  ;;  %v20589_v38 = vcombine.high %v20573_v37, %v20573_v37 }
 0x318   : > { %v20510_v10 = vadd.f32 %v7321_v13, %v20420_v3  ;;  %12755 = vrot.lane.b32.xlu0 %v20104_v45, %s17224_s23  ;;  %v7323_v47 = vpop.f32.mrb[217].mxu0  ;;  %16882 = vmatmul.mubr.msk.bf16.vlgmr.msra.gmra.mrb[64].mxu0 %vm253_vm2, %v20502_v49  ;;  %v10786_v25 = vpop.permute.xlu1 %10785 }
 0x319   : > { %v20517_v36 = vadd.f32 %v7323_v47, %v20424_v14  ;;  %16883 = vmatprep.subr.msk.bf16.mxu1 %vm257_vm1, %v10799_v18  ;;  %v10800_v4 = vsel %vm10795_vm5, %v10784_v28, %v10786_v25  ;;  %v7325_v3 = vpop.f32.mrb[218].mxu0  ;;  %10952 = vmatprep.mubr.bf16.mxu0 %v17187_v12  ;;  %v13033_v47 = vld [vmem:[%s17271_s17 + $0xa] sm:$0xff] }
 0x31a   : > { %v7362_v63 = vpop.f32.mrb[216].mxu1  ;;  %10880 = vmatpush1.bf16.msra.mxu1 %v10815_v30  ;;  %v10788_v45 = vpop.permute.xlu0 %10787  ;;  %12757 = vrot.lane.b32.xlu1 %v20129_v50, %s17224_s23  ;;  %v10821_v2 = vsel %vm257_vm1, %v10800_v4, 0 }
 0x31b   : > { %v20526_v44 = vadd.f32 %v7362_v63, %v20438_v19  ;;  %v7364_v14 = vpop.f32.mrb[217].mxu1  ;;  %v10801_v15 = vsel %vm10795_vm5, %v10786_v25, %v10788_v45  ;;  %v7326_v55 = vpop.f32.mrb[219].mxu0 }
 0x31c   : > { %v20531_v32 = vadd.f32 %v7364_v14, %v20445_v58  ;;  %12759 = vrot.lane.b32.xlu0 %v20132_v43, %s17224_s23  ;;  %16885 = vmatprep.subr.msk.bf16.mxu0 %vm257_vm1, %v10801_v15  ;;  %v10790_v57 = vpop.permute.xlu1 %10789  ;;  %v7366_v50 = vpop.f32.mrb[218].mxu1  ;;  %v12742_v43 = vrot.slane %v12695_v6, %v17266_v5 }
 0x31d   : > { %16884 = vmatmul.mubr.msk.bf16.vlgmr.msra.gmra.mrb[64].mxu1 %vm253_vm2, %v20502_v49  ;;  %10921 = vmatpush1.bf16.msra.mxu0 %v10821_v2  ;;  %v7367_v19 = vpop.f32.mrb[219].mxu1  ;;  %v10802_v61 = vsel %vm10795_vm5, %v10788_v45, %v10790_v57 }
 0x31e   : > { %v10792_v27 = vpop.permute.xlu0 %10791  ;;  %12761 = vrot.lane.b32.xlu1 %v20153_v40, %s17224_s23  ;;  %10993 = vmatprep.mubr.bf16.mxu1 %v17187_v12  ;;  %v12735_v40 = vcombine.high %v12695_v6, %v12695_v6  ;;  %v10827_v11 = vsel %vm257_vm1, %v10802_v61, 0  ;;  %v20622_v6 = vrot.slane %v13033_v47, %v17266_v5 }
 0x31f   : > { %v7537_v58 = vpop.f32.mrb[220].mxu0  ;;  %v10803_v46 = vsel %vm10795_vm5, %v10790_v57, %v10792_v27  ;;  %v13057_v57 = vcombine.high %v13033_v47, %v13033_v47 }
 0x320   : > { %v20546_v60 = vadd.f32 %v7537_v58, %v20454_v16  ;;  %12763 = vrot.lane.b32.xlu0 %v20156_v8, %s17224_s23  ;;  %v7539_v53 = vpop.f32.mrb[221].mxu0  ;;  %16886 = vmatmul.mubr.msk.bf16.vlgmr.msra.gmra.mrb[68].mxu0 %vm253_vm2, %v20502_v49  ;;  %v10794_v17 = vpop.permute.xlu1 %10793  ;;  %v12749_v54 = vrot.slane %v12735_v40, %v17266_v5  ;;  %v20640_v58 = vcombine.high %v20622_v6, %v20622_v6 }
 0x321   : > { %v20553_v31 = vadd.f32 %v7539_v53, %v20458_v41  ;;  %16887 = vmatprep.subr.msk.bf16.mxu1 %vm257_vm1, %v10803_v46  ;;  %v10804_v20 = vsel %vm10795_vm5, %v10792_v27, %v10794_v17  ;;  %16889 = vmatprep.subr.msk.bf16.mxu0 %vm257_vm1, %v10794_v17  ;;  %v7541_v16 = vpop.f32.mrb[222].mxu0  ;;  %v12750_v41 = vcombine.high %v12742_v43, %v12742_v43  ;;  %vm15485_vm5 = vcmask 195584  }
 0x322   : > { %v7578_v8 = vpop.f32.mrb[220].mxu1  ;;  %10962 = vmatpush1.bf16.msra.mxu1 %v10827_v11  ;;  %v11104_v35 = vpop.permute.xlu0 %11103  ;;  %12765 = vrot.lane.b32.xlu1 %v20176_v62, %s17224_s23  ;;  %v10833_v59 = vsel %vm257_vm1, %v10804_v20, 0  ;;  %v20643_v46 = vrot.slane %v13057_v57, %v17266_v5  ;;  %v13034_v11 = vld [vmem:[%s17271_s17 + $0x12] sm:$0x3f]  ;;  %v20711_v57 = vld [vmem:[%s21999_s1 + $0x88] sm:$0xf] }
 0x323   : > { %v20564_v52 = vadd.f32 %v7578_v8, %v20473_v26  ;;  %v7580_v56 = vpop.f32.mrb[221].mxu1  ;;  %11003 = vmatpush1.bf16.msra.mxu0 %v10833_v59  ;;  %v7542_v9 = vpop.f32.mrb[223].mxu0  ;;  %11034 = vmatprep.mubr.bf16.mxu0 %v17187_v12 }
 0x324   : > { %v20568_v33 = vadd.f32 %v7580_v56, %v20480_v39  ;;  %12767 = vrot.lane.b32.xlu0 %v12742_v43, %s17224_s23  ;;  %v11106_v1 = vpop.permute.xlu1 %11105  ;;  %v7582_v62 = vpop.f32.mrb[222].mxu1  ;;  %v20668_v0 = vcombine.high %v20643_v46, %v20643_v46 }
 0x325   : > { %16888 = vmatmul.mubr.msk.bf16.vlgmr.msra.gmra.mrb[68].mxu1 %vm253_vm2, %v20502_v49  ;;  %v7583_v26 = vpop.f32.mrb[223].mxu1  ;;  %v11124_v34 = vsel %vm11123_vm6, %v11104_v35, %v11106_v1 }
 0x326   : > { %v11108_v29 = vpop.permute.xlu0 %11107  ;;  %12769 = vrot.lane.b32.xlu1 %v12750_v41, %s17224_s23  ;;  %11198 = vmatprep.mubr.bf16.mxu1 %v17187_v12  ;;  %v11137_v13 = vsel %vm257_vm1, %v11124_v34, 0 }
 0x327   : > { %v7619_v39 = vpop.f32.mrb[224].mxu0  ;;  %v11125_v42 = vsel %vm11123_vm6, %v11106_v1, %v11108_v29  ;;  %v13081_v1 = vrot.slane %v13034_v11, %v17266_v5 }
 0x328   : > { %12771 = vrot.lane.b32.xlu0 %v12749_v54, %s17224_s23  ;;  %v7621_v48 = vpop.f32.mrb[225].mxu0  ;;  %16890 = vmatmul.mubr.msk.bf16.vlgmr.msra.gmra.mrb[72].mxu0 %vm253_vm2, %v20502_v49  ;;  %v11110_v51 = vpop.permute.xlu1 %11109  ;;  %v20592_v21 = vadd.f32 %v7619_v39, %v20487_v23  ;;  %v20607_v23 = vld [vmem:[%s21999_s1 + $0x84] sm:$0xf] }
 0x329   : > { %16893 = vmatprep.subr.msk.bf16.mxu1 %vm257_vm1, %v11125_v42  ;;  %v11126_v28 = vsel %vm11123_vm6, %v11108_v29, %v11110_v51  ;;  %v7623_v18 = vpop.f32.mrb[226].mxu0  ;;  %11239 = vmatprep.mubr.bf16.mxu0 %v17187_v12  ;;  %v20600_v49 = vadd.f32 %v7621_v48, %v20491_v22  ;;  %v20612_v22 = vcombine.high %v20582_v24, %v20582_v24 }
 0x32a   : > { %v7660_v25 = vpop.f32.mrb[224].mxu1  ;;  %11167 = vmatpush1.bf16.msra.mxu1 %v11137_v13  ;;  %v11112_v4 = vpop.permute.xlu0 %11111  ;;  %13090 = vrot.lane.b32.xlu1 %v20573_v37, %s17225_s26  ;;  %v11143_v15 = vsel %vm257_vm1, %v11126_v28, 0  ;;  %v13074_v29 = vcombine.high %v13034_v11, %v13034_v11  ;;  %v13089_v48 = vcombine.high %v13081_v1, %v13081_v1 }
 0x32b   : > { %v7662_v30 = vpop.f32.mrb[225].mxu1  ;;  %v11127_v3 = vsel %vm11123_vm6, %v11110_v51, %v11112_v4  ;;  %v7624_v63 = vpop.f32.mrb[227].mxu0  ;;  %v20615_v45 = vadd.f32 %v7660_v25, %v20510_v10 }
 0x32c   : > { %13092 = vrot.lane.b32.xlu0 %v20589_v38, %s17225_s26  ;;  %16895 = vmatprep.subr.msk.bf16.mxu0 %vm257_vm1, %v11127_v3  ;;  %v11114_v14 = vpop.permute.xlu1 %11113  ;;  %v7664_v55 = vpop.f32.mrb[226].mxu1  ;;  %v20625_v2 = vadd.f32 %v7662_v30, %v20517_v36 }
 0x32d   : > { %16894 = vmatmul.mubr.msk.bf16.vlgmr.msra.gmra.mrb[72].mxu1 %vm253_vm2, %v20607_v23  ;;  %11208 = vmatpush1.bf16.msra.mxu0 %v11143_v15  ;;  %v7665_v10 = vpop.f32.mrb[227].mxu1  ;;  %v11128_v50 = vsel %vm11123_vm6, %v11112_v4, %v11114_v14  ;;  %v13088_v4 = vrot.slane %v13074_v29, %v17266_v5 }
 0x32e   : > { %v11116_v19 = vpop.permute.xlu0 %11115  ;;  %13094 = vrot.lane.b32.xlu1 %v20582_v24, %s17225_s26  ;;  %11280 = vmatprep.mubr.bf16.mxu1 %v17187_v12  ;;  %v11149_v40 = vsel %vm257_vm1, %v11128_v50, 0 }
 0x32f   : > { %v7701_v61 = vpop.f32.mrb[228].mxu0  ;;  %v11129_v27 = vsel %vm11123_vm6, %v11114_v14, %v11116_v19 }
 0x330   : > { %13096 = vrot.lane.b32.xlu0 %v20612_v22, %s17225_s26  ;;  %v7703_v36 = vpop.f32.mrb[229].mxu0  ;;  %16896 = vmatmul.mubr.msk.bf16.vlgmr.msra.gmra.mrb[76].mxu0 %vm253_vm2, %v20607_v23  ;;  %v11118_v43 = vpop.permute.xlu1 %11117  ;;  %v20646_v53 = vadd.f32 %v7701_v61, %v20526_v44 }
 0x331   : > { %16897 = vmatprep.subr.msk.bf16.mxu1 %vm257_vm1, %v11129_v27  ;;  %v11130_v17 = vsel %vm11123_vm6, %v11116_v19, %v11118_v43  ;;  %v7705_v20 = vpop.f32.mrb[230].mxu0  ;;  %11321 = vmatprep.mubr.bf16.mxu0 %v17187_v12  ;;  %v20654_v16 = vadd.f32 %v7703_v36, %v20531_v32 }
 0x332   : > { %v7876_v7 = vpop.f32.mrb[228].mxu1  ;;  %11249 = vmatpush1.bf16.msra.mxu1 %v11149_v40  ;;  %v11120_v8 = vpop.permute.xlu0 %11119  ;;  %13098 = vrot.lane.b32.xlu1 %v20622_v6, %s17225_s26  ;;  %v11155_v56 = vsel %vm257_vm1, %v11130_v17, 0 }
 0x333   : > { %v7878_v44 = vpop.f32.mrb[229].mxu1  ;;  %v11131_v35 = vsel %vm11123_vm6, %v11118_v43, %v11120_v8  ;;  %v7706_v59 = vpop.f32.mrb[231].mxu0  ;;  %v20660_v41 = vadd.f32 %v7876_v7, %v20546_v60 }
 0x334   : > { %13100 = vrot.lane.b32.xlu0 %v20640_v58, %s17225_s26  ;;  %16899 = vmatprep.subr.msk.bf16.mxu0 %vm257_vm1, %v11131_v35  ;;  %v11122_v32 = vpop.permute.xlu1 %11121  ;;  %v7880_v9 = vpop.f32.mrb[230].mxu1  ;;  %v20672_v62 = vadd.f32 %v7878_v44, %v20553_v31 }
 0x335   : > { %16898 = vmatmul.mubr.msk.bf16.vlgmr.msra.gmra.mrb[76].mxu1 %vm253_vm2, %v20607_v23  ;;  %v11132_v60 = vsel %vm11123_vm6, %v11120_v8, %v11122_v32  ;;  %11290 = vmatpush1.bf16.msra.mxu0 %v11155_v56  ;;  %v7881_v54 = vpop.f32.mrb[231].mxu1  ;;  %vm15824_vm6 = vcmask 187392  }
 0x336   : > { %v11432_v26 = vpop.permute.xlu0 %11431  ;;  %13102 = vrot.lane.b32.xlu1 %v20643_v46, %s17225_s26  ;;  %16901 = vmatprep.subr.msk.bf16.mxu1 %vm257_vm1, %v11122_v32  ;;  %v11161_v34 = vsel %vm257_vm1, %v11132_v60, 0  ;;  %v13373_v60 = vld [vmem:[%s17271_s17 + $0x12] sm:$0x3f] }
 0x337   : > { %v7917_v39 = vpop.f32.mrb[232].mxu0  ;;  %11331 = vmatpush1.bf16.msra.mxu1 %v11161_v34  ;;  %11362 = vmatprep.mubr.bf16.mxu1 %v17187_v12 }
 0x338   : > { %13104 = vrot.lane.b32.xlu0 %v20668_v0, %s17225_s26  ;;  %v7919_v31 = vpop.f32.mrb[233].mxu0  ;;  %16900 = vmatmul.mubr.msk.bf16.vlgmr.msra.gmra.mrb[80].mxu0 %vm253_vm2, %v20607_v23  ;;  %v11434_v42 = vpop.permute.xlu1 %11433  ;;  %v20687_v51 = vadd.f32 %v7917_v39, %v20564_v52 }
 0x339   : > { %v11452_v28 = vsel %vm11451_vm7, %v11432_v26, %v11434_v42  ;;  %v7921_v13 = vpop.f32.mrb[234].mxu0  ;;  %11526 = vmatprep.mubr.bf16.mxu0 %v17187_v12  ;;  %v20692_v18 = vadd.f32 %v7919_v31, %v20568_v33 }
 0x33a   : > { %v7958_v47 = vpop.f32.mrb[232].mxu1  ;;  %v11436_v25 = vpop.permute.xlu0 %11435  ;;  %13106 = vrot.lane.b32.xlu1 %v13081_v1, %s17225_s26  ;;  %v11465_v15 = vsel %vm257_vm1, %v11452_v28, 0 }
 0x33b   : > { %v20697_v30 = vadd.f32 %v7958_v47, %v20592_v21  ;;  %v7960_v3 = vpop.f32.mrb[233].mxu1  ;;  %v11453_v52 = vsel %vm11451_vm7, %v11434_v42, %v11436_v25  ;;  %v7922_v63 = vpop.f32.mrb[235].mxu0 }
 0x33c   : > { %v20701_v14 = vadd.f32 %v7960_v3, %v20600_v49  ;;  %13108 = vrot.lane.b32.xlu0 %v13089_v48, %s17225_s26  ;;  %16905 = vmatprep.subr.msk.bf16.mxu0 %vm257_vm1, %v11453_v52  ;;  %v11438_v33 = vpop.permute.xlu1 %11437  ;;  %v7962_v55 = vpop.f32.mrb[234].mxu1  ;;  %v13413_v63 = vcombine.high %v13373_v60, %v13373_v60 }
 0x33d   : > { %16902 = vmatmul.mubr.msk.bf16.vlgmr.msra.gmra.mrb[80].mxu1 %vm253_vm2, %v20607_v23  ;;  %11495 = vmatpush1.bf16.msra.mxu0 %v11465_v15  ;;  %v7963_v21 = vpop.f32.mrb[235].mxu1  ;;  %v11454_v49 = vsel %vm11451_vm7, %v11436_v25, %v11438_v33 }
 0x33e   : > { %v11440_v10 = vpop.permute.xlu0 %11439  ;;  %13110 = vrot.lane.b32.xlu1 %v13088_v4, %s17225_s26  ;;  %11567 = vmatprep.mubr.bf16.mxu1 %v17187_v12  ;;  %v11471_v17 = vsel %vm257_vm1, %v11454_v49, 0 }
 0x33f   : > { %v7999_v50 = vpop.f32.mrb[236].mxu0  ;;  %v11455_v19 = vsel %vm11451_vm7, %v11438_v33, %v11440_v10 }
 0x340   : > { %v20718_v61 = vadd.f32 %v7999_v50, %v20615_v45  ;;  %13429 = vrot.lane.b32.xlu0 %v20573_v37, %s17226_s4  ;;  %v8001_v23 = vpop.f32.mrb[237].mxu0  ;;  %16906 = vmatmul.mubr.msk.bf16.vlgmr.msra.gmra.mrb[84].mxu0 %vm253_vm2, %v20711_v57  ;;  %v11442_v27 = vpop.permute.xlu1 %11441 }
 0x341   : > { %v20725_v36 = vadd.f32 %v8001_v23, %v20625_v2  ;;  %16907 = vmatprep.subr.msk.bf16.mxu1 %vm257_vm1, %v11455_v19  ;;  %v11456_v43 = vsel %vm11451_vm7, %v11440_v10, %v11442_v27  ;;  %v8003_v45 = vpop.f32.mrb[238].mxu0  ;;  %11608 = vmatprep.mubr.bf16.mxu0 %v17187_v12  ;;  %v13427_v19 = vrot.slane %v13413_v63, %v17266_v5 }
 0x342   : > { %v8040_v40 = vpop.f32.mrb[236].mxu1  ;;  %11536 = vmatpush1.bf16.msra.mxu1 %v11471_v17  ;;  %v11444_v20 = vpop.permute.xlu0 %11443  ;;  %13431 = vrot.lane.b32.xlu1 %v20589_v38, %s17226_s4  ;;  %v11477_v59 = vsel %vm257_vm1, %v11456_v43, 0 }
 0x343   : > { %v20734_v11 = vadd.f32 %v8040_v40, %v20646_v53  ;;  %v8042_v2 = vpop.f32.mrb[237].mxu1  ;;  %v11457_v7 = vsel %vm11451_vm7, %v11442_v27, %v11444_v20  ;;  %v8004_v8 = vpop.f32.mrb[239].mxu0 }
 0x344   : > { %v20738_v44 = vadd.f32 %v8042_v2, %v20654_v16  ;;  %13433 = vrot.lane.b32.xlu0 %v20582_v24, %s17226_s4  ;;  %16909 = vmatprep.subr.msk.bf16.mxu0 %vm257_vm1, %v11457_v7  ;;  %v11446_v35 = vpop.permute.xlu1 %11445  ;;  %v8044_v32 = vpop.f32.mrb[238].mxu1 }
 0x345   : > { %16908 = vmatmul.mubr.msk.bf16.vlgmr.msra.gmra.mrb[84].mxu1 %vm253_vm2, %v20711_v57  ;;  %11577 = vmatpush1.bf16.msra.mxu0 %v11477_v59  ;;  %v8045_v53 = vpop.f32.mrb[239].mxu1  ;;  %v11458_v56 = vsel %vm11451_vm7, %v11444_v20, %v11446_v35 }
 0x346   : > { %v11448_v9 = vpop.permute.xlu0 %11447  ;;  %13435 = vrot.lane.b32.xlu1 %v20612_v22, %s17226_s4  ;;  %11649 = vmatprep.mubr.bf16.mxu1 %v17187_v12  ;;  %v11483_v31 = vsel %vm257_vm1, %v11458_v56, 0 }
 0x347   : > { %v8215_v16 = vpop.f32.mrb[240].mxu0  ;;  %v11459_v1 = vsel %vm11451_vm7, %v11446_v35, %v11448_v9 }
 0x348   : > { %v20753_v54 = vadd.f32 %v8215_v16, %v20660_v41  ;;  %13437 = vrot.lane.b32.xlu0 %v20622_v6, %s17226_s4  ;;  %v8217_v26 = vpop.f32.mrb[241].mxu0  ;;  %16910 = vmatmul.mubr.msk.bf16.vlgmr.msra.gmra.mrb[88].mxu0 %vm253_vm2, %v20711_v57  ;;  %v11450_v34 = vpop.permute.xlu1 %11449 }
 0x349   : > { %v20760_v29 = vadd.f32 %v8217_v26, %v20672_v62  ;;  %16911 = vmatprep.subr.msk.bf16.mxu1 %vm257_vm1, %v11459_v1  ;;  %v11460_v39 = vsel %vm11451_vm7, %v11448_v9, %v11450_v34  ;;  %16913 = vmatprep.subr.msk.bf16.mxu0 %vm257_vm1, %v11450_v34  ;;  %v8219_v41 = vpop.f32.mrb[242].mxu0  ;;  %v13420_v62 = vrot.slane %v13373_v60, %v17266_v5  ;;  %vm16163_vm7 = vcmask 179200  }
 0x34a   : > { %v8256_v42 = vpop.f32.mrb[240].mxu1  ;;  %11618 = vmatpush1.bf16.msra.mxu1 %v11483_v31  ;;  %v11760_v48 = vpop.permute.xlu0 %11759  ;;  %13439 = vrot.lane.b32.xlu1 %v20640_v58, %s17226_s4  ;;  %v11489_v28 = vsel %vm257_vm1, %v11460_v39, 0 }
 0x34b   : > { %v20771_v13 = vadd.f32 %v8256_v42, %v20687_v51  ;;  %v8258_v47 = vpop.f32.mrb[241].mxu1  ;;  %11659 = vmatpush1.bf16.msra.mxu0 %v11489_v28  ;;  %v8220_v25 = vpop.f32.mrb[243].mxu0  ;;  %11690 = vmatprep.mubr.bf16.mxu0 %v17187_v12  ;;  %v13428_v55 = vcombine.high %v13420_v62, %v13420_v62 }
 0x34c   : > { %v20775_v4 = vadd.f32 %v8258_v47, %v20692_v18  ;;  %13441 = vrot.lane.b32.xlu0 %v20643_v46, %s17226_s4  ;;  %v11762_v3 = vpop.permute.xlu1 %11761  ;;  %v8260_v52 = vpop.f32.mrb[242].mxu1 }
 0x34d   : > { %16912 = vmatmul.mubr.msk.bf16.vlgmr.msra.gmra.mrb[88].mxu1 %vm253_vm2, %v20711_v57  ;;  %v8261_v51 = vpop.f32.mrb[243].mxu1  ;;  %v11780_v33 = vsel %vm11779_vm8, %v11760_v48, %v11762_v3  ;;  %v13712_v52 = vld [vmem:[%s17271_s17 + $0x12] sm:$0x3f] }
 0x34e   : > { %v11764_v15 = vpop.permute.xlu0 %11763  ;;  %13443 = vrot.lane.b32.xlu1 %v20668_v0, %s17226_s4  ;;  %11854 = vmatprep.mubr.bf16.mxu1 %v17187_v12  ;;  %v11793_v43 = vsel %vm257_vm1, %v11780_v33, 0 }
 0x34f   : > { %v8297_v18 = vpop.f32.mrb[244].mxu0  ;;  %v11781_v21 = vsel %vm11779_vm8, %v11762_v3, %v11764_v15 }
 0x350   : > { %v20787_v49 = vadd.f32 %v8297_v18, %v20697_v30  ;;  %13445 = vrot.lane.b32.xlu0 %v13420_v62, %s17226_s4  ;;  %v8299_v10 = vpop.f32.mrb[245].mxu0  ;;  %16914 = vmatmul.mubr.msk.bf16.vlgmr.msra.gmra.mrb[92].mxu0 %vm253_vm2, %v20711_v57  ;;  %v11766_v50 = vpop.permute.xlu1 %11765  ;;  %v20804_v57 = vld [vmem:[%s21999_s1 + $0x8c] sm:$0xf]  ;;  %v13759_v18 = vrot.slane %v13712_v52, %v17266_v5 }
 0x351   : > { %v20794_v23 = vadd.f32 %v8299_v10, %v20701_v14  ;;  %16917 = vmatprep.subr.msk.bf16.mxu1 %vm257_vm1, %v11781_v21  ;;  %v11782_v27 = vsel %vm11779_vm8, %v11764_v15, %v11766_v50  ;;  %v8301_v30 = vpop.f32.mrb[246].mxu0  ;;  %11895 = vmatprep.mubr.bf16.mxu0 %v17187_v12 }
 0x352   : > { %v8338_v17 = vpop.f32.mrb[244].mxu1  ;;  %11823 = vmatpush1.bf16.msra.mxu1 %v11793_v43  ;;  %v11768_v45 = vpop.permute.xlu0 %11767  ;;  %13447 = vrot.lane.b32.xlu1 %v13428_v55, %s17226_s4  ;;  %v11799_v35 = vsel %vm257_vm1, %v11782_v27, 0  ;;  %v13752_v27 = vcombine.high %v13712_v52, %v13712_v52 }
 0x353   : > { %v20807_v14 = vadd.f32 %v8338_v17, %v20718_v61  ;;  %v8340_v40 = vpop.f32.mrb[245].mxu1  ;;  %v11783_v20 = vsel %vm11779_vm8, %v11766_v50, %v11768_v45  ;;  %v8302_v2 = vpop.f32.mrb[247].mxu0 }
 0x354   : > { %v20811_v7 = vadd.f32 %v8340_v40, %v20725_v36  ;;  %13449 = vrot.lane.b32.xlu0 %v13427_v19, %s17226_s4  ;;  %16919 = vmatprep.subr.msk.bf16.mxu0 %vm257_vm1, %v11783_v20  ;;  %v11770_v8 = vpop.permute.xlu1 %11769  ;;  %v8342_v59 = vpop.f32.mrb[246].mxu1  ;;  %s17234_s4 = smov 22  }
 0x355   : > { %16918 = vmatmul.mubr.msk.bf16.vlgmr.msra.gmra.mrb[92].mxu1 %vm253_vm2, %v20804_v57  ;;  %11864 = vmatpush1.bf16.msra.mxu0 %v11799_v35  ;;  %v8343_v61 = vpop.f32.mrb[247].mxu1  ;;  %v11784_v32 = vsel %vm11779_vm8, %v11768_v45, %v11770_v8 }
 0x356   : > { %v11772_v53 = vpop.permute.xlu0 %11771  ;;  %13768 = vrot.lane.b32.xlu1 %v20573_v37, %s17227_s7  ;;  %11936 = vmatprep.mubr.bf16.mxu1 %v17187_v12  ;;  %v11805_v34 = vsel %vm257_vm1, %v11784_v32, 0  ;;  %v13766_v61 = vrot.slane %v13752_v27, %v17266_v5 }
 0x357   : > { %v8379_v36 = vpop.f32.mrb[248].mxu0  ;;  %v11785_v56 = vsel %vm11779_vm8, %v11770_v8, %v11772_v53  ;;  %v13767_v8 = vcombine.high %v13759_v18, %v13759_v18 }
 0x358   : > { %v20824_v9 = vadd.f32 %v8379_v36, %v20734_v11  ;;  %13770 = vrot.lane.b32.xlu0 %v20589_v38, %s17227_s7  ;;  %v8381_v16 = vpop.f32.mrb[249].mxu0  ;;  %16920 = vmatmul.mubr.msk.bf16.vlgmr.msra.gmra.mrb[96].mxu0 %vm253_vm2, %v20804_v57  ;;  %v11774_v1 = vpop.permute.xlu1 %11773 }
 0x359   : > { %v20831_v60 = vadd.f32 %v8381_v16, %v20738_v44  ;;  %16921 = vmatprep.subr.msk.bf16.mxu1 %vm257_vm1, %v11785_v56  ;;  %v11786_v26 = vsel %vm11779_vm8, %v11772_v53, %v11774_v1  ;;  %v8383_v39 = vpop.f32.mrb[250].mxu0  ;;  %11977 = vmatprep.mubr.bf16.mxu0 %v17187_v12 }
 0x35a   : > { %v8554_v11 = vpop.f32.mrb[248].mxu1  ;;  %11905 = vmatpush1.bf16.msra.mxu1 %v11805_v34  ;;  %v11776_v31 = vpop.permute.xlu0 %11775  ;;  %13772 = vrot.lane.b32.xlu1 %v20582_v24, %s17227_s7  ;;  %v11811_v47 = vsel %vm257_vm1, %v11786_v26, 0 }
 0x35b   : > { %v20840_v41 = vadd.f32 %v8554_v11, %v20753_v54  ;;  %v8556_v44 = vpop.f32.mrb[249].mxu1  ;;  %v11787_v42 = vsel %vm11779_vm8, %v11774_v1, %v11776_v31  ;;  %v8384_v48 = vpop.f32.mrb[251].mxu0 }
 0x35c   : > { %v20844_v28 = vadd.f32 %v8556_v44, %v20760_v29  ;;  %13774 = vrot.lane.b32.xlu0 %v20612_v22, %s17227_s7  ;;  %16923 = vmatprep.subr.msk.bf16.mxu0 %vm257_vm1, %v11787_v42  ;;  %v11778_v62 = vpop.permute.xlu1 %11777  ;;  %v8558_v25 = vpop.f32.mrb[250].mxu1 }
 0x35d   : > { %16922 = vmatmul.mubr.msk.bf16.vlgmr.msra.gmra.mrb[96].mxu1 %vm253_vm2, %v20804_v57  ;;  %v11788_v54 = vsel %vm11779_vm8, %v11776_v31, %v11778_v62  ;;  %11946 = vmatpush1.bf16.msra.mxu0 %v11811_v47  ;;  %v8559_v3 = vpop.f32.mrb[251].mxu1 }
 0x35e   : > { %v12088_v63 = vpop.permute.xlu0 %12087  ;;  %13776 = vrot.lane.b32.xlu1 %v20622_v6, %s17227_s7  ;;  %16925 = vmatprep.subr.msk.bf16.mxu1 %vm257_vm1, %v11778_v62  ;;  %v11817_v29 = vsel %vm257_vm1, %v11788_v54, 0 }
 0x35f   : > { %v8595_v51 = vpop.f32.mrb[252].mxu0  ;;  %11987 = vmatpush1.bf16.msra.mxu1 %v11817_v29  ;;  %12018 = vmatprep.mubr.bf16.mxu1 %v17187_v12 }
 0x360   : > { %v20860_v33 = vadd.f32 %v8595_v51, %v20771_v13  ;;  %13778 = vrot.lane.b32.xlu0 %v20640_v58, %s17227_s7  ;;  %v8597_v15 = vpop.f32.mrb[253].mxu0  ;;  %16924 = vmatmul.mubr.msk.bf16.vlgmr.msra.gmra.mrb[100].mxu0 %vm253_vm2, %v20804_v57  ;;  %v12090_v55 = vpop.permute.xlu1 %12089 }
 0x361   : > { %v20868_v21 = vadd.f32 %v8597_v15, %v20775_v4  ;;  %v12108_v10 = vsel %vm12107_vm9, %v12088_v63, %v12090_v55  ;;  %v8599_v50 = vpop.f32.mrb[254].mxu0  ;;  %12182 = vmatprep.mubr.bf16.mxu0 %v17187_v12 }
 0x362   : > { %v8636_v13 = vpop.f32.mrb[252].mxu1  ;;  %v12092_v19 = vpop.permute.xlu0 %12091  ;;  %13780 = vrot.lane.b32.xlu1 %v20643_v46, %s17227_s7  ;;  %v12121_v20 = vsel %vm257_vm1, %v12108_v10, 0 }
 0x363   : > { %v20875_v43 = vadd.f32 %v8636_v13, %v20787_v49  ;;  %v8638_v30 = vpop.f32.mrb[253].mxu1  ;;  %v12109_v17 = vsel %vm12107_vm9, %v12090_v55, %v12092_v19  ;;  %v8600_v45 = vpop.f32.mrb[255].mxu0 }
 0x364   : > { %v20879_v4 = vadd.f32 %v8638_v30, %v20794_v23  ;;  %13782 = vrot.lane.b32.xlu0 %v20668_v0, %s17227_s7  ;;  %16929 = vmatprep.subr.msk.bf16.mxu0 %vm257_vm1, %v12109_v17  ;;  %v12094_v40 = vpop.permute.xlu1 %12093  ;;  %v8640_v2 = vpop.f32.mrb[254].mxu1  ;;  %v20890_v23 = vld [vmem:[%s21999_s1 + $0x90] sm:$0xf] }
 0x365   : > { %16926 = vmatmul.mubr.msk.bf16.vlgmr.msra.gmra.mrb[100].mxu1 %vm253_vm2, %v20804_v57  ;;  %12151 = vmatpush1.bf16.msra.mxu0 %v12121_v20  ;;  %v8641_v49 = vpop.f32.mrb[255].mxu1  ;;  %v12110_v35 = vsel %vm12107_vm9, %v12092_v19, %v12094_v40 }
 0x366   : > { %v12096_v59 = vpop.permute.xlu0 %12095  ;;  %13784 = vrot.lane.b32.xlu1 %v13759_v18, %s17227_s7  ;;  %12223 = vmatprep.mubr.bf16.mxu1 %v17187_v12  ;;  %v12127_v26 = vsel %vm257_vm1, %v12110_v35, 0 }
 0x367   : > { %v8677_v32 = vpop.f32.mrb[0].mxu0  ;;  %v12111_v53 = vsel %vm12107_vm9, %v12094_v40, %v12096_v59 }
 0x368   : > { %v20898_v57 = vadd.f32 %v8677_v32, %v20807_v14  ;;  %13786 = vrot.lane.b32.xlu0 %v13767_v8, %s17227_s7  ;;  %v8679_v36 = vpop.f32.mrb[1].mxu0  ;;  %16930 = vmatmul.mubr.msk.bf16.vlgmr.msra.gmra.mrb[104].mxu0 %vm253_vm2, %v20890_v23  ;;  %v12098_v56 = vpop.permute.xlu1 %12097 }
 0x369   : > { %v20904_v16 = vadd.f32 %v8679_v36, %v20811_v7  ;;  %16931 = vmatprep.subr.msk.bf16.mxu1 %vm257_vm1, %v12111_v53  ;;  %v12112_v1 = vsel %vm12107_vm9, %v12096_v59, %v12098_v56  ;;  %v8681_v34 = vpop.f32.mrb[2].mxu0  ;;  %12264 = vmatprep.mubr.bf16.mxu0 %v17187_v12 }
 0x36a   : > { %v8718_v14 = vpop.f32.mrb[0].mxu1  ;;  %12192 = vmatpush1.bf16.msra.mxu1 %v12127_v26  ;;  %v12100_v39 = vpop.permute.xlu0 %12099  ;;  %13788 = vrot.lane.b32.xlu1 %v13766_v61, %s17227_s7  ;;  %v12133_v62 = vsel %vm257_vm1, %v12112_v1, 0 }
 0x36b   : > { %v20912_v11 = vadd.f32 %v8718_v14, %v20824_v9  ;;  %v8720_v31 = vpop.f32.mrb[1].mxu1  ;;  %v12113_v7 = vsel %vm12107_vm9, %v12098_v56, %v12100_v39  ;;  %v8682_v44 = vpop.f32.mrb[3].mxu0 }
 0x36c   : > { %v20916_v42 = vadd.f32 %v8720_v31, %v20831_v60  ;;  %14107 = vrot.lane.b32.xlu0 %v20573_v37, %s17228_s10  ;;  %16933 = vmatprep.subr.msk.bf16.mxu0 %vm257_vm1, %v12113_v7  ;;  %v12102_v48 = vpop.permute.xlu1 %12101  ;;  %v8722_v47 = vpop.f32.mrb[2].mxu1 }
 0x36d   : > { %16932 = vmatmul.mubr.msk.bf16.vlgmr.msra.gmra.mrb[104].mxu1 %vm253_vm2, %v20890_v23  ;;  %12233 = vmatpush1.bf16.msra.mxu0 %v12133_v62  ;;  %v8723_v9 = vpop.f32.mrb[3].mxu1  ;;  %v12114_v25 = vsel %vm12107_vm9, %v12100_v39, %v12102_v48 }
 0x36e   : > { %v12104_v54 = vpop.permute.xlu0 %12103  ;;  %14109 = vrot.lane.b32.xlu1 %v20589_v38, %s17228_s10  ;;  %12305 = vmatprep.mubr.bf16.mxu1 %v17187_v12  ;;  %v12139_v55 = vsel %vm257_vm1, %v12114_v25, 0 }
 0x36f   : > { %v8893_v60 = vpop.f32.mrb[4].mxu0  ;;  %v12115_v3 = vsel %vm12107_vm9, %v12102_v48, %v12104_v54 }
 0x370   : > { %v20930_v52 = vadd.f32 %v8893_v60, %v20840_v41  ;;  %14111 = vrot.lane.b32.xlu0 %v20582_v24, %s17228_s10  ;;  %v8895_v63 = vpop.f32.mrb[5].mxu0  ;;  %16934 = vmatmul.mubr.msk.bf16.vlgmr.msra.gmra.mrb[108].mxu0 %vm253_vm2, %v20890_v23  ;;  %v12106_v29 = vpop.permute.xlu1 %12105 }
 0x371   : > { %v20937_v51 = vadd.f32 %v8895_v63, %v20844_v28  ;;  %16935 = vmatprep.subr.msk.bf16.mxu1 %vm257_vm1, %v12115_v3  ;;  %v12116_v15 = vsel %vm12107_vm9, %v12104_v54, %v12106_v29  ;;  %16937 = vmatprep.subr.msk.bf16.mxu0 %vm257_vm1, %v12106_v29  ;;  %v8897_v41 = vpop.f32.mrb[6].mxu0  ;;  %v14051_v28 = vld [vmem:[%s17271_s17 + $0x12] sm:$0x3f] }
 0x372   : > { %12274 = vmatpush1.bf16.msra.mxu1 %v12139_v55  ;;  %v12416_v18 = vpop.permute.xlu0 %12415  ;;  %14113 = vrot.lane.b32.xlu1 %v20612_v22, %s17228_s10  ;;  %v12145_v10 = vsel %vm257_vm1, %v12116_v15, 0  ;;  %v8898_v50 = vpop.f32.mrb[7].mxu0  ;;  %v14098_v2 = vrot.slane %v14051_v28, %v17266_v5  ;;  %v14091_v61 = vcombine.high %v14051_v28, %v14051_v28 }
 0x373   : > { %12315 = vmatpush1.bf16.msra.mxu0 %v12145_v10  ;;  %12346 = vmatprep.mubr.bf16.mxu0 %v17187_v12 }
 0x374   : > { %v8934_v13 = vpop.f32.mrb[4].mxu1  ;;  %14115 = vrot.lane.b32.xlu0 %v20622_v6, %s17228_s10  ;;  %v12418_v19 = vpop.permute.xlu1 %12417  ;;  %v14106_v1 = vcombine.high %v14098_v2, %v14098_v2  ;;  %v14105_v31 = vrot.slane %v14091_v61, %v17266_v5 }
 0x375   : > { %v20951_v27 = vadd.f32 %v8934_v13, %v20860_v33  ;;  %v8936_v30 = vpop.f32.mrb[5].mxu1  ;;  %16936 = vmatmul.mubr.msk.bf16.vlgmr.msra.gmra.mrb[108].mxu1 %vm253_vm2, %v20890_v23  ;;  %v12436_v45 = vsel %vm12435_vm10, %v12416_v18, %v12418_v19 }
 0x376   : > { %v20956_v17 = vadd.f32 %v8936_v30, %v20868_v21  ;;  %v12420_v40 = vpop.permute.xlu0 %12419  ;;  %14117 = vrot.lane.b32.xlu1 %v20640_v58, %s17228_s10  ;;  %v8938_v20 = vpop.f32.mrb[6].mxu1  ;;  %12510 = vmatprep.mubr.bf16.mxu1 %v17187_v12  ;;  %v12449_v36 = vsel %vm257_vm1, %v12436_v45, 0 }
 0x377   : > { %v8975_v33 = vpop.f32.mrb[8].mxu0  ;;  %v12437_v8 = vsel %vm12435_vm10, %v12418_v19, %v12420_v40  ;;  %v8939_v49 = vpop.f32.mrb[7].mxu1  ;;  %v14390_v20 = vld [vmem:[%s17271_s17 + $0x12] sm:$0x3f] }
 0x378   : > { %v20965_v35 = vadd.f32 %v8975_v33, %v20875_v43  ;;  %14119 = vrot.lane.b32.xlu0 %v20643_v46, %s17228_s10  ;;  %v8977_v21 = vpop.f32.mrb[9].mxu0  ;;  %16938 = vmatmul.mubr.msk.bf16.vlgmr.msra.gmra.mrb[112].mxu0 %vm253_vm2, %v20890_v23  ;;  %v12422_v59 = vpop.permute.xlu1 %12421  ;;  %v20983_v23 = vld [vmem:[%s21999_s1 + $0x94] sm:$0xf] }
 0x379   : > { %v20972_v32 = vadd.f32 %v8977_v21, %v20879_v4  ;;  %16941 = vmatprep.subr.msk.bf16.mxu1 %vm257_vm1, %v12437_v8  ;;  %v12438_v53 = vsel %vm12435_vm10, %v12420_v40, %v12422_v59  ;;  %v8979_v43 = vpop.f32.mrb[10].mxu0  ;;  %12551 = vmatprep.mubr.bf16.mxu0 %v17187_v12 }
 0x37a   : > { %12479 = vmatpush1.bf16.msra.mxu1 %v12449_v36  ;;  %v12424_v56 = vpop.permute.xlu0 %12423  ;;  %14121 = vrot.lane.b32.xlu1 %v20668_v0, %s17228_s10  ;;  %v8980_v4 = vpop.f32.mrb[11].mxu0  ;;  %v12455_v39 = vsel %vm257_vm1, %v12438_v53, 0 }
 0x37b   : > { %v12439_v26 = vsel %vm12435_vm10, %v12422_v59, %v12424_v56  ;;  %v14727_v4 = vld [vmem:[%s17271_s17 + $0x2] sm:$0xff] }
 0x37c   : > { %v9016_v34 = vpop.f32.mrb[8].mxu1  ;;  %14123 = vrot.lane.b32.xlu0 %v14098_v2, %s17228_s10  ;;  %16943 = vmatprep.subr.msk.bf16.mxu0 %vm257_vm1, %v12439_v26  ;;  %v12426_v14 = vpop.permute.xlu1 %12425 }
 0x37d   : > { %v20991_v7 = vadd.f32 %v9016_v34, %v20898_v57  ;;  %v9018_v44 = vpop.f32.mrb[9].mxu1  ;;  %16942 = vmatmul.mubr.msk.bf16.vlgmr.msra.gmra.mrb[112].mxu1 %vm253_vm2, %v20983_v23  ;;  %12520 = vmatpush1.bf16.msra.mxu0 %v12455_v39  ;;  %v12440_v62 = vsel %vm12435_vm10, %v12424_v56, %v12426_v14 }
 0x37e   : > { %v20996_v48 = vadd.f32 %v9018_v44, %v20904_v16  ;;  %v12428_v47 = vpop.permute.xlu0 %12427  ;;  %14125 = vrot.lane.b32.xlu1 %v14106_v1, %s17228_s10  ;;  %v9020_v9 = vpop.f32.mrb[10].mxu1  ;;  %12592 = vmatprep.mubr.bf16.mxu1 %v17187_v12  ;;  %v12461_v15 = vsel %vm257_vm1, %v12440_v62, 0 }
 0x37f   : > { %v9057_v25 = vpop.f32.mrb[12].mxu0  ;;  %v12441_v57 = vsel %vm12435_vm10, %v12426_v14, %v12428_v47  ;;  %v9021_v54 = vpop.f32.mrb[11].mxu1 }
 0x380   : > { %v21003_v60 = vadd.f32 %v9057_v25, %v20912_v11  ;;  %14127 = vrot.lane.b32.xlu0 %v14105_v31, %s17228_s10  ;;  %v9059_v3 = vpop.f32.mrb[13].mxu0  ;;  %16944 = vmatmul.mubr.msk.bf16.vlgmr.msra.gmra.mrb[116].mxu0 %vm253_vm2, %v20983_v23  ;;  %v12430_v16 = vpop.permute.xlu1 %12429 }
 0x381   : > { %v21009_v63 = vadd.f32 %v9059_v3, %v20916_v42  ;;  %16945 = vmatprep.subr.msk.bf16.mxu1 %vm257_vm1, %v12441_v57  ;;  %v12442_v29 = vsel %vm12435_vm10, %v12428_v47, %v12430_v16  ;;  %v9061_v55 = vpop.f32.mrb[14].mxu0  ;;  %12633 = vmatprep.mubr.bf16.mxu0 %v17187_v12  ;;  %v14735_v47 = vcombine.high %v14727_v4, %v14727_v4 }
 0x382   : > { %12561 = vmatpush1.bf16.msra.mxu1 %v12461_v15  ;;  %v12432_v11 = vpop.permute.xlu0 %12431  ;;  %14446 = vrot.lane.b32.xlu1 %v20573_v37, %s17229_s15  ;;  %v9062_v41 = vpop.f32.mrb[15].mxu0  ;;  %v12467_v10 = vsel %vm257_vm1, %v12442_v29, 0 }
 0x383   : > { %v12443_v18 = vsel %vm12435_vm10, %v12430_v16, %v12432_v11 }
 0x384   : > { %14448 = vrot.lane.b32.xlu0 %v20589_v38, %s17229_s15  ;;  %16947 = vmatprep.subr.msk.bf16.mxu0 %vm257_vm1, %v12443_v18  ;;  %v12434_v42 = vpop.permute.xlu1 %12433 }
 0x385   : > { %16946 = vmatmul.mubr.msk.bf16.vlgmr.msra.gmra.mrb[116].mxu1 %vm253_vm2, %v20983_v23  ;;  %v12444_v50 = vsel %vm12435_vm10, %v12432_v11, %v12434_v42  ;;  %v9232_v28 = vpop.f32.mrb[12].mxu1  ;;  %12602 = vmatpush1.bf16.msra.mxu0 %v12467_v10 }
 0x386   : > { %v21026_v37 = vadd.f32 %v9232_v28, %v20930_v52  ;;  %v12752_v13 = vpop.permute.xlu0 %12751  ;;  %v9234_v19 = vpop.f32.mrb[13].mxu1  ;;  %14450 = vrot.lane.b32.xlu1 %v20582_v24, %s17229_s15  ;;  %16949 = vmatprep.subr.msk.bf16.mxu1 %vm257_vm1, %v12434_v42  ;;  %v12473_v38 = vsel %vm257_vm1, %v12444_v50, 0  ;;  %v21112_v42 = vrot.slane %v14735_v47, %v17266_v5 }
 0x387   : > { %v21033_v30 = vadd.f32 %v9234_v19, %v20937_v51  ;;  %12643 = vmatpush1.bf16.msra.mxu1 %v12473_v38  ;;  %v9236_v45 = vpop.f32.mrb[14].mxu1  ;;  %12674 = vmatprep.mubr.bf16.mxu1 %v17187_v12 }
 0x388   : > { %14452 = vrot.lane.b32.xlu0 %v20612_v22, %s17229_s15  ;;  %16948 = vmatmul.mubr.msk.bf16.vlgmr.msra.gmra.mrb[120].mxu0 %vm253_vm2, %v20983_v23  ;;  %v12754_v52 = vpop.permute.xlu1 %12753  ;;  %v9237_v24 = vpop.f32.mrb[15].mxu1 }
 0x389   : > { %v12774_v40 = vsel %vm12773_vm11, %v12752_v13, %v12754_v52  ;;  %12849 = vmatprep.mubr.bf16.mxu0 %v17187_v12  ;;  %v14728_v13 = vld [vmem:[%s17271_s17 + $0xa] sm:$0xff] }
 0x38a   : > { %v9273_v2 = vpop.f32.mrb[16].mxu0  ;;  %v12756_v51 = vpop.permute.xlu0 %12755  ;;  %14454 = vrot.lane.b32.xlu1 %v20622_v6, %s17229_s15  ;;  %v12788_v59 = vsel %vm257_vm1, %v12774_v40, 0  ;;  %v14437_v6 = vrot.slane %v14390_v20, %v17266_v5  ;;  %v21134_v24 = vrot.slane %v14728_v13, %v17266_v5  ;;  %v14752_v40 = vcombine.high %v14728_v13, %v14728_v13 }
 0x38b   : > { %v21046_v33 = vadd.f32 %v9273_v2, %v20951_v27  ;;  %v9275_v8 = vpop.f32.mrb[17].mxu0  ;;  %v12775_v22 = vsel %vm12773_vm11, %v12754_v52, %v12756_v51  ;;  %v21131_v52 = vcombine.high %v21112_v42, %v21112_v42 }
 0x38c   : > { %v21050_v49 = vadd.f32 %v9275_v8, %v20956_v17  ;;  %14456 = vrot.lane.b32.xlu0 %v20640_v58, %s17229_s15  ;;  %16952 = vmatprep.subr.msk.bf16.mxu0 %vm257_vm1, %v12775_v22  ;;  %v12758_v21 = vpop.permute.xlu1 %12757  ;;  %v9277_v61 = vpop.f32.mrb[18].mxu0  ;;  %v21062_v17 = vld [vmem:[%s21999_s1 + $0x98] sm:$0xf]  ;;  %v14445_v14 = vcombine.high %v14437_v6, %v14437_v6 }
 0x38d   : > { %16950 = vmatmul.mubr.msk.bf16.vlgmr.msra.gmra.mrb[120].mxu1 %vm253_vm2, %v20983_v23  ;;  %v9314_v27 = vpop.f32.mrb[16].mxu1  ;;  %12818 = vmatpush1.bf16.msra.mxu0 %v12788_v59  ;;  %v9278_v53 = vpop.f32.mrb[19].mxu0  ;;  %v12776_v58 = vsel %vm12773_vm11, %v12756_v51, %v12758_v21  ;;  %v14430_v23 = vcombine.high %v14390_v20, %v14390_v20 }
 0x38e   : > { %v21066_v36 = vadd.f32 %v9314_v27, %v20965_v35  ;;  %v12760_v43 = vpop.permute.xlu0 %12759  ;;  %v9316_v56 = vpop.f32.mrb[17].mxu1  ;;  %14458 = vrot.lane.b32.xlu1 %v20643_v46, %s17229_s15  ;;  %12890 = vmatprep.mubr.bf16.mxu1 %v17187_v12  ;;  %v12794_v31 = vsel %vm257_vm1, %v12776_v58, 0  ;;  %v21153_v27 = vcombine.high %v21134_v24, %v21134_v24  ;;  %v21156_v53 = vrot.slane %v14752_v40, %v17266_v5  ;;  %v14729_v58 = vld [vmem:[%s17271_s17 + $0x12] sm:$0x3f] }
 0x38f   : > { %v21073_v1 = vadd.f32 %v9316_v56, %v20972_v32  ;;  %v12777_v26 = vsel %vm12773_vm11, %v12758_v21, %v12760_v43  ;;  %v9318_v34 = vpop.f32.mrb[18].mxu1  ;;  %v21085_v32 = vrot.slane %v14727_v4, %v17266_v5  ;;  %v14444_v62 = vrot.slane %v14430_v23, %v17266_v5 }
 0x390   : > { %14460 = vrot.lane.b32.xlu0 %v20668_v0, %s17229_s15  ;;  %16953 = vmatmul.mubr.msk.bf16.vlgmr.msra.gmra.mrb[124].mxu0 %vm253_vm2, %v21062_v17  ;;  %v12762_v35 = vpop.permute.xlu1 %12761  ;;  %v9319_v39 = vpop.f32.mrb[19].mxu1 }
 0x391   : > { %16954 = vmatprep.subr.msk.bf16.mxu1 %vm257_vm1, %v12777_v26  ;;  %v12778_v46 = vsel %vm12773_vm11, %v12760_v43, %v12762_v35  ;;  %12931 = vmatprep.mubr.bf16.mxu0 %v17187_v12  ;;  %v21103_v55 = vcombine.high %v21085_v32, %v21085_v32  ;;  %v14776_v39 = vrot.slane %v14729_v58, %v17266_v5 }
 0x392   : > { %v9355_v44 = vpop.f32.mrb[20].mxu0  ;;  %12859 = vmatpush1.bf16.msra.mxu1 %v12794_v31  ;;  %v12764_v0 = vpop.permute.xlu0 %12763  ;;  %14462 = vrot.lane.b32.xlu1 %v14437_v6, %s17229_s15  ;;  %v12800_v16 = vsel %vm257_vm1, %v12778_v46, 0 }
 0x393   : > { %v21090_v9 = vadd.f32 %v9355_v44, %v20991_v7  ;;  %v9357_v25 = vpop.f32.mrb[21].mxu0  ;;  %v12779_v57 = vsel %vm12773_vm11, %v12762_v35, %v12764_v0 }
 0x394   : > { %v21094_v54 = vadd.f32 %v9357_v25, %v20996_v48  ;;  %14464 = vrot.lane.b32.xlu0 %v14445_v14, %s17229_s15  ;;  %16956 = vmatprep.subr.msk.bf16.mxu0 %vm257_vm1, %v12779_v57  ;;  %v12766_v3 = vpop.permute.xlu1 %12765  ;;  %v9359_v29 = vpop.f32.mrb[22].mxu0  ;;  %v14769_v25 = vcombine.high %v14729_v58, %v14729_v58 }
 0x395   : > { %16955 = vmatmul.mubr.msk.bf16.vlgmr.msra.gmra.mrb[124].mxu1 %vm253_vm2, %v21062_v17  ;;  %v9396_v7 = vpop.f32.mrb[20].mxu1  ;;  %12900 = vmatpush1.bf16.msra.mxu0 %v12800_v16  ;;  %v9360_v15 = vpop.f32.mrb[23].mxu0  ;;  %v12780_v48 = vsel %vm12773_vm11, %v12764_v0, %v12766_v3 }
 0x396   : > { %v21107_v11 = vadd.f32 %v9396_v7, %v21003_v60  ;;  %v12768_v41 = vpop.permute.xlu0 %12767  ;;  %v9398_v18 = vpop.f32.mrb[21].mxu1  ;;  %14466 = vrot.lane.b32.xlu1 %v14444_v62, %s17229_s15  ;;  %12972 = vmatprep.mubr.bf16.mxu1 %v17187_v12  ;;  %v14784_v7 = vcombine.high %v14776_v39, %v14776_v39 }
 0x397   : > { %v21115_v10 = vadd.f32 %v9398_v18, %v21009_v63  ;;  %v12781_v50 = vsel %vm12773_vm11, %v12766_v3, %v12768_v41  ;;  %v9400_v28 = vpop.f32.mrb[22].mxu1  ;;  %v12806_v63 = vsel %vm257_vm1, %v12780_v48, 0  ;;  %v14783_v18 = vrot.slane %v14769_v25, %v17266_v5 }
 0x398   : > { %14785 = vrot.lane.b32.xlu0 %v21085_v32, %s17230_s19  ;;  %16957 = vmatmul.mubr.msk.bf16.vlgmr.msra.gmra.mrb[128].mxu0 %vm253_vm2, %v21062_v17  ;;  %v12770_v60 = vpop.permute.xlu1 %12769  ;;  %v9401_v19 = vpop.f32.mrb[23].mxu1 }
 0x399   : > { %16958 = vmatprep.subr.msk.bf16.mxu1 %vm257_vm1, %v12781_v50  ;;  %v12782_v38 = vsel %vm12773_vm11, %v12768_v41, %v12770_v60  ;;  %13013 = vmatprep.mubr.bf16.mxu0 %v17187_v12 }
 0x39a   : > { %12941 = vmatpush1.bf16.msra.mxu1 %v12806_v63  ;;  %v12772_v45 = vpop.permute.xlu0 %12771  ;;  %14787 = vrot.lane.b32.xlu1 %v21103_v55, %s17230_s19  ;;  %v12812_v21 = vsel %vm257_vm1, %v12782_v38, 0 }
 0x39b   : > { %v12783_v20 = vsel %vm12773_vm11, %v12770_v60, %v12772_v45  ;;  %v9560_v2 = vpop.f32.mrb[24].mxu0 }
 0x39c   : > { %v21138_v51 = vadd.f32 %v9560_v2, %v21026_v37  ;;  %14789 = vrot.lane.b32.xlu0 %v21112_v42, %s17230_s19  ;;  %v9562_v8 = vpop.f32.mrb[25].mxu0  ;;  %16960 = vmatprep.subr.msk.bf16.mxu0 %vm257_vm1, %v12783_v20  ;;  %v13091_v22 = vpop.permute.xlu1 %13090 }
 0x39d   : > { %v21145_v59 = vadd.f32 %v9562_v8, %v21033_v30  ;;  %16959 = vmatmul.mubr.msk.bf16.vlgmr.msra.gmra.mrb[128].mxu1 %vm253_vm2, %v21062_v17  ;;  %12982 = vmatpush1.bf16.msra.mxu0 %v12812_v21  ;;  %v9564_v37 = vpop.f32.mrb[26].mxu0 }
 0x39e   : > { %v13093_v61 = vpop.permute.xlu0 %13092  ;;  %14791 = vrot.lane.b32.xlu1 %v21131_v52, %s17230_s19  ;;  %v9565_v6 = vpop.f32.mrb[27].mxu0  ;;  %13188 = vmatprep.mubr.bf16.mxu1 %v17187_v12 }
 0x39f   : > { %v13113_v30 = vsel %vm13112_vm12, %v13091_v22, %v13093_v61 }
 0x3a0   : > { %v9601_v43 = vpop.f32.mrb[24].mxu1  ;;  %14793 = vrot.lane.b32.xlu0 %v21134_v24, %s17230_s19  ;;  %16961 = vmatmul.mubr.msk.bf16.vlgmr.msra.gmra.mrb[132].mxu0 %vm253_vm2, %v21062_v17  ;;  %v13095_v56 = vpop.permute.xlu1 %13094  ;;  %v13127_v17 = vsel %vm257_vm1, %v13113_v30, 0 }
 0x3a1   : > { %v21166_v23 = vadd.f32 %v9601_v43, %v21046_v33  ;;  %v9603_v4 = vpop.f32.mrb[25].mxu1  ;;  %v13114_v26 = vsel %vm13112_vm12, %v13093_v61, %v13095_v56  ;;  %13229 = vmatprep.mubr.bf16.mxu0 %v17187_v12  ;;  %v21179_v33 = vcombine.high %v21156_v53, %v21156_v53 }
 0x3a2   : > { %v21171_v34 = vadd.f32 %v9603_v4, %v21050_v49  ;;  %v13097_v35 = vpop.permute.xlu0 %13096  ;;  %14795 = vrot.lane.b32.xlu1 %v21153_v27, %s17230_s19  ;;  %16963 = vmatprep.subr.msk.bf16.mxu1 %vm257_vm1, %v13114_v26  ;;  %v9605_v14 = vpop.f32.mrb[26].mxu1  ;;  %v21185_v49 = vld [vmem:[%s21999_s1 + $0x9c] sm:$0xf] }
 0x3a3   : > { %v9642_v46 = vpop.f32.mrb[28].mxu0  ;;  %13157 = vmatpush1.bf16.msra.mxu1 %v13127_v17  ;;  %v9606_v31 = vpop.f32.mrb[27].mxu1  ;;  %v13115_v44 = vsel %vm13112_vm12, %v13095_v56, %v13097_v35 }
 0x3a4   : > { %v21189_v0 = vadd.f32 %v9642_v46, %v21066_v36  ;;  %14797 = vrot.lane.b32.xlu0 %v21156_v53, %s17230_s19  ;;  %v9644_v62 = vpop.f32.mrb[29].mxu0  ;;  %v13099_v47 = vpop.permute.xlu1 %13098  ;;  %v13133_v48 = vsel %vm257_vm1, %v13115_v44, 0 }
 0x3a5   : > { %v21194_v57 = vadd.f32 %v9644_v62, %v21073_v1  ;;  %v13116_v3 = vsel %vm13112_vm12, %v13097_v35, %v13099_v47  ;;  %v9646_v16 = vpop.f32.mrb[30].mxu0 }
 0x3a6   : > { %v13101_v29 = vpop.permute.xlu0 %13100  ;;  %14799 = vrot.lane.b32.xlu1 %v21179_v33, %s17230_s19  ;;  %16964 = vmatmul.mubr.msk.bf16.vlgmr.msra.gmra.mrb[132].mxu1 %vm253_vm2, %v21185_v49  ;;  %v9647_v36 = vpop.f32.mrb[31].mxu0 }
 0x3a7   : > { %v13117_v15 = vsel %vm13112_vm12, %v13099_v47, %v13101_v29  ;;  %16965 = vmatprep.subr.msk.bf16.mxu0 %vm257_vm1, %v13116_v3  ;;  %13270 = vmatprep.mubr.bf16.mxu1 %v17187_v12  ;;  %v15068_v47 = vld [vmem:[%s17271_s17 + $0x12] sm:$0x3f] }
 0x3a8   : > { %v9683_v1 = vpop.f32.mrb[28].mxu1  ;;  %13198 = vmatpush1.bf16.msra.mxu0 %v13133_v48  ;;  %14801 = vrot.lane.b32.xlu0 %v14776_v39, %s17230_s19  ;;  %v13103_v41 = vpop.permute.xlu1 %13102  ;;  %v13139_v38 = vsel %vm257_vm1, %v13117_v15, 0  ;;  %v15115_v36 = vrot.slane %v15068_v47, %v17266_v5  ;;  %v21280_v15 = vld [vmem:[%s21999_s1 + $0xa0] sm:$0xf] }
 0x3a9   : > { %v21208_v50 = vadd.f32 %v9683_v1, %v21090_v9  ;;  %v9685_v28 = vpop.f32.mrb[29].mxu1  ;;  %v13118_v13 = vsel %vm13112_vm12, %v13101_v29, %v13103_v41 }
 0x3aa   : > { %v21212_v60 = vadd.f32 %v9685_v28, %v21094_v54  ;;  %v13105_v19 = vpop.permute.xlu0 %13104  ;;  %14803 = vrot.lane.b32.xlu1 %v14784_v7, %s17230_s19  ;;  %16967 = vmatprep.subr.msk.bf16.mxu1 %vm257_vm1, %v13118_v13  ;;  %v9687_v63 = vpop.f32.mrb[30].mxu1  ;;  %v15108_v28 = vcombine.high %v15068_v47, %v15068_v47 }
 0x3ab   : > { %16966 = vmatmul.mubr.msk.bf16.vlgmr.msra.gmra.mrb[136].mxu0 %vm253_vm2, %v21185_v49  ;;  %v9724_v45 = vpop.f32.mrb[32].mxu0  ;;  %13239 = vmatpush1.bf16.msra.mxu1 %v13139_v38  ;;  %v9688_v9 = vpop.f32.mrb[31].mxu1  ;;  %v13119_v40 = vsel %vm13112_vm12, %v13103_v41, %v13105_v19 }
 0x3ac   : > { %v21221_v20 = vadd.f32 %v9724_v45, %v21107_v11  ;;  %14805 = vrot.lane.b32.xlu0 %v14783_v18, %s17230_s19  ;;  %v9726_v54 = vpop.f32.mrb[33].mxu0  ;;  %v13107_v2 = vpop.permute.xlu1 %13106  ;;  %13311 = vmatprep.mubr.bf16.mxu0 %v17187_v12  ;;  %v13145_v6 = vsel %vm257_vm1, %v13119_v40, 0  ;;  %v15123_v45 = vcombine.high %v15115_v36, %v15115_v36 }
 0x3ad   : > { %v21226_v8 = vadd.f32 %v9726_v54, %v21115_v10  ;;  %v13120_v22 = vsel %vm13112_vm12, %v13105_v19, %v13107_v2  ;;  %v9728_v21 = vpop.f32.mrb[34].mxu0 }
 0x3ae   : > { %v13109_v37 = vpop.permute.xlu0 %13108  ;;  %15124 = vrot.lane.b32.xlu1 %v21085_v32, %s17231_s22  ;;  %16968 = vmatmul.mubr.msk.bf16.vlgmr.msra.gmra.mrb[136].mxu1 %vm253_vm2, %v21185_v49  ;;  %v9729_v11 = vpop.f32.mrb[35].mxu0  ;;  %v15122_v21 = vrot.slane %v15108_v28, %v17266_v5 }
 0x3af   : > { %v13121_v61 = vsel %vm13112_vm12, %v13107_v2, %v13109_v37  ;;  %16969 = vmatprep.subr.msk.bf16.mxu0 %vm257_vm1, %v13120_v22  ;;  %13352 = vmatprep.mubr.bf16.mxu1 %v17187_v12 }
 0x3b0   : > { %v9888_v10 = vpop.f32.mrb[32].mxu1  ;;  %13280 = vmatpush1.bf16.msra.mxu0 %v13145_v6  ;;  %15126 = vrot.lane.b32.xlu0 %v21103_v55, %s17231_s22  ;;  %v13111_v30 = vpop.permute.xlu1 %13110  ;;  %v13151_v35 = vsel %vm257_vm1, %v13121_v61, 0 }
 0x3b1   : > { %v21240_v58 = vadd.f32 %v9888_v10, %v21138_v51  ;;  %v9890_v43 = vpop.f32.mrb[33].mxu1  ;;  %v13122_v56 = vsel %vm13112_vm12, %v13109_v37, %v13111_v30 }
 0x3b2   : > { %v21244_v4 = vadd.f32 %v9890_v43, %v21145_v59  ;;  %v13430_v26 = vpop.permute.xlu0 %13429  ;;  %15128 = vrot.lane.b32.xlu1 %v21112_v42, %s17231_s22  ;;  %16971 = vmatprep.subr.msk.bf16.mxu1 %vm257_vm1, %v13122_v56  ;;  %v9892_v17 = vpop.f32.mrb[34].mxu1 }
 0x3b3   : > { %16970 = vmatmul.mubr.msk.bf16.vlgmr.msra.gmra.mrb[140].mxu0 %vm253_vm2, %v21185_v49  ;;  %v9929_v51 = vpop.f32.mrb[36].mxu0  ;;  %13321 = vmatpush1.bf16.msra.mxu1 %v13151_v35  ;;  %v9893_v14 = vpop.f32.mrb[35].mxu1 }
 0x3b4   : > { %v21253_v59 = vadd.f32 %v9929_v51, %v21166_v23  ;;  %15130 = vrot.lane.b32.xlu0 %v21131_v52, %s17231_s22  ;;  %v9931_v39 = vpop.f32.mrb[37].mxu0  ;;  %v13432_v46 = vpop.permute.xlu1 %13431  ;;  %13527 = vmatprep.mubr.bf16.mxu0 %v17187_v12 }
 0x3b5   : > { %v21259_v31 = vadd.f32 %v9931_v39, %v21171_v34  ;;  %v13452_v44 = vsel %vm13451_vm13, %v13430_v26, %v13432_v46  ;;  %v9933_v62 = vpop.f32.mrb[38].mxu0 }
 0x3b6   : > { %v13434_v25 = vpop.permute.xlu0 %13433  ;;  %15132 = vrot.lane.b32.xlu1 %v21134_v24, %s17231_s22  ;;  %16972 = vmatmul.mubr.msk.bf16.vlgmr.msra.gmra.mrb[140].mxu1 %vm253_vm2, %v21185_v49  ;;  %v9934_v23 = vpop.f32.mrb[39].mxu0  ;;  %v13466_v29 = vsel %vm257_vm1, %v13452_v44, 0 }
 0x3b7   : > { %v13453_v3 = vsel %vm13451_vm13, %v13432_v46, %v13434_v25  ;;  %13568 = vmatprep.mubr.bf16.mxu1 %v17187_v12 }
 0x3b8   : > { %v9970_v16 = vpop.f32.mrb[36].mxu1  ;;  %15134 = vrot.lane.b32.xlu0 %v21153_v27, %s17231_s22  ;;  %16974 = vmatprep.subr.msk.bf16.mxu0 %vm257_vm1, %v13453_v3  ;;  %v13436_v34 = vpop.permute.xlu1 %13435 }
 0x3b9   : > { %v21275_v7 = vadd.f32 %v9970_v16, %v21189_v0  ;;  %v9972_v49 = vpop.f32.mrb[37].mxu1  ;;  %13496 = vmatpush1.bf16.msra.mxu0 %v13466_v29  ;;  %v13454_v1 = vsel %vm13451_vm13, %v13434_v25, %v13436_v34 }
 0x3ba   : > { %v21283_v48 = vadd.f32 %v9972_v49, %v21194_v57  ;;  %v13438_v41 = vpop.permute.xlu0 %13437  ;;  %15136 = vrot.lane.b32.xlu1 %v21156_v53, %s17231_s22  ;;  %v9974_v18 = vpop.f32.mrb[38].mxu1  ;;  %v13472_v9 = vsel %vm257_vm1, %v13454_v1, 0 }
 0x3bb   : > { %v13455_v0 = vsel %vm13451_vm13, %v13436_v34, %v13438_v41  ;;  %v10011_v13 = vpop.f32.mrb[40].mxu0  ;;  %v9975_v19 = vpop.f32.mrb[39].mxu1  ;;  %v15407_v18 = vld [vmem:[%s17271_s17 + $0x12] sm:$0x3f] }
 0x3bc   : > { %v21290_v38 = vadd.f32 %v10011_v13, %v21208_v50  ;;  %15138 = vrot.lane.b32.xlu0 %v21179_v33, %s17231_s22  ;;  %v10013_v57 = vpop.f32.mrb[41].mxu0  ;;  %16975 = vmatmul.mubr.msk.bf16.vlgmr.msra.gmra.mrb[144].mxu0 %vm253_vm2, %v21280_v15  ;;  %v13440_v63 = vpop.permute.xlu1 %13439 }
 0x3bd   : > { %v21298_v40 = vadd.f32 %v10013_v57, %v21212_v60  ;;  %16976 = vmatprep.subr.msk.bf16.mxu1 %vm257_vm1, %v13455_v0  ;;  %v13456_v54 = vsel %vm13451_vm13, %v13438_v41, %v13440_v63  ;;  %v10015_v50 = vpop.f32.mrb[42].mxu0  ;;  %13609 = vmatprep.mubr.bf16.mxu0 %v17187_v12 }
 0x3be   : > { %13537 = vmatpush1.bf16.msra.mxu1 %v13472_v9  ;;  %v13442_v2 = vpop.permute.xlu0 %13441  ;;  %15140 = vrot.lane.b32.xlu1 %v15115_v36, %s17231_s22  ;;  %v10016_v22 = vpop.f32.mrb[43].mxu0  ;;  %v13478_v11 = vsel %vm257_vm1, %v13456_v54, 0 }
 0x3bf   : > { %v13457_v37 = vsel %vm13451_vm13, %v13440_v63, %v13442_v2 }
 0x3c0   : > { %v10052_v60 = vpop.f32.mrb[40].mxu1  ;;  %15142 = vrot.lane.b32.xlu0 %v15123_v45, %s17231_s22  ;;  %16978 = vmatprep.subr.msk.bf16.mxu0 %vm257_vm1, %v13457_v37  ;;  %v13444_v61 = vpop.permute.xlu1 %13443 }
 0x3c1   : > { %v21310_v6 = vadd.f32 %v10052_v60, %v21221_v20  ;;  %v10054_v10 = vpop.f32.mrb[41].mxu1  ;;  %16977 = vmatmul.mubr.msk.bf16.vlgmr.msra.gmra.mrb[144].mxu1 %vm253_vm2, %v21280_v15  ;;  %13578 = vmatpush1.bf16.msra.mxu0 %v13478_v11  ;;  %v13458_v43 = vsel %vm13451_vm13, %v13442_v2, %v13444_v61  ;;  %v15447_v2 = vcombine.high %v15407_v18, %v15407_v18 }
 0x3c2   : > { %v21315_v30 = vadd.f32 %v10054_v10, %v21226_v8  ;;  %v13446_v56 = vpop.permute.xlu0 %13445  ;;  %15144 = vrot.lane.b32.xlu1 %v15122_v21, %s17231_s22  ;;  %v10056_v26 = vpop.f32.mrb[42].mxu1  ;;  %13650 = vmatprep.mubr.bf16.mxu1 %v17187_v12  ;;  %v13484_v39 = vsel %vm257_vm1, %v13458_v43, 0 }
 0x3c3   : > { %v13459_v35 = vsel %vm13451_vm13, %v13444_v61, %v13446_v56  ;;  %v10216_v20 = vpop.f32.mrb[44].mxu0  ;;  %v10057_v17 = vpop.f32.mrb[43].mxu1 }
 0x3c4   : > { %v21322_v51 = vadd.f32 %v10216_v20, %v21240_v58  ;;  %15463 = vrot.lane.b32.xlu0 %v21085_v32, %s17232_s25  ;;  %v10218_v8 = vpop.f32.mrb[45].mxu0  ;;  %16979 = vmatmul.mubr.msk.bf16.vlgmr.msra.gmra.mrb[148].mxu0 %vm253_vm2, %v21280_v15  ;;  %v13448_v14 = vpop.permute.xlu1 %13447  ;;  %v15461_v17 = vrot.slane %v15447_v2, %v17266_v5 }
 0x3c5   : > { %v21330_v46 = vadd.f32 %v10218_v8, %v21244_v4  ;;  %16980 = vmatprep.subr.msk.bf16.mxu1 %vm257_vm1, %v13459_v35  ;;  %v13460_v44 = vsel %vm13451_vm13, %v13446_v56, %v13448_v14  ;;  %v10220_v58 = vpop.f32.mrb[46].mxu0  ;;  %13691 = vmatprep.mubr.bf16.mxu0 %v17187_v12 }
 0x3c6   : > { %13619 = vmatpush1.bf16.msra.mxu1 %v13484_v39  ;;  %v13450_v62 = vpop.permute.xlu0 %13449  ;;  %15465 = vrot.lane.b32.xlu1 %v21103_v55, %s17232_s25  ;;  %v10221_v47 = vpop.f32.mrb[47].mxu0  ;;  %v13490_v23 = vsel %vm257_vm1, %v13460_v44, 0 }
 0x3c7   : > { %v13461_v25 = vsel %vm13451_vm13, %v13448_v14, %v13450_v62 }
 0x3c8   : > { %v10257_v3 = vpop.f32.mrb[44].mxu1  ;;  %15467 = vrot.lane.b32.xlu0 %v21112_v42, %s17232_s25  ;;  %16982 = vmatprep.subr.msk.bf16.mxu0 %vm257_vm1, %v13461_v25  ;;  %v13769_v4 = vpop.permute.xlu1 %13768 }
 0x3c9   : > { %v21343_v16 = vadd.f32 %v10257_v3, %v21253_v59  ;;  %v10259_v34 = vpop.f32.mrb[45].mxu1  ;;  %16981 = vmatmul.mubr.msk.bf16.vlgmr.msra.gmra.mrb[148].mxu1 %vm253_vm2, %v21280_v15  ;;  %13660 = vmatpush1.bf16.msra.mxu0 %v13490_v23 }
 0x3ca   : > { %v21348_v29 = vadd.f32 %v10259_v34, %v21259_v31  ;;  %v13771_v36 = vpop.permute.xlu0 %13770  ;;  %15469 = vrot.lane.b32.xlu1 %v21131_v52, %s17232_s25  ;;  %v10261_v49 = vpop.f32.mrb[46].mxu1  ;;  %13866 = vmatprep.mubr.bf16.mxu1 %v17187_v12 }
 0x3cb   : > { %v13791_v1 = vsel %vm13790_vm14, %v13769_v4, %v13771_v36  ;;  %v10298_v41 = vpop.f32.mrb[48].mxu0  ;;  %v10262_v59 = vpop.f32.mrb[47].mxu1 }
 0x3cc   : > { %v21356_v28 = vadd.f32 %v10298_v41, %v21275_v7  ;;  %15471 = vrot.lane.b32.xlu0 %v21134_v24, %s17232_s25  ;;  %v10300_v31 = vpop.f32.mrb[49].mxu0  ;;  %16983 = vmatmul.mubr.msk.bf16.vlgmr.msra.gmra.mrb[152].mxu0 %vm253_vm2, %v21280_v15  ;;  %v13773_v0 = vpop.permute.xlu1 %13772  ;;  %v13805_v63 = vsel %vm257_vm1, %v13791_v1, 0  ;;  %v15454_v15 = vrot.slane %v15407_v18, %v17266_v5 }
 0x3cd   : > { %v21363_v13 = vadd.f32 %v10300_v31, %v21283_v48  ;;  %v13792_v19 = vsel %vm13790_vm14, %v13771_v36, %v13773_v0  ;;  %v10302_v57 = vpop.f32.mrb[50].mxu0  ;;  %13907 = vmatprep.mubr.bf16.mxu0 %v17187_v12  ;;  %v21375_v48 = vld [vmem:[%s21999_s1 + $0xa4] sm:$0xf] }
 0x3ce   : > { %v13775_v7 = vpop.permute.xlu0 %13774  ;;  %15473 = vrot.lane.b32.xlu1 %v21153_v27, %s17232_s25  ;;  %16985 = vmatprep.subr.msk.bf16.mxu1 %vm257_vm1, %v13792_v19  ;;  %v10303_v45 = vpop.f32.mrb[51].mxu0  ;;  %v15462_v10 = vcombine.high %v15454_v15, %v15454_v15 }
 0x3cf   : > { %13835 = vmatpush1.bf16.msra.mxu1 %v13805_v63  ;;  %v13793_v9 = vsel %vm13790_vm14, %v13773_v0, %v13775_v7 }
 0x3d0   : > { %v10339_v54 = vpop.f32.mrb[48].mxu1  ;;  %15475 = vrot.lane.b32.xlu0 %v21156_v53, %s17232_s25  ;;  %v13777_v50 = vpop.permute.xlu1 %13776  ;;  %v13811_v43 = vsel %vm257_vm1, %v13793_v9, 0 }
 0x3d1   : > { %v21381_v22 = vadd.f32 %v10339_v54, %v21290_v38  ;;  %v10341_v21 = vpop.f32.mrb[49].mxu1  ;;  %v13794_v37 = vsel %vm13790_vm14, %v13775_v7, %v13777_v50  ;;  %v15746_v54 = vld [vmem:[%s17271_s17 + $0x12] sm:$0x3f] }
 0x3d2   : > { %v21385_v11 = vadd.f32 %v10341_v21, %v21298_v40  ;;  %v13779_v60 = vpop.permute.xlu0 %13778  ;;  %15477 = vrot.lane.b32.xlu1 %v21179_v33, %s17232_s25  ;;  %16986 = vmatmul.mubr.msk.bf16.vlgmr.msra.gmra.mrb[152].mxu1 %vm253_vm2, %v21375_v48  ;;  %v10343_v61 = vpop.f32.mrb[50].mxu1 }
 0x3d3   : > { %v13795_v38 = vsel %vm13790_vm14, %v13777_v50, %v13779_v60  ;;  %16987 = vmatprep.subr.msk.bf16.mxu0 %vm257_vm1, %v13794_v37  ;;  %v10380_v56 = vpop.f32.mrb[52].mxu0  ;;  %v10344_v26 = vpop.f32.mrb[51].mxu1  ;;  %13948 = vmatprep.mubr.bf16.mxu1 %v17187_v12 }
 0x3d4   : > { %v21396_v40 = vadd.f32 %v10380_v56, %v21310_v6  ;;  %13876 = vmatpush1.bf16.msra.mxu0 %v13811_v43  ;;  %15479 = vrot.lane.b32.xlu0 %v15454_v15, %s17232_s25  ;;  %v10382_v35 = vpop.f32.mrb[53].mxu0  ;;  %v13781_v20 = vpop.permute.xlu1 %13780  ;;  %v13817_v44 = vsel %vm257_vm1, %v13795_v38, 0  ;;  %v21473_v56 = vld [vmem:[%s21999_s1 + $0xa8] sm:$0xf] }
 0x3d5   : > { %v21401_v8 = vadd.f32 %v10382_v35, %v21315_v30  ;;  %v13796_v14 = vsel %vm13790_vm14, %v13779_v60, %v13781_v20  ;;  %v10384_v39 = vpop.f32.mrb[54].mxu0 }
 0x3d6   : > { %v13783_v58 = vpop.permute.xlu0 %13782  ;;  %15481 = vrot.lane.b32.xlu1 %v15462_v10, %s17232_s25  ;;  %16989 = vmatprep.subr.msk.bf16.mxu1 %vm257_vm1, %v13796_v14  ;;  %v10385_v6 = vpop.f32.mrb[55].mxu0 }
 0x3d7   : > { %16988 = vmatmul.mubr.msk.bf16.vlgmr.msra.gmra.mrb[156].mxu0 %vm253_vm2, %v21375_v48  ;;  %13917 = vmatpush1.bf16.msra.mxu1 %v13817_v44  ;;  %v13797_v62 = vsel %vm13790_vm14, %v13781_v20, %v13783_v58 }
 0x3d8   : > { %v10544_v47 = vpop.f32.mrb[52].mxu1  ;;  %15483 = vrot.lane.b32.xlu0 %v15461_v17, %s17232_s25  ;;  %v13785_v30 = vpop.permute.xlu1 %13784  ;;  %13989 = vmatprep.mubr.bf16.mxu0 %v17187_v12  ;;  %v13823_v49 = vsel %vm257_vm1, %v13797_v62, 0  ;;  %v15786_v17 = vcombine.high %v15746_v54, %v15746_v54 }
 0x3d9   : > { %v21413_v25 = vadd.f32 %v10544_v47, %v21322_v51  ;;  %v10546_v23 = vpop.f32.mrb[53].mxu1  ;;  %v13798_v3 = vsel %vm13790_vm14, %v13783_v58, %v13785_v30 }
 0x3da   : > { %v21417_v4 = vadd.f32 %v10546_v23, %v21330_v46  ;;  %v13787_v34 = vpop.permute.xlu0 %13786  ;;  %15802 = vrot.lane.b32.xlu1 %v21085_v32, %s17233_s28  ;;  %16990 = vmatmul.mubr.msk.bf16.vlgmr.msra.gmra.mrb[156].mxu1 %vm253_vm2, %v21375_v48  ;;  %v10548_v36 = vpop.f32.mrb[54].mxu1 }
 0x3db   : > { %v13799_v51 = vsel %vm13790_vm14, %v13785_v30, %v13787_v34  ;;  %16991 = vmatprep.subr.msk.bf16.mxu0 %vm257_vm1, %v13798_v3  ;;  %v10585_v1 = vpop.f32.mrb[56].mxu0  ;;  %v10549_v41 = vpop.f32.mrb[55].mxu1  ;;  %14030 = vmatprep.mubr.bf16.mxu1 %v17187_v12 }
 0x3dc   : > { %v21428_v46 = vadd.f32 %v10585_v1, %v21343_v16  ;;  %13958 = vmatpush1.bf16.msra.mxu0 %v13823_v49  ;;  %15804 = vrot.lane.b32.xlu0 %v21103_v55, %s17233_s28  ;;  %v10587_v59 = vpop.f32.mrb[57].mxu0  ;;  %v13789_v18 = vpop.permute.xlu1 %13788  ;;  %v13829_v57 = vsel %vm257_vm1, %v13799_v51, 0 }
 0x3dd   : > { %v21433_v31 = vadd.f32 %v10587_v59, %v21348_v29  ;;  %v13800_v0 = vsel %vm13790_vm14, %v13787_v34, %v13789_v18  ;;  %v10589_v19 = vpop.f32.mrb[58].mxu0  ;;  %v15800_v34 = vrot.slane %v15786_v17, %v17266_v5 }
 0x3de   : > { %v14108_v63 = vpop.permute.xlu0 %14107  ;;  %15806 = vrot.lane.b32.xlu1 %v21112_v42, %s17233_s28  ;;  %16993 = vmatprep.subr.msk.bf16.mxu1 %vm257_vm1, %v13800_v0  ;;  %v10590_v16 = vpop.f32.mrb[59].mxu0 }
 0x3df   : > { %16992 = vmatmul.mubr.msk.bf16.vlgmr.msra.gmra.mrb[160].mxu0 %vm253_vm2, %v21375_v48  ;;  %13999 = vmatpush1.bf16.msra.mxu1 %v13829_v57 }
 0x3e0   : > { %v10626_v29 = vpop.f32.mrb[56].mxu1  ;;  %15808 = vrot.lane.b32.xlu0 %v21131_v52, %s17233_s28  ;;  %v14110_v7 = vpop.permute.xlu1 %14109  ;;  %14205 = vmatprep.mubr.bf16.mxu0 %v17187_v12 }
 0x3e1   : > { %v21446_v45 = vadd.f32 %v10626_v29, %v21356_v28  ;;  %v10628_v15 = vpop.f32.mrb[57].mxu1  ;;  %v14130_v9 = vsel %vm14129_vm15, %v14108_v63, %v14110_v7 }
 0x3e2   : > { %v21451_v50 = vadd.f32 %v10628_v15, %v21363_v13  ;;  %v14112_v2 = vpop.permute.xlu0 %14111  ;;  %15810 = vrot.lane.b32.xlu1 %v21134_v24, %s17233_s28  ;;  %16994 = vmatmul.mubr.msk.bf16.vlgmr.msra.gmra.mrb[160].mxu1 %vm253_vm2, %v21375_v48  ;;  %v10630_v21 = vpop.f32.mrb[58].mxu1  ;;  %v14144_v61 = vsel %vm257_vm1, %v14130_v9, 0  ;;  %v15793_v48 = vrot.slane %v15746_v54, %v17266_v5 }
 0x3e3   : > { %v14131_v37 = vsel %vm14129_vm15, %v14110_v7, %v14112_v2  ;;  %v10667_v60 = vpop.f32.mrb[60].mxu0  ;;  %v10631_v28 = vpop.f32.mrb[59].mxu1  ;;  %14246 = vmatprep.mubr.bf16.mxu1 %v17187_v12 }
 0x3e4   : > { %v21461_v10 = vadd.f32 %v10667_v60, %v21381_v22  ;;  %15812 = vrot.lane.b32.xlu0 %v21153_v27, %s17233_s28  ;;  %v10669_v13 = vpop.f32.mrb[61].mxu0  ;;  %16996 = vmatprep.subr.msk.bf16.mxu0 %vm257_vm1, %v14131_v37  ;;  %v14114_v43 = vpop.permute.xlu1 %14113  ;;  %v15801_v44 = vcombine.high %v15793_v48, %v15793_v48 }
 0x3e5   : > { %v21468_v38 = vadd.f32 %v10669_v13, %v21385_v11  ;;  %14174 = vmatpush1.bf16.msra.mxu0 %v14144_v61  ;;  %v10671_v22 = vpop.f32.mrb[62].mxu0  ;;  %v14132_v26 = vsel %vm14129_vm15, %v14112_v2, %v14114_v43 }
 0x3e6   : > { %v14116_v35 = vpop.permute.xlu0 %14115  ;;  %15814 = vrot.lane.b32.xlu1 %v21156_v53, %s17233_s28  ;;  %v10672_v20 = vpop.f32.mrb[63].mxu0  ;;  %v14150_v58 = vsel %vm257_vm1, %v14132_v26, 0 }
 0x3e7   : > { %v14133_v14 = vsel %vm14129_vm15, %v14114_v43, %v14116_v35  ;;  %v16085_v43 = vld [vmem:[%s17271_s17 + $0x12] sm:$0x3f] }
 0x3e8   : > { %v10708_v39 = vpop.f32.mrb[60].mxu1  ;;  %15816 = vrot.lane.b32.xlu0 %v21179_v33, %s17233_s28  ;;  %16997 = vmatmul.mubr.msk.bf16.vlgmr.msra.gmra.mrb[164].mxu0 %vm253_vm2, %v21473_v56  ;;  %v14118_v11 = vpop.permute.xlu1 %14117 }
 0x3e9   : > { %v21485_v6 = vadd.f32 %v10708_v39, %v21396_v40  ;;  %v10710_v62 = vpop.f32.mrb[61].mxu1  ;;  %16998 = vmatprep.subr.msk.bf16.mxu1 %vm257_vm1, %v14133_v14  ;;  %v14134_v47 = vsel %vm14129_vm15, %v14116_v35, %v14118_v11  ;;  %14287 = vmatprep.mubr.bf16.mxu0 %v17187_v12  ;;  %v21565_v39 = vld [vmem:[%s21999_s1 + $0xac] sm:$0xf] }
 0x3ea   : > { %v21491_v30 = vadd.f32 %v10710_v62, %v21401_v8  ;;  %14215 = vmatpush1.bf16.msra.mxu1 %v14150_v58  ;;  %v14120_v23 = vpop.permute.xlu0 %14119  ;;  %15818 = vrot.lane.b32.xlu1 %v15793_v48, %s17233_s28  ;;  %v10712_v3 = vpop.f32.mrb[62].mxu1  ;;  %v14156_v51 = vsel %vm257_vm1, %v14134_v47, 0  ;;  %v16125_v58 = vcombine.high %v16085_v43, %v16085_v43 }
 0x3eb   : > { %v14135_v40 = vsel %vm14129_vm15, %v14118_v11, %v14120_v23  ;;  %v10872_v36 = vpop.f32.mrb[64].mxu0  ;;  %v10713_v49 = vpop.f32.mrb[63].mxu1 }
 0x3ec   : > { %v21498_v1 = vadd.f32 %v10872_v36, %v21413_v25  ;;  %15820 = vrot.lane.b32.xlu0 %v15801_v44, %s17233_s28  ;;  %v10874_v8 = vpop.f32.mrb[65].mxu0  ;;  %17000 = vmatprep.subr.msk.bf16.mxu0 %vm257_vm1, %v14135_v40  ;;  %v14122_v41 = vpop.permute.xlu1 %14121 }
 0x3ed   : > { %v21503_v59 = vadd.f32 %v10874_v8, %v21417_v4  ;;  %16999 = vmatmul.mubr.msk.bf16.vlgmr.msra.gmra.mrb[164].mxu1 %vm253_vm2, %v21473_v56  ;;  %14256 = vmatpush1.bf16.msra.mxu0 %v14156_v51  ;;  %v10876_v18 = vpop.f32.mrb[66].mxu0  ;;  %v14136_v0 = vsel %vm14129_vm15, %v14120_v23, %v14122_v41 }
 0x3ee   : > { %v14124_v19 = vpop.permute.xlu0 %14123  ;;  %15822 = vrot.lane.b32.xlu1 %v15800_v34, %s17233_s28  ;;  %v10877_v25 = vpop.f32.mrb[67].mxu0  ;;  %14328 = vmatprep.mubr.bf16.mxu1 %v17187_v12  ;;  %v14162_v16 = vsel %vm257_vm1, %v14136_v0, 0 }
 0x3ef   : > { %v14137_v57 = vsel %vm14129_vm15, %v14122_v41, %v14124_v19 }
 0x3f0   : > { %v10913_v63 = vpop.f32.mrb[64].mxu1  ;;  %16141 = vrot.lane.b32.xlu0 %v21085_v32, %s17234_s4  ;;  %17001 = vmatmul.mubr.msk.bf16.vlgmr.msra.gmra.mrb[168].mxu0 %vm253_vm2, %v21473_v56  ;;  %v14126_v4 = vpop.permute.xlu1 %14125 }
 0x3f1   : > { %v21517_v29 = vadd.f32 %v10913_v63, %v21428_v46  ;;  %v10915_v7 = vpop.f32.mrb[65].mxu1  ;;  %17002 = vmatprep.subr.msk.bf16.mxu1 %vm257_vm1, %v14137_v57  ;;  %v14138_v15 = vsel %vm14129_vm15, %v14124_v19, %v14126_v4  ;;  %14369 = vmatprep.mubr.bf16.mxu0 %v17187_v12 }
 0x3f2   : > { %v21523_v9 = vadd.f32 %v10915_v7, %v21433_v31  ;;  %14297 = vmatpush1.bf16.msra.mxu1 %v14162_v16  ;;  %v14128_v32 = vpop.permute.xlu0 %14127  ;;  %16143 = vrot.lane.b32.xlu1 %v21103_v55, %s17234_s4  ;;  %v10917_v54 = vpop.f32.mrb[66].mxu1  ;;  %v14168_v37 = vsel %vm257_vm1, %v14138_v15, 0 }
 0x3f3   : > { %v14139_v2 = vsel %vm14129_vm15, %v14126_v4, %v14128_v32  ;;  %v10954_v46 = vpop.f32.mrb[68].mxu0  ;;  %v10918_v21 = vpop.f32.mrb[67].mxu1 }
 0x3f4   : > { %v21530_v60 = vadd.f32 %v10954_v46, %v21446_v45  ;;  %16145 = vrot.lane.b32.xlu0 %v21112_v42, %s17234_s4  ;;  %v10956_v31 = vpop.f32.mrb[69].mxu0  ;;  %17004 = vmatprep.subr.msk.bf16.mxu0 %vm257_vm1, %v14139_v2  ;;  %v14447_v28 = vpop.permute.xlu1 %14446 }
 0x3f5   : > { %v21536_v55 = vadd.f32 %v10956_v31, %v21451_v50  ;;  %17003 = vmatmul.mubr.msk.bf16.vlgmr.msra.gmra.mrb[168].mxu1 %vm253_vm2, %v21473_v56  ;;  %14338 = vmatpush1.bf16.msra.mxu0 %v14168_v37  ;;  %v10958_v61 = vpop.f32.mrb[70].mxu0 }
 0x3f6   : > { %v14449_v13 = vpop.permute.xlu0 %14448  ;;  %16147 = vrot.lane.b32.xlu1 %v21131_v52, %s17234_s4  ;;  %v10959_v45 = vpop.f32.mrb[71].mxu0  ;;  %14544 = vmatprep.mubr.bf16.mxu1 %v17187_v12 }
 0x3f7   : > { %v14469_v42 = vsel %vm14468_vm0, %v14447_v28, %v14449_v13 }
 0x3f8   : > { %v10995_v48 = vpop.f32.mrb[68].mxu1  ;;  %16149 = vrot.lane.b32.xlu0 %v21134_v24, %s17234_s4  ;;  %17005 = vmatmul.mubr.msk.bf16.vlgmr.msra.gmra.mrb[172].mxu0 %vm253_vm2, %v21473_v56  ;;  %v14451_v50 = vpop.permute.xlu1 %14450  ;;  %v14483_v35 = vsel %vm257_vm1, %v14469_v42, 0 }
 0x3f9   : > { %v21550_v22 = vadd.f32 %v10995_v48, %v21461_v10  ;;  %v10997_v26 = vpop.f32.mrb[69].mxu1  ;;  %v14470_v52 = vsel %vm14468_vm0, %v14449_v13, %v14451_v50  ;;  %14585 = vmatprep.mubr.bf16.mxu0 %v17187_v12  ;;  %v16132_v10 = vrot.slane %v16085_v43, %v17266_v5 }
 0x3fa   : > { %v21556_v20 = vadd.f32 %v10997_v26, %v21468_v38  ;;  %v14453_v17 = vpop.permute.xlu0 %14452  ;;  %16151 = vrot.lane.b32.xlu1 %v21153_v27, %s17234_s4  ;;  %17007 = vmatprep.subr.msk.bf16.mxu1 %vm257_vm1, %v14470_v52  ;;  %v10999_v24 = vpop.f32.mrb[70].mxu1 }
 0x3fb   : > { %v11036_v56 = vpop.f32.mrb[72].mxu0  ;;  %14513 = vmatpush1.bf16.msra.mxu1 %v14483_v35  ;;  %v11000_v14 = vpop.f32.mrb[71].mxu1  ;;  %v14471_v38 = vsel %vm14468_vm0, %v14451_v50, %v14453_v17  ;;  %v16140_v34 = vcombine.high %v16132_v10, %v16132_v10 }
 0x3fc   : > { %v21569_v11 = vadd.f32 %v11036_v56, %v21485_v6  ;;  %16153 = vrot.lane.b32.xlu0 %v21156_v53, %s17234_s4  ;;  %v11038_v27 = vpop.f32.mrb[73].mxu0  ;;  %v14455_v44 = vpop.permute.xlu1 %14454  ;;  %v14489_v53 = vsel %vm257_vm1, %v14471_v38, 0 }
 0x3fd   : > { %v21574_v62 = vadd.f32 %v11038_v27, %v21491_v30  ;;  %v14472_v47 = vsel %vm14468_vm0, %v14453_v17, %v14455_v44  ;;  %v11040_v23 = vpop.f32.mrb[74].mxu0 }
 0x3fe   : > { %v14457_v3 = vpop.permute.xlu0 %14456  ;;  %16155 = vrot.lane.b32.xlu1 %v21179_v33, %s17234_s4  ;;  %17008 = vmatmul.mubr.msk.bf16.vlgmr.msra.gmra.mrb[172].mxu1 %vm253_vm2, %v21565_v39  ;;  %v11041_v6 = vpop.f32.mrb[75].mxu0  ;;  %v16139_v33 = vrot.slane %v16125_v58, %v17266_v5 }
 0x3ff   : > { %v14473_v40 = vsel %vm14468_vm0, %v14455_v44, %v14457_v3  ;;  %17009 = vmatprep.subr.msk.bf16.mxu0 %vm257_vm1, %v14472_v47  ;;  %14626 = vmatprep.mubr.bf16.mxu1 %v17187_v12 }
 0x400   : > { %v11200_v30 = vpop.f32.mrb[72].mxu1  ;;  %14554 = vmatpush1.bf16.msra.mxu0 %v14489_v53  ;;  %16157 = vrot.lane.b32.xlu0 %v16132_v10, %s17234_s4  ;;  %v14459_v36 = vpop.permute.xlu1 %14458  ;;  %v14495_v41 = vsel %vm257_vm1, %v14473_v40, 0 }
 0x401   : > { %v21588_v49 = vadd.f32 %v11200_v30, %v21498_v1  ;;  %v11202_v51 = vpop.f32.mrb[73].mxu1  ;;  %v14474_v8 = vsel %vm14468_vm0, %v14457_v3, %v14459_v36 }
 0x402   : > { %v21593_v18 = vadd.f32 %v11202_v51, %v21503_v59  ;;  %v14461_v0 = vpop.permute.xlu0 %14460  ;;  %16159 = vrot.lane.b32.xlu1 %v16140_v34, %s17234_s4  ;;  %17011 = vmatprep.subr.msk.bf16.mxu1 %vm257_vm1, %v14474_v8  ;;  %v11204_v19 = vpop.f32.mrb[74].mxu1 }
 0x403   : > { %v14475_v25 = vsel %vm14468_vm0, %v14459_v36, %v14461_v0  ;;  %17010 = vmatmul.mubr.msk.bf16.vlgmr.msra.gmra.mrb[176].mxu0 %vm253_vm2, %v21565_v39  ;;  %v11241_v5 = vpop.f32.mrb[76].mxu0  ;;  %14595 = vmatpush1.bf16.msra.mxu1 %v14495_v41  ;;  %v11205_v1 = vpop.f32.mrb[75].mxu1 }
 0x404   : > { %v21601_v57 = vadd.f32 %v11241_v5, %v21517_v29  ;;  %16161 = vrot.lane.b32.xlu0 %v16139_v33, %s17234_s4  ;;  %v11243_v59 = vpop.f32.mrb[77].mxu0  ;;  %v14463_v63 = vpop.permute.xlu1 %14462  ;;  %14667 = vmatprep.mubr.bf16.mxu0 %v17187_v12  ;;  %v14501_v15 = vsel %vm257_vm1, %v14475_v25, 0 }
 0x405   : > { %v21606_v4 = vadd.f32 %v11243_v59, %v21523_v9  ;;  %v14476_v16 = vsel %vm14468_vm0, %v14461_v0, %v14463_v63  ;;  %v11245_v7 = vpop.f32.mrb[78].mxu0 }
 0x406   : > { %v14465_v32 = vpop.permute.xlu0 %14464  ;;  %17012 = vmatmul.mubr.msk.bf16.vlgmr.msra.gmra.mrb[176].mxu1 %vm253_vm2, %v21565_v39  ;;  %17013 = vmatprep.subr.msk.bf16.mxu0 %vm257_vm1, %v14476_v16  ;;  %v11246_v29 = vpop.f32.mrb[79].mxu0 }
 0x407   : > { %v14477_v54 = vsel %vm14468_vm0, %v14463_v63, %v14465_v32  ;;  %14636 = vmatpush1.bf16.msra.mxu0 %v14501_v15  ;;  %14708 = vmatprep.mubr.bf16.mxu1 %v17187_v12 }
 0x408   : > { %v11282_v2 = vpop.f32.mrb[76].mxu1  ;;  %v14467_v9 = vpop.permute.xlu1 %14466  ;;  %v14507_v31 = vsel %vm257_vm1, %v14477_v54, 0 }
 0x409   : > { %v21616_v46 = vadd.f32 %v11282_v2, %v21530_v60  ;;  %v11284_v21 = vpop.f32.mrb[77].mxu1  ;;  %v14478_v37 = vsel %vm14468_vm0, %v14465_v32, %v14467_v9 }
 0x40a   : > { %v21621_v28 = vadd.f32 %v11284_v21, %v21536_v55  ;;  %v14786_v61 = vpop.permute.xlu0 %14785  ;;  %17015 = vmatprep.subr.msk.bf16.mxu1 %vm257_vm1, %v14478_v37  ;;  %v11286_v13 = vpop.f32.mrb[78].mxu1 }
 0x40b   : > { %17014 = vmatmul.mubr.msk.bf16.vlgmr.msra.gmra.mrb[180].mxu0 %vm253_vm2, %v21565_v39  ;;  %v11323_v45 = vpop.f32.mrb[80].mxu0  ;;  %14677 = vmatpush1.bf16.msra.mxu1 %v14507_v31  ;;  %v11287_v60 = vpop.f32.mrb[79].mxu1 }
 0x40c   : > { %v21627_v42 = vadd.f32 %v11323_v45, %v21550_v22  ;;  %v11325_v43 = vpop.f32.mrb[81].mxu0  ;;  %v14788_v48 = vpop.permute.xlu1 %14787  ;;  %14883 = vmatprep.mubr.bf16.mxu0 %v17187_v12 }
 0x40d   : > { %v21631_v55 = vadd.f32 %v11325_v43, %v21556_v20  ;;  %v14808_v50 = vsel %vm14807_vm3, %v14786_v61, %v14788_v48  ;;  %v11327_v26 = vpop.f32.mrb[82].mxu0 }
 0x40e   : > { %v14790_v52 = vpop.permute.xlu0 %14789  ;;  %17016 = vmatmul.mubr.msk.bf16.vlgmr.msra.gmra.mrb[180].mxu1 %vm253_vm2, %v21565_v39  ;;  %v11328_v35 = vpop.f32.mrb[83].mxu0  ;;  %v14822_v22 = vsel %vm257_vm1, %v14808_v50, 0  ;;  %v21647_v39 = vld [vmem:[%s21999_s1 + $0xb0] sm:$0xf] }
 0x40f   : > { %v14809_v17 = vsel %vm14807_vm3, %v14788_v48, %v14790_v52  ;;  %14924 = vmatprep.mubr.bf16.mxu1 %v17187_v12 }
 0x410   : > { %v11364_v24 = vpop.f32.mrb[80].mxu1  ;;  %17018 = vmatprep.subr.msk.bf16.mxu0 %vm257_vm1, %v14809_v17  ;;  %v14792_v10 = vpop.permute.xlu1 %14791 }
 0x411   : > { %v21641_v20 = vadd.f32 %v11364_v24, %v21569_v11  ;;  %v11366_v56 = vpop.f32.mrb[81].mxu1  ;;  %v14810_v14 = vsel %vm14807_vm3, %v14790_v52, %v14792_v10  ;;  %14852 = vmatpush1.bf16.msra.mxu0 %v14822_v22 }
 0x412   : > { %v21650_v38 = vadd.f32 %v11366_v56, %v21574_v62  ;;  %v14794_v27 = vpop.permute.xlu0 %14793  ;;  %v11368_v44 = vpop.f32.mrb[82].mxu1  ;;  %v14828_v11 = vsel %vm257_vm1, %v14810_v14, 0 }
 0x413   : > { %v14811_v58 = vsel %vm14807_vm3, %v14792_v10, %v14794_v27  ;;  %v11528_v47 = vpop.f32.mrb[84].mxu0  ;;  %v11369_v23 = vpop.f32.mrb[83].mxu1 }
 0x414   : > { %v21655_v3 = vadd.f32 %v11528_v47, %v21588_v49  ;;  %v11530_v6 = vpop.f32.mrb[85].mxu0  ;;  %17019 = vmatmul.mubr.msk.bf16.vlgmr.msra.gmra.mrb[184].mxu0 %vm253_vm2, %v21647_v39  ;;  %17020 = vmatprep.subr.msk.bf16.mxu1 %vm257_vm1, %v14811_v58  ;;  %v14796_v34 = vpop.permute.xlu1 %14795 }
 0x415   : > { %v21661_v62 = vadd.f32 %v11530_v6, %v21593_v18  ;;  %v14812_v53 = vsel %vm14807_vm3, %v14794_v27, %v14796_v34  ;;  %14893 = vmatpush1.bf16.msra.mxu1 %v14828_v11  ;;  %v11532_v40 = vpop.f32.mrb[86].mxu0  ;;  %14965 = vmatprep.mubr.bf16.mxu0 %v17187_v12 }
 0x416   : > { %v14798_v30 = vpop.permute.xlu0 %14797  ;;  %v11533_v36 = vpop.f32.mrb[87].mxu0  ;;  %v14834_v49 = vsel %vm257_vm1, %v14812_v53, 0 }
 0x417   : > { %v14813_v33 = vsel %vm14807_vm3, %v14796_v34, %v14798_v30 }
 0x418   : > { %v11569_v51 = vpop.f32.mrb[84].mxu1  ;;  %17021 = vmatmul.mubr.msk.bf16.vlgmr.msra.gmra.mrb[184].mxu1 %vm253_vm2, %v21647_v39  ;;  %17022 = vmatprep.subr.msk.bf16.mxu0 %vm257_vm1, %v14813_v33  ;;  %v14800_v8 = vpop.permute.xlu1 %14799 }
 0x419   : > { %v21671_v41 = vadd.f32 %v11569_v51, %v21601_v57  ;;  %v11571_v18 = vpop.f32.mrb[85].mxu1  ;;  %v14814_v0 = vsel %vm14807_vm3, %v14798_v30, %v14800_v8  ;;  %14934 = vmatpush1.bf16.msra.mxu0 %v14834_v49  ;;  %15006 = vmatprep.mubr.bf16.mxu1 %v17187_v12 }
 0x41a   : > { %v21676_v19 = vadd.f32 %v11571_v18, %v21606_v4  ;;  %v14802_v25 = vpop.permute.xlu0 %14801  ;;  %v11573_v5 = vpop.f32.mrb[86].mxu1  ;;  %v14840_v16 = vsel %vm257_vm1, %v14814_v0, 0 }
 0x41b   : > { %v14815_v1 = vsel %vm14807_vm3, %v14800_v8, %v14802_v25  ;;  %v11610_v59 = vpop.f32.mrb[88].mxu0  ;;  %v11574_v63 = vpop.f32.mrb[87].mxu1 }
 0x41c   : > { %v21681_v57 = vadd.f32 %v11610_v59, %v21616_v46  ;;  %v11612_v7 = vpop.f32.mrb[89].mxu0  ;;  %17023 = vmatmul.mubr.msk.bf16.vlgmr.msra.gmra.mrb[188].mxu0 %vm253_vm2, %v21647_v39  ;;  %17024 = vmatprep.subr.msk.bf16.mxu1 %vm257_vm1, %v14815_v1  ;;  %v14804_v15 = vpop.permute.xlu1 %14803 }
 0x41d   : > { %v21687_v4 = vadd.f32 %v11612_v7, %v21621_v28  ;;  %v14816_v32 = vsel %vm14807_vm3, %v14802_v25, %v14804_v15  ;;  %14975 = vmatpush1.bf16.msra.mxu1 %v14840_v16  ;;  %v11614_v29 = vpop.f32.mrb[90].mxu0  ;;  %15047 = vmatprep.mubr.bf16.mxu0 %v17187_v12 }
 0x41e   : > { %v14806_v54 = vpop.permute.xlu0 %14805  ;;  %v11615_v2 = vpop.f32.mrb[91].mxu0  ;;  %v14846_v46 = vsel %vm257_vm1, %v14816_v32, 0 }
 0x41f   : > { %v14817_v9 = vsel %vm14807_vm3, %v14804_v15, %v14806_v54 }
 0x420   : > { %v11651_v21 = vpop.f32.mrb[88].mxu1  ;;  %17025 = vmatmul.mubr.msk.bf16.vlgmr.msra.gmra.mrb[188].mxu1 %vm253_vm2, %v21647_v39  ;;  %17026 = vmatprep.subr.msk.bf16.mxu0 %vm257_vm1, %v14817_v9  ;;  %v15125_v37 = vpop.permute.xlu1 %15124 }
 0x421   : > { %v21697_v31 = vadd.f32 %v11651_v21, %v21627_v42  ;;  %v11653_v28 = vpop.f32.mrb[89].mxu1  ;;  %15016 = vmatpush1.bf16.msra.mxu0 %v14846_v46  ;;  %15222 = vmatprep.mubr.bf16.mxu1 %v17187_v12 }
 0x422   : > { %v21701_v61 = vadd.f32 %v11653_v28, %v21631_v55  ;;  %v15127_v13 = vpop.permute.xlu0 %15126  ;;  %v11655_v45 = vpop.f32.mrb[90].mxu1 }
 0x423   : > { %v15147_v60 = vsel %vm15146_vm4, %v15125_v37, %v15127_v13  ;;  %v11692_v43 = vpop.f32.mrb[92].mxu0  ;;  %v11656_v48 = vpop.f32.mrb[91].mxu1 }
 0x424   : > { %v21705_v50 = vadd.f32 %v11692_v43, %v21641_v20  ;;  %v11694_v26 = vpop.f32.mrb[93].mxu0  ;;  %17027 = vmatmul.mubr.msk.bf16.vlgmr.msra.gmra.mrb[192].mxu0 %vm253_vm2, %v21647_v39  ;;  %v15129_v42 = vpop.permute.xlu1 %15128  ;;  %v15161_v17 = vsel %vm257_vm1, %v15147_v60, 0  ;;  %v21720_v20 = vld [vmem:[%s21999_s1 + $0xb4] sm:$0xf] }
 0x425   : > { %v21710_v52 = vadd.f32 %v11694_v26, %v21650_v38  ;;  %v15148_v55 = vsel %vm15146_vm4, %v15127_v13, %v15129_v42  ;;  %v11696_v35 = vpop.f32.mrb[94].mxu0  ;;  %15263 = vmatprep.mubr.bf16.mxu0 %v17187_v12 }
 0x426   : > { %v15131_v22 = vpop.permute.xlu0 %15130  ;;  %17029 = vmatprep.subr.msk.bf16.mxu1 %vm257_vm1, %v15148_v55  ;;  %v11697_v24 = vpop.f32.mrb[95].mxu0 }
 0x427   : > { %v15149_v10 = vsel %vm15146_vm4, %v15129_v42, %v15131_v22  ;;  %15191 = vmatpush1.bf16.msra.mxu1 %v15161_v17  ;;  %v21796_v24 = vld [vmem:[%s21999_s1 + $0xb8] sm:$0xf] }
 0x428   : > { %v11856_v56 = vpop.f32.mrb[92].mxu1  ;;  %v15133_v14 = vpop.permute.xlu1 %15132  ;;  %v15167_v44 = vsel %vm257_vm1, %v15149_v10, 0 }
 0x429   : > { %v21723_v39 = vadd.f32 %v11856_v56, %v21655_v3  ;;  %v11858_v38 = vpop.f32.mrb[93].mxu1  ;;  %v15150_v27 = vsel %vm15146_vm4, %v15131_v22, %v15133_v14 }
 0x42a   : > { %v21728_v58 = vadd.f32 %v11858_v38, %v21661_v62  ;;  %v15135_v47 = vpop.permute.xlu0 %15134  ;;  %17030 = vmatmul.mubr.msk.bf16.vlgmr.msra.gmra.mrb[192].mxu1 %vm253_vm2, %v21720_v20  ;;  %17031 = vmatprep.subr.msk.bf16.mxu0 %vm257_vm1, %v15150_v27  ;;  %v11860_v23 = vpop.f32.mrb[94].mxu1 }
 0x42b   : > { %v15151_v11 = vsel %vm15146_vm4, %v15133_v14, %v15135_v47  ;;  %v11897_v6 = vpop.f32.mrb[96].mxu0  ;;  %15232 = vmatpush1.bf16.msra.mxu0 %v15167_v44  ;;  %v11861_v3 = vpop.f32.mrb[95].mxu1  ;;  %15304 = vmatprep.mubr.bf16.mxu1 %v17187_v12 }
 0x42c   : > { %v21736_v34 = vadd.f32 %v11897_v6, %v21671_v41  ;;  %v11899_v53 = vpop.f32.mrb[97].mxu0  ;;  %v15137_v62 = vpop.permute.xlu1 %15136  ;;  %v15173_v33 = vsel %vm257_vm1, %v15151_v11, 0  ;;  %v16422_v3 = vld [vmem:[%s22000_s2] sm:$0xff] }
 0x42d   : > { %v21739_v40 = vadd.f32 %v11899_v53, %v21676_v19  ;;  %v15152_v30 = vsel %vm15146_vm4, %v15135_v47, %v15137_v62  ;;  %v11901_v36 = vpop.f32.mrb[98].mxu0  ;;  %16425 = vperm.xlu1 %17134, %v16422_v3  }
 0x42e   : > { %v15139_v49 = vpop.permute.xlu0 %15138  ;;  %17032 = vmatmul.mubr.msk.bf16.vlgmr.msra.gmra.mrb[196].mxu0 %vm253_vm2, %v21720_v20  ;;  %17033 = vmatprep.subr.msk.bf16.mxu1 %vm257_vm1, %v15152_v30  ;;  %v11902_v51 = vpop.f32.mrb[99].mxu0 }
 0x42f   : > { %v15153_v8 = vsel %vm15146_vm4, %v15137_v62, %v15139_v49  ;;  %15273 = vmatpush1.bf16.msra.mxu1 %v15173_v33  ;;  %15345 = vmatprep.mubr.bf16.mxu0 %v17187_v12 }
 0x430   : > { %v11938_v41 = vpop.f32.mrb[96].mxu1  ;;  %v15141_v18 = vpop.permute.xlu1 %15140  ;;  %v15179_v5 = vsel %vm257_vm1, %v15153_v8, 0 }
 0x431   : > { %v21749_v0 = vadd.f32 %v11938_v41, %v21681_v57  ;;  %v11940_v19 = vpop.f32.mrb[97].mxu1  ;;  %v15154_v25 = vsel %vm15146_vm4, %v15139_v49, %v15141_v18 }
 0x432   : > { %v21754_v1 = vadd.f32 %v11940_v19, %v21687_v4  ;;  %v15143_v59 = vpop.permute.xlu0 %15142  ;;  %17034 = vmatmul.mubr.msk.bf16.vlgmr.msra.gmra.mrb[196].mxu1 %vm253_vm2, %v21720_v20  ;;  %17035 = vmatprep.subr.msk.bf16.mxu0 %vm257_vm1, %v15154_v25  ;;  %v11942_v63 = vpop.f32.mrb[98].mxu1 }
 0x433   : > { %v15155_v16 = vsel %vm15146_vm4, %v15141_v18, %v15143_v59  ;;  %v11979_v7 = vpop.f32.mrb[100].mxu0  ;;  %15314 = vmatpush1.bf16.msra.mxu0 %v15179_v5  ;;  %v11943_v57 = vpop.f32.mrb[99].mxu1  ;;  %15386 = vmatprep.mubr.bf16.mxu1 %v17187_v12 }
 0x434   : > { %v21762_v15 = vadd.f32 %v11979_v7, %v21697_v31  ;;  %v11981_v32 = vpop.f32.mrb[101].mxu0  ;;  %v15145_v4 = vpop.permute.xlu1 %15144  ;;  %v15185_v9 = vsel %vm257_vm1, %v15155_v16, 0 }
 0x435   : > { %v21765_v29 = vadd.f32 %v11981_v32, %v21701_v61  ;;  %v15156_v54 = vsel %vm15146_vm4, %v15143_v59, %v15145_v4  ;;  %v11983_v2 = vpop.f32.mrb[102].mxu0 }
 0x436   : > { %v15464_v46 = vpop.permute.xlu0 %15463  ;;  %17036 = vmatmul.mubr.msk.bf16.vlgmr.msra.gmra.mrb[200].mxu0 %vm253_vm2, %v21720_v20  ;;  %17037 = vmatprep.subr.msk.bf16.mxu1 %vm257_vm1, %v15156_v54  ;;  %v11984_v21 = vpop.f32.mrb[103].mxu0 }
 0x437   : > { %15355 = vmatpush1.bf16.msra.mxu1 %v15185_v9  ;;  %15561 = vmatprep.mubr.bf16.mxu0 %v17187_v12 }
 0x438   : > { %v12020_v37 = vpop.f32.mrb[100].mxu1  ;;  %v15466_v31 = vpop.permute.xlu1 %15465 }
 0x439   : > { %v21774_v28 = vadd.f32 %v12020_v37, %v21705_v50  ;;  %v12022_v61 = vpop.f32.mrb[101].mxu1  ;;  %v15486_v13 = vsel %vm15485_vm5, %v15464_v46, %v15466_v31 }
 0x43a   : > { %v21778_v45 = vadd.f32 %v12022_v61, %v21710_v52  ;;  %v15468_v60 = vpop.permute.xlu0 %15467  ;;  %17038 = vmatmul.mubr.msk.bf16.vlgmr.msra.gmra.mrb[200].mxu1 %vm253_vm2, %v21720_v20  ;;  %v12024_v43 = vpop.f32.mrb[102].mxu1  ;;  %v15500_v50 = vsel %vm257_vm1, %v15486_v13, 0 }
 0x43b   : > { %v15487_v48 = vsel %vm15485_vm5, %v15466_v31, %v15468_v60  ;;  %v12184_v26 = vpop.f32.mrb[104].mxu0  ;;  %v12025_v42 = vpop.f32.mrb[103].mxu1  ;;  %15602 = vmatprep.mubr.bf16.mxu1 %v17187_v12 }
 0x43c   : > { %v21786_v55 = vadd.f32 %v12184_v26, %v21723_v39  ;;  %v12186_v35 = vpop.f32.mrb[105].mxu0  ;;  %17040 = vmatprep.subr.msk.bf16.mxu0 %vm257_vm1, %v15487_v48  ;;  %v15470_v52 = vpop.permute.xlu1 %15469 }
 0x43d   : > { %v21790_v17 = vadd.f32 %v12186_v35, %v21728_v58  ;;  %v15488_v22 = vsel %vm15485_vm5, %v15468_v60, %v15470_v52  ;;  %15530 = vmatpush1.bf16.msra.mxu0 %v15500_v50  ;;  %v12188_v10 = vpop.f32.mrb[106].mxu0 }
 0x43e   : > { %v15472_v20 = vpop.permute.xlu0 %15471  ;;  %v12189_v56 = vpop.f32.mrb[107].mxu0  ;;  %v15506_v39 = vsel %vm257_vm1, %v15488_v22, 0  ;;  %v21869_v22 = vld [vmem:[%s21999_s1 + $0xbc] sm:$0xf] }
 0x43f   : > { %v15489_v14 = vsel %vm15485_vm5, %v15470_v52, %v15472_v20 }
 0x440   : > { %v12225_v38 = vpop.f32.mrb[104].mxu1  ;;  %17041 = vmatmul.mubr.msk.bf16.vlgmr.msra.gmra.mrb[204].mxu0 %vm253_vm2, %v21796_v24  ;;  %17042 = vmatprep.subr.msk.bf16.mxu1 %vm257_vm1, %v15489_v14  ;;  %v15474_v27 = vpop.permute.xlu1 %15473 }
 0x441   : > { %v21804_v44 = vadd.f32 %v12225_v38, %v21736_v34  ;;  %v12227_v58 = vpop.f32.mrb[105].mxu1  ;;  %v15490_v47 = vsel %vm15485_vm5, %v15472_v20, %v15474_v27  ;;  %15571 = vmatpush1.bf16.msra.mxu1 %v15506_v39  ;;  %15643 = vmatprep.mubr.bf16.mxu0 %v17187_v12 }
 0x442   : > { %v21809_v23 = vadd.f32 %v12227_v58, %v21739_v40  ;;  %v15476_v11 = vpop.permute.xlu0 %15475  ;;  %v12229_v6 = vpop.f32.mrb[106].mxu1  ;;  %v15512_v30 = vsel %vm257_vm1, %v15490_v47, 0 }
 0x443   : > { %v15491_v53 = vsel %vm15485_vm5, %v15474_v27, %v15476_v11  ;;  %v12266_v62 = vpop.f32.mrb[108].mxu0  ;;  %v12230_v34 = vpop.f32.mrb[107].mxu1 }
 0x444   : > { %v21817_v36 = vadd.f32 %v12266_v62, %v21749_v0  ;;  %v12268_v33 = vpop.f32.mrb[109].mxu0  ;;  %17043 = vmatmul.mubr.msk.bf16.vlgmr.msra.gmra.mrb[204].mxu1 %vm253_vm2, %v21796_v24  ;;  %17044 = vmatprep.subr.msk.bf16.mxu0 %vm257_vm1, %v15491_v53  ;;  %v15478_v40 = vpop.permute.xlu1 %15477 }
 0x445   : > { %v21823_v49 = vadd.f32 %v12268_v33, %v21754_v1  ;;  %v15492_v51 = vsel %vm15485_vm5, %v15476_v11, %v15478_v40  ;;  %15612 = vmatpush1.bf16.msra.mxu0 %v15512_v30  ;;  %v12270_v8 = vpop.f32.mrb[110].mxu0  ;;  %15684 = vmatprep.mubr.bf16.mxu1 %v17187_v12 }
 0x446   : > { %v15480_v41 = vpop.permute.xlu0 %15479  ;;  %v12271_v18 = vpop.f32.mrb[111].mxu0  ;;  %v15518_v19 = vsel %vm257_vm1, %v15492_v51, 0 }
 0x447   : > { %v15493_v0 = vsel %vm15485_vm5, %v15478_v40, %v15480_v41 }
 0x448   : > { %v12307_v25 = vpop.f32.mrb[108].mxu1  ;;  %17045 = vmatmul.mubr.msk.bf16.vlgmr.msra.gmra.mrb[208].mxu0 %vm253_vm2, %v21796_v24  ;;  %17046 = vmatprep.subr.msk.bf16.mxu1 %vm257_vm1, %v15493_v0  ;;  %v15482_v5 = vpop.permute.xlu1 %15481 }
 0x449   : > { %v21833_v1 = vadd.f32 %v12307_v25, %v21762_v15  ;;  %v12309_v59 = vpop.f32.mrb[109].mxu1  ;;  %v15494_v63 = vsel %vm15485_vm5, %v15480_v41, %v15482_v5  ;;  %15653 = vmatpush1.bf16.msra.mxu1 %v15518_v19  ;;  %15725 = vmatprep.mubr.bf16.mxu0 %v17187_v12 }
 0x44a   : > { %v21838_v16 = vadd.f32 %v12309_v59, %v21765_v29  ;;  %v15484_v7 = vpop.permute.xlu0 %15483  ;;  %v12311_v57 = vpop.f32.mrb[110].mxu1  ;;  %v15524_v2 = vsel %vm257_vm1, %v15494_v63, 0 }
 0x44b   : > { %v15495_v32 = vsel %vm15485_vm5, %v15482_v5, %v15484_v7  ;;  %v12348_v4 = vpop.f32.mrb[112].mxu0  ;;  %v12312_v54 = vpop.f32.mrb[111].mxu1 }
 0x44c   : > { %v21843_v15 = vadd.f32 %v12348_v4, %v21774_v28  ;;  %v12350_v9 = vpop.f32.mrb[113].mxu0  ;;  %17047 = vmatmul.mubr.msk.bf16.vlgmr.msra.gmra.mrb[208].mxu1 %vm253_vm2, %v21796_v24  ;;  %17048 = vmatprep.subr.msk.bf16.mxu0 %vm257_vm1, %v15495_v32  ;;  %v15803_v46 = vpop.permute.xlu1 %15802 }
 0x44d   : > { %v21849_v29 = vadd.f32 %v12350_v9, %v21778_v45  ;;  %15694 = vmatpush1.bf16.msra.mxu0 %v15524_v2  ;;  %v12352_v21 = vpop.f32.mrb[114].mxu0  ;;  %15900 = vmatprep.mubr.bf16.mxu1 %v17187_v12 }
 0x44e   : > { %v15805_v37 = vpop.permute.xlu0 %15804  ;;  %v12353_v31 = vpop.f32.mrb[115].mxu0 }
 0x44f   : > { %v15825_v28 = vsel %vm15824_vm6, %v15803_v46, %v15805_v37 }
 0x450   : > { %v12512_v61 = vpop.f32.mrb[112].mxu1  ;;  %17049 = vmatmul.mubr.msk.bf16.vlgmr.msra.gmra.mrb[212].mxu0 %vm253_vm2, %v21796_v24  ;;  %v15807_v13 = vpop.permute.xlu1 %15806  ;;  %v15839_v48 = vsel %vm257_vm1, %v15825_v28, 0 }
 0x451   : > { %v21856_v60 = vadd.f32 %v12512_v61, %v21786_v55  ;;  %v12514_v43 = vpop.f32.mrb[113].mxu1  ;;  %v15826_v45 = vsel %vm15824_vm6, %v15805_v37, %v15807_v13  ;;  %15941 = vmatprep.mubr.bf16.mxu0 %v17187_v12 }
 0x452   : > { %v21862_v26 = vadd.f32 %v12514_v43, %v21790_v17  ;;  %v15809_v42 = vpop.permute.xlu0 %15808  ;;  %17051 = vmatprep.subr.msk.bf16.mxu1 %vm257_vm1, %v15826_v45  ;;  %v12516_v50 = vpop.f32.mrb[114].mxu1 }
 0x453   : > { %v15827_v35 = vsel %vm15824_vm6, %v15807_v13, %v15809_v42  ;;  %v12553_v52 = vpop.f32.mrb[116].mxu0  ;;  %15869 = vmatpush1.bf16.msra.mxu1 %v15839_v48  ;;  %v12517_v55 = vpop.f32.mrb[115].mxu1  ;;  %v17061_v50 = vld [vmem:[%s21999_s1 + $0xc0] sm:$0xf] }
 0x454   : > { %v21872_v24 = vadd.f32 %v12553_v52, %v21804_v44  ;;  %v12555_v10 = vpop.f32.mrb[117].mxu0  ;;  %v15811_v17 = vpop.permute.xlu1 %15810  ;;  %v15845_v39 = vsel %vm257_vm1, %v15827_v35, 0 }
 0x455   : > { %v21875_v20 = vadd.f32 %v12555_v10, %v21809_v23  ;;  %v15828_v56 = vsel %vm15824_vm6, %v15809_v42, %v15811_v17  ;;  %v12557_v14 = vpop.f32.mrb[118].mxu0 }
 0x456   : > { %v15813_v38 = vpop.permute.xlu0 %15812  ;;  %17052 = vmatmul.mubr.msk.bf16.vlgmr.msra.gmra.mrb[212].mxu1 %vm253_vm2, %v21869_v22  ;;  %17053 = vmatprep.subr.msk.bf16.mxu0 %vm257_vm1, %v15828_v56  ;;  %v12558_v27 = vpop.f32.mrb[119].mxu0 }
 0x457   : > { %v15829_v44 = vsel %vm15824_vm6, %v15811_v17, %v15813_v38  ;;  %15910 = vmatpush1.bf16.msra.mxu0 %v15845_v39  ;;  %15982 = vmatprep.mubr.bf16.mxu1 %v17187_v12 }
 0x458   : > { %v12594_v58 = vpop.f32.mrb[116].mxu1  ;;  %v15815_v47 = vpop.permute.xlu1 %15814  ;;  %v15851_v3 = vsel %vm257_vm1, %v15829_v44, 0 }
 0x459   : > { %v21885_v23 = vadd.f32 %v12594_v58, %v21817_v36  ;;  %v12596_v11 = vpop.f32.mrb[117].mxu1  ;;  %v15830_v6 = vsel %vm15824_vm6, %v15813_v38, %v15815_v47 }
 0x45a   : > { %v21890_v53 = vadd.f32 %v12596_v11, %v21823_v49  ;;  %v15817_v62 = vpop.permute.xlu0 %15816  ;;  %17054 = vmatmul.mubr.msk.bf16.vlgmr.msra.gmra.mrb[216].mxu0 %vm253_vm2, %v21869_v22  ;;  %17055 = vmatprep.subr.msk.bf16.mxu1 %vm257_vm1, %v15830_v6  ;;  %v12598_v34 = vpop.f32.mrb[118].mxu1 }
 0x45b   : > { %v15831_v30 = vsel %vm15824_vm6, %v15815_v47, %v15817_v62  ;;  %v12635_v33 = vpop.f32.mrb[120].mxu0  ;;  %15951 = vmatpush1.bf16.msra.mxu1 %v15851_v3  ;;  %v12599_v36 = vpop.f32.mrb[119].mxu1  ;;  %16023 = vmatprep.mubr.bf16.mxu0 %v17187_v12 }
 0x45c   : > { %v21898_v40 = vadd.f32 %v12635_v33, %v21833_v1  ;;  %v12637_v51 = vpop.f32.mrb[121].mxu0  ;;  %v15819_v49 = vpop.permute.xlu1 %15818  ;;  %v15857_v0 = vsel %vm257_vm1, %v15831_v30, 0 }
 0x45d   : > { %v21901_v8 = vadd.f32 %v12637_v51, %v21838_v16  ;;  %v15832_v41 = vsel %vm15824_vm6, %v15817_v62, %v15819_v49  ;;  %v12639_v18 = vpop.f32.mrb[122].mxu0 }
 0x45e   : > { %v15821_v19 = vpop.permute.xlu0 %15820  ;;  %17056 = vmatmul.mubr.msk.bf16.vlgmr.msra.gmra.mrb[216].mxu1 %vm253_vm2, %v21869_v22  ;;  %17057 = vmatprep.subr.msk.bf16.mxu0 %vm257_vm1, %v15832_v41  ;;  %v12640_v25 = vpop.f32.mrb[123].mxu0 }
 0x45f   : > { %v15833_v5 = vsel %vm15824_vm6, %v15819_v49, %v15821_v19  ;;  %15992 = vmatpush1.bf16.msra.mxu0 %v15857_v0  ;;  %16064 = vmatprep.mubr.bf16.mxu1 %v17187_v12 }
 0x460   : > { %v12676_v1 = vpop.f32.mrb[120].mxu1  ;;  %v15823_v59 = vpop.permute.xlu1 %15822  ;;  %v15863_v57 = vsel %vm257_vm1, %v15833_v5, 0 }
 0x461   : > { %v21911_v63 = vadd.f32 %v12676_v1, %v21843_v15  ;;  %v12678_v16 = vpop.f32.mrb[121].mxu1  ;;  %v15834_v7 = vsel %vm15824_vm6, %v15821_v19, %v15823_v59 }
 0x462   : > { %v21916_v32 = vadd.f32 %v12678_v16, %v21849_v29  ;;  %v16142_v4 = vpop.permute.xlu0 %16141  ;;  %17058 = vmatmul.mubr.msk.bf16.vlgmr.msra.gmra.mrb[220].mxu0 %vm253_vm2, %v21869_v22  ;;  %17059 = vmatprep.subr.msk.bf16.mxu1 %vm257_vm1, %v15834_v7  ;;  %v12680_v54 = vpop.f32.mrb[122].mxu1 }
 0x463   : > { %v12851_v2 = vpop.f32.mrb[124].mxu0  ;;  %16033 = vmatpush1.bf16.msra.mxu1 %v15863_v57  ;;  %v12681_v15 = vpop.f32.mrb[123].mxu1  ;;  %16239 = vmatprep.mubr.bf16.mxu0 %v17187_v12 }
 0x464   : > { %v21923_v9 = vadd.f32 %v12851_v2, %v21856_v60  ;;  %v12853_v46 = vpop.f32.mrb[125].mxu0  ;;  %v16144_v21 = vpop.permute.xlu1 %16143 }
 0x465   : > { %v21926_v29 = vadd.f32 %v12853_v46, %v21862_v26  ;;  %v16164_v37 = vsel %vm16163_vm7, %v16142_v4, %v16144_v21  ;;  %v12855_v31 = vpop.f32.mrb[126].mxu0 }
 0x466   : > { %v16146_v28 = vpop.permute.xlu0 %16145  ;;  %17060 = vmatmul.mubr.msk.bf16.vlgmr.msra.gmra.mrb[220].mxu1 %vm253_vm2, %v21869_v22  ;;  %v12856_v61 = vpop.f32.mrb[127].mxu0  ;;  %v16178_v60 = vsel %vm257_vm1, %v16164_v37, 0 }
 0x467   : > { %v16165_v13 = vsel %vm16163_vm7, %v16144_v21, %v16146_v28  ;;  %16280 = vmatprep.mubr.bf16.mxu1 %v17187_v12 }
 0x468   : > { %v12892_v43 = vpop.f32.mrb[124].mxu1  ;;  %17062 = vmatprep.subr.msk.bf16.mxu0 %vm257_vm1, %v16165_v13  ;;  %v16148_v45 = vpop.permute.xlu1 %16147 }
 0x469   : > { %v21936_v48 = vadd.f32 %v12892_v43, %v21872_v24  ;;  %v12894_v26 = vpop.f32.mrb[125].mxu1  ;;  %v16166_v42 = vsel %vm16163_vm7, %v16146_v28, %v16148_v45  ;;  %16208 = vmatpush1.bf16.msra.mxu0 %v16178_v60 }
 0x46a   : > { %v21943_v35 = vadd.f32 %v12894_v26, %v21875_v20  ;;  %v16150_v52 = vpop.permute.xlu0 %16149  ;;  %v12896_v55 = vpop.f32.mrb[126].mxu1  ;;  %v16184_v24 = vsel %vm257_vm1, %v16166_v42, 0 }
 0x46b   : > { %v16167_v22 = vsel %vm16163_vm7, %v16148_v45, %v16150_v52  ;;  %v12933_v10 = vpop.f32.mrb[128].mxu0  ;;  %v12897_v17 = vpop.f32.mrb[127].mxu1 }
 0x46c   : > { %v13026_v56 = vadd.f32 %v12933_v10, %v21885_v23  ;;  %v12935_v14 = vpop.f32.mrb[129].mxu0  ;;  %17063 = vmatmul.mubr.msk.bf16.vlgmr.msra.gmra.mrb[224].mxu0 %vm253_vm2, %v17061_v50  ;;  %17064 = vmatprep.subr.msk.bf16.mxu1 %vm257_vm1, %v16167_v22  ;;  %v16152_v39 = vpop.permute.xlu1 %16151 }
 0x46d   : > { %v13027_v38 = vadd.f32 %v12935_v14, %v21890_v53  ;;  %v16168_v20 = vsel %vm16163_vm7, %v16150_v52, %v16152_v39  ;;  %16249 = vmatpush1.bf16.msra.mxu1 %v16184_v24  ;;  %v12937_v27 = vpop.f32.mrb[130].mxu0  ;;  %16321 = vmatprep.mubr.bf16.mxu0 %v17187_v12 }
 0x46e   : > { %v16154_v44 = vpop.permute.xlu0 %16153  ;;  %v12938_v58 = vpop.f32.mrb[131].mxu0  ;;  %v16190_v23 = vsel %vm257_vm1, %v16168_v20, 0 }
 0x46f   : > { %v16169_v47 = vsel %vm16163_vm7, %v16152_v39, %v16154_v44 }
 0x470   : > { %v12974_v11 = vpop.f32.mrb[128].mxu1  ;;  %17065 = vmatmul.mubr.msk.bf16.vlgmr.msra.gmra.mrb[224].mxu1 %vm253_vm2, %v17061_v50  ;;  %17066 = vmatprep.subr.msk.bf16.mxu0 %vm257_vm1, %v16169_v47  ;;  %v16156_v6 = vpop.permute.xlu1 %16155 }
 0x471   : > { %v13028_v3 = vadd.f32 %v12974_v11, %v21898_v40  ;;  %v12976_v53 = vpop.f32.mrb[129].mxu1  ;;  %v16170_v62 = vsel %vm16163_vm7, %v16154_v44, %v16156_v6  ;;  %16290 = vmatpush1.bf16.msra.mxu0 %v16190_v23  ;;  %16362 = vmatprep.mubr.bf16.mxu1 %v17187_v12 }
 0x472   : > { %v13029_v34 = vadd.f32 %v12976_v53, %v21901_v8  ;;  %v16158_v30 = vpop.permute.xlu0 %16157  ;;  %v12978_v33 = vpop.f32.mrb[130].mxu1  ;;  %v16196_v41 = vsel %vm257_vm1, %v16170_v62, 0 }
 0x473   : > { %v16171_v36 = vsel %vm16163_vm7, %v16156_v6, %v16158_v30  ;;  %v13015_v51 = vpop.f32.mrb[132].mxu0  ;;  %v12979_v49 = vpop.f32.mrb[131].mxu1 }
 0x474   : > { %v13030_v18 = vadd.f32 %v13015_v51, %v21911_v63  ;;  %v13017_v0 = vpop.f32.mrb[133].mxu0  ;;  %17067 = vmatmul.mubr.msk.bf16.vlgmr.msra.gmra.mrb[228].mxu0 %vm253_vm2, %v17061_v50  ;;  %17068 = vmatprep.subr.msk.bf16.mxu1 %vm257_vm1, %v16171_v36  ;;  %v16160_v40 = vpop.permute.xlu1 %16159 }
 0x475   : > { %v13031_v19 = vadd.f32 %v13017_v0, %v21916_v32  ;;  %v16172_v8 = vsel %vm16163_vm7, %v16158_v30, %v16160_v40  ;;  %16331 = vmatpush1.bf16.msra.mxu1 %v16196_v41  ;;  %v13019_v25 = vpop.f32.mrb[134].mxu0  ;;  %16403 = vmatprep.mubr.bf16.mxu0 %v17187_v12 }
 0x476   : > { %v16162_v5 = vpop.permute.xlu0 %16161  ;;  %v13020_v1 = vpop.f32.mrb[135].mxu0  ;;  %v16202_v63 = vsel %vm257_vm1, %v16172_v8, 0 }
 0x477   : > { %v16173_v59 = vsel %vm16163_vm7, %v16160_v40, %v16162_v5 }
 0x478   : > { %17069 = vmatmul.mubr.msk.bf16.vlgmr.msra.gmra.mrb[228].mxu1 %vm253_vm2, %v17061_v50  ;;  %17070 = vmatprep.subr.msk.bf16.mxu0 %vm257_vm1, %v16173_v59 }
 0x479   : > { %v13190_v16 = vpop.f32.mrb[132].mxu1  ;;  %16372 = vmatpush1.bf16.msra.mxu0 %v16202_v63 }
 0x47a   : > { %v13361_v7 = vadd.f32 %v13190_v16, %v21923_v9  ;;  %v13192_v57 = vpop.f32.mrb[133].mxu1 }
 0x47b   : > { %v13362_v32 = vadd.f32 %v13192_v57, %v21926_v29  ;;  %v13194_v4 = vpop.f32.mrb[134].mxu1 }
 0x47c   : > { %17071 = vmatmul.mubr.msk.bf16.vlgmr.msra.gmra.mrb[232].mxu0 %vm253_vm2, %v17061_v50  ;;  %v13195_v12 = vpop.f32.mrb[135].mxu1 }
 0x47e   : > { %v13231_v54 = vpop.f32.mrb[136].mxu0 }
 0x47f   : > { %v13363_v2 = vadd.f32 %v13231_v54, %v21936_v48  ;;  %v13233_v15 = vpop.f32.mrb[137].mxu0 }
 0x480   : > { %v13364_v46 = vadd.f32 %v13233_v15, %v21943_v35  ;;  %v13235_v21 = vpop.f32.mrb[138].mxu0 }
 0x481   : > { %v13272_v37 = vpop.f32.mrb[136].mxu1  ;;  %v13236_v31 = vpop.f32.mrb[139].mxu0 }
 0x482   : > { %v13365_v28 = vadd.f32 %v13272_v37, %v13026_v56  ;;  %v13274_v61 = vpop.f32.mrb[137].mxu1 }
 0x483   : > { %v13366_v13 = vadd.f32 %v13274_v61, %v13027_v38  ;;  %v13276_v9 = vpop.f32.mrb[138].mxu1 }
 0x484   : > { %v13277_v60 = vpop.f32.mrb[139].mxu1 }
 0x486   : > { %v13313_v43 = vpop.f32.mrb[140].mxu0 }
 0x487   : > { %v13367_v29 = vadd.f32 %v13313_v43, %v13028_v3  ;;  %v13315_v45 = vpop.f32.mrb[141].mxu0 }
 0x488   : > { %v13368_v26 = vadd.f32 %v13315_v45, %v13029_v34  ;;  %v13317_v42 = vpop.f32.mrb[142].mxu0 }
 0x489   : > { %v13354_v50 = vpop.f32.mrb[140].mxu1  ;;  %v13318_v52 = vpop.f32.mrb[143].mxu0 }
 0x48a   : > { %v13369_v55 = vadd.f32 %v13354_v50, %v13030_v18  ;;  %v13356_v48 = vpop.f32.mrb[141].mxu1 }
 0x48b   : > { %v13370_v22 = vadd.f32 %v13356_v48, %v13031_v19  ;;  %v13358_v10 = vpop.f32.mrb[142].mxu1 }
 0x48c   : > { %v13359_v35 = vpop.f32.mrb[143].mxu1 }
 0x48f   : > { %v13529_v17 = vpop.f32.mrb[144].mxu0 }
 0x490   : > { %v13700_v24 = vadd.f32 %v13529_v17, %v13361_v7  ;;  %v13531_v14 = vpop.f32.mrb[145].mxu0 }
 0x491   : > { %v13701_v56 = vadd.f32 %v13531_v14, %v13362_v32  ;;  %v13533_v39 = vpop.f32.mrb[146].mxu0 }
 0x492   : > { %v13534_v38 = vpop.f32.mrb[147].mxu0 }
 0x494   : > { %v13570_v20 = vpop.f32.mrb[144].mxu1 }
 0x495   : > { %v13702_v27 = vadd.f32 %v13570_v20, %v13363_v2  ;;  %v13572_v44 = vpop.f32.mrb[145].mxu1 }
 0x496   : > { %v13703_v58 = vadd.f32 %v13572_v44, %v13364_v46  ;;  %v13574_v47 = vpop.f32.mrb[146].mxu1 }
 0x497   : > { %v13611_v23 = vpop.f32.mrb[148].mxu0  ;;  %v13575_v11 = vpop.f32.mrb[147].mxu1 }
 0x498   : > { %v13704_v6 = vadd.f32 %v13611_v23, %v13365_v28  ;;  %v13613_v3 = vpop.f32.mrb[149].mxu0 }
 0x499   : > { %v13705_v53 = vadd.f32 %v13613_v3, %v13366_v13  ;;  %v13615_v62 = vpop.f32.mrb[150].mxu0 }
 0x49a   : > { %v13616_v34 = vpop.f32.mrb[151].mxu0 }
 0x49c   : > { %v13652_v30 = vpop.f32.mrb[148].mxu1 }
 0x49d   : > { %v13706_v33 = vadd.f32 %v13652_v30, %v13367_v29  ;;  %v13654_v36 = vpop.f32.mrb[149].mxu1 }
 0x49e   : > { %v13707_v51 = vadd.f32 %v13654_v36, %v13368_v26  ;;  %v13656_v49 = vpop.f32.mrb[150].mxu1 }
 0x49f   : > { %v13693_v41 = vpop.f32.mrb[152].mxu0  ;;  %v13657_v18 = vpop.f32.mrb[151].mxu1 }
 0x4a0   : > { %v13708_v0 = vadd.f32 %v13693_v41, %v13369_v55  ;;  %v13695_v40 = vpop.f32.mrb[153].mxu0 }
 0x4a1   : > { %v13709_v19 = vadd.f32 %v13695_v40, %v13370_v22  ;;  %v13697_v8 = vpop.f32.mrb[154].mxu0 }
 0x4a2   : > { %v13698_v25 = vpop.f32.mrb[155].mxu0 }
 0x4a5   : > { %v13868_v5 = vpop.f32.mrb[152].mxu1 }
 0x4a6   : > { %v14039_v1 = vadd.f32 %v13868_v5, %v13700_v24  ;;  %v13870_v59 = vpop.f32.mrb[153].mxu1 }
 0x4a7   : > { %v14040_v63 = vadd.f32 %v13870_v59, %v13701_v56  ;;  %v13872_v16 = vpop.f32.mrb[154].mxu1 }
 0x4a8   : > { %v13873_v7 = vpop.f32.mrb[155].mxu1 }
 0x4aa   : > { %v13909_v57 = vpop.f32.mrb[156].mxu0 }
 0x4ab   : > { %v14041_v32 = vadd.f32 %v13909_v57, %v13702_v27  ;;  %v13911_v4 = vpop.f32.mrb[157].mxu0 }
 0x4ac   : > { %v14042_v12 = vadd.f32 %v13911_v4, %v13703_v58  ;;  %v13913_v54 = vpop.f32.mrb[158].mxu0 }
 0x4ad   : > { %v13950_v2 = vpop.f32.mrb[156].mxu1  ;;  %v13914_v15 = vpop.f32.mrb[159].mxu0 }
 0x4ae   : > { %v14043_v46 = vadd.f32 %v13950_v2, %v13704_v6  ;;  %v13952_v21 = vpop.f32.mrb[157].mxu1 }
 0x4af   : > { %v14044_v37 = vadd.f32 %v13952_v21, %v13705_v53  ;;  %v13954_v31 = vpop.f32.mrb[158].mxu1 }
 0x4b0   : > { %v13955_v28 = vpop.f32.mrb[159].mxu1 }
 0x4b2   : > { %v13991_v61 = vpop.f32.mrb[160].mxu0 }
 0x4b3   : > { %v14045_v13 = vadd.f32 %v13991_v61, %v13706_v33  ;;  %v13993_v9 = vpop.f32.mrb[161].mxu0 }
 0x4b4   : > { %v14046_v60 = vadd.f32 %v13993_v9, %v13707_v51  ;;  %v13995_v43 = vpop.f32.mrb[162].mxu0 }
 0x4b5   : > { %v14032_v29 = vpop.f32.mrb[160].mxu1  ;;  %v13996_v45 = vpop.f32.mrb[163].mxu0 }
 0x4b6   : > { %v14047_v26 = vadd.f32 %v14032_v29, %v13708_v0  ;;  %v14034_v42 = vpop.f32.mrb[161].mxu1 }
 0x4b7   : > { %v14048_v50 = vadd.f32 %v14034_v42, %v13709_v19  ;;  %v14036_v52 = vpop.f32.mrb[162].mxu1 }
 0x4b8   : > { %v14037_v55 = vpop.f32.mrb[163].mxu1 }
 0x4bb   : > { %v14207_v48 = vpop.f32.mrb[164].mxu0 }
 0x4bc   : > { %v14378_v22 = vadd.f32 %v14207_v48, %v14039_v1  ;;  %v14209_v10 = vpop.f32.mrb[165].mxu0 }
 0x4bd   : > { %v14379_v35 = vadd.f32 %v14209_v10, %v14040_v63  ;;  %v14211_v17 = vpop.f32.mrb[166].mxu0 }
 0x4be   : > { %v14212_v24 = vpop.f32.mrb[167].mxu0 }
 0x4c0   : > { %v14248_v14 = vpop.f32.mrb[164].mxu1 }
 0x4c1   : > { %v14380_v56 = vadd.f32 %v14248_v14, %v14041_v32  ;;  %v14250_v39 = vpop.f32.mrb[165].mxu1 }
 0x4c2   : > { %v14381_v38 = vadd.f32 %v14250_v39, %v14042_v12  ;;  %v14252_v20 = vpop.f32.mrb[166].mxu1 }
 0x4c3   : > { %v14289_v27 = vpop.f32.mrb[168].mxu0  ;;  %v14253_v44 = vpop.f32.mrb[167].mxu1 }
 0x4c4   : > { %v14382_v58 = vadd.f32 %v14289_v27, %v14043_v46  ;;  %v14291_v47 = vpop.f32.mrb[169].mxu0 }
 0x4c5   : > { %v14383_v23 = vadd.f32 %v14291_v47, %v14044_v37  ;;  %v14293_v11 = vpop.f32.mrb[170].mxu0 }
 0x4c6   : > { %v14294_v6 = vpop.f32.mrb[171].mxu0 }
 0x4c8   : > { %v14330_v3 = vpop.f32.mrb[168].mxu1 }
 0x4c9   : > { %v14384_v53 = vadd.f32 %v14330_v3, %v14045_v13  ;;  %v14332_v62 = vpop.f32.mrb[169].mxu1 }
 0x4ca   : > { %v14385_v34 = vadd.f32 %v14332_v62, %v14046_v60  ;;  %v14334_v30 = vpop.f32.mrb[170].mxu1 }
 0x4cb   : > { %v14371_v33 = vpop.f32.mrb[172].mxu0  ;;  %v14335_v36 = vpop.f32.mrb[171].mxu1 }
 0x4cc   : > { %v14386_v51 = vadd.f32 %v14371_v33, %v14047_v26  ;;  %v14373_v49 = vpop.f32.mrb[173].mxu0 }
 0x4cd   : > { %v14387_v41 = vadd.f32 %v14373_v49, %v14048_v50  ;;  %v14375_v18 = vpop.f32.mrb[174].mxu0 }
 0x4ce   : > { %v14376_v0 = vpop.f32.mrb[175].mxu0 }
 0x4d1   : > { %v14546_v40 = vpop.f32.mrb[172].mxu1 }
 0x4d2   : > { %v14717_v19 = vadd.f32 %v14546_v40, %v14378_v22  ;;  %v14548_v8 = vpop.f32.mrb[173].mxu1 }
 0x4d3   : > { %v14718_v25 = vadd.f32 %v14548_v8, %v14379_v35  ;;  %v14550_v5 = vpop.f32.mrb[174].mxu1 }
 0x4d4   : > { %v14551_v1 = vpop.f32.mrb[175].mxu1 }
 0x4d6   : > { %v14587_v59 = vpop.f32.mrb[176].mxu0 }
 0x4d7   : > { %v14719_v63 = vadd.f32 %v14587_v59, %v14380_v56  ;;  %v14589_v16 = vpop.f32.mrb[177].mxu0 }
 0x4d8   : > { %v14720_v7 = vadd.f32 %v14589_v16, %v14381_v38  ;;  %v14591_v57 = vpop.f32.mrb[178].mxu0 }
 0x4d9   : > { %v14628_v32 = vpop.f32.mrb[176].mxu1  ;;  %v14592_v4 = vpop.f32.mrb[179].mxu0 }
 0x4da   : > { %v14721_v12 = vadd.f32 %v14628_v32, %v14382_v58  ;;  %v14630_v54 = vpop.f32.mrb[177].mxu1 }
 0x4db   : > { %v14722_v2 = vadd.f32 %v14630_v54, %v14383_v23  ;;  %v14632_v15 = vpop.f32.mrb[178].mxu1 }
 0x4dc   : > { %v14633_v46 = vpop.f32.mrb[179].mxu1 }
 0x4de   : > { %v14669_v21 = vpop.f32.mrb[180].mxu0 }
 0x4df   : > { %v14723_v37 = vadd.f32 %v14669_v21, %v14384_v53  ;;  %v14671_v31 = vpop.f32.mrb[181].mxu0 }
 0x4e0   : > { %v14724_v28 = vadd.f32 %v14671_v31, %v14385_v34  ;;  %v14673_v61 = vpop.f32.mrb[182].mxu0 }
 0x4e1   : > { %v14710_v13 = vpop.f32.mrb[180].mxu1  ;;  %v14674_v9 = vpop.f32.mrb[183].mxu0 }
 0x4e2   : > { %v14725_v60 = vadd.f32 %v14710_v13, %v14386_v51  ;;  %v14712_v43 = vpop.f32.mrb[181].mxu1 }
 0x4e3   : > { %v14726_v29 = vadd.f32 %v14712_v43, %v14387_v41  ;;  %v14714_v45 = vpop.f32.mrb[182].mxu1 }
 0x4e4   : > { %v14715_v26 = vpop.f32.mrb[183].mxu1 }
 0x4e7   : > { %v14885_v42 = vpop.f32.mrb[184].mxu0 }
 0x4e8   : > { %v15056_v50 = vadd.f32 %v14885_v42, %v14717_v19  ;;  %v14887_v52 = vpop.f32.mrb[185].mxu0 }
 0x4e9   : > { %v15057_v55 = vadd.f32 %v14887_v52, %v14718_v25  ;;  %v14889_v48 = vpop.f32.mrb[186].mxu0 }
 0x4ea   : > { %v14890_v22 = vpop.f32.mrb[187].mxu0 }
 0x4eb   : > { %v14926_v10 = vpop.f32.mrb[184].mxu1 }
 0x4ec   : > { %v15058_v35 = vadd.f32 %v14926_v10, %v14719_v63  ;;  %v14928_v17 = vpop.f32.mrb[185].mxu1 }
 0x4ed   : > { %v15059_v24 = vadd.f32 %v14928_v17, %v14720_v7  ;;  %v14930_v14 = vpop.f32.mrb[186].mxu1 }
 0x4ee   : > { %v14931_v56 = vpop.f32.mrb[187].mxu1 }
 0x4ef   : > { %v14967_v39 = vpop.f32.mrb[188].mxu0 }
 0x4f0   : > { %v15060_v38 = vadd.f32 %v14967_v39, %v14721_v12  ;;  %v14969_v20 = vpop.f32.mrb[189].mxu0 }
 0x4f1   : > { %v15061_v27 = vadd.f32 %v14969_v20, %v14722_v2  ;;  %v14971_v44 = vpop.f32.mrb[190].mxu0 }
 0x4f2   : > { %v14972_v58 = vpop.f32.mrb[191].mxu0 }
 0x4f3   : > { %v15008_v47 = vpop.f32.mrb[188].mxu1 }
 0x4f4   : > { %v15062_v23 = vadd.f32 %v15008_v47, %v14723_v37  ;;  %v15010_v11 = vpop.f32.mrb[189].mxu1 }
 0x4f5   : > { %v15063_v6 = vadd.f32 %v15010_v11, %v14724_v28  ;;  %v15012_v3 = vpop.f32.mrb[190].mxu1 }
 0x4f6   : > { %v15013_v53 = vpop.f32.mrb[191].mxu1 }
 0x4f7   : > { %v15049_v62 = vpop.f32.mrb[192].mxu0 }
 0x4f8   : > { %v15064_v34 = vadd.f32 %v15049_v62, %v14725_v60  ;;  %v15051_v30 = vpop.f32.mrb[193].mxu0 }
 0x4f9   : > { %v15065_v33 = vadd.f32 %v15051_v30, %v14726_v29  ;;  %v15053_v36 = vpop.f32.mrb[194].mxu0 }
 0x4fa   : > { %v15054_v51 = vpop.f32.mrb[195].mxu0 }
 0x4fd   : > { %v15224_v49 = vpop.f32.mrb[192].mxu1 }
 0x4fe   : > { %v15395_v41 = vadd.f32 %v15224_v49, %v15056_v50  ;;  %v15226_v18 = vpop.f32.mrb[193].mxu1 }
 0x4ff   : > { %v15396_v0 = vadd.f32 %v15226_v18, %v15057_v55  ;;  %v15228_v40 = vpop.f32.mrb[194].mxu1 }
 0x500   : > { %v15229_v19 = vpop.f32.mrb[195].mxu1 }
 0x501   : > { %v15265_v8 = vpop.f32.mrb[196].mxu0 }
 0x502   : > { %v15397_v25 = vadd.f32 %v15265_v8, %v15058_v35  ;;  %v15267_v5 = vpop.f32.mrb[197].mxu0 }
 0x503   : > { %v15398_v1 = vadd.f32 %v15267_v5, %v15059_v24  ;;  %v15269_v59 = vpop.f32.mrb[198].mxu0 }
 0x504   : > { %v15270_v63 = vpop.f32.mrb[199].mxu0 }
 0x505   : > { %v15306_v16 = vpop.f32.mrb[196].mxu1 }
 0x506   : > { %v15399_v7 = vadd.f32 %v15306_v16, %v15060_v38  ;;  %v15308_v57 = vpop.f32.mrb[197].mxu1 }
 0x507   : > { %v15400_v32 = vadd.f32 %v15308_v57, %v15061_v27  ;;  %v15310_v4 = vpop.f32.mrb[198].mxu1 }
 0x508   : > { %v15311_v12 = vpop.f32.mrb[199].mxu1 }
 0x509   : > { %v15347_v54 = vpop.f32.mrb[200].mxu0 }
 0x50a   : > { %v15401_v2 = vadd.f32 %v15347_v54, %v15062_v23  ;;  %v15349_v15 = vpop.f32.mrb[201].mxu0 }
 0x50b   : > { %v15402_v46 = vadd.f32 %v15349_v15, %v15063_v6  ;;  %v15351_v21 = vpop.f32.mrb[202].mxu0 }
 0x50c   : > { %v15352_v37 = vpop.f32.mrb[203].mxu0 }
 0x50d   : > { %v15388_v31 = vpop.f32.mrb[200].mxu1 }
 0x50e   : > { %v15403_v28 = vadd.f32 %v15388_v31, %v15064_v34  ;;  %v15390_v61 = vpop.f32.mrb[201].mxu1 }
 0x50f   : > { %v15404_v13 = vadd.f32 %v15390_v61, %v15065_v33  ;;  %v15392_v9 = vpop.f32.mrb[202].mxu1 }
 0x510   : > { %v15393_v60 = vpop.f32.mrb[203].mxu1 }
 0x513   : > { %v15563_v43 = vpop.f32.mrb[204].mxu0 }
 0x514   : > { %v15734_v29 = vadd.f32 %v15563_v43, %v15395_v41  ;;  %v15565_v45 = vpop.f32.mrb[205].mxu0 }
 0x515   : > { %v15735_v26 = vadd.f32 %v15565_v45, %v15396_v0  ;;  %v15567_v42 = vpop.f32.mrb[206].mxu0 }
 0x516   : > { %v15568_v50 = vpop.f32.mrb[207].mxu0 }
 0x517   : > { %v15604_v52 = vpop.f32.mrb[204].mxu1 }
 0x518   : > { %v15736_v55 = vadd.f32 %v15604_v52, %v15397_v25  ;;  %v15606_v48 = vpop.f32.mrb[205].mxu1 }
 0x519   : > { %v15737_v22 = vadd.f32 %v15606_v48, %v15398_v1  ;;  %v15608_v10 = vpop.f32.mrb[206].mxu1 }
 0x51a   : > { %v15609_v35 = vpop.f32.mrb[207].mxu1 }
 0x51b   : > { %v15645_v17 = vpop.f32.mrb[208].mxu0 }
 0x51c   : > { %v15738_v24 = vadd.f32 %v15645_v17, %v15399_v7  ;;  %v15647_v14 = vpop.f32.mrb[209].mxu0 }
 0x51d   : > { %v15739_v56 = vadd.f32 %v15647_v14, %v15400_v32  ;;  %v15649_v39 = vpop.f32.mrb[210].mxu0 }
 0x51e   : > { %v15650_v38 = vpop.f32.mrb[211].mxu0 }
 0x51f   : > { %v15686_v20 = vpop.f32.mrb[208].mxu1 }
 0x520   : > { %v15740_v27 = vadd.f32 %v15686_v20, %v15401_v2  ;;  %v15688_v44 = vpop.f32.mrb[209].mxu1 }
 0x521   : > { %v15741_v58 = vadd.f32 %v15688_v44, %v15402_v46  ;;  %v15690_v47 = vpop.f32.mrb[210].mxu1 }
 0x522   : > { %v15691_v23 = vpop.f32.mrb[211].mxu1 }
 0x523   : > { %v15727_v11 = vpop.f32.mrb[212].mxu0 }
 0x524   : > { %v15742_v6 = vadd.f32 %v15727_v11, %v15403_v28  ;;  %v15729_v3 = vpop.f32.mrb[213].mxu0 }
 0x525   : > { %v15743_v53 = vadd.f32 %v15729_v3, %v15404_v13  ;;  %v15731_v62 = vpop.f32.mrb[214].mxu0  ;;  %v16426_v13 = vpop.permute.xlu1 %16425 }
 0x526   : > { %v15732_v34 = vpop.f32.mrb[215].mxu0 }
 0x529   : > { %v15902_v30 = vpop.f32.mrb[212].mxu1 }
 0x52a   : > { %v16073_v33 = vadd.f32 %v15902_v30, %v15734_v29  ;;  %v15904_v36 = vpop.f32.mrb[213].mxu1 }
 0x52b   : > { %v16074_v51 = vadd.f32 %v15904_v36, %v15735_v26  ;;  %v15906_v49 = vpop.f32.mrb[214].mxu1 }
 0x52c   : > { %v15907_v41 = vpop.f32.mrb[215].mxu1 }
 0x52d   : > { %v15943_v18 = vpop.f32.mrb[216].mxu0 }
 0x52e   : > { %v16075_v0 = vadd.f32 %v15943_v18, %v15736_v55  ;;  %v15945_v40 = vpop.f32.mrb[217].mxu0 }
 0x52f   : > { %v16076_v19 = vadd.f32 %v15945_v40, %v15737_v22  ;;  %v15947_v8 = vpop.f32.mrb[218].mxu0 }
 0x530   : > { %v15948_v25 = vpop.f32.mrb[219].mxu0 }
 0x531   : > { %v15984_v5 = vpop.f32.mrb[216].mxu1 }
 0x532   : > { %v16077_v1 = vadd.f32 %v15984_v5, %v15738_v24  ;;  %v15986_v59 = vpop.f32.mrb[217].mxu1 }
 0x533   : > { %v16078_v63 = vadd.f32 %v15986_v59, %v15739_v56  ;;  %v15988_v16 = vpop.f32.mrb[218].mxu1 }
 0x534   : > { %v15989_v7 = vpop.f32.mrb[219].mxu1 }
 0x535   : > { %v16025_v57 = vpop.f32.mrb[220].mxu0 }
 0x536   : > { %v16079_v32 = vadd.f32 %v16025_v57, %v15740_v27  ;;  %v16027_v4 = vpop.f32.mrb[221].mxu0 }
 0x537   : > { %v16080_v12 = vadd.f32 %v16027_v4, %v15741_v58  ;;  %v16029_v54 = vpop.f32.mrb[222].mxu0 }
 0x538   : > { %v16030_v2 = vpop.f32.mrb[223].mxu0 }
 0x539   : > { %v16066_v15 = vpop.f32.mrb[220].mxu1 }
 0x53a   : > { %v16081_v46 = vadd.f32 %v16066_v15, %v15742_v6  ;;  %v16068_v21 = vpop.f32.mrb[221].mxu1 }
 0x53b   : > { %v16082_v37 = vadd.f32 %v16068_v21, %v15743_v53  ;;  %v16070_v31 = vpop.f32.mrb[222].mxu1 }
 0x53c   : > { %v16071_v28 = vpop.f32.mrb[223].mxu1 }
 0x53f   : > { %v16241_v61 = vpop.f32.mrb[224].mxu0 }
 0x540   : > { %v16412_v9 = vadd.f32 %v16241_v61, %v16073_v33  ;;  %v16243_v60 = vpop.f32.mrb[225].mxu0 }
 0x541   : > { %v16413_v43 = vadd.f32 %v16243_v60, %v16074_v51  ;;  %v16245_v29 = vpop.f32.mrb[226].mxu0 }
 0x542   : > { %v16428_v45 = vadd.f32 %v16426_v13, %v16412_v9  ;;  %v16246_v26 = vpop.f32.mrb[227].mxu0 }
 0x543   : > { %v16429_v42 = vadd.f32 %v16426_v13, %v16413_v43  ;;  %v16282_v50 = vpop.f32.mrb[224].mxu1 }
 0x544   : > { %16438 = vst [vmem:[%s21982_s24] sm:$0xff] %v16428_v45  ;;  %v16414_v52 = vadd.f32 %v16282_v50, %v16075_v0  ;;  %v16284_v55 = vpop.f32.mrb[225].mxu1 }
 0x545   : > { %16439 = vst [vmem:[%s21982_s24 + $0x8] sm:$0xff] %v16429_v42  ;;  %v16415_v48 = vadd.f32 %v16284_v55, %v16076_v19  ;;  %v16286_v22 = vpop.f32.mrb[226].mxu1 }
 0x546   : > { %v16430_v10 = vadd.f32 %v16426_v13, %v16414_v52  ;;  %v16287_v35 = vpop.f32.mrb[227].mxu1 }
 0x547   : > { %v16431_v17 = vadd.f32 %v16426_v13, %v16415_v48  ;;  %v16323_v24 = vpop.f32.mrb[228].mxu0 }
 0x548   : > { %16440 = vst [vmem:[%s21982_s24 + $0x10] sm:$0xff] %v16430_v10  ;;  %v16416_v14 = vadd.f32 %v16323_v24, %v16077_v1  ;;  %v16325_v56 = vpop.f32.mrb[229].mxu0 }
 0x549   : > { %16441 = vst [vmem:[%s21982_s24 + $0x18] sm:$0xff] %v16431_v17  ;;  %v16417_v39 = vadd.f32 %v16325_v56, %v16078_v63  ;;  %v16327_v38 = vpop.f32.mrb[230].mxu0 }
 0x54a   : > { %v16432_v20 = vadd.f32 %v16426_v13, %v16416_v14  ;;  %v16328_v27 = vpop.f32.mrb[231].mxu0 }
 0x54b   : > { %v16433_v44 = vadd.f32 %v16426_v13, %v16417_v39  ;;  %v16364_v58 = vpop.f32.mrb[228].mxu1 }
 0x54c   : > { %16442 = vst [vmem:[%s21982_s24 + $0x20] sm:$0xff] %v16432_v20  ;;  %v16418_v47 = vadd.f32 %v16364_v58, %v16079_v32  ;;  %v16366_v23 = vpop.f32.mrb[229].mxu1 }
 0x54d   : > { %16443 = vst [vmem:[%s21982_s24 + $0x28] sm:$0xff] %v16433_v44  ;;  %v16419_v11 = vadd.f32 %v16366_v23, %v16080_v12  ;;  %v16368_v6 = vpop.f32.mrb[230].mxu1 }
 0x54e   : > { %v16434_v3 = vadd.f32 %v16426_v13, %v16418_v47  ;;  %v16369_v53 = vpop.f32.mrb[231].mxu1 }
 0x54f   : > { %v16435_v62 = vadd.f32 %v16426_v13, %v16419_v11  ;;  %v16405_v34 = vpop.f32.mrb[232].mxu0 }
 0x550   : > { %16444 = vst [vmem:[%s21982_s24 + $0x30] sm:$0xff] %v16434_v3  ;;  %v16420_v30 = vadd.f32 %v16405_v34, %v16081_v46  ;;  %v16407_v33 = vpop.f32.mrb[233].mxu0 }
 0x551   : > { %16445 = vst [vmem:[%s21982_s24 + $0x38] sm:$0xff] %v16435_v62  ;;  %v16421_v36 = vadd.f32 %v16407_v33, %v16082_v37  ;;  %v16409_v51 = vpop.f32.mrb[234].mxu0 }
 0x552   : > { %v16436_v49 = vadd.f32 %v16426_v13, %v16420_v30  ;;  %v16410_v41 = vpop.f32.mrb[235].mxu0 }
 0x553   : > { %v16437_v18 = vadd.f32 %v16426_v13, %v16421_v36 }
 0x554   : > { %16446 = vst [vmem:[%s21982_s24 + $0x40] sm:$0xff] %v16436_v49 }
 0x555   : > { %16448 = vst.msk [vmem:[%s21982_s24 + $0x48] sm:$0xff] %vm12435_vm10, %v16437_v18 }
 0x556 PF: > { %s13_s12 = sadd.s32 1, %s17183_s12  }
 0x557   : > { %p10_p4 = scmp.ge.s32.totalorder %s13_s12, 4  }
 0x559   :  { %12 = sbr.rel (!%p10_p4) target bundleno = 1 (0x1), region = 110 }

</bundles_post_ra>
